<compile_context>
chip_gen: v7x
topology: tpu7x:2x2x1
jax: 0.10.0
libtpu: 0.0.40
codegen_flags: <defaults>
</compile_context>

<pallas_src>
import functools
import math

import jax
import jax.numpy as jnp
from jax import lax
from jax.experimental import pallas as pl
from jax.experimental.pallas import tpu as pltpu  # noqa: F401  (TPU backend assumed)

# ------------------------- config (synthetic, small) -------------------------
HIDDEN_SIZE = 32
MULTI_HEAD = 4
HIDDEN_SIZE_HEAD = HIDDEN_SIZE // MULTI_HEAD   # 8
FF_SIZE = 64
DROPOUT_R = 0.0          # dropout == identity
LN_EPS = 1e-6
NEG_INF = -1e9           # torch masked_fill(-1000000000.0)


# --------------------------- in-kernel helper math ----------------------------
def _dot(a, b):
    return jnp.dot(a, b, preferred_element_type=jnp.float32)


def _dot_nt(a, b):
    # a @ b.T without materializing the transpose: contract last dims on MXU.
    return lax.dot_general(a, b, (((1,), (1,)), ((), ())),
                           preferred_element_type=jnp.float32)


def _softmax_lastdim(s):
    s = s - jnp.max(s, axis=-1, keepdims=True)
    p = jnp.exp(s)
    return p * pl.reciprocal(jnp.sum(p, axis=-1, keepdims=True), approx=True)


def _layernorm(s, gamma, beta, eps):
    # MCAN LayerNorm: unbiased std (torch.std, ddof=1), eps added to std.
    d = s.shape[-1]
    mean = jnp.mean(s, axis=-1, keepdims=True)
    c = s - mean
    var = jnp.sum(c * c, axis=-1, keepdims=True) * (1.0 / (d - 1))
    inv = pl.reciprocal(jnp.sqrt(var) + eps, approx=True)
    return gamma * (c * inv) + beta


# ------------------------------ Pallas kernels --------------------------------
def _mhatt1_ln_kernel(x_ref, pe_ref, mask_ref,
                      wq_ref, bq_ref, wk_ref, bk_ref, wv_ref, bv_ref,
                      wm_ref, bm_ref, wbox_ref, bbox_ref, g_ref, beta_ref,
                      out_ref, pos_ref, *, B, L, H, Dh, eps):
    # fg == 2 self-attention over x with geometric pos bias + residual + LN.
    scale = 1.0 / math.sqrt(Dh)
    wb = wbox_ref[...]           # (1, G)
    bb = bbox_ref[...]           # (1, 1)
    bm = bm_ref[...]             # (1, D)
    gamma = g_ref[...]
    beta = beta_ref[...]
    for b in range(B):
        x_b = x_ref[b]                                            # (L, D)
        # relu(img_box(pos_emd)) as a VPU weighted sum over G=8 features;
        # identical for every head (matches the reference loop over heads).
        ps_b = jnp.maximum(jnp.sum(pe_ref[b] * wb, axis=-1) + bb, 0.0)   # (L, L)
        pos_ref[b] = ps_b
        m_b = mask_ref[b] > 0.5                                   # (1, L)
        merged = jnp.zeros((L, H * Dh), jnp.float32)
        for h in range(H):
            q = _dot(x_b, wq_ref[h]) + bq_ref[h]                  # (L, Dh)
            k = _dot(x_b, wk_ref[h]) + bk_ref[h]
            v = _dot(x_b, wv_ref[h]) + bv_ref[h]
            s = _dot_nt(q, k) * scale + ps_b                      # (L, L)
            s = jnp.where(m_b, NEG_INF, s)
            p = _softmax_lastdim(s)
            # fold linear_merge per head: concat_h(out_h) @ Wm == sum_h out_h @ Wm[h]
            merged = merged + _dot(_dot(p, v), wm_ref[h])
        res = x_b + merged + bm                                   # residual + merge bias
        out_ref[b] = _layernorm(res, gamma, beta, eps)


def _mhatt2_ln_kernel(x_ref, y_ref, xp_ref, yp_ref, mask_ref,
                      wq_ref, bq_ref, wk_ref, bk_ref, wv_ref, bv_ref,
                      wqp_ref, bqp_ref, wkp_ref, bkp_ref,
                      wm_ref, bm_ref, g_ref, beta_ref,
                      out_ref, pos_ref, *, B, Lq, Lk, H, Dh, eps):
    # fg == 3 cross-attention (q from x, k/v from y) with learned pos scores,
    # + residual + LN. Pos scores are produced in-kernel (no HBM round trip).
    scale = 1.0 / (math.sqrt(Dh) * math.sqrt(2.0))   # /sqrt(d_k)/sqrt(2)
    bm = bm_ref[...]
    gamma = g_ref[...]
    beta = beta_ref[...]
    for b in range(B):
        x_b = x_ref[b]            # (Lq, D) query + residual
        y_b = y_ref[b]            # (Lk, D) key / value source
        xp_b = xp_ref[b]          # (Lq, D) q_pos source
        yp_b = yp_ref[b]          # (Lk, D) k_pos source
        m_b = mask_ref[b] > 0.5   # (1, Lk)
        merged = jnp.zeros((Lq, H * Dh), jnp.float32)
        for h in range(H):
            q = _dot(x_b, wq_ref[h]) + bq_ref[h]                  # (Lq, Dh)
            k = _dot(y_b, wk_ref[h]) + bk_ref[h]                  # (Lk, Dh)
            v = _dot(y_b, wv_ref[h]) + bv_ref[h]                  # (Lk, Dh)
            qp = _dot(xp_b, wqp_ref[h]) + bqp_ref[h]              # (Lq, Dh)
            kp = _dot(yp_b, wkp_ref[h]) + bkp_ref[h]              # (Lk, Dh)
            pos = _dot_nt(qp, kp) * scale                         # (Lq, Lk)
            pos_ref[b * H + h] = pos
            s = _dot_nt(q, k) * scale + pos
            s = jnp.where(m_b, NEG_INF, s)
            p = _softmax_lastdim(s)
            merged = merged + _dot(_dot(p, v), wm_ref[h])
        res = x_b + merged + bm
        out_ref[b] = _layernorm(res, gamma, beta, eps)


def _ffn_ln_kernel(x_ref, wfc_ref, bfc_ref, wout_ref, bout_ref, g_ref, beta_ref,
                   out_ref, *, eps):
    # FFN (fc + ReLU + out) + residual + LN; the (B*L, FF) activation stays in VMEM.
    x2 = x_ref[...]                                               # (B*L, D)
    h = jnp.maximum(_dot(x2, wfc_ref[...]) + bfc_ref[...], 0.0)
    o = _dot(h, wout_ref[...]) + bout_ref[...]
    out_ref[...] = _layernorm(x2 + o, g_ref[...], beta_ref[...], eps)


# --------------------------- wrapper-side plumbing ----------------------------
def _split_out_heads_w(w, H, Dh):
    # (D, D) -> (H, D, Dh): head h consumes output columns [h*Dh, (h+1)*Dh)
    D = w.shape[0]
    return jnp.transpose(w.reshape(D, H, Dh), (1, 0, 2))


def _split_out_heads_b(b, H, Dh):
    return b.reshape(H, 1, Dh)


def _split_in_heads_w(w, H, Dh):
    # merge weight (D, D) -> (H, Dh, D): head h feeds input rows [h*Dh, (h+1)*Dh)
    D = w.shape[1]
    return w.reshape(H, Dh, D)


def mhatt1_ln(p, x, pos_emd, x_mask, ln_g, ln_b):
    B, L, D = x.shape
    H, Dh = MULTI_HEAD, HIDDEN_SIZE_HEAD
    G = pos_emd.shape[-1]
    mask = x_mask.reshape(B, 1, L).astype(jnp.float32)
    out, ps = pl.pallas_call(
        functools.partial(_mhatt1_ln_kernel, B=B, L=L, H=H, Dh=Dh, eps=LN_EPS),
        out_shape=(jax.ShapeDtypeStruct((B, L, D), jnp.float32),
                   jax.ShapeDtypeStruct((B, L, L), jnp.float32)),
    )(x, pos_emd, mask,
      _split_out_heads_w(p['w_q'], H, Dh), _split_out_heads_b(p['b_q'], H, Dh),
      _split_out_heads_w(p['w_k'], H, Dh), _split_out_heads_b(p['b_k'], H, Dh),
      _split_out_heads_w(p['w_v'], H, Dh), _split_out_heads_b(p['b_v'], H, Dh),
      _split_in_heads_w(p['w_m'], H, Dh), p['b_m'].reshape(1, D),
      p['w_box'].reshape(1, G), p['b_box'].reshape(1, 1),
      ln_g.reshape(1, D), ln_b.reshape(1, D))
    # reference returns identical per-head copies; broadcast only for the output
    self_pos = jnp.broadcast_to(ps[:, None], (B, H, L, L))
    return out, self_pos


def mhatt2_ln(p, x, y, x_pos, y_pos, y_mask, ln_g, ln_b):
    B, Lq, D = x.shape
    Lk = y.shape[1]
    H, Dh = MULTI_HEAD, HIDDEN_SIZE_HEAD
    mask = y_mask.reshape(B, 1, Lk).astype(jnp.float32)
    out, pos = pl.pallas_call(
        functools.partial(_mhatt2_ln_kernel, B=B, Lq=Lq, Lk=Lk, H=H, Dh=Dh, eps=LN_EPS),
        out_shape=(jax.ShapeDtypeStruct((B, Lq, D), jnp.float32),
                   jax.ShapeDtypeStruct((B * H, Lq, Lk), jnp.float32)),
    )(x, y, x_pos, y_pos, mask,
      _split_out_heads_w(p['w_q'], H, Dh), _split_out_heads_b(p['b_q'], H, Dh),
      _split_out_heads_w(p['w_k'], H, Dh), _split_out_heads_b(p['b_k'], H, Dh),
      _split_out_heads_w(p['w_v'], H, Dh), _split_out_heads_b(p['b_v'], H, Dh),
      _split_out_heads_w(p['w_qp'], H, Dh), _split_out_heads_b(p['b_qp'], H, Dh),
      _split_out_heads_w(p['w_kp'], H, Dh), _split_out_heads_b(p['b_kp'], H, Dh),
      _split_in_heads_w(p['w_m'], H, Dh), p['b_m'].reshape(1, D),
      ln_g.reshape(1, D), ln_b.reshape(1, D))
    co_pos = pos.reshape(B, H, Lq, Lk)
    return out, co_pos


def ffn_ln(p, x, ln_g, ln_b):
    B, L, D = x.shape
    out = pl.pallas_call(
        functools.partial(_ffn_ln_kernel, eps=LN_EPS),
        out_shape=jax.ShapeDtypeStruct((B * L, D), jnp.float32),
    )(x.reshape(B * L, D), p['w_fc'], p['b_fc'].reshape(1, FF_SIZE),
      p['w_out'], p['b_out'].reshape(1, D),
      ln_g.reshape(1, D), ln_b.reshape(1, D))
    return out.reshape(B, L, D)


# ------------------------------ plain-JAX glue --------------------------------
def positional_embedding(f_g, dim_g, wave_len=1000.0):
    # Parameter-free geometric relation setup (elementwise), feeds kernel 1.
    x_min, y_min, x_max, y_max = jnp.split(f_g, 4, axis=-1)   # each (B, N, 1)
    cx = (x_min + x_max) * 0.5
    cy = (y_min + y_max) * 0.5
    w = x_max - x_min + 1.0
    h = y_max - y_min + 1.0
    B, N = cx.shape[0], cx.shape[1]
    delta_x = jnp.log(jnp.maximum(jnp.abs((cx - cx.reshape(B, 1, N)) / w), 0.001))
    delta_y = jnp.log(jnp.maximum(jnp.abs((cy - cy.reshape(B, 1, N)) / h), 0.001))
    delta_w = jnp.log(w / w.reshape(B, 1, N))
    delta_h = jnp.log(h / h.reshape(B, 1, N))
    position_mat = jnp.stack([delta_x, delta_y, delta_w, delta_h], axis=-1)  # (B,N,N,4)
    n_feat = int(dim_g / 8)
    feat_range = jnp.arange(n_feat, dtype=jnp.float32)
    dim_mat = 1.0 / jnp.power(wave_len, feat_range / (dim_g / 8.0))
    mul_mat = (100.0 * position_mat)[..., None] * dim_mat.reshape(1, 1, 1, 1, -1)
    mul_mat = mul_mat.reshape(B, N, N, 4 * n_feat)
    return jnp.concatenate([jnp.sin(mul_mat), jnp.cos(mul_mat)], axis=-1)    # (B,N,N,dim_g)


def sga_forward(params, x, y, x_mask, y_mask, x_pos, y_pos,
                self_pos=None, co_pos=None, box=None):
    # TODO(synk): only the pos_scores-is-None path of the reference is
    # implemented (fresh self_pos / co_pos computed in-kernel, as exercised by
    # SGA's default call); reusing cached pos_scores needs a kernel variant.
    B, Lx, D = x.shape
    pos_emd = positional_embedding(box, D // MULTI_HEAD)      # (B, Lx, Lx, 8)
    x, self_pos = mhatt1_ln(params['mhatt1'], x, pos_emd, x_mask,
                            params['ln1_g'], params['ln1_b'])
    x, co_pos = mhatt2_ln(params['mhatt2'], x, y, x_pos, y_pos, y_mask,
                          params['ln2_g'], params['ln2_b'])
    x = ffn_ln(params['ffn'], x, params['ln3_g'], params['ln3_b'])
    return x, self_pos, co_pos


# ---------------------------- deterministic params ----------------------------
def init_params(key):
    D, H = HIDDEN_SIZE, MULTI_HEAD

    def lin(k, fan_in, fan_out):
        kw, kb = jax.random.split(k)
        w = jax.random.normal(kw, (fan_in, fan_out), jnp.float32) * 0.05
        b = jax.random.normal(kb, (fan_out,), jnp.float32) * 0.05
        return w, b

    keys = iter(jax.random.split(key, 32))

    def mhatt_params(use_pos, use_box):
        p = {}
        for name in ('v', 'k', 'q', 'm'):
            p[f'w_{name}'], p[f'b_{name}'] = lin(next(keys), D, D)
        if use_pos:
            p['w_qp'], p['b_qp'] = lin(next(keys), D, D)
            p['w_kp'], p['b_kp'] = lin(next(keys), D, D)
        if use_box:
            p['w_box'], p['b_box'] = lin(next(keys), D // H, 1)
        return p

    params = {
        'mhatt1': mhatt_params(use_pos=False, use_box=True),   # fg == 2 path
        'mhatt2': mhatt_params(use_pos=True, use_box=False),   # fg == 3 path
        'ffn': {},
    }
    params['ffn']['w_fc'], params['ffn']['b_fc'] = lin(next(keys), D, FF_SIZE)
    params['ffn']['w_out'], params['ffn']['b_out'] = lin(next(keys), FF_SIZE, D)
    for i in (1, 2, 3):
        params[f'ln{i}_g'] = jnp.ones((D,), jnp.float32)
        params[f'ln{i}_b'] = jnp.zeros((D,), jnp.float32)
    return params
    # NOTE: MHAtt.project (MLP(2*dim, HIDDEN, dim)) is unused in forward -> omitted.


# ----------------------------------- main -------------------------------------
if __name__ == "__main__":
    key = jax.random.PRNGKey(0)
    kp, kx, ky, kxp, kyp, kb = jax.random.split(key, 6)
    B, Lx, Ly, D = 2, 10, 8, HIDDEN_SIZE

    params = init_params(kp)
    x = jax.random.normal(kx, (B, Lx, D), jnp.float32)
    y = jax.random.normal(ky, (B, Ly, D), jnp.float32)
    x_pos = jax.random.normal(kxp, (B, Lx, D), jnp.float32)
    y_pos = jax.random.normal(kyp, (B, Ly, D), jnp.float32)

    # boolean padding masks: (B, 1, 1, L), True == masked out
    x_mask = jnp.broadcast_to(jnp.arange(Lx)[None, None, None, :] >= Lx - 1,
                              (B, 1, 1, Lx))
    y_mask = jnp.broadcast_to(jnp.arange(Ly)[None, None, None, :] >= Ly - 2,
                              (B, 1, 1, Ly))

    # boxes (x_min, y_min, x_max, y_max) for the fg==2 geometric embedding
    b1, b2 = jax.random.split(kb)
    mins = jax.random.uniform(b1, (B, Lx, 2), jnp.float32, 0.0, 10.0)
    sizes = jax.random.uniform(b2, (B, Lx, 2), jnp.float32, 1.0, 6.0)
    box = jnp.concatenate([mins, mins + sizes], axis=-1)        # (B, Lx, 4)

    fwd = jax.jit(functools.partial(sga_forward, params))
    out_x, self_pos, co_pos = fwd(x, y, x_mask, y_mask, x_pos, y_pos, box=box)

    out_x = jax.block_until_ready(out_x)
    self_pos = jax.block_until_ready(self_pos)
    co_pos = jax.block_until_ready(co_pos)

    assert out_x.shape == (B, Lx, D)
    assert self_pos.shape == (B, MULTI_HEAD, Lx, Lx)
    assert co_pos.shape == (B, MULTI_HEAD, Lx, Ly)
    assert bool(jnp.all(jnp.isfinite(out_x)))
    assert bool(jnp.all(jnp.isfinite(self_pos)))
    assert bool(jnp.all(jnp.isfinite(co_pos)))
    print("KERNEL_OK")
</pallas_src>

<mosaic_0001>
module attributes {stable_mosaic.version = 11 : i64} {
  func.func @_ffn_ln_kernel(%arg0: memref<20x32xf32, #tpu.memory_space<vmem>>, %arg1: memref<32x64xf32, #tpu.memory_space<vmem>>, %arg2: memref<1x64xf32, #tpu.memory_space<vmem>>, %arg3: memref<64x32xf32, #tpu.memory_space<vmem>>, %arg4: memref<1x32xf32, #tpu.memory_space<vmem>>, %arg5: memref<1x32xf32, #tpu.memory_space<vmem>>, %arg6: memref<1x32xf32, #tpu.memory_space<vmem>>, %arg7: memref<20x32xf32, #tpu.memory_space<vmem>>) attributes {dimension_semantics = [], scalar_prefetch = 0 : i64, scratch_operands = 0 : i64, tpu.core_type = #tpu.core_type<tc>} {
    %c0 = arith.constant 0 : index
    %c0_0 = arith.constant 0 : index
    %0 = vector.load %arg0[%c0, %c0_0] : memref<20x32xf32, #tpu.memory_space<vmem>>, vector<20x32xf32>
    %c0_1 = arith.constant 0 : index
    %c0_2 = arith.constant 0 : index
    %1 = vector.load %arg1[%c0_1, %c0_2] : memref<32x64xf32, #tpu.memory_space<vmem>>, vector<32x64xf32>
    %cst = arith.constant dense<0.000000e+00> : vector<20x64xf32>
    %2 = tpu.matmul %0, %1, %cst {dimension_numbers = #tpu.dot_dimension_numbers<[1], [0], [0], [1], [0, 0, 1, 1], [], []>} : vector<20x32xf32>, vector<32x64xf32>, vector<20x64xf32> -> vector<20x64xf32>
    %c0_3 = arith.constant 0 : index
    %c0_4 = arith.constant 0 : index
    %3 = vector.load %arg2[%c0_3, %c0_4] : memref<1x64xf32, #tpu.memory_space<vmem>>, vector<1x64xf32>
    %4 = vector.broadcast %3 : vector<1x64xf32> to vector<20x64xf32>
    %5 = arith.addf %2, %4 : vector<20x64xf32>
    %cst_5 = arith.constant 0.000000e+00 : f32
    %6 = vector.broadcast %cst_5 : f32 to vector<20x64xf32>
    %7 = arith.maximumf %5, %6 : vector<20x64xf32>
    %c0_6 = arith.constant 0 : index
    %c0_7 = arith.constant 0 : index
    %8 = vector.load %arg3[%c0_6, %c0_7] : memref<64x32xf32, #tpu.memory_space<vmem>>, vector<64x32xf32>
    %cst_8 = arith.constant dense<0.000000e+00> : vector<20x32xf32>
    %9 = tpu.matmul %7, %8, %cst_8 {dimension_numbers = #tpu.dot_dimension_numbers<[1], [0], [0], [1], [0, 0, 1, 1], [], []>} : vector<20x64xf32>, vector<64x32xf32>, vector<20x32xf32> -> vector<20x32xf32>
    %c0_9 = arith.constant 0 : index
    %c0_10 = arith.constant 0 : index
    %10 = vector.load %arg4[%c0_9, %c0_10] : memref<1x32xf32, #tpu.memory_space<vmem>>, vector<1x32xf32>
    %11 = vector.broadcast %10 : vector<1x32xf32> to vector<20x32xf32>
    %12 = arith.addf %9, %11 : vector<20x32xf32>
    %13 = arith.addf %0, %12 : vector<20x32xf32>
    %c0_11 = arith.constant 0 : index
    %c0_12 = arith.constant 0 : index
    %14 = vector.load %arg5[%c0_11, %c0_12] : memref<1x32xf32, #tpu.memory_space<vmem>>, vector<1x32xf32>
    %c0_13 = arith.constant 0 : index
    %c0_14 = arith.constant 0 : index
    %15 = vector.load %arg6[%c0_13, %c0_14] : memref<1x32xf32, #tpu.memory_space<vmem>>, vector<1x32xf32>
    %cst_15 = arith.constant dense<0.000000e+00> : vector<20xf32>
    %16 = vector.multi_reduction <add>, %13, %cst_15 [1] : vector<20x32xf32> to vector<20xf32>
    %17 = vector.shape_cast %16 : vector<20xf32> to vector<20x1xf32>
    %cst_16 = arith.constant 3.200000e+01 : f32
    %18 = vector.broadcast %cst_16 : f32 to vector<20x1xf32>
    %19 = arith.divf %17, %18 : vector<20x1xf32>
    %20 = vector.broadcast %19 : vector<20x1xf32> to vector<20x32xf32>
    %21 = arith.subf %13, %20 : vector<20x32xf32>
    %22 = arith.mulf %21, %21 : vector<20x32xf32>
    %cst_17 = arith.constant dense<0.000000e+00> : vector<20xf32>
    %23 = vector.multi_reduction <add>, %22, %cst_17 [1] : vector<20x32xf32> to vector<20xf32>
    %24 = vector.shape_cast %23 : vector<20xf32> to vector<20x1xf32>
    %cst_18 = arith.constant 0.0322580636 : f32
    %25 = vector.broadcast %cst_18 : f32 to vector<20x1xf32>
    %26 = arith.mulf %24, %25 : vector<20x1xf32>
    %27 = math.sqrt %26 : vector<20x1xf32>
    %cst_19 = arith.constant 9.99999997E-7 : f32
    %28 = vector.broadcast %cst_19 : f32 to vector<20x1xf32>
    %29 = arith.addf %27, %28 : vector<20x1xf32>
    %30 = tpu.reciprocal %29 {approx = true} : vector<20x1xf32> -> vector<20x1xf32>
    %31 = vector.broadcast %30 : vector<20x1xf32> to vector<20x32xf32>
    %32 = arith.mulf %21, %31 : vector<20x32xf32>
    %33 = vector.broadcast %14 : vector<1x32xf32> to vector<20x32xf32>
    %34 = arith.mulf %33, %32 : vector<20x32xf32>
    %35 = vector.broadcast %15 : vector<1x32xf32> to vector<20x32xf32>
    %36 = arith.addf %34, %35 : vector<20x32xf32>
    %c0_20 = arith.constant 0 : index
    %c0_21 = arith.constant 0 : index
    %37 = vector.load %arg7[%c0_20, %c0_21] : memref<20x32xf32, #tpu.memory_space<vmem>>, vector<20x32xf32>
    tpu.vector_store %arg7[%c0_20, %c0_21], %36 {strides = array<i32>} : memref<20x32xf32, #tpu.memory_space<vmem>>, vector<20x32xf32>,
    return
  }
}

module attributes {stable_mosaic.version = 11 : i64} {
  func.func @_mhatt1_ln_kernel(%arg0: memref<2x10x32xf32, #tpu.memory_space<vmem>>, %arg1: memref<2x10x10x8xf32, #tpu.memory_space<vmem>>, %arg2: memref<2x1x10xf32, #tpu.memory_space<vmem>>, %arg3: memref<4x32x8xf32, #tpu.memory_space<vmem>>, %arg4: memref<4x1x8xf32, #tpu.memory_space<vmem>>, %arg5: memref<4x32x8xf32, #tpu.memory_space<vmem>>, %arg6: memref<4x1x8xf32, #tpu.memory_space<vmem>>, %arg7: memref<4x32x8xf32, #tpu.memory_space<vmem>>, %arg8: memref<4x1x8xf32, #tpu.memory_space<vmem>>, %arg9: memref<4x8x32xf32, #tpu.memory_space<vmem>>, %arg10: memref<1x32xf32, #tpu.memory_space<vmem>>, %arg11: memref<1x8xf32, #tpu.memory_space<vmem>>, %arg12: memref<1x1xf32, #tpu.memory_space<vmem>>, %arg13: memref<1x32xf32, #tpu.memory_space<vmem>>, %arg14: memref<1x32xf32, #tpu.memory_space<vmem>>, %arg15: memref<2x10x32xf32, #tpu.memory_space<vmem>>, %arg16: memref<2x10x10xf32, #tpu.memory_space<vmem>>) attributes {dimension_semantics = [], scalar_prefetch = 0 : i64, scratch_operands = 0 : i64, tpu.core_type = #tpu.core_type<tc>} {
    %c0 = arith.constant 0 : index
    %c0_0 = arith.constant 0 : index
    %0 = vector.load %arg11[%c0, %c0_0] : memref<1x8xf32, #tpu.memory_space<vmem>>, vector<1x8xf32>
    %c0_1 = arith.constant 0 : index
    %c0_2 = arith.constant 0 : index
    %1 = vector.load %arg12[%c0_1, %c0_2] : memref<1x1xf32, #tpu.memory_space<vmem>>, vector<1x1xf32>
    %c0_3 = arith.constant 0 : index
    %c0_4 = arith.constant 0 : index
    %2 = vector.load %arg10[%c0_3, %c0_4] : memref<1x32xf32, #tpu.memory_space<vmem>>, vector<1x32xf32>
    %c0_5 = arith.constant 0 : index
    %c0_6 = arith.constant 0 : index
    %3 = vector.load %arg13[%c0_5, %c0_6] : memref<1x32xf32, #tpu.memory_space<vmem>>, vector<1x32xf32>
    %c0_7 = arith.constant 0 : index
    %c0_8 = arith.constant 0 : index
    %4 = vector.load %arg14[%c0_7, %c0_8] : memref<1x32xf32, #tpu.memory_space<vmem>>, vector<1x32xf32>
    %c0_9 = arith.constant 0 : index
    %c0_10 = arith.constant 0 : index
    %c0_11 = arith.constant 0 : index
    %5 = vector.load %arg0[%c0_9, %c0_10, %c0_11] : memref<2x10x32xf32, #tpu.memory_space<vmem>>, vector<1x10x32xf32>
    %6 = vector.shape_cast %5 : vector<1x10x32xf32> to vector<10x32xf32>
    %c0_12 = arith.constant 0 : index
    %c0_13 = arith.constant 0 : index
    %c0_14 = arith.constant 0 : index
    %c0_15 = arith.constant 0 : index
    %7 = vector.load %arg1[%c0_12, %c0_13, %c0_14, %c0_15] : memref<2x10x10x8xf32, #tpu.memory_space<vmem>>, vector<1x10x10x8xf32>
    %8 = vector.shape_cast %7 : vector<1x10x10x8xf32> to vector<10x10x8xf32>
    %9 = vector.shape_cast %0 : vector<1x8xf32> to vector<1x1x8xf32>
    %10 = vector.broadcast %9 : vector<1x1x8xf32> to vector<10x10x8xf32>
    %11 = arith.mulf %8, %10 : vector<10x10x8xf32>
    %cst = arith.constant dense<0.000000e+00> : vector<10x10xf32>
    %12 = vector.multi_reduction <add>, %11, %cst [2] : vector<10x10x8xf32> to vector<10x10xf32>
    %13 = vector.broadcast %1 : vector<1x1xf32> to vector<10x10xf32>
    %14 = arith.addf %12, %13 : vector<10x10xf32>
    %cst_16 = arith.constant 0.000000e+00 : f32
    %15 = vector.broadcast %cst_16 : f32 to vector<10x10xf32>
    %16 = arith.maximumf %14, %15 : vector<10x10xf32>
    %c0_17 = arith.constant 0 : index
    %c0_18 = arith.constant 0 : index
    %c0_19 = arith.constant 0 : index
    %17 = vector.load %arg16[%c0_17, %c0_18, %c0_19] : memref<2x10x10xf32, #tpu.memory_space<vmem>>, vector<1x10x10xf32>
    %18 = vector.shape_cast %17 : vector<1x10x10xf32> to vector<10x10xf32>
    %19 = vector.shape_cast %16 : vector<10x10xf32> to vector<1x10x10xf32>
    tpu.vector_store %arg16[%c0_17, %c0_18, %c0_19], %19 {strides = array<i32>} : memref<2x10x10xf32, #tpu.memory_space<vmem>>, vector<1x10x10xf32>,
    %c0_20 = arith.constant 0 : index
    %c0_21 = arith.constant 0 : index
    %c0_22 = arith.constant 0 : index
    %20 = vector.load %arg2[%c0_20, %c0_21, %c0_22] : memref<2x1x10xf32, #tpu.memory_space<vmem>>, vector<1x1x10xf32>
    %21 = vector.shape_cast %20 : vector<1x1x10xf32> to vector<1x10xf32>
    %cst_23 = arith.constant 5.000000e-01 : f32
    %22 = vector.broadcast %cst_23 : f32 to vector<1x10xf32>
    %23 = arith.cmpf ogt, %21, %22 : vector<1x10xf32>
    %cst_24 = arith.constant 0.000000e+00 : f32
    %24 = vector.broadcast %cst_24 : f32 to vector<10x32xf32>
    %c0_25 = arith.constant 0 : index
    %c0_26 = arith.constant 0 : index
    %c0_27 = arith.constant 0 : index
    %25 = vector.load %arg3[%c0_25, %c0_26, %c0_27] : memref<4x32x8xf32, #tpu.memory_space<vmem>>, vector<1x32x8xf32>
    %26 = vector.shape_cast %25 : vector<1x32x8xf32> to vector<32x8xf32>
    %cst_28 = arith.constant dense<0.000000e+00> : vector<10x8xf32>
    %27 = tpu.matmul %6, %26, %cst_28 {dimension_numbers = #tpu.dot_dimension_numbers<[1], [0], [0], [1], [0, 0, 1, 1], [], []>} : vector<10x32xf32>, vector<32x8xf32>, vector<10x8xf32> -> vector<10x8xf32>
    %c0_29 = arith.constant 0 : index
    %c0_30 = arith.constant 0 : index
    %c0_31 = arith.constant 0 : index
    %28 = vector.load %arg4[%c0_29, %c0_30, %c0_31] : memref<4x1x8xf32, #tpu.memory_space<vmem>>, vector<1x1x8xf32>
    %29 = vector.shape_cast %28 : vector<1x1x8xf32> to vector<1x8xf32>
    %30 = vector.broadcast %29 : vector<1x8xf32> to vector<10x8xf32>
    %31 = arith.addf %27, %30 : vector<10x8xf32>
    %c0_32 = arith.constant 0 : index
    %c0_33 = arith.constant 0 : index
    %c0_34 = arith.constant 0 : index
    %32 = vector.load %arg5[%c0_32, %c0_33, %c0_34] : memref<4x32x8xf32, #tpu.memory_space<vmem>>, vector<1x32x8xf32>
    %33 = vector.shape_cast %32 : vector<1x32x8xf32> to vector<32x8xf32>
    %cst_35 = arith.constant dense<0.000000e+00> : vector<10x8xf32>
    %34 = tpu.matmul %6, %33, %cst_35 {dimension_numbers = #tpu.dot_dimension_numbers<[1], [0], [0], [1], [0, 0, 1, 1], [], []>} : vector<10x32xf32>, vector<32x8xf32>, vector<10x8xf32> -> vector<10x8xf32>
    %c0_36 = arith.constant 0 : index
    %c0_37 = arith.constant 0 : index
    %c0_38 = arith.constant 0 : index
    %35 = vector.load %arg6[%c0_36, %c0_37, %c0_38] : memref<4x1x8xf32, #tpu.memory_space<vmem>>, vector<1x1x8xf32>
    %36 = vector.shape_cast %35 : vector<1x1x8xf32> to vector<1x8xf32>
    %37 = vector.broadcast %36 : vector<1x8xf32> to vector<10x8xf32>
    %38 = arith.addf %34, %37 : vector<10x8xf32>
    %c0_39 = arith.constant 0 : index
    %c0_40 = arith.constant 0 : index
    %c0_41 = arith.constant 0 : index
    %39 = vector.load %arg7[%c0_39, %c0_40, %c0_41] : memref<4x32x8xf32, #tpu.memory_space<vmem>>, vector<1x32x8xf32>
    %40 = vector.shape_cast %39 : vector<1x32x8xf32> to vector<32x8xf32>
    %cst_42 = arith.constant dense<0.000000e+00> : vector<10x8xf32>
    %41 = tpu.matmul %6, %40, %cst_42 {dimension_numbers = #tpu.dot_dimension_numbers<[1], [0], [0], [1], [0, 0, 1, 1], [], []>} : vector<10x32xf32>, vector<32x8xf32>, vector<10x8xf32> -> vector<10x8xf32>
    %c0_43 = arith.constant 0 : index
    %c0_44 = arith.constant 0 : index
    %c0_45 = arith.constant 0 : index
    %42 = vector.load %arg8[%c0_43, %c0_44, %c0_45] : memref<4x1x8xf32, #tpu.memory_space<vmem>>, vector<1x1x8xf32>
    %43 = vector.shape_cast %42 : vector<1x1x8xf32> to vector<1x8xf32>
    %44 = vector.broadcast %43 : vector<1x8xf32> to vector<10x8xf32>
    %45 = arith.addf %41, %44 : vector<10x8xf32>
    %cst_46 = arith.constant dense<0.000000e+00> : vector<10x10xf32>
    %46 = tpu.matmul %31, %38, %cst_46 {dimension_numbers = #tpu.dot_dimension_numbers<[1], [1], [0], [0], [0, 0, 1, 0], [], []>} : vector<10x8xf32>, vector<10x8xf32>, vector<10x10xf32> -> vector<10x10xf32>
    %cst_47 = arith.constant 0.353553385 : f32
    %47 = vector.broadcast %cst_47 : f32 to vector<10x10xf32>
    %48 = arith.mulf %46, %47 : vector<10x10xf32>
    %49 = arith.addf %48, %16 : vector<10x10xf32>
    %cst_48 = arith.constant -1.000000e+09 : f32
    %50 = vector.shape_cast %23 : vector<1x10xi1> to vector<1x10xi1>
    %51 = vector.broadcast %50 : vector<1x10xi1> to vector<10x10xi1>
    %52 = vector.broadcast %cst_48 : f32 to vector<10x10xf32>
    %53 = arith.select %51, %52, %49 : vector<10x10xi1>, vector<10x10xf32>
    %cst_49 = arith.constant dense<0xFF800000> : vector<10xf32>
    %54 = vector.multi_reduction <maximumf>, %53, %cst_49 [1] : vector<10x10xf32> to vector<10xf32>
    %55 = vector.shape_cast %54 : vector<10xf32> to vector<10x1xf32>
    %56 = vector.broadcast %55 : vector<10x1xf32> to vector<10x10xf32>
    %57 = arith.subf %53, %56 : vector<10x10xf32>
    %58 = math.exp %57 : vector<10x10xf32>
    %cst_50 = arith.constant dense<0.000000e+00> : vector<10xf32>
    %59 = vector.multi_reduction <add>, %58, %cst_50 [1] : vector<10x10xf32> to vector<10xf32>
    %60 = vector.shape_cast %59 : vector<10xf32> to vector<10x1xf32>
    %61 = tpu.reciprocal %60 {approx = true} : vector<10x1xf32> -> vector<10x1xf32>
    %62 = vector.broadcast %61 : vector<10x1xf32> to vector<10x10xf32>
    %63 = arith.mulf %58, %62 : vector<10x10xf32>
    %cst_51 = arith.constant dense<0.000000e+00> : vector<10x8xf32>
    %64 = tpu.matmul %63, %45, %cst_51 {dimension_numbers = #tpu.dot_dimension_numbers<[1], [0], [0], [1], [0, 0, 1, 1], [], []>} : vector<10x10xf32>, vector<10x8xf32>, vector<10x8xf32> -> vector<10x8xf32>
    %c0_52 = arith.constant 0 : index
    %c0_53 = arith.constant 0 : index
    %c0_54 = arith.constant 0 : index
    %65 = vector.load %arg9[%c0_52, %c0_53, %c0_54] : memref<4x8x32xf32, #tpu.memory_space<vmem>>, vector<1x8x32xf32>
    %66 = vector.shape_cast %65 : vector<1x8x32xf32> to vector<8x32xf32>
    %cst_55 = arith.constant dense<0.000000e+00> : vector<10x32xf32>
    %67 = tpu.matmul %64, %66, %cst_55 {dimension_numbers = #tpu.dot_dimension_numbers<[1], [0], [0], [1], [0, 0, 1, 1], [], []>} : vector<10x8xf32>, vector<8x32xf32>, vector<10x32xf32> -> vector<10x32xf32>
    %68 = arith.addf %24, %67 : vector<10x32xf32>
    %c1 = arith.constant 1 : index
    %c0_56 = arith.constant 0 : index
    %c0_57 = arith.constant 0 : index
    %69 = vector.load %arg3[%c1, %c0_56, %c0_57] : memref<4x32x8xf32, #tpu.memory_space<vmem>>, vector<1x32x8xf32>
    %70 = vector.shape_cast %69 : vector<1x32x8xf32> to vector<32x8xf32>
    %cst_58 = arith.constant dense<0.000000e+00> : vector<10x8xf32>
    %71 = tpu.matmul %6, %70, %cst_58 {dimension_numbers = #tpu.dot_dimension_numbers<[1], [0], [0], [1], [0, 0, 1, 1], [], []>} : vector<10x32xf32>, vector<32x8xf32>, vector<10x8xf32> -> vector<10x8xf32>
    %c1_59 = arith.constant 1 : index
    %c0_60 = arith.constant 0 : index
    %c0_61 = arith.constant 0 : index
    %72 = vector.load %arg4[%c1_59, %c0_60, %c0_61] : memref<4x1x8xf32, #tpu.memory_space<vmem>>, vector<1x1x8xf32>
    %73 = vector.shape_cast %72 : vector<1x1x8xf32> to vector<1x8xf32>
    %74 = vector.broadcast %73 : vector<1x8xf32> to vector<10x8xf32>
    %75 = arith.addf %71, %74 : vector<10x8xf32>
    %c1_62 = arith.constant 1 : index
    %c0_63 = arith.constant 0 : index
    %c0_64 = arith.constant 0 : index
    %76 = vector.load %arg5[%c1_62, %c0_63, %c0_64] : memref<4x32x8xf32, #tpu.memory_space<vmem>>, vector<1x32x8xf32>
    %77 = vector.shape_cast %76 : vector<1x32x8xf32> to vector<32x8xf32>
    %cst_65 = arith.constant dense<0.000000e+00> : vector<10x8xf32>
    %78 = tpu.matmul %6, %77, %cst_65 {dimension_numbers = #tpu.dot_dimension_numbers<[1], [0], [0], [1], [0, 0, 1, 1], [], []>} : vector<10x32xf32>, vector<32x8xf32>, vector<10x8xf32> -> vector<10x8xf32>
    %c1_66 = arith.constant 1 : index
    %c0_67 = arith.constant 0 : index
    %c0_68 = arith.constant 0 : index
    %79 = vector.load %arg6[%c1_66, %c0_67, %c0_68] : memref<4x1x8xf32, #tpu.memory_space<vmem>>, vector<1x1x8xf32>
    %80 = vector.shape_cast %79 : vector<1x1x8xf32> to vector<1x8xf32>
    %81 = vector.broadcast %80 : vector<1x8xf32> to vector<10x8xf32>
    %82 = arith.addf %78, %81 : vector<10x8xf32>
    %c1_69 = arith.constant 1 : index
    %c0_70 = arith.constant 0 : index
    %c0_71 = arith.constant 0 : index
    %83 = vector.load %arg7[%c1_69, %c0_70, %c0_71] : memref<4x32x8xf32, #tpu.memory_space<vmem>>, vector<1x32x8xf32>
    %84 = vector.shape_cast %83 : vector<1x32x8xf32> to vector<32x8xf32>
    %cst_72 = arith.constant dense<0.000000e+00> : vector<10x8xf32>
    %85 = tpu.matmul %6, %84, %cst_72 {dimension_numbers = #tpu.dot_dimension_numbers<[1], [0], [0], [1], [0, 0, 1, 1], [], []>} : vector<10x32xf32>, vector<32x8xf32>, vector<10x8xf32> -> vector<10x8xf32>
    %c1_73 = arith.constant 1 : index
    %c0_74 = arith.constant 0 : index
    %c0_75 = arith.constant 0 : index
    %86 = vector.load %arg8[%c1_73, %c0_74, %c0_75] : memref<4x1x8xf32, #tpu.memory_space<vmem>>, vector<1x1x8xf32>
    %87 = vector.shape_cast %86 : vector<1x1x8xf32> to vector<1x8xf32>
    %88 = vector.broadcast %87 : vector<1x8xf32> to vector<10x8xf32>
    %89 = arith.addf %85, %88 : vector<10x8xf32>
    %cst_76 = arith.constant dense<0.000000e+00> : vector<10x10xf32>
    %90 = tpu.matmul %75, %82, %cst_76 {dimension_numbers = #tpu.dot_dimension_numbers<[1], [1], [0], [0], [0, 0, 1, 0], [], []>} : vector<10x8xf32>, vector<10x8xf32>, vector<10x10xf32> -> vector<10x10xf32>
    %cst_77 = arith.constant 0.353553385 : f32
    %91 = vector.broadcast %cst_77 : f32 to vector<10x10xf32>
    %92 = arith.mulf %90, %91 : vector<10x10xf32>
    %93 = arith.addf %92, %16 : vector<10x10xf32>
    %cst_78 = arith.constant -1.000000e+09 : f32
    %94 = vector.shape_cast %23 : vector<1x10xi1> to vector<1x10xi1>
    %95 = vector.broadcast %94 : vector<1x10xi1> to vector<10x10xi1>
    %96 = vector.broadcast %cst_78 : f32 to vector<10x10xf32>
    %97 = arith.select %95, %96, %93 : vector<10x10xi1>, vector<10x10xf32>
    %cst_79 = arith.constant dense<0xFF800000> : vector<10xf32>
    %98 = vector.multi_reduction <maximumf>, %97, %cst_79 [1] : vector<10x10xf32> to vector<10xf32>
    %99 = vector.shape_cast %98 : vector<10xf32> to vector<10x1xf32>
    %100 = vector.broadcast %99 : vector<10x1xf32> to vector<10x10xf32>
    %101 = arith.subf %97, %100 : vector<10x10xf32>
    %102 = math.exp %101 : vector<10x10xf32>
    %cst_80 = arith.constant dense<0.000000e+00> : vector<10xf32>
    %103 = vector.multi_reduction <add>, %102, %cst_80 [1] : vector<10x10xf32> to vector<10xf32>
    %104 = vector.shape_cast %103 : vector<10xf32> to vector<10x1xf32>
    %105 = tpu.reciprocal %104 {approx = true} : vector<10x1xf32> -> vector<10x1xf32>
    %106 = vector.broadcast %105 : vector<10x1xf32> to vector<10x10xf32>
    %107 = arith.mulf %102, %106 : vector<10x10xf32>
    %cst_81 = arith.constant dense<0.000000e+00> : vector<10x8xf32>
    %108 = tpu.matmul %107, %89, %cst_81 {dimension_numbers = #tpu.dot_dimension_numbers<[1], [0], [0], [1], [0, 0, 1, 1], [], []>} : vector<10x10xf32>, vector<10x8xf32>, vector<10x8xf32> -> vector<10x8xf32>
    %c1_82 = arith.constant 1 : index
    %c0_83 = arith.constant 0 : index
    %c0_84 = arith.constant 0 : index
    %109 = vector.load %arg9[%c1_82, %c0_83, %c0_84] : memref<4x8x32xf32, #tpu.memory_space<vmem>>, vector<1x8x32xf32>
    %110 = vector.shape_cast %109 : vector<1x8x32xf32> to vector<8x32xf32>
    %cst_85 = arith.constant dense<0.000000e+00> : vector<10x32xf32>
    %111 = tpu.matmul %108, %110, %cst_85 {dimension_numbers = #tpu.dot_dimension_numbers<[1], [0], [0], [1], [0, 0, 1, 1], [], []>} : vector<10x8xf32>, vector<8x32xf32>, vector<10x32xf32> -> vector<10x32xf32>
    %112 = arith.addf %68, %111 : vector<10x32xf32>
    %c2 = arith.constant 2 : index
    %c0_86 = arith.constant 0 : index
    %c0_87 = arith.constant 0 : index
    %113 = vector.load %arg3[%c2, %c0_86, %c0_87] : memref<4x32x8xf32, #tpu.memory_space<vmem>>, vector<1x32x8xf32>
    %114 = vector.shape_cast %113 : vector<1x32x8xf32> to vector<32x8xf32>
    %cst_88 = arith.constant dense<0.000000e+00> : vector<10x8xf32>
    %115 = tpu.matmul %6, %114, %cst_88 {dimension_numbers = #tpu.dot_dimension_numbers<[1], [0], [0], [1], [0, 0, 1, 1], [], []>} : vector<10x32xf32>, vector<32x8xf32>, vector<10x8xf32> -> vector<10x8xf32>
    %c2_89 = arith.constant 2 : index
    %c0_90 = arith.constant 0 : index
    %c0_91 = arith.constant 0 : index
    %116 = vector.load %arg4[%c2_89, %c0_90, %c0_91] : memref<4x1x8xf32, #tpu.memory_space<vmem>>, vector<1x1x8xf32>
    %117 = vector.shape_cast %116 : vector<1x1x8xf32> to vector<1x8xf32>
    %118 = vector.broadcast %117 : vector<1x8xf32> to vector<10x8xf32>
    %119 = arith.addf %115, %118 : vector<10x8xf32>
    %c2_92 = arith.constant 2 : index
    %c0_93 = arith.constant 0 : index
    %c0_94 = arith.constant 0 : index
    %120 = vector.load %arg5[%c2_92, %c0_93, %c0_94] : memref<4x32x8xf32, #tpu.memory_space<vmem>>, vector<1x32x8xf32>
    %121 = vector.shape_cast %120 : vector<1x32x8xf32> to vector<32x8xf32>
    %cst_95 = arith.constant dense<0.000000e+00> : vector<10x8xf32>
    %122 = tpu.matmul %6, %121, %cst_95 {dimension_numbers = #tpu.dot_dimension_numbers<[1], [0], [0], [1], [0, 0, 1, 1], [], []>} : vector<10x32xf32>, vector<32x8xf32>, vector<10x8xf32> -> vector<10x8xf32>
    %c2_96 = arith.constant 2 : index
    %c0_97 = arith.constant 0 : index
    %c0_98 = arith.constant 0 : index
    %123 = vector.load %arg6[%c2_96, %c0_97, %c0_98] : memref<4x1x8xf32, #tpu.memory_space<vmem>>, vector<1x1x8xf32>
    %124 = vector.shape_cast %123 : vector<1x1x8xf32> to vector<1x8xf32>
    %125 = vector.broadcast %124 : vector<1x8xf32> to vector<10x8xf32>
    %126 = arith.addf %122, %125 : vector<10x8xf32>
    %c2_99 = arith.constant 2 : index
    %c0_100 = arith.constant 0 : index
    %c0_101 = arith.constant 0 : index
    %127 = vector.load %arg7[%c2_99, %c0_100, %c0_101] : memref<4x32x8xf32, #tpu.memory_space<vmem>>, vector<1x32x8xf32>
    %128 = vector.shape_cast %127 : vector<1x32x8xf32> to vector<32x8xf32>
    %cst_102 = arith.constant dense<0.000000e+00> : vector<10x8xf32>
    %129 = tpu.matmul %6, %128, %cst_102 {dimension_numbers = #tpu.dot_dimension_numbers<[1], [0], [0], [1], [0, 0, 1, 1], [], []>} : vector<10x32xf32>, vector<32x8xf32>, vector<10x8xf32> -> vector<10x8xf32>
    %c2_103 = arith.constant 2 : index
    %c0_104 = arith.constant 0 : index
    %c0_105 = arith.constant 0 : index
    %130 = vector.load %arg8[%c2_103, %c0_104, %c0_105] : memref<4x1x8xf32, #tpu.memory_space<vmem>>, vector<1x1x8xf32>
    %131 = vector.shape_cast %130 : vector<1x1x8xf32> to vector<1x8xf32>
    %132 = vector.broadcast %131 : vector<1x8xf32> to vector<10x8xf32>
    %133 = arith.addf %129, %132 : vector<10x8xf32>
    %cst_106 = arith.constant dense<0.000000e+00> : vector<10x10xf32>
    %134 = tpu.matmul %119, %126, %cst_106 {dimension_numbers = #tpu.dot_dimension_numbers<[1], [1], [0], [0], [0, 0, 1, 0], [], []>} : vector<10x8xf32>, vector<10x8xf32>, vector<10x10xf32> -> vector<10x10xf32>
    %cst_107 = arith.constant 0.353553385 : f32
    %135 = vector.broadcast %cst_107 : f32 to vector<10x10xf32>
    %136 = arith.mulf %134, %135 : vector<10x10xf32>
    %137 = arith.addf %136, %16 : vector<10x10xf32>
    %cst_108 = arith.constant -1.000000e+09 : f32
    %138 = vector.shape_cast %23 : vector<1x10xi1> to vector<1x10xi1>
    %139 = vector.broadcast %138 : vector<1x10xi1> to vector<10x10xi1>
    %140 = vector.broadcast %cst_108 : f32 to vector<10x10xf32>
    %141 = arith.select %139, %140, %137 : vector<10x10xi1>, vector<10x10xf32>
    %cst_109 = arith.constant dense<0xFF800000> : vector<10xf32>
    %142 = vector.multi_reduction <maximumf>, %141, %cst_109 [1] : vector<10x10xf32> to vector<10xf32>
    %143 = vector.shape_cast %142 : vector<10xf32> to vector<10x1xf32>
    %144 = vector.broadcast %143 : vector<10x1xf32> to vector<10x10xf32>
    %145 = arith.subf %141, %144 : vector<10x10xf32>
    %146 = math.exp %145 : vector<10x10xf32>
    %cst_110 = arith.constant dense<0.000000e+00> : vector<10xf32>
    %147 = vector.multi_reduction <add>, %146, %cst_110 [1] : vector<10x10xf32> to vector<10xf32>
    %148 = vector.shape_cast %147 : vector<10xf32> to vector<10x1xf32>
    %149 = tpu.reciprocal %148 {approx = true} : vector<10x1xf32> -> vector<10x1xf32>
    %150 = vector.broadcast %149 : vector<10x1xf32> to vector<10x10xf32>
    %151 = arith.mulf %146, %150 : vector<10x10xf32>
    %cst_111 = arith.constant dense<0.000000e+00> : vector<10x8xf32>
    %152 = tpu.matmul %151, %133, %cst_111 {dimension_numbers = #tpu.dot_dimension_numbers<[1], [0], [0], [1], [0, 0, 1, 1], [], []>} : vector<10x10xf32>, vector<10x8xf32>, vector<10x8xf32> -> vector<10x8xf32>
    %c2_112 = arith.constant 2 : index
    %c0_113 = arith.constant 0 : index
    %c0_114 = arith.constant 0 : index
    %153 = vector.load %arg9[%c2_112, %c0_113, %c0_114] : memref<4x8x32xf32, #tpu.memory_space<vmem>>, vector<1x8x32xf32>
    %154 = vector.shape_cast %153 : vector<1x8x32xf32> to vector<8x32xf32>
    %cst_115 = arith.constant dense<0.000000e+00> : vector<10x32xf32>
    %155 = tpu.matmul %152, %154, %cst_115 {dimension_numbers = #tpu.dot_dimension_numbers<[1], [0], [0], [1], [0, 0, 1, 1], [], []>} : vector<10x8xf32>, vector<8x32xf32>, vector<10x32xf32> -> vector<10x32xf32>
    %156 = arith.addf %112, %155 : vector<10x32xf32>
    %c3 = arith.constant 3 : index
    %c0_116 = arith.constant 0 : index
    %c0_117 = arith.constant 0 : index
    %157 = vector.load %arg3[%c3, %c0_116, %c0_117] : memref<4x32x8xf32, #tpu.memory_space<vmem>>, vector<1x32x8xf32>
    %158 = vector.shape_cast %157 : vector<1x32x8xf32> to vector<32x8xf32>
    %cst_118 = arith.constant dense<0.000000e+00> : vector<10x8xf32>
    %159 = tpu.matmul %6, %158, %cst_118 {dimension_numbers = #tpu.dot_dimension_numbers<[1], [0], [0], [1], [0, 0, 1, 1], [], []>} : vector<10x32xf32>, vector<32x8xf32>, vector<10x8xf32> -> vector<10x8xf32>
    %c3_119 = arith.constant 3 : index
    %c0_120 = arith.constant 0 : index
    %c0_121 = arith.constant 0 : index
    %160 = vector.load %arg4[%c3_119, %c0_120, %c0_121] : memref<4x1x8xf32, #tpu.memory_space<vmem>>, vector<1x1x8xf32>
    %161 = vector.shape_cast %160 : vector<1x1x8xf32> to vector<1x8xf32>
    %162 = vector.broadcast %161 : vector<1x8xf32> to vector<10x8xf32>
    %163 = arith.addf %159, %162 : vector<10x8xf32>
    %c3_122 = arith.constant 3 : index
    %c0_123 = arith.constant 0 : index
    %c0_124 = arith.constant 0 : index
    %164 = vector.load %arg5[%c3_122, %c0_123, %c0_124] : memref<4x32x8xf32, #tpu.memory_space<vmem>>, vector<1x32x8xf32>
    %165 = vector.shape_cast %164 : vector<1x32x8xf32> to vector<32x8xf32>
    %cst_125 = arith.constant dense<0.000000e+00> : vector<10x8xf32>
    %166 = tpu.matmul %6, %165, %cst_125 {dimension_numbers = #tpu.dot_dimension_numbers<[1], [0], [0], [1], [0, 0, 1, 1], [], []>} : vector<10x32xf32>, vector<32x8xf32>, vector<10x8xf32> -> vector<10x8xf32>
    %c3_126 = arith.constant 3 : index
    %c0_127 = arith.constant 0 : index
    %c0_128 = arith.constant 0 : index
    %167 = vector.load %arg6[%c3_126, %c0_127, %c0_128] : memref<4x1x8xf32, #tpu.memory_space<vmem>>, vector<1x1x8xf32>
    %168 = vector.shape_cast %167 : vector<1x1x8xf32> to vector<1x8xf32>
    %169 = vector.broadcast %168 : vector<1x8xf32> to vector<10x8xf32>
    %170 = arith.addf %166, %169 : vector<10x8xf32>
    %c3_129 = arith.constant 3 : index
    %c0_130 = arith.constant 0 : index
    %c0_131 = arith.constant 0 : index
    %171 = vector.load %arg7[%c3_129, %c0_130, %c0_131] : memref<4x32x8xf32, #tpu.memory_space<vmem>>, vector<1x32x8xf32>
    %172 = vector.shape_cast %171 : vector<1x32x8xf32> to vector<32x8xf32>
    %cst_132 = arith.constant dense<0.000000e+00> : vector<10x8xf32>
    %173 = tpu.matmul %6, %172, %cst_132 {dimension_numbers = #tpu.dot_dimension_numbers<[1], [0], [0], [1], [0, 0, 1, 1], [], []>} : vector<10x32xf32>, vector<32x8xf32>, vector<10x8xf32> -> vector<10x8xf32>
    %c3_133 = arith.constant 3 : index
    %c0_134 = arith.constant 0 : index
    %c0_135 = arith.constant 0 : index
    %174 = vector.load %arg8[%c3_133, %c0_134, %c0_135] : memref<4x1x8xf32, #tpu.memory_space<vmem>>, vector<1x1x8xf32>
    %175 = vector.shape_cast %174 : vector<1x1x8xf32> to vector<1x8xf32>
    %176 = vector.broadcast %175 : vector<1x8xf32> to vector<10x8xf32>
    %177 = arith.addf %173, %176 : vector<10x8xf32>
    %cst_136 = arith.constant dense<0.000000e+00> : vector<10x10xf32>
    %178 = tpu.matmul %163, %170, %cst_136 {dimension_numbers = #tpu.dot_dimension_numbers<[1], [1], [0], [0], [0, 0, 1, 0], [], []>} : vector<10x8xf32>, vector<10x8xf32>, vector<10x10xf32> -> vector<10x10xf32>
    %cst_137 = arith.constant 0.353553385 : f32
    %179 = vector.broadcast %cst_137 : f32 to vector<10x10xf32>
    %180 = arith.mulf %178, %179 : vector<10x10xf32>
    %181 = arith.addf %180, %16 : vector<10x10xf32>
    %cst_138 = arith.constant -1.000000e+09 : f32
    %182 = vector.shape_cast %23 : vector<1x10xi1> to vector<1x10xi1>
    %183 = vector.broadcast %182 : vector<1x10xi1> to vector<10x10xi1>
    %184 = vector.broadcast %cst_138 : f32 to vector<10x10xf32>
    %185 = arith.select %183, %184, %181 : vector<10x10xi1>, vector<10x10xf32>
    %cst_139 = arith.constant dense<0xFF800000> : vector<10xf32>
    %186 = vector.multi_reduction <maximumf>, %185, %cst_139 [1] : vector<10x10xf32> to vector<10xf32>
    %187 = vector.shape_cast %186 : vector<10xf32> to vector<10x1xf32>
    %188 = vector.broadcast %187 : vector<10x1xf32> to vector<10x10xf32>
    %189 = arith.subf %185, %188 : vector<10x10xf32>
    %190 = math.exp %189 : vector<10x10xf32>
    %cst_140 = arith.constant dense<0.000000e+00> : vector<10xf32>
    %191 = vector.multi_reduction <add>, %190, %cst_140 [1] : vector<10x10xf32> to vector<10xf32>
    %192 = vector.shape_cast %191 : vector<10xf32> to vector<10x1xf32>
    %193 = tpu.reciprocal %192 {approx = true} : vector<10x1xf32> -> vector<10x1xf32>
    %194 = vector.broadcast %193 : vector<10x1xf32> to vector<10x10xf32>
    %195 = arith.mulf %190, %194 : vector<10x10xf32>
    %cst_141 = arith.constant dense<0.000000e+00> : vector<10x8xf32>
    %196 = tpu.matmul %195, %177, %cst_141 {dimension_numbers = #tpu.dot_dimension_numbers<[1], [0], [0], [1], [0, 0, 1, 1], [], []>} : vector<10x10xf32>, vector<10x8xf32>, vector<10x8xf32> -> vector<10x8xf32>
    %c3_142 = arith.constant 3 : index
    %c0_143 = arith.constant 0 : index
    %c0_144 = arith.constant 0 : index
    %197 = vector.load %arg9[%c3_142, %c0_143, %c0_144] : memref<4x8x32xf32, #tpu.memory_space<vmem>>, vector<1x8x32xf32>
    %198 = vector.shape_cast %197 : vector<1x8x32xf32> to vector<8x32xf32>
    %cst_145 = arith.constant dense<0.000000e+00> : vector<10x32xf32>
    %199 = tpu.matmul %196, %198, %cst_145 {dimension_numbers = #tpu.dot_dimension_numbers<[1], [0], [0], [1], [0, 0, 1, 1], [], []>} : vector<10x8xf32>, vector<8x32xf32>, vector<10x32xf32> -> vector<10x32xf32>
    %200 = arith.addf %156, %199 : vector<10x32xf32>
    %201 = arith.addf %6, %200 : vector<10x32xf32>
    %202 = vector.broadcast %2 : vector<1x32xf32> to vector<10x32xf32>
    %203 = arith.addf %201, %202 : vector<10x32xf32>
    %cst_146 = arith.constant dense<0.000000e+00> : vector<10xf32>
    %204 = vector.multi_reduction <add>, %203, %cst_146 [1] : vector<10x32xf32> to vector<10xf32>
    %205 = vector.shape_cast %204 : vector<10xf32> to vector<10x1xf32>
    %cst_147 = arith.constant 3.200000e+01 : f32
    %206 = vector.broadcast %cst_147 : f32 to vector<10x1xf32>
    %207 = arith.divf %205, %206 : vector<10x1xf32>
    %208 = vector.broadcast %207 : vector<10x1xf32> to vector<10x32xf32>
    %209 = arith.subf %203, %208 : vector<10x32xf32>
    %210 = arith.mulf %209, %209 : vector<10x32xf32>
    %cst_148 = arith.constant dense<0.000000e+00> : vector<10xf32>
    %211 = vector.multi_reduction <add>, %210, %cst_148 [1] : vector<10x32xf32> to vector<10xf32>
    %212 = vector.shape_cast %211 : vector<10xf32> to vector<10x1xf32>
    %cst_149 = arith.constant 0.0322580636 : f32
    %213 = vector.broadcast %cst_149 : f32 to vector<10x1xf32>
    %214 = arith.mulf %212, %213 : vector<10x1xf32>
    %215 = math.sqrt %214 : vector<10x1xf32>
    %cst_150 = arith.constant 9.99999997E-7 : f32
    %216 = vector.broadcast %cst_150 : f32 to vector<10x1xf32>
    %217 = arith.addf %215, %216 : vector<10x1xf32>
    %218 = tpu.reciprocal %217 {approx = true} : vector<10x1xf32> -> vector<10x1xf32>
    %219 = vector.broadcast %218 : vector<10x1xf32> to vector<10x32xf32>
    %220 = arith.mulf %209, %219 : vector<10x32xf32>
    %221 = vector.broadcast %3 : vector<1x32xf32> to vector<10x32xf32>
    %222 = arith.mulf %221, %220 : vector<10x32xf32>
    %223 = vector.broadcast %4 : vector<1x32xf32> to vector<10x32xf32>
    %224 = arith.addf %222, %223 : vector<10x32xf32>
    %c0_151 = arith.constant 0 : index
    %c0_152 = arith.constant 0 : index
    %c0_153 = arith.constant 0 : index
    %225 = vector.load %arg15[%c0_151, %c0_152, %c0_153] : memref<2x10x32xf32, #tpu.memory_space<vmem>>, vector<1x10x32xf32>
    %226 = vector.shape_cast %225 : vector<1x10x32xf32> to vector<10x32xf32>
    %227 = vector.shape_cast %224 : vector<10x32xf32> to vector<1x10x32xf32>
    tpu.vector_store %arg15[%c0_151, %c0_152, %c0_153], %227 {strides = array<i32>} : memref<2x10x32xf32, #tpu.memory_space<vmem>>, vector<1x10x32xf32>,
    %c1_154 = arith.constant 1 : index
    %c0_155 = arith.constant 0 : index
    %c0_156 = arith.constant 0 : index
    %228 = vector.load %arg0[%c1_154, %c0_155, %c0_156] : memref<2x10x32xf32, #tpu.memory_space<vmem>>, vector<1x10x32xf32>
    %229 = vector.shape_cast %228 : vector<1x10x32xf32> to vector<10x32xf32>
    %c1_157 = arith.constant 1 : index
    %c0_158 = arith.constant 0 : index
    %c0_159 = arith.constant 0 : index
    %c0_160 = arith.constant 0 : index
    %230 = vector.load %arg1[%c1_157, %c0_158, %c0_159, %c0_160] : memref<2x10x10x8xf32, #tpu.memory_space<vmem>>, vector<1x10x10x8xf32>
    %231 = vector.shape_cast %230 : vector<1x10x10x8xf32> to vector<10x10x8xf32>
    %232 = vector.shape_cast %0 : vector<1x8xf32> to vector<1x1x8xf32>
    %233 = vector.broadcast %232 : vector<1x1x8xf32> to vector<10x10x8xf32>
    %234 = arith.mulf %231, %233 : vector<10x10x8xf32>
    %cst_161 = arith.constant dense<0.000000e+00> : vector<10x10xf32>
    %235 = vector.multi_reduction <add>, %234, %cst_161 [2] : vector<10x10x8xf32> to vector<10x10xf32>
    %236 = vector.broadcast %1 : vector<1x1xf32> to vector<10x10xf32>
    %237 = arith.addf %235, %236 : vector<10x10xf32>
    %cst_162 = arith.constant 0.000000e+00 : f32
    %238 = vector.broadcast %cst_162 : f32 to vector<10x10xf32>
    %239 = arith.maximumf %237, %238 : vector<10x10xf32>
    %c1_163 = arith.constant 1 : index
    %c0_164 = arith.constant 0 : index
    %c0_165 = arith.constant 0 : index
    %240 = vector.load %arg16[%c1_163, %c0_164, %c0_165] : memref<2x10x10xf32, #tpu.memory_space<vmem>>, vector<1x10x10xf32>
    %241 = vector.shape_cast %240 : vector<1x10x10xf32> to vector<10x10xf32>
    %242 = vector.shape_cast %239 : vector<10x10xf32> to vector<1x10x10xf32>
    tpu.vector_store %arg16[%c1_163, %c0_164, %c0_165], %242 {strides = array<i32>} : memref<2x10x10xf32, #tpu.memory_space<vmem>>, vector<1x10x10xf32>,
    %c1_166 = arith.constant 1 : index
    %c0_167 = arith.constant 0 : index
    %c0_168 = arith.constant 0 : index
    %243 = vector.load %arg2[%c1_166, %c0_167, %c0_168] : memref<2x1x10xf32, #tpu.memory_space<vmem>>, vector<1x1x10xf32>
    %244 = vector.shape_cast %243 : vector<1x1x10xf32> to vector<1x10xf32>
    %cst_169 = arith.constant 5.000000e-01 : f32
    %245 = vector.broadcast %cst_169 : f32 to vector<1x10xf32>
    %246 = arith.cmpf ogt, %244, %245 : vector<1x10xf32>
    %cst_170 = arith.constant 0.000000e+00 : f32
    %247 = vector.broadcast %cst_170 : f32 to vector<10x32xf32>
    %c0_171 = arith.constant 0 : index
    %c0_172 = arith.constant 0 : index
    %c0_173 = arith.constant 0 : index
    %248 = vector.load %arg3[%c0_171, %c0_172, %c0_173] : memref<4x32x8xf32, #tpu.memory_space<vmem>>, vector<1x32x8xf32>
    %249 = vector.shape_cast %248 : vector<1x32x8xf32> to vector<32x8xf32>
    %cst_174 = arith.constant dense<0.000000e+00> : vector<10x8xf32>
    %250 = tpu.matmul %229, %249, %cst_174 {dimension_numbers = #tpu.dot_dimension_numbers<[1], [0], [0], [1], [0, 0, 1, 1], [], []>} : vector<10x32xf32>, vector<32x8xf32>, vector<10x8xf32> -> vector<10x8xf32>
    %c0_175 = arith.constant 0 : index
    %c0_176 = arith.constant 0 : index
    %c0_177 = arith.constant 0 : index
    %251 = vector.load %arg4[%c0_175, %c0_176, %c0_177] : memref<4x1x8xf32, #tpu.memory_space<vmem>>, vector<1x1x8xf32>
    %252 = vector.shape_cast %251 : vector<1x1x8xf32> to vector<1x8xf32>
    %253 = vector.broadcast %252 : vector<1x8xf32> to vector<10x8xf32>
    %254 = arith.addf %250, %253 : vector<10x8xf32>
    %c0_178 = arith.constant 0 : index
    %c0_179 = arith.constant 0 : index
    %c0_180 = arith.constant 0 : index
    %255 = vector.load %arg5[%c0_178, %c0_179, %c0_180] : memref<4x32x8xf32, #tpu.memory_space<vmem>>, vector<1x32x8xf32>
    %256 = vector.shape_cast %255 : vector<1x32x8xf32> to vector<32x8xf32>
    %cst_181 = arith.constant dense<0.000000e+00> : vector<10x8xf32>
    %257 = tpu.matmul %229, %256, %cst_181 {dimension_numbers = #tpu.dot_dimension_numbers<[1], [0], [0], [1], [0, 0, 1, 1], [], []>} : vector<10x32xf32>, vector<32x8xf32>, vector<10x8xf32> -> vector<10x8xf32>
    %c0_182 = arith.constant 0 : index
    %c0_183 = arith.constant 0 : index
    %c0_184 = arith.constant 0 : index
    %258 = vector.load %arg6[%c0_182, %c0_183, %c0_184] : memref<4x1x8xf32, #tpu.memory_space<vmem>>, vector<1x1x8xf32>
    %259 = vector.shape_cast %258 : vector<1x1x8xf32> to vector<1x8xf32>
    %260 = vector.broadcast %259 : vector<1x8xf32> to vector<10x8xf32>
    %261 = arith.addf %257, %260 : vector<10x8xf32>
    %c0_185 = arith.constant 0 : index
    %c0_186 = arith.constant 0 : index
    %c0_187 = arith.constant 0 : index
    %262 = vector.load %arg7[%c0_185, %c0_186, %c0_187] : memref<4x32x8xf32, #tpu.memory_space<vmem>>, vector<1x32x8xf32>
    %263 = vector.shape_cast %262 : vector<1x32x8xf32> to vector<32x8xf32>
    %cst_188 = arith.constant dense<0.000000e+00> : vector<10x8xf32>
    %264 = tpu.matmul %229, %263, %cst_188 {dimension_numbers = #tpu.dot_dimension_numbers<[1], [0], [0], [1], [0, 0, 1, 1], [], []>} : vector<10x32xf32>, vector<32x8xf32>, vector<10x8xf32> -> vector<10x8xf32>
    %c0_189 = arith.constant 0 : index
    %c0_190 = arith.constant 0 : index
    %c0_191 = arith.constant 0 : index
    %265 = vector.load %arg8[%c0_189, %c0_190, %c0_191] : memref<4x1x8xf32, #tpu.memory_space<vmem>>, vector<1x1x8xf32>
    %266 = vector.shape_cast %265 : vector<1x1x8xf32> to vector<1x8xf32>
    %267 = vector.broadcast %266 : vector<1x8xf32> to vector<10x8xf32>
    %268 = arith.addf %264, %267 : vector<10x8xf32>
    %cst_192 = arith.constant dense<0.000000e+00> : vector<10x10xf32>
    %269 = tpu.matmul %254, %261, %cst_192 {dimension_numbers = #tpu.dot_dimension_numbers<[1], [1], [0], [0], [0, 0, 1, 0], [], []>} : vector<10x8xf32>, vector<10x8xf32>, vector<10x10xf32> -> vector<10x10xf32>
    %cst_193 = arith.constant 0.353553385 : f32
    %270 = vector.broadcast %cst_193 : f32 to vector<10x10xf32>
    %271 = arith.mulf %269, %270 : vector<10x10xf32>
    %272 = arith.addf %271, %239 : vector<10x10xf32>
    %cst_194 = arith.constant -1.000000e+09 : f32
    %273 = vector.shape_cast %246 : vector<1x10xi1> to vector<1x10xi1>
    %274 = vector.broadcast %273 : vector<1x10xi1> to vector<10x10xi1>
    %275 = vector.broadcast %cst_194 : f32 to vector<10x10xf32>
    %276 = arith.select %274, %275, %272 : vector<10x10xi1>, vector<10x10xf32>
    %cst_195 = arith.constant dense<0xFF800000> : vector<10xf32>
    %277 = vector.multi_reduction <maximumf>, %276, %cst_195 [1] : vector<10x10xf32> to vector<10xf32>
    %278 = vector.shape_cast %277 : vector<10xf32> to vector<10x1xf32>
    %279 = vector.broadcast %278 : vector<10x1xf32> to vector<10x10xf32>
    %280 = arith.subf %276, %279 : vector<10x10xf32>
    %281 = math.exp %280 : vector<10x10xf32>
    %cst_196 = arith.constant dense<0.000000e+00> : vector<10xf32>
    %282 = vector.multi_reduction <add>, %281, %cst_196 [1] : vector<10x10xf32> to vector<10xf32>
    %283 = vector.shape_cast %282 : vector<10xf32> to vector<10x1xf32>
    %284 = tpu.reciprocal %283 {approx = true} : vector<10x1xf32> -> vector<10x1xf32>
    %285 = vector.broadcast %284 : vector<10x1xf32> to vector<10x10xf32>
    %286 = arith.mulf %281, %285 : vector<10x10xf32>
    %cst_197 = arith.constant dense<0.000000e+00> : vector<10x8xf32>
    %287 = tpu.matmul %286, %268, %cst_197 {dimension_numbers = #tpu.dot_dimension_numbers<[1], [0], [0], [1], [0, 0, 1, 1], [], []>} : vector<10x10xf32>, vector<10x8xf32>, vector<10x8xf32> -> vector<10x8xf32>
    %c0_198 = arith.constant 0 : index
    %c0_199 = arith.constant 0 : index
    %c0_200 = arith.constant 0 : index
    %288 = vector.load %arg9[%c0_198, %c0_199, %c0_200] : memref<4x8x32xf32, #tpu.memory_space<vmem>>, vector<1x8x32xf32>
    %289 = vector.shape_cast %288 : vector<1x8x32xf32> to vector<8x32xf32>
    %cst_201 = arith.constant dense<0.000000e+00> : vector<10x32xf32>
    %290 = tpu.matmul %287, %289, %cst_201 {dimension_numbers = #tpu.dot_dimension_numbers<[1], [0], [0], [1], [0, 0, 1, 1], [], []>} : vector<10x8xf32>, vector<8x32xf32>, vector<10x32xf32> -> vector<10x32xf32>
    %291 = arith.addf %247, %290 : vector<10x32xf32>
    %c1_202 = arith.constant 1 : index
    %c0_203 = arith.constant 0 : index
    %c0_204 = arith.constant 0 : index
    %292 = vector.load %arg3[%c1_202, %c0_203, %c0_204] : memref<4x32x8xf32, #tpu.memory_space<vmem>>, vector<1x32x8xf32>
    %293 = vector.shape_cast %292 : vector<1x32x8xf32> to vector<32x8xf32>
    %cst_205 = arith.constant dense<0.000000e+00> : vector<10x8xf32>
    %294 = tpu.matmul %229, %293, %cst_205 {dimension_numbers = #tpu.dot_dimension_numbers<[1], [0], [0], [1], [0, 0, 1, 1], [], []>} : vector<10x32xf32>, vector<32x8xf32>, vector<10x8xf32> -> vector<10x8xf32>
    %c1_206 = arith.constant 1 : index
    %c0_207 = arith.constant 0 : index
    %c0_208 = arith.constant 0 : index
    %295 = vector.load %arg4[%c1_206, %c0_207, %c0_208] : memref<4x1x8xf32, #tpu.memory_space<vmem>>, vector<1x1x8xf32>
    %296 = vector.shape_cast %295 : vector<1x1x8xf32> to vector<1x8xf32>
    %297 = vector.broadcast %296 : vector<1x8xf32> to vector<10x8xf32>
    %298 = arith.addf %294, %297 : vector<10x8xf32>
    %c1_209 = arith.constant 1 : index
    %c0_210 = arith.constant 0 : index
    %c0_211 = arith.constant 0 : index
    %299 = vector.load %arg5[%c1_209, %c0_210, %c0_211] : memref<4x32x8xf32, #tpu.memory_space<vmem>>, vector<1x32x8xf32>
    %300 = vector.shape_cast %299 : vector<1x32x8xf32> to vector<32x8xf32>
    %cst_212 = arith.constant dense<0.000000e+00> : vector<10x8xf32>
    %301 = tpu.matmul %229, %300, %cst_212 {dimension_numbers = #tpu.dot_dimension_numbers<[1], [0], [0], [1], [0, 0, 1, 1], [], []>} : vector<10x32xf32>, vector<32x8xf32>, vector<10x8xf32> -> vector<10x8xf32>
    %c1_213 = arith.constant 1 : index
    %c0_214 = arith.constant 0 : index
    %c0_215 = arith.constant 0 : index
    %302 = vector.load %arg6[%c1_213, %c0_214, %c0_215] : memref<4x1x8xf32, #tpu.memory_space<vmem>>, vector<1x1x8xf32>
    %303 = vector.shape_cast %302 : vector<1x1x8xf32> to vector<1x8xf32>
    %304 = vector.broadcast %303 : vector<1x8xf32> to vector<10x8xf32>
    %305 = arith.addf %301, %304 : vector<10x8xf32>
    %c1_216 = arith.constant 1 : index
    %c0_217 = arith.constant 0 : index
    %c0_218 = arith.constant 0 : index
    %306 = vector.load %arg7[%c1_216, %c0_217, %c0_218] : memref<4x32x8xf32, #tpu.memory_space<vmem>>, vector<1x32x8xf32>
    %307 = vector.shape_cast %306 : vector<1x32x8xf32> to vector<32x8xf32>
    %cst_219 = arith.constant dense<0.000000e+00> : vector<10x8xf32>
    %308 = tpu.matmul %229, %307, %cst_219 {dimension_numbers = #tpu.dot_dimension_numbers<[1], [0], [0], [1], [0, 0, 1, 1], [], []>} : vector<10x32xf32>, vector<32x8xf32>, vector<10x8xf32> -> vector<10x8xf32>
    %c1_220 = arith.constant 1 : index
    %c0_221 = arith.constant 0 : index
    %c0_222 = arith.constant 0 : index
    %309 = vector.load %arg8[%c1_220, %c0_221, %c0_222] : memref<4x1x8xf32, #tpu.memory_space<vmem>>, vector<1x1x8xf32>
    %310 = vector.shape_cast %309 : vector<1x1x8xf32> to vector<1x8xf32>
    %311 = vector.broadcast %310 : vector<1x8xf32> to vector<10x8xf32>
    %312 = arith.addf %308, %311 : vector<10x8xf32>
    %cst_223 = arith.constant dense<0.000000e+00> : vector<10x10xf32>
    %313 = tpu.matmul %298, %305, %cst_223 {dimension_numbers = #tpu.dot_dimension_numbers<[1], [1], [0], [0], [0, 0, 1, 0], [], []>} : vector<10x8xf32>, vector<10x8xf32>, vector<10x10xf32> -> vector<10x10xf32>
    %cst_224 = arith.constant 0.353553385 : f32
    %314 = vector.broadcast %cst_224 : f32 to vector<10x10xf32>
    %315 = arith.mulf %313, %314 : vector<10x10xf32>
    %316 = arith.addf %315, %239 : vector<10x10xf32>
    %cst_225 = arith.constant -1.000000e+09 : f32
    %317 = vector.shape_cast %246 : vector<1x10xi1> to vector<1x10xi1>
    %318 = vector.broadcast %317 : vector<1x10xi1> to vector<10x10xi1>
    %319 = vector.broadcast %cst_225 : f32 to vector<10x10xf32>
    %320 = arith.select %318, %319, %316 : vector<10x10xi1>, vector<10x10xf32>
    %cst_226 = arith.constant dense<0xFF800000> : vector<10xf32>
    %321 = vector.multi_reduction <maximumf>, %320, %cst_226 [1] : vector<10x10xf32> to vector<10xf32>
    %322 = vector.shape_cast %321 : vector<10xf32> to vector<10x1xf32>
    %323 = vector.broadcast %322 : vector<10x1xf32> to vector<10x10xf32>
    %324 = arith.subf %320, %323 : vector<10x10xf32>
    %325 = math.exp %324 : vector<10x10xf32>
    %cst_227 = arith.constant dense<0.000000e+00> : vector<10xf32>
    %326 = vector.multi_reduction <add>, %325, %cst_227 [1] : vector<10x10xf32> to vector<10xf32>
    %327 = vector.shape_cast %326 : vector<10xf32> to vector<10x1xf32>
    %328 = tpu.reciprocal %327 {approx = true} : vector<10x1xf32> -> vector<10x1xf32>
    %329 = vector.broadcast %328 : vector<10x1xf32> to vector<10x10xf32>
    %330 = arith.mulf %325, %329 : vector<10x10xf32>
    %cst_228 = arith.constant dense<0.000000e+00> : vector<10x8xf32>
    %331 = tpu.matmul %330, %312, %cst_228 {dimension_numbers = #tpu.dot_dimension_numbers<[1], [0], [0], [1], [0, 0, 1, 1], [], []>} : vector<10x10xf32>, vector<10x8xf32>, vector<10x8xf32> -> vector<10x8xf32>
    %c1_229 = arith.constant 1 : index
    %c0_230 = arith.constant 0 : index
    %c0_231 = arith.constant 0 : index
    %332 = vector.load %arg9[%c1_229, %c0_230, %c0_231] : memref<4x8x32xf32, #tpu.memory_space<vmem>>, vector<1x8x32xf32>
    %333 = vector.shape_cast %332 : vector<1x8x32xf32> to vector<8x32xf32>
    %cst_232 = arith.constant dense<0.000000e+00> : vector<10x32xf32>
    %334 = tpu.matmul %331, %333, %cst_232 {dimension_numbers = #tpu.dot_dimension_numbers<[1], [0], [0], [1], [0, 0, 1, 1], [], []>} : vector<10x8xf32>, vector<8x32xf32>, vector<10x32xf32> -> vector<10x32xf32>
    %335 = arith.addf %291, %334 : vector<10x32xf32>
    %c2_233 = arith.constant 2 : index
    %c0_234 = arith.constant 0 : index
    %c0_235 = arith.constant 0 : index
    %336 = vector.load %arg3[%c2_233, %c0_234, %c0_235] : memref<4x32x8xf32, #tpu.memory_space<vmem>>, vector<1x32x8xf32>
    %337 = vector.shape_cast %336 : vector<1x32x8xf32> to vector<32x8xf32>
    %cst_236 = arith.constant dense<0.000000e+00> : vector<10x8xf32>
    %338 = tpu.matmul %229, %337, %cst_236 {dimension_numbers = #tpu.dot_dimension_numbers<[1], [0], [0], [1], [0, 0, 1, 1], [], []>} : vector<10x32xf32>, vector<32x8xf32>, vector<10x8xf32> -> vector<10x8xf32>
    %c2_237 = arith.constant 2 : index
    %c0_238 = arith.constant 0 : index
    %c0_239 = arith.constant 0 : index
    %339 = vector.load %arg4[%c2_237, %c0_238, %c0_239] : memref<4x1x8xf32, #tpu.memory_space<vmem>>, vector<1x1x8xf32>
    %340 = vector.shape_cast %339 : vector<1x1x8xf32> to vector<1x8xf32>
    %341 = vector.broadcast %340 : vector<1x8xf32> to vector<10x8xf32>
    %342 = arith.addf %338, %341 : vector<10x8xf32>
    %c2_240 = arith.constant 2 : index
    %c0_241 = arith.constant 0 : index
    %c0_242 = arith.constant 0 : index
    %343 = vector.load %arg5[%c2_240, %c0_241, %c0_242] : memref<4x32x8xf32, #tpu.memory_space<vmem>>, vector<1x32x8xf32>
    %344 = vector.shape_cast %343 : vector<1x32x8xf32> to vector<32x8xf32>
    %cst_243 = arith.constant dense<0.000000e+00> : vector<10x8xf32>
    %345 = tpu.matmul %229, %344, %cst_243 {dimension_numbers = #tpu.dot_dimension_numbers<[1], [0], [0], [1], [0, 0, 1, 1], [], []>} : vector<10x32xf32>, vector<32x8xf32>, vector<10x8xf32> -> vector<10x8xf32>
    %c2_244 = arith.constant 2 : index
    %c0_245 = arith.constant 0 : index
    %c0_246 = arith.constant 0 : index
    %346 = vector.load %arg6[%c2_244, %c0_245, %c0_246] : memref<4x1x8xf32, #tpu.memory_space<vmem>>, vector<1x1x8xf32>
    %347 = vector.shape_cast %346 : vector<1x1x8xf32> to vector<1x8xf32>
    %348 = vector.broadcast %347 : vector<1x8xf32> to vector<10x8xf32>
    %349 = arith.addf %345, %348 : vector<10x8xf32>
    %c2_247 = arith.constant 2 : index
    %c0_248 = arith.constant 0 : index
    %c0_249 = arith.constant 0 : index
    %350 = vector.load %arg7[%c2_247, %c0_248, %c0_249] : memref<4x32x8xf32, #tpu.memory_space<vmem>>, vector<1x32x8xf32>
    %351 = vector.shape_cast %350 : vector<1x32x8xf32> to vector<32x8xf32>
    %cst_250 = arith.constant dense<0.000000e+00> : vector<10x8xf32>
    %352 = tpu.matmul %229, %351, %cst_250 {dimension_numbers = #tpu.dot_dimension_numbers<[1], [0], [0], [1], [0, 0, 1, 1], [], []>} : vector<10x32xf32>, vector<32x8xf32>, vector<10x8xf32> -> vector<10x8xf32>
    %c2_251 = arith.constant 2 : index
    %c0_252 = arith.constant 0 : index
    %c0_253 = arith.constant 0 : index
    %353 = vector.load %arg8[%c2_251, %c0_252, %c0_253] : memref<4x1x8xf32, #tpu.memory_space<vmem>>, vector<1x1x8xf32>
    %354 = vector.shape_cast %353 : vector<1x1x8xf32> to vector<1x8xf32>
    %355 = vector.broadcast %354 : vector<1x8xf32> to vector<10x8xf32>
    %356 = arith.addf %352, %355 : vector<10x8xf32>
    %cst_254 = arith.constant dense<0.000000e+00> : vector<10x10xf32>
    %357 = tpu.matmul %342, %349, %cst_254 {dimension_numbers = #tpu.dot_dimension_numbers<[1], [1], [0], [0], [0, 0, 1, 0], [], []>} : vector<10x8xf32>, vector<10x8xf32>, vector<10x10xf32> -> vector<10x10xf32>
    %cst_255 = arith.constant 0.353553385 : f32
    %358 = vector.broadcast %cst_255 : f32 to vector<10x10xf32>
    %359 = arith.mulf %357, %358 : vector<10x10xf32>
    %360 = arith.addf %359, %239 : vector<10x10xf32>
    %cst_256 = arith.constant -1.000000e+09 : f32
    %361 = vector.shape_cast %246 : vector<1x10xi1> to vector<1x10xi1>
    %362 = vector.broadcast %361 : vector<1x10xi1> to vector<10x10xi1>
    %363 = vector.broadcast %cst_256 : f32 to vector<10x10xf32>
    %364 = arith.select %362, %363, %360 : vector<10x10xi1>, vector<10x10xf32>
    %cst_257 = arith.constant dense<0xFF800000> : vector<10xf32>
    %365 = vector.multi_reduction <maximumf>, %364, %cst_257 [1] : vector<10x10xf32> to vector<10xf32>
    %366 = vector.shape_cast %365 : vector<10xf32> to vector<10x1xf32>
    %367 = vector.broadcast %366 : vector<10x1xf32> to vector<10x10xf32>
    %368 = arith.subf %364, %367 : vector<10x10xf32>
    %369 = math.exp %368 : vector<10x10xf32>
    %cst_258 = arith.constant dense<0.000000e+00> : vector<10xf32>
    %370 = vector.multi_reduction <add>, %369, %cst_258 [1] : vector<10x10xf32> to vector<10xf32>
    %371 = vector.shape_cast %370 : vector<10xf32> to vector<10x1xf32>
    %372 = tpu.reciprocal %371 {approx = true} : vector<10x1xf32> -> vector<10x1xf32>
    %373 = vector.broadcast %372 : vector<10x1xf32> to vector<10x10xf32>
    %374 = arith.mulf %369, %373 : vector<10x10xf32>
    %cst_259 = arith.constant dense<0.000000e+00> : vector<10x8xf32>
    %375 = tpu.matmul %374, %356, %cst_259 {dimension_numbers = #tpu.dot_dimension_numbers<[1], [0], [0], [1], [0, 0, 1, 1], [], []>} : vector<10x10xf32>, vector<10x8xf32>, vector<10x8xf32> -> vector<10x8xf32>
    %c2_260 = arith.constant 2 : index
    %c0_261 = arith.constant 0 : index
    %c0_262 = arith.constant 0 : index
    %376 = vector.load %arg9[%c2_260, %c0_261, %c0_262] : memref<4x8x32xf32, #tpu.memory_space<vmem>>, vector<1x8x32xf32>
    %377 = vector.shape_cast %376 : vector<1x8x32xf32> to vector<8x32xf32>
    %cst_263 = arith.constant dense<0.000000e+00> : vector<10x32xf32>
    %378 = tpu.matmul %375, %377, %cst_263 {dimension_numbers = #tpu.dot_dimension_numbers<[1], [0], [0], [1], [0, 0, 1, 1], [], []>} : vector<10x8xf32>, vector<8x32xf32>, vector<10x32xf32> -> vector<10x32xf32>
    %379 = arith.addf %335, %378 : vector<10x32xf32>
    %c3_264 = arith.constant 3 : index
    %c0_265 = arith.constant 0 : index
    %c0_266 = arith.constant 0 : index
    %380 = vector.load %arg3[%c3_264, %c0_265, %c0_266] : memref<4x32x8xf32, #tpu.memory_space<vmem>>, vector<1x32x8xf32>
    %381 = vector.shape_cast %380 : vector<1x32x8xf32> to vector<32x8xf32>
    %cst_267 = arith.constant dense<0.000000e+00> : vector<10x8xf32>
    %382 = tpu.matmul %229, %381, %cst_267 {dimension_numbers = #tpu.dot_dimension_numbers<[1], [0], [0], [1], [0, 0, 1, 1], [], []>} : vector<10x32xf32>, vector<32x8xf32>, vector<10x8xf32> -> vector<10x8xf32>
    %c3_268 = arith.constant 3 : index
    %c0_269 = arith.constant 0 : index
    %c0_270 = arith.constant 0 : index
    %383 = vector.load %arg4[%c3_268, %c0_269, %c0_270] : memref<4x1x8xf32, #tpu.memory_space<vmem>>, vector<1x1x8xf32>
    %384 = vector.shape_cast %383 : vector<1x1x8xf32> to vector<1x8xf32>
    %385 = vector.broadcast %384 : vector<1x8xf32> to vector<10x8xf32>
    %386 = arith.addf %382, %385 : vector<10x8xf32>
    %c3_271 = arith.constant 3 : index
    %c0_272 = arith.constant 0 : index
    %c0_273 = arith.constant 0 : index
    %387 = vector.load %arg5[%c3_271, %c0_272, %c0_273] : memref<4x32x8xf32, #tpu.memory_space<vmem>>, vector<1x32x8xf32>
    %388 = vector.shape_cast %387 : vector<1x32x8xf32> to vector<32x8xf32>
    %cst_274 = arith.constant dense<0.000000e+00> : vector<10x8xf32>
    %389 = tpu.matmul %229, %388, %cst_274 {dimension_numbers = #tpu.dot_dimension_numbers<[1], [0], [0], [1], [0, 0, 1, 1], [], []>} : vector<10x32xf32>, vector<32x8xf32>, vector<10x8xf32> -> vector<10x8xf32>
    %c3_275 = arith.constant 3 : index
    %c0_276 = arith.constant 0 : index
    %c0_277 = arith.constant 0 : index
    %390 = vector.load %arg6[%c3_275, %c0_276, %c0_277] : memref<4x1x8xf32, #tpu.memory_space<vmem>>, vector<1x1x8xf32>
    %391 = vector.shape_cast %390 : vector<1x1x8xf32> to vector<1x8xf32>
    %392 = vector.broadcast %391 : vector<1x8xf32> to vector<10x8xf32>
    %393 = arith.addf %389, %392 : vector<10x8xf32>
    %c3_278 = arith.constant 3 : index
    %c0_279 = arith.constant 0 : index
    %c0_280 = arith.constant 0 : index
    %394 = vector.load %arg7[%c3_278, %c0_279, %c0_280] : memref<4x32x8xf32, #tpu.memory_space<vmem>>, vector<1x32x8xf32>
    %395 = vector.shape_cast %394 : vector<1x32x8xf32> to vector<32x8xf32>
    %cst_281 = arith.constant dense<0.000000e+00> : vector<10x8xf32>
    %396 = tpu.matmul %229, %395, %cst_281 {dimension_numbers = #tpu.dot_dimension_numbers<[1], [0], [0], [1], [0, 0, 1, 1], [], []>} : vector<10x32xf32>, vector<32x8xf32>, vector<10x8xf32> -> vector<10x8xf32>
    %c3_282 = arith.constant 3 : index
    %c0_283 = arith.constant 0 : index
    %c0_284 = arith.constant 0 : index
    %397 = vector.load %arg8[%c3_282, %c0_283, %c0_284] : memref<4x1x8xf32, #tpu.memory_space<vmem>>, vector<1x1x8xf32>
    %398 = vector.shape_cast %397 : vector<1x1x8xf32> to vector<1x8xf32>
    %399 = vector.broadcast %398 : vector<1x8xf32> to vector<10x8xf32>
    %400 = arith.addf %396, %399 : vector<10x8xf32>
    %cst_285 = arith.constant dense<0.000000e+00> : vector<10x10xf32>
    %401 = tpu.matmul %386, %393, %cst_285 {dimension_numbers = #tpu.dot_dimension_numbers<[1], [1], [0], [0], [0, 0, 1, 0], [], []>} : vector<10x8xf32>, vector<10x8xf32>, vector<10x10xf32> -> vector<10x10xf32>
    %cst_286 = arith.constant 0.353553385 : f32
    %402 = vector.broadcast %cst_286 : f32 to vector<10x10xf32>
    %403 = arith.mulf %401, %402 : vector<10x10xf32>
    %404 = arith.addf %403, %239 : vector<10x10xf32>
    %cst_287 = arith.constant -1.000000e+09 : f32
    %405 = vector.shape_cast %246 : vector<1x10xi1> to vector<1x10xi1>
    %406 = vector.broadcast %405 : vector<1x10xi1> to vector<10x10xi1>
    %407 = vector.broadcast %cst_287 : f32 to vector<10x10xf32>
    %408 = arith.select %406, %407, %404 : vector<10x10xi1>, vector<10x10xf32>
    %cst_288 = arith.constant dense<0xFF800000> : vector<10xf32>
    %409 = vector.multi_reduction <maximumf>, %408, %cst_288 [1] : vector<10x10xf32> to vector<10xf32>
    %410 = vector.shape_cast %409 : vector<10xf32> to vector<10x1xf32>
    %411 = vector.broadcast %410 : vector<10x1xf32> to vector<10x10xf32>
    %412 = arith.subf %408, %411 : vector<10x10xf32>
    %413 = math.exp %412 : vector<10x10xf32>
    %cst_289 = arith.constant dense<0.000000e+00> : vector<10xf32>
    %414 = vector.multi_reduction <add>, %413, %cst_289 [1] : vector<10x10xf32> to vector<10xf32>
    %415 = vector.shape_cast %414 : vector<10xf32> to vector<10x1xf32>
    %416 = tpu.reciprocal %415 {approx = true} : vector<10x1xf32> -> vector<10x1xf32>
    %417 = vector.broadcast %416 : vector<10x1xf32> to vector<10x10xf32>
    %418 = arith.mulf %413, %417 : vector<10x10xf32>
    %cst_290 = arith.constant dense<0.000000e+00> : vector<10x8xf32>
    %419 = tpu.matmul %418, %400, %cst_290 {dimension_numbers = #tpu.dot_dimension_numbers<[1], [0], [0], [1], [0, 0, 1, 1], [], []>} : vector<10x10xf32>, vector<10x8xf32>, vector<10x8xf32> -> vector<10x8xf32>
    %c3_291 = arith.constant 3 : index
    %c0_292 = arith.constant 0 : index
    %c0_293 = arith.constant 0 : index
    %420 = vector.load %arg9[%c3_291, %c0_292, %c0_293] : memref<4x8x32xf32, #tpu.memory_space<vmem>>, vector<1x8x32xf32>
    %421 = vector.shape_cast %420 : vector<1x8x32xf32> to vector<8x32xf32>
    %cst_294 = arith.constant dense<0.000000e+00> : vector<10x32xf32>
    %422 = tpu.matmul %419, %421, %cst_294 {dimension_numbers = #tpu.dot_dimension_numbers<[1], [0], [0], [1], [0, 0, 1, 1], [], []>} : vector<10x8xf32>, vector<8x32xf32>, vector<10x32xf32> -> vector<10x32xf32>
    %423 = arith.addf %379, %422 : vector<10x32xf32>
    %424 = arith.addf %229, %423 : vector<10x32xf32>
    %425 = vector.broadcast %2 : vector<1x32xf32> to vector<10x32xf32>
    %426 = arith.addf %424, %425 : vector<10x32xf32>
    %cst_295 = arith.constant dense<0.000000e+00> : vector<10xf32>
    %427 = vector.multi_reduction <add>, %426, %cst_295 [1] : vector<10x32xf32> to vector<10xf32>
    %428 = vector.shape_cast %427 : vector<10xf32> to vector<10x1xf32>
    %cst_296 = arith.constant 3.200000e+01 : f32
    %429 = vector.broadcast %cst_296 : f32 to vector<10x1xf32>
    %430 = arith.divf %428, %429 : vector<10x1xf32>
    %431 = vector.broadcast %430 : vector<10x1xf32> to vector<10x32xf32>
    %432 = arith.subf %426, %431 : vector<10x32xf32>
    %433 = arith.mulf %432, %432 : vector<10x32xf32>
    %cst_297 = arith.constant dense<0.000000e+00> : vector<10xf32>
    %434 = vector.multi_reduction <add>, %433, %cst_297 [1] : vector<10x32xf32> to vector<10xf32>
    %435 = vector.shape_cast %434 : vector<10xf32> to vector<10x1xf32>
    %cst_298 = arith.constant 0.0322580636 : f32
    %436 = vector.broadcast %cst_298 : f32 to vector<10x1xf32>
    %437 = arith.mulf %435, %436 : vector<10x1xf32>
    %438 = math.sqrt %437 : vector<10x1xf32>
    %cst_299 = arith.constant 9.99999997E-7 : f32
    %439 = vector.broadcast %cst_299 : f32 to vector<10x1xf32>
    %440 = arith.addf %438, %439 : vector<10x1xf32>
    %441 = tpu.reciprocal %440 {approx = true} : vector<10x1xf32> -> vector<10x1xf32>
    %442 = vector.broadcast %441 : vector<10x1xf32> to vector<10x32xf32>
    %443 = arith.mulf %432, %442 : vector<10x32xf32>
    %444 = vector.broadcast %3 : vector<1x32xf32> to vector<10x32xf32>
    %445 = arith.mulf %444, %443 : vector<10x32xf32>
    %446 = vector.broadcast %4 : vector<1x32xf32> to vector<10x32xf32>
    %447 = arith.addf %445, %446 : vector<10x32xf32>
    %c1_300 = arith.constant 1 : index
    %c0_301 = arith.constant 0 : index
    %c0_302 = arith.constant 0 : index
    %448 = vector.load %arg15[%c1_300, %c0_301, %c0_302] : memref<2x10x32xf32, #tpu.memory_space<vmem>>, vector<1x10x32xf32>
    %449 = vector.shape_cast %448 : vector<1x10x32xf32> to vector<10x32xf32>
    %450 = vector.shape_cast %447 : vector<10x32xf32> to vector<1x10x32xf32>
    tpu.vector_store %arg15[%c1_300, %c0_301, %c0_302], %450 {strides = array<i32>} : memref<2x10x32xf32, #tpu.memory_space<vmem>>, vector<1x10x32xf32>,
    return
  }
}

module attributes {stable_mosaic.version = 11 : i64} {
  func.func @_mhatt2_ln_kernel(%arg0: memref<2x10x32xf32, #tpu.memory_space<vmem>>, %arg1: memref<2x8x32xf32, #tpu.memory_space<vmem>>, %arg2: memref<2x10x32xf32, #tpu.memory_space<vmem>>, %arg3: memref<2x8x32xf32, #tpu.memory_space<vmem>>, %arg4: memref<2x1x8xf32, #tpu.memory_space<vmem>>, %arg5: memref<4x32x8xf32, #tpu.memory_space<vmem>>, %arg6: memref<4x1x8xf32, #tpu.memory_space<vmem>>, %arg7: memref<4x32x8xf32, #tpu.memory_space<vmem>>, %arg8: memref<4x1x8xf32, #tpu.memory_space<vmem>>, %arg9: memref<4x32x8xf32, #tpu.memory_space<vmem>>, %arg10: memref<4x1x8xf32, #tpu.memory_space<vmem>>, %arg11: memref<4x32x8xf32, #tpu.memory_space<vmem>>, %arg12: memref<4x1x8xf32, #tpu.memory_space<vmem>>, %arg13: memref<4x32x8xf32, #tpu.memory_space<vmem>>, %arg14: memref<4x1x8xf32, #tpu.memory_space<vmem>>, %arg15: memref<4x8x32xf32, #tpu.memory_space<vmem>>, %arg16: memref<1x32xf32, #tpu.memory_space<vmem>>, %arg17: memref<1x32xf32, #tpu.memory_space<vmem>>, %arg18: memref<1x32xf32, #tpu.memory_space<vmem>>, %arg19: memref<2x10x32xf32, #tpu.memory_space<vmem>>, %arg20: memref<8x10x8xf32, #tpu.memory_space<vmem>>) attributes {dimension_semantics = [], scalar_prefetch = 0 : i64, scratch_operands = 0 : i64, tpu.core_type = #tpu.core_type<tc>} {
    %c0 = arith.constant 0 : index
    %c0_0 = arith.constant 0 : index
    %0 = vector.load %arg16[%c0, %c0_0] : memref<1x32xf32, #tpu.memory_space<vmem>>, vector<1x32xf32>
    %c0_1 = arith.constant 0 : index
    %c0_2 = arith.constant 0 : index
    %1 = vector.load %arg17[%c0_1, %c0_2] : memref<1x32xf32, #tpu.memory_space<vmem>>, vector<1x32xf32>
    %c0_3 = arith.constant 0 : index
    %c0_4 = arith.constant 0 : index
    %2 = vector.load %arg18[%c0_3, %c0_4] : memref<1x32xf32, #tpu.memory_space<vmem>>, vector<1x32xf32>
    %c0_5 = arith.constant 0 : index
    %c0_6 = arith.constant 0 : index
    %c0_7 = arith.constant 0 : index
    %3 = vector.load %arg0[%c0_5, %c0_6, %c0_7] : memref<2x10x32xf32, #tpu.memory_space<vmem>>, vector<1x10x32xf32>
    %4 = vector.shape_cast %3 : vector<1x10x32xf32> to vector<10x32xf32>
    %c0_8 = arith.constant 0 : index
    %c0_9 = arith.constant 0 : index
    %c0_10 = arith.constant 0 : index
    %5 = vector.load %arg1[%c0_8, %c0_9, %c0_10] : memref<2x8x32xf32, #tpu.memory_space<vmem>>, vector<1x8x32xf32>
    %6 = vector.shape_cast %5 : vector<1x8x32xf32> to vector<8x32xf32>
    %c0_11 = arith.constant 0 : index
    %c0_12 = arith.constant 0 : index
    %c0_13 = arith.constant 0 : index
    %7 = vector.load %arg2[%c0_11, %c0_12, %c0_13] : memref<2x10x32xf32, #tpu.memory_space<vmem>>, vector<1x10x32xf32>
    %8 = vector.shape_cast %7 : vector<1x10x32xf32> to vector<10x32xf32>
    %c0_14 = arith.constant 0 : index
    %c0_15 = arith.constant 0 : index
    %c0_16 = arith.constant 0 : index
    %9 = vector.load %arg3[%c0_14, %c0_15, %c0_16] : memref<2x8x32xf32, #tpu.memory_space<vmem>>, vector<1x8x32xf32>
    %10 = vector.shape_cast %9 : vector<1x8x32xf32> to vector<8x32xf32>
    %c0_17 = arith.constant 0 : index
    %c0_18 = arith.constant 0 : index
    %c0_19 = arith.constant 0 : index
    %11 = vector.load %arg4[%c0_17, %c0_18, %c0_19] : memref<2x1x8xf32, #tpu.memory_space<vmem>>, vector<1x1x8xf32>
    %12 = vector.shape_cast %11 : vector<1x1x8xf32> to vector<1x8xf32>
    %cst = arith.constant 5.000000e-01 : f32
    %13 = vector.broadcast %cst : f32 to vector<1x8xf32>
    %14 = arith.cmpf ogt, %12, %13 : vector<1x8xf32>
    %cst_20 = arith.constant 0.000000e+00 : f32
    %15 = vector.broadcast %cst_20 : f32 to vector<10x32xf32>
    %c0_21 = arith.constant 0 : index
    %c0_22 = arith.constant 0 : index
    %c0_23 = arith.constant 0 : index
    %16 = vector.load %arg5[%c0_21, %c0_22, %c0_23] : memref<4x32x8xf32, #tpu.memory_space<vmem>>, vector<1x32x8xf32>
    %17 = vector.shape_cast %16 : vector<1x32x8xf32> to vector<32x8xf32>
    %cst_24 = arith.constant dense<0.000000e+00> : vector<10x8xf32>
    %18 = tpu.matmul %4, %17, %cst_24 {dimension_numbers = #tpu.dot_dimension_numbers<[1], [0], [0], [1], [0, 0, 1, 1], [], []>} : vector<10x32xf32>, vector<32x8xf32>, vector<10x8xf32> -> vector<10x8xf32>
    %c0_25 = arith.constant 0 : index
    %c0_26 = arith.constant 0 : index
    %c0_27 = arith.constant 0 : index
    %19 = vector.load %arg6[%c0_25, %c0_26, %c0_27] : memref<4x1x8xf32, #tpu.memory_space<vmem>>, vector<1x1x8xf32>
    %20 = vector.shape_cast %19 : vector<1x1x8xf32> to vector<1x8xf32>
    %21 = vector.broadcast %20 : vector<1x8xf32> to vector<10x8xf32>
    %22 = arith.addf %18, %21 : vector<10x8xf32>
    %c0_28 = arith.constant 0 : index
    %c0_29 = arith.constant 0 : index
    %c0_30 = arith.constant 0 : index
    %23 = vector.load %arg7[%c0_28, %c0_29, %c0_30] : memref<4x32x8xf32, #tpu.memory_space<vmem>>, vector<1x32x8xf32>
    %24 = vector.shape_cast %23 : vector<1x32x8xf32> to vector<32x8xf32>
    %cst_31 = arith.constant dense<0.000000e+00> : vector<8x8xf32>
    %25 = tpu.matmul %6, %24, %cst_31 {dimension_numbers = #tpu.dot_dimension_numbers<[1], [0], [0], [1], [0, 0, 1, 1], [], []>} : vector<8x32xf32>, vector<32x8xf32>, vector<8x8xf32> -> vector<8x8xf32>
    %c0_32 = arith.constant 0 : index
    %c0_33 = arith.constant 0 : index
    %c0_34 = arith.constant 0 : index
    %26 = vector.load %arg8[%c0_32, %c0_33, %c0_34] : memref<4x1x8xf32, #tpu.memory_space<vmem>>, vector<1x1x8xf32>
    %27 = vector.shape_cast %26 : vector<1x1x8xf32> to vector<1x8xf32>
    %28 = vector.broadcast %27 : vector<1x8xf32> to vector<8x8xf32>
    %29 = arith.addf %25, %28 : vector<8x8xf32>
    %c0_35 = arith.constant 0 : index
    %c0_36 = arith.constant 0 : index
    %c0_37 = arith.constant 0 : index
    %30 = vector.load %arg9[%c0_35, %c0_36, %c0_37] : memref<4x32x8xf32, #tpu.memory_space<vmem>>, vector<1x32x8xf32>
    %31 = vector.shape_cast %30 : vector<1x32x8xf32> to vector<32x8xf32>
    %cst_38 = arith.constant dense<0.000000e+00> : vector<8x8xf32>
    %32 = tpu.matmul %6, %31, %cst_38 {dimension_numbers = #tpu.dot_dimension_numbers<[1], [0], [0], [1], [0, 0, 1, 1], [], []>} : vector<8x32xf32>, vector<32x8xf32>, vector<8x8xf32> -> vector<8x8xf32>
    %c0_39 = arith.constant 0 : index
    %c0_40 = arith.constant 0 : index
    %c0_41 = arith.constant 0 : index
    %33 = vector.load %arg10[%c0_39, %c0_40, %c0_41] : memref<4x1x8xf32, #tpu.memory_space<vmem>>, vector<1x1x8xf32>
    %34 = vector.shape_cast %33 : vector<1x1x8xf32> to vector<1x8xf32>
    %35 = vector.broadcast %34 : vector<1x8xf32> to vector<8x8xf32>
    %36 = arith.addf %32, %35 : vector<8x8xf32>
    %c0_42 = arith.constant 0 : index
    %c0_43 = arith.constant 0 : index
    %c0_44 = arith.constant 0 : index
    %37 = vector.load %arg11[%c0_42, %c0_43, %c0_44] : memref<4x32x8xf32, #tpu.memory_space<vmem>>, vector<1x32x8xf32>
    %38 = vector.shape_cast %37 : vector<1x32x8xf32> to vector<32x8xf32>
    %cst_45 = arith.constant dense<0.000000e+00> : vector<10x8xf32>
    %39 = tpu.matmul %8, %38, %cst_45 {dimension_numbers = #tpu.dot_dimension_numbers<[1], [0], [0], [1], [0, 0, 1, 1], [], []>} : vector<10x32xf32>, vector<32x8xf32>, vector<10x8xf32> -> vector<10x8xf32>
    %c0_46 = arith.constant 0 : index
    %c0_47 = arith.constant 0 : index
    %c0_48 = arith.constant 0 : index
    %40 = vector.load %arg12[%c0_46, %c0_47, %c0_48] : memref<4x1x8xf32, #tpu.memory_space<vmem>>, vector<1x1x8xf32>
    %41 = vector.shape_cast %40 : vector<1x1x8xf32> to vector<1x8xf32>
    %42 = vector.broadcast %41 : vector<1x8xf32> to vector<10x8xf32>
    %43 = arith.addf %39, %42 : vector<10x8xf32>
    %c0_49 = arith.constant 0 : index
    %c0_50 = arith.constant 0 : index
    %c0_51 = arith.constant 0 : index
    %44 = vector.load %arg13[%c0_49, %c0_50, %c0_51] : memref<4x32x8xf32, #tpu.memory_space<vmem>>, vector<1x32x8xf32>
    %45 = vector.shape_cast %44 : vector<1x32x8xf32> to vector<32x8xf32>
    %cst_52 = arith.constant dense<0.000000e+00> : vector<8x8xf32>
    %46 = tpu.matmul %10, %45, %cst_52 {dimension_numbers = #tpu.dot_dimension_numbers<[1], [0], [0], [1], [0, 0, 1, 1], [], []>} : vector<8x32xf32>, vector<32x8xf32>, vector<8x8xf32> -> vector<8x8xf32>
    %c0_53 = arith.constant 0 : index
    %c0_54 = arith.constant 0 : index
    %c0_55 = arith.constant 0 : index
    %47 = vector.load %arg14[%c0_53, %c0_54, %c0_55] : memref<4x1x8xf32, #tpu.memory_space<vmem>>, vector<1x1x8xf32>
    %48 = vector.shape_cast %47 : vector<1x1x8xf32> to vector<1x8xf32>
    %49 = vector.broadcast %48 : vector<1x8xf32> to vector<8x8xf32>
    %50 = arith.addf %46, %49 : vector<8x8xf32>
    %cst_56 = arith.constant dense<0.000000e+00> : vector<10x8xf32>
    %51 = tpu.matmul %43, %50, %cst_56 {dimension_numbers = #tpu.dot_dimension_numbers<[1], [1], [0], [0], [0, 0, 1, 0], [], []>} : vector<10x8xf32>, vector<8x8xf32>, vector<10x8xf32> -> vector<10x8xf32>
    %cst_57 = arith.constant 2.500000e-01 : f32
    %52 = vector.broadcast %cst_57 : f32 to vector<10x8xf32>
    %53 = arith.mulf %51, %52 : vector<10x8xf32>
    %c0_58 = arith.constant 0 : index
    %c0_59 = arith.constant 0 : index
    %c0_60 = arith.constant 0 : index
    %54 = vector.load %arg20[%c0_58, %c0_59, %c0_60] : memref<8x10x8xf32, #tpu.memory_space<vmem>>, vector<1x10x8xf32>
    %55 = vector.shape_cast %54 : vector<1x10x8xf32> to vector<10x8xf32>
    %56 = vector.shape_cast %53 : vector<10x8xf32> to vector<1x10x8xf32>
    tpu.vector_store %arg20[%c0_58, %c0_59, %c0_60], %56 {strides = array<i32>} : memref<8x10x8xf32, #tpu.memory_space<vmem>>, vector<1x10x8xf32>,
    %cst_61 = arith.constant dense<0.000000e+00> : vector<10x8xf32>
    %57 = tpu.matmul %22, %29, %cst_61 {dimension_numbers = #tpu.dot_dimension_numbers<[1], [1], [0], [0], [0, 0, 1, 0], [], []>} : vector<10x8xf32>, vector<8x8xf32>, vector<10x8xf32> -> vector<10x8xf32>
    %cst_62 = arith.constant 2.500000e-01 : f32
    %58 = vector.broadcast %cst_62 : f32 to vector<10x8xf32>
    %59 = arith.mulf %57, %58 : vector<10x8xf32>
    %60 = arith.addf %59, %53 : vector<10x8xf32>
    %cst_63 = arith.constant -1.000000e+09 : f32
    %61 = vector.shape_cast %14 : vector<1x8xi1> to vector<1x8xi1>
    %62 = vector.broadcast %61 : vector<1x8xi1> to vector<10x8xi1>
    %63 = vector.broadcast %cst_63 : f32 to vector<10x8xf32>
    %64 = arith.select %62, %63, %60 : vector<10x8xi1>, vector<10x8xf32>
    %cst_64 = arith.constant dense<0xFF800000> : vector<10xf32>
    %65 = vector.multi_reduction <maximumf>, %64, %cst_64 [1] : vector<10x8xf32> to vector<10xf32>
    %66 = vector.shape_cast %65 : vector<10xf32> to vector<10x1xf32>
    %67 = vector.broadcast %66 : vector<10x1xf32> to vector<10x8xf32>
    %68 = arith.subf %64, %67 : vector<10x8xf32>
    %69 = math.exp %68 : vector<10x8xf32>
    %cst_65 = arith.constant dense<0.000000e+00> : vector<10xf32>
    %70 = vector.multi_reduction <add>, %69, %cst_65 [1] : vector<10x8xf32> to vector<10xf32>
    %71 = vector.shape_cast %70 : vector<10xf32> to vector<10x1xf32>
    %72 = tpu.reciprocal %71 {approx = true} : vector<10x1xf32> -> vector<10x1xf32>
    %73 = vector.broadcast %72 : vector<10x1xf32> to vector<10x8xf32>
    %74 = arith.mulf %69, %73 : vector<10x8xf32>
    %cst_66 = arith.constant dense<0.000000e+00> : vector<10x8xf32>
    %75 = tpu.matmul %74, %36, %cst_66 {dimension_numbers = #tpu.dot_dimension_numbers<[1], [0], [0], [1], [0, 0, 1, 1], [], []>} : vector<10x8xf32>, vector<8x8xf32>, vector<10x8xf32> -> vector<10x8xf32>
    %c0_67 = arith.constant 0 : index
    %c0_68 = arith.constant 0 : index
    %c0_69 = arith.constant 0 : index
    %76 = vector.load %arg15[%c0_67, %c0_68, %c0_69] : memref<4x8x32xf32, #tpu.memory_space<vmem>>, vector<1x8x32xf32>
    %77 = vector.shape_cast %76 : vector<1x8x32xf32> to vector<8x32xf32>
    %cst_70 = arith.constant dense<0.000000e+00> : vector<10x32xf32>
    %78 = tpu.matmul %75, %77, %cst_70 {dimension_numbers = #tpu.dot_dimension_numbers<[1], [0], [0], [1], [0, 0, 1, 1], [], []>} : vector<10x8xf32>, vector<8x32xf32>, vector<10x32xf32> -> vector<10x32xf32>
    %79 = arith.addf %15, %78 : vector<10x32xf32>
    %c1 = arith.constant 1 : index
    %c0_71 = arith.constant 0 : index
    %c0_72 = arith.constant 0 : index
    %80 = vector.load %arg5[%c1, %c0_71, %c0_72] : memref<4x32x8xf32, #tpu.memory_space<vmem>>, vector<1x32x8xf32>
    %81 = vector.shape_cast %80 : vector<1x32x8xf32> to vector<32x8xf32>
    %cst_73 = arith.constant dense<0.000000e+00> : vector<10x8xf32>
    %82 = tpu.matmul %4, %81, %cst_73 {dimension_numbers = #tpu.dot_dimension_numbers<[1], [0], [0], [1], [0, 0, 1, 1], [], []>} : vector<10x32xf32>, vector<32x8xf32>, vector<10x8xf32> -> vector<10x8xf32>
    %c1_74 = arith.constant 1 : index
    %c0_75 = arith.constant 0 : index
    %c0_76 = arith.constant 0 : index
    %83 = vector.load %arg6[%c1_74, %c0_75, %c0_76] : memref<4x1x8xf32, #tpu.memory_space<vmem>>, vector<1x1x8xf32>
    %84 = vector.shape_cast %83 : vector<1x1x8xf32> to vector<1x8xf32>
    %85 = vector.broadcast %84 : vector<1x8xf32> to vector<10x8xf32>
    %86 = arith.addf %82, %85 : vector<10x8xf32>
    %c1_77 = arith.constant 1 : index
    %c0_78 = arith.constant 0 : index
    %c0_79 = arith.constant 0 : index
    %87 = vector.load %arg7[%c1_77, %c0_78, %c0_79] : memref<4x32x8xf32, #tpu.memory_space<vmem>>, vector<1x32x8xf32>
    %88 = vector.shape_cast %87 : vector<1x32x8xf32> to vector<32x8xf32>
    %cst_80 = arith.constant dense<0.000000e+00> : vector<8x8xf32>
    %89 = tpu.matmul %6, %88, %cst_80 {dimension_numbers = #tpu.dot_dimension_numbers<[1], [0], [0], [1], [0, 0, 1, 1], [], []>} : vector<8x32xf32>, vector<32x8xf32>, vector<8x8xf32> -> vector<8x8xf32>
    %c1_81 = arith.constant 1 : index
    %c0_82 = arith.constant 0 : index
    %c0_83 = arith.constant 0 : index
    %90 = vector.load %arg8[%c1_81, %c0_82, %c0_83] : memref<4x1x8xf32, #tpu.memory_space<vmem>>, vector<1x1x8xf32>
    %91 = vector.shape_cast %90 : vector<1x1x8xf32> to vector<1x8xf32>
    %92 = vector.broadcast %91 : vector<1x8xf32> to vector<8x8xf32>
    %93 = arith.addf %89, %92 : vector<8x8xf32>
    %c1_84 = arith.constant 1 : index
    %c0_85 = arith.constant 0 : index
    %c0_86 = arith.constant 0 : index
    %94 = vector.load %arg9[%c1_84, %c0_85, %c0_86] : memref<4x32x8xf32, #tpu.memory_space<vmem>>, vector<1x32x8xf32>
    %95 = vector.shape_cast %94 : vector<1x32x8xf32> to vector<32x8xf32>
    %cst_87 = arith.constant dense<0.000000e+00> : vector<8x8xf32>
    %96 = tpu.matmul %6, %95, %cst_87 {dimension_numbers = #tpu.dot_dimension_numbers<[1], [0], [0], [1], [0, 0, 1, 1], [], []>} : vector<8x32xf32>, vector<32x8xf32>, vector<8x8xf32> -> vector<8x8xf32>
    %c1_88 = arith.constant 1 : index
    %c0_89 = arith.constant 0 : index
    %c0_90 = arith.constant 0 : index
    %97 = vector.load %arg10[%c1_88, %c0_89, %c0_90] : memref<4x1x8xf32, #tpu.memory_space<vmem>>, vector<1x1x8xf32>
    %98 = vector.shape_cast %97 : vector<1x1x8xf32> to vector<1x8xf32>
    %99 = vector.broadcast %98 : vector<1x8xf32> to vector<8x8xf32>
    %100 = arith.addf %96, %99 : vector<8x8xf32>
    %c1_91 = arith.constant 1 : index
    %c0_92 = arith.constant 0 : index
    %c0_93 = arith.constant 0 : index
    %101 = vector.load %arg11[%c1_91, %c0_92, %c0_93] : memref<4x32x8xf32, #tpu.memory_space<vmem>>, vector<1x32x8xf32>
    %102 = vector.shape_cast %101 : vector<1x32x8xf32> to vector<32x8xf32>
    %cst_94 = arith.constant dense<0.000000e+00> : vector<10x8xf32>
    %103 = tpu.matmul %8, %102, %cst_94 {dimension_numbers = #tpu.dot_dimension_numbers<[1], [0], [0], [1], [0, 0, 1, 1], [], []>} : vector<10x32xf32>, vector<32x8xf32>, vector<10x8xf32> -> vector<10x8xf32>
    %c1_95 = arith.constant 1 : index
    %c0_96 = arith.constant 0 : index
    %c0_97 = arith.constant 0 : index
    %104 = vector.load %arg12[%c1_95, %c0_96, %c0_97] : memref<4x1x8xf32, #tpu.memory_space<vmem>>, vector<1x1x8xf32>
    %105 = vector.shape_cast %104 : vector<1x1x8xf32> to vector<1x8xf32>
    %106 = vector.broadcast %105 : vector<1x8xf32> to vector<10x8xf32>
    %107 = arith.addf %103, %106 : vector<10x8xf32>
    %c1_98 = arith.constant 1 : index
    %c0_99 = arith.constant 0 : index
    %c0_100 = arith.constant 0 : index
    %108 = vector.load %arg13[%c1_98, %c0_99, %c0_100] : memref<4x32x8xf32, #tpu.memory_space<vmem>>, vector<1x32x8xf32>
    %109 = vector.shape_cast %108 : vector<1x32x8xf32> to vector<32x8xf32>
    %cst_101 = arith.constant dense<0.000000e+00> : vector<8x8xf32>
    %110 = tpu.matmul %10, %109, %cst_101 {dimension_numbers = #tpu.dot_dimension_numbers<[1], [0], [0], [1], [0, 0, 1, 1], [], []>} : vector<8x32xf32>, vector<32x8xf32>, vector<8x8xf32> -> vector<8x8xf32>
    %c1_102 = arith.constant 1 : index
    %c0_103 = arith.constant 0 : index
    %c0_104 = arith.constant 0 : index
    %111 = vector.load %arg14[%c1_102, %c0_103, %c0_104] : memref<4x1x8xf32, #tpu.memory_space<vmem>>, vector<1x1x8xf32>
    %112 = vector.shape_cast %111 : vector<1x1x8xf32> to vector<1x8xf32>
    %113 = vector.broadcast %112 : vector<1x8xf32> to vector<8x8xf32>
    %114 = arith.addf %110, %113 : vector<8x8xf32>
    %cst_105 = arith.constant dense<0.000000e+00> : vector<10x8xf32>
    %115 = tpu.matmul %107, %114, %cst_105 {dimension_numbers = #tpu.dot_dimension_numbers<[1], [1], [0], [0], [0, 0, 1, 0], [], []>} : vector<10x8xf32>, vector<8x8xf32>, vector<10x8xf32> -> vector<10x8xf32>
    %cst_106 = arith.constant 2.500000e-01 : f32
    %116 = vector.broadcast %cst_106 : f32 to vector<10x8xf32>
    %117 = arith.mulf %115, %116 : vector<10x8xf32>
    %c1_107 = arith.constant 1 : index
    %c0_108 = arith.constant 0 : index
    %c0_109 = arith.constant 0 : index
    %118 = vector.load %arg20[%c1_107, %c0_108, %c0_109] : memref<8x10x8xf32, #tpu.memory_space<vmem>>, vector<1x10x8xf32>
    %119 = vector.shape_cast %118 : vector<1x10x8xf32> to vector<10x8xf32>
    %120 = vector.shape_cast %117 : vector<10x8xf32> to vector<1x10x8xf32>
    tpu.vector_store %arg20[%c1_107, %c0_108, %c0_109], %120 {strides = array<i32>} : memref<8x10x8xf32, #tpu.memory_space<vmem>>, vector<1x10x8xf32>,
    %cst_110 = arith.constant dense<0.000000e+00> : vector<10x8xf32>
    %121 = tpu.matmul %86, %93, %cst_110 {dimension_numbers = #tpu.dot_dimension_numbers<[1], [1], [0], [0], [0, 0, 1, 0], [], []>} : vector<10x8xf32>, vector<8x8xf32>, vector<10x8xf32> -> vector<10x8xf32>
    %cst_111 = arith.constant 2.500000e-01 : f32
    %122 = vector.broadcast %cst_111 : f32 to vector<10x8xf32>
    %123 = arith.mulf %121, %122 : vector<10x8xf32>
    %124 = arith.addf %123, %117 : vector<10x8xf32>
    %cst_112 = arith.constant -1.000000e+09 : f32
    %125 = vector.shape_cast %14 : vector<1x8xi1> to vector<1x8xi1>
    %126 = vector.broadcast %125 : vector<1x8xi1> to vector<10x8xi1>
    %127 = vector.broadcast %cst_112 : f32 to vector<10x8xf32>
    %128 = arith.select %126, %127, %124 : vector<10x8xi1>, vector<10x8xf32>
    %cst_113 = arith.constant dense<0xFF800000> : vector<10xf32>
    %129 = vector.multi_reduction <maximumf>, %128, %cst_113 [1] : vector<10x8xf32> to vector<10xf32>
    %130 = vector.shape_cast %129 : vector<10xf32> to vector<10x1xf32>
    %131 = vector.broadcast %130 : vector<10x1xf32> to vector<10x8xf32>
    %132 = arith.subf %128, %131 : vector<10x8xf32>
    %133 = math.exp %132 : vector<10x8xf32>
    %cst_114 = arith.constant dense<0.000000e+00> : vector<10xf32>
    %134 = vector.multi_reduction <add>, %133, %cst_114 [1] : vector<10x8xf32> to vector<10xf32>
    %135 = vector.shape_cast %134 : vector<10xf32> to vector<10x1xf32>
    %136 = tpu.reciprocal %135 {approx = true} : vector<10x1xf32> -> vector<10x1xf32>
    %137 = vector.broadcast %136 : vector<10x1xf32> to vector<10x8xf32>
    %138 = arith.mulf %133, %137 : vector<10x8xf32>
    %cst_115 = arith.constant dense<0.000000e+00> : vector<10x8xf32>
    %139 = tpu.matmul %138, %100, %cst_115 {dimension_numbers = #tpu.dot_dimension_numbers<[1], [0], [0], [1], [0, 0, 1, 1], [], []>} : vector<10x8xf32>, vector<8x8xf32>, vector<10x8xf32> -> vector<10x8xf32>
    %c1_116 = arith.constant 1 : index
    %c0_117 = arith.constant 0 : index
    %c0_118 = arith.constant 0 : index
    %140 = vector.load %arg15[%c1_116, %c0_117, %c0_118] : memref<4x8x32xf32, #tpu.memory_space<vmem>>, vector<1x8x32xf32>
    %141 = vector.shape_cast %140 : vector<1x8x32xf32> to vector<8x32xf32>
    %cst_119 = arith.constant dense<0.000000e+00> : vector<10x32xf32>
    %142 = tpu.matmul %139, %141, %cst_119 {dimension_numbers = #tpu.dot_dimension_numbers<[1], [0], [0], [1], [0, 0, 1, 1], [], []>} : vector<10x8xf32>, vector<8x32xf32>, vector<10x32xf32> -> vector<10x32xf32>
    %143 = arith.addf %79, %142 : vector<10x32xf32>
    %c2 = arith.constant 2 : index
    %c0_120 = arith.constant 0 : index
    %c0_121 = arith.constant 0 : index
    %144 = vector.load %arg5[%c2, %c0_120, %c0_121] : memref<4x32x8xf32, #tpu.memory_space<vmem>>, vector<1x32x8xf32>
    %145 = vector.shape_cast %144 : vector<1x32x8xf32> to vector<32x8xf32>
    %cst_122 = arith.constant dense<0.000000e+00> : vector<10x8xf32>
    %146 = tpu.matmul %4, %145, %cst_122 {dimension_numbers = #tpu.dot_dimension_numbers<[1], [0], [0], [1], [0, 0, 1, 1], [], []>} : vector<10x32xf32>, vector<32x8xf32>, vector<10x8xf32> -> vector<10x8xf32>
    %c2_123 = arith.constant 2 : index
    %c0_124 = arith.constant 0 : index
    %c0_125 = arith.constant 0 : index
    %147 = vector.load %arg6[%c2_123, %c0_124, %c0_125] : memref<4x1x8xf32, #tpu.memory_space<vmem>>, vector<1x1x8xf32>
    %148 = vector.shape_cast %147 : vector<1x1x8xf32> to vector<1x8xf32>
    %149 = vector.broadcast %148 : vector<1x8xf32> to vector<10x8xf32>
    %150 = arith.addf %146, %149 : vector<10x8xf32>
    %c2_126 = arith.constant 2 : index
    %c0_127 = arith.constant 0 : index
    %c0_128 = arith.constant 0 : index
    %151 = vector.load %arg7[%c2_126, %c0_127, %c0_128] : memref<4x32x8xf32, #tpu.memory_space<vmem>>, vector<1x32x8xf32>
    %152 = vector.shape_cast %151 : vector<1x32x8xf32> to vector<32x8xf32>
    %cst_129 = arith.constant dense<0.000000e+00> : vector<8x8xf32>
    %153 = tpu.matmul %6, %152, %cst_129 {dimension_numbers = #tpu.dot_dimension_numbers<[1], [0], [0], [1], [0, 0, 1, 1], [], []>} : vector<8x32xf32>, vector<32x8xf32>, vector<8x8xf32> -> vector<8x8xf32>
    %c2_130 = arith.constant 2 : index
    %c0_131 = arith.constant 0 : index
    %c0_132 = arith.constant 0 : index
    %154 = vector.load %arg8[%c2_130, %c0_131, %c0_132] : memref<4x1x8xf32, #tpu.memory_space<vmem>>, vector<1x1x8xf32>
    %155 = vector.shape_cast %154 : vector<1x1x8xf32> to vector<1x8xf32>
    %156 = vector.broadcast %155 : vector<1x8xf32> to vector<8x8xf32>
    %157 = arith.addf %153, %156 : vector<8x8xf32>
    %c2_133 = arith.constant 2 : index
    %c0_134 = arith.constant 0 : index
    %c0_135 = arith.constant 0 : index
    %158 = vector.load %arg9[%c2_133, %c0_134, %c0_135] : memref<4x32x8xf32, #tpu.memory_space<vmem>>, vector<1x32x8xf32>
    %159 = vector.shape_cast %158 : vector<1x32x8xf32> to vector<32x8xf32>
    %cst_136 = arith.constant dense<0.000000e+00> : vector<8x8xf32>
    %160 = tpu.matmul %6, %159, %cst_136 {dimension_numbers = #tpu.dot_dimension_numbers<[1], [0], [0], [1], [0, 0, 1, 1], [], []>} : vector<8x32xf32>, vector<32x8xf32>, vector<8x8xf32> -> vector<8x8xf32>
    %c2_137 = arith.constant 2 : index
    %c0_138 = arith.constant 0 : index
    %c0_139 = arith.constant 0 : index
    %161 = vector.load %arg10[%c2_137, %c0_138, %c0_139] : memref<4x1x8xf32, #tpu.memory_space<vmem>>, vector<1x1x8xf32>
    %162 = vector.shape_cast %161 : vector<1x1x8xf32> to vector<1x8xf32>
    %163 = vector.broadcast %162 : vector<1x8xf32> to vector<8x8xf32>
    %164 = arith.addf %160, %163 : vector<8x8xf32>
    %c2_140 = arith.constant 2 : index
    %c0_141 = arith.constant 0 : index
    %c0_142 = arith.constant 0 : index
    %165 = vector.load %arg11[%c2_140, %c0_141, %c0_142] : memref<4x32x8xf32, #tpu.memory_space<vmem>>, vector<1x32x8xf32>
    %166 = vector.shape_cast %165 : vector<1x32x8xf32> to vector<32x8xf32>
    %cst_143 = arith.constant dense<0.000000e+00> : vector<10x8xf32>
    %167 = tpu.matmul %8, %166, %cst_143 {dimension_numbers = #tpu.dot_dimension_numbers<[1], [0], [0], [1], [0, 0, 1, 1], [], []>} : vector<10x32xf32>, vector<32x8xf32>, vector<10x8xf32> -> vector<10x8xf32>
    %c2_144 = arith.constant 2 : index
    %c0_145 = arith.constant 0 : index
    %c0_146 = arith.constant 0 : index
    %168 = vector.load %arg12[%c2_144, %c0_145, %c0_146] : memref<4x1x8xf32, #tpu.memory_space<vmem>>, vector<1x1x8xf32>
    %169 = vector.shape_cast %168 : vector<1x1x8xf32> to vector<1x8xf32>
    %170 = vector.broadcast %169 : vector<1x8xf32> to vector<10x8xf32>
    %171 = arith.addf %167, %170 : vector<10x8xf32>
    %c2_147 = arith.constant 2 : index
    %c0_148 = arith.constant 0 : index
    %c0_149 = arith.constant 0 : index
    %172 = vector.load %arg13[%c2_147, %c0_148, %c0_149] : memref<4x32x8xf32, #tpu.memory_space<vmem>>, vector<1x32x8xf32>
    %173 = vector.shape_cast %172 : vector<1x32x8xf32> to vector<32x8xf32>
    %cst_150 = arith.constant dense<0.000000e+00> : vector<8x8xf32>
    %174 = tpu.matmul %10, %173, %cst_150 {dimension_numbers = #tpu.dot_dimension_numbers<[1], [0], [0], [1], [0, 0, 1, 1], [], []>} : vector<8x32xf32>, vector<32x8xf32>, vector<8x8xf32> -> vector<8x8xf32>
    %c2_151 = arith.constant 2 : index
    %c0_152 = arith.constant 0 : index
    %c0_153 = arith.constant 0 : index
    %175 = vector.load %arg14[%c2_151, %c0_152, %c0_153] : memref<4x1x8xf32, #tpu.memory_space<vmem>>, vector<1x1x8xf32>
    %176 = vector.shape_cast %175 : vector<1x1x8xf32> to vector<1x8xf32>
    %177 = vector.broadcast %176 : vector<1x8xf32> to vector<8x8xf32>
    %178 = arith.addf %174, %177 : vector<8x8xf32>
    %cst_154 = arith.constant dense<0.000000e+00> : vector<10x8xf32>
    %179 = tpu.matmul %171, %178, %cst_154 {dimension_numbers = #tpu.dot_dimension_numbers<[1], [1], [0], [0], [0, 0, 1, 0], [], []>} : vector<10x8xf32>, vector<8x8xf32>, vector<10x8xf32> -> vector<10x8xf32>
    %cst_155 = arith.constant 2.500000e-01 : f32
    %180 = vector.broadcast %cst_155 : f32 to vector<10x8xf32>
    %181 = arith.mulf %179, %180 : vector<10x8xf32>
    %c2_156 = arith.constant 2 : index
    %c0_157 = arith.constant 0 : index
    %c0_158 = arith.constant 0 : index
    %182 = vector.load %arg20[%c2_156, %c0_157, %c0_158] : memref<8x10x8xf32, #tpu.memory_space<vmem>>, vector<1x10x8xf32>
    %183 = vector.shape_cast %182 : vector<1x10x8xf32> to vector<10x8xf32>
    %184 = vector.shape_cast %181 : vector<10x8xf32> to vector<1x10x8xf32>
    tpu.vector_store %arg20[%c2_156, %c0_157, %c0_158], %184 {strides = array<i32>} : memref<8x10x8xf32, #tpu.memory_space<vmem>>, vector<1x10x8xf32>,
    %cst_159 = arith.constant dense<0.000000e+00> : vector<10x8xf32>
    %185 = tpu.matmul %150, %157, %cst_159 {dimension_numbers = #tpu.dot_dimension_numbers<[1], [1], [0], [0], [0, 0, 1, 0], [], []>} : vector<10x8xf32>, vector<8x8xf32>, vector<10x8xf32> -> vector<10x8xf32>
    %cst_160 = arith.constant 2.500000e-01 : f32
    %186 = vector.broadcast %cst_160 : f32 to vector<10x8xf32>
    %187 = arith.mulf %185, %186 : vector<10x8xf32>
    %188 = arith.addf %187, %181 : vector<10x8xf32>
    %cst_161 = arith.constant -1.000000e+09 : f32
    %189 = vector.shape_cast %14 : vector<1x8xi1> to vector<1x8xi1>
    %190 = vector.broadcast %189 : vector<1x8xi1> to vector<10x8xi1>
    %191 = vector.broadcast %cst_161 : f32 to vector<10x8xf32>
    %192 = arith.select %190, %191, %188 : vector<10x8xi1>, vector<10x8xf32>
    %cst_162 = arith.constant dense<0xFF800000> : vector<10xf32>
    %193 = vector.multi_reduction <maximumf>, %192, %cst_162 [1] : vector<10x8xf32> to vector<10xf32>
    %194 = vector.shape_cast %193 : vector<10xf32> to vector<10x1xf32>
    %195 = vector.broadcast %194 : vector<10x1xf32> to vector<10x8xf32>
    %196 = arith.subf %192, %195 : vector<10x8xf32>
    %197 = math.exp %196 : vector<10x8xf32>
    %cst_163 = arith.constant dense<0.000000e+00> : vector<10xf32>
    %198 = vector.multi_reduction <add>, %197, %cst_163 [1] : vector<10x8xf32> to vector<10xf32>
    %199 = vector.shape_cast %198 : vector<10xf32> to vector<10x1xf32>
    %200 = tpu.reciprocal %199 {approx = true} : vector<10x1xf32> -> vector<10x1xf32>
    %201 = vector.broadcast %200 : vector<10x1xf32> to vector<10x8xf32>
    %202 = arith.mulf %197, %201 : vector<10x8xf32>
    %cst_164 = arith.constant dense<0.000000e+00> : vector<10x8xf32>
    %203 = tpu.matmul %202, %164, %cst_164 {dimension_numbers = #tpu.dot_dimension_numbers<[1], [0], [0], [1], [0, 0, 1, 1], [], []>} : vector<10x8xf32>, vector<8x8xf32>, vector<10x8xf32> -> vector<10x8xf32>
    %c2_165 = arith.constant 2 : index
    %c0_166 = arith.constant 0 : index
    %c0_167 = arith.constant 0 : index
    %204 = vector.load %arg15[%c2_165, %c0_166, %c0_167] : memref<4x8x32xf32, #tpu.memory_space<vmem>>, vector<1x8x32xf32>
    %205 = vector.shape_cast %204 : vector<1x8x32xf32> to vector<8x32xf32>
    %cst_168 = arith.constant dense<0.000000e+00> : vector<10x32xf32>
    %206 = tpu.matmul %203, %205, %cst_168 {dimension_numbers = #tpu.dot_dimension_numbers<[1], [0], [0], [1], [0, 0, 1, 1], [], []>} : vector<10x8xf32>, vector<8x32xf32>, vector<10x32xf32> -> vector<10x32xf32>
    %207 = arith.addf %143, %206 : vector<10x32xf32>
    %c3 = arith.constant 3 : index
    %c0_169 = arith.constant 0 : index
    %c0_170 = arith.constant 0 : index
    %208 = vector.load %arg5[%c3, %c0_169, %c0_170] : memref<4x32x8xf32, #tpu.memory_space<vmem>>, vector<1x32x8xf32>
    %209 = vector.shape_cast %208 : vector<1x32x8xf32> to vector<32x8xf32>
    %cst_171 = arith.constant dense<0.000000e+00> : vector<10x8xf32>
    %210 = tpu.matmul %4, %209, %cst_171 {dimension_numbers = #tpu.dot_dimension_numbers<[1], [0], [0], [1], [0, 0, 1, 1], [], []>} : vector<10x32xf32>, vector<32x8xf32>, vector<10x8xf32> -> vector<10x8xf32>
    %c3_172 = arith.constant 3 : index
    %c0_173 = arith.constant 0 : index
    %c0_174 = arith.constant 0 : index
    %211 = vector.load %arg6[%c3_172, %c0_173, %c0_174] : memref<4x1x8xf32, #tpu.memory_space<vmem>>, vector<1x1x8xf32>
    %212 = vector.shape_cast %211 : vector<1x1x8xf32> to vector<1x8xf32>
    %213 = vector.broadcast %212 : vector<1x8xf32> to vector<10x8xf32>
    %214 = arith.addf %210, %213 : vector<10x8xf32>
    %c3_175 = arith.constant 3 : index
    %c0_176 = arith.constant 0 : index
    %c0_177 = arith.constant 0 : index
    %215 = vector.load %arg7[%c3_175, %c0_176, %c0_177] : memref<4x32x8xf32, #tpu.memory_space<vmem>>, vector<1x32x8xf32>
    %216 = vector.shape_cast %215 : vector<1x32x8xf32> to vector<32x8xf32>
    %cst_178 = arith.constant dense<0.000000e+00> : vector<8x8xf32>
    %217 = tpu.matmul %6, %216, %cst_178 {dimension_numbers = #tpu.dot_dimension_numbers<[1], [0], [0], [1], [0, 0, 1, 1], [], []>} : vector<8x32xf32>, vector<32x8xf32>, vector<8x8xf32> -> vector<8x8xf32>
    %c3_179 = arith.constant 3 : index
    %c0_180 = arith.constant 0 : index
    %c0_181 = arith.constant 0 : index
    %218 = vector.load %arg8[%c3_179, %c0_180, %c0_181] : memref<4x1x8xf32, #tpu.memory_space<vmem>>, vector<1x1x8xf32>
    %219 = vector.shape_cast %218 : vector<1x1x8xf32> to vector<1x8xf32>
    %220 = vector.broadcast %219 : vector<1x8xf32> to vector<8x8xf32>
    %221 = arith.addf %217, %220 : vector<8x8xf32>
    %c3_182 = arith.constant 3 : index
    %c0_183 = arith.constant 0 : index
    %c0_184 = arith.constant 0 : index
    %222 = vector.load %arg9[%c3_182, %c0_183, %c0_184] : memref<4x32x8xf32, #tpu.memory_space<vmem>>, vector<1x32x8xf32>
    %223 = vector.shape_cast %222 : vector<1x32x8xf32> to vector<32x8xf32>
    %cst_185 = arith.constant dense<0.000000e+00> : vector<8x8xf32>
    %224 = tpu.matmul %6, %223, %cst_185 {dimension_numbers = #tpu.dot_dimension_numbers<[1], [0], [0], [1], [0, 0, 1, 1], [], []>} : vector<8x32xf32>, vector<32x8xf32>, vector<8x8xf32> -> vector<8x8xf32>
    %c3_186 = arith.constant 3 : index
    %c0_187 = arith.constant 0 : index
    %c0_188 = arith.constant 0 : index
    %225 = vector.load %arg10[%c3_186, %c0_187, %c0_188] : memref<4x1x8xf32, #tpu.memory_space<vmem>>, vector<1x1x8xf32>
    %226 = vector.shape_cast %225 : vector<1x1x8xf32> to vector<1x8xf32>
    %227 = vector.broadcast %226 : vector<1x8xf32> to vector<8x8xf32>
    %228 = arith.addf %224, %227 : vector<8x8xf32>
    %c3_189 = arith.constant 3 : index
    %c0_190 = arith.constant 0 : index
    %c0_191 = arith.constant 0 : index
    %229 = vector.load %arg11[%c3_189, %c0_190, %c0_191] : memref<4x32x8xf32, #tpu.memory_space<vmem>>, vector<1x32x8xf32>
    %230 = vector.shape_cast %229 : vector<1x32x8xf32> to vector<32x8xf32>
    %cst_192 = arith.constant dense<0.000000e+00> : vector<10x8xf32>
    %231 = tpu.matmul %8, %230, %cst_192 {dimension_numbers = #tpu.dot_dimension_numbers<[1], [0], [0], [1], [0, 0, 1, 1], [], []>} : vector<10x32xf32>, vector<32x8xf32>, vector<10x8xf32> -> vector<10x8xf32>
    %c3_193 = arith.constant 3 : index
    %c0_194 = arith.constant 0 : index
    %c0_195 = arith.constant 0 : index
    %232 = vector.load %arg12[%c3_193, %c0_194, %c0_195] : memref<4x1x8xf32, #tpu.memory_space<vmem>>, vector<1x1x8xf32>
    %233 = vector.shape_cast %232 : vector<1x1x8xf32> to vector<1x8xf32>
    %234 = vector.broadcast %233 : vector<1x8xf32> to vector<10x8xf32>
    %235 = arith.addf %231, %234 : vector<10x8xf32>
    %c3_196 = arith.constant 3 : index
    %c0_197 = arith.constant 0 : index
    %c0_198 = arith.constant 0 : index
    %236 = vector.load %arg13[%c3_196, %c0_197, %c0_198] : memref<4x32x8xf32, #tpu.memory_space<vmem>>, vector<1x32x8xf32>
    %237 = vector.shape_cast %236 : vector<1x32x8xf32> to vector<32x8xf32>
    %cst_199 = arith.constant dense<0.000000e+00> : vector<8x8xf32>
    %238 = tpu.matmul %10, %237, %cst_199 {dimension_numbers = #tpu.dot_dimension_numbers<[1], [0], [0], [1], [0, 0, 1, 1], [], []>} : vector<8x32xf32>, vector<32x8xf32>, vector<8x8xf32> -> vector<8x8xf32>
    %c3_200 = arith.constant 3 : index
    %c0_201 = arith.constant 0 : index
    %c0_202 = arith.constant 0 : index
    %239 = vector.load %arg14[%c3_200, %c0_201, %c0_202] : memref<4x1x8xf32, #tpu.memory_space<vmem>>, vector<1x1x8xf32>
    %240 = vector.shape_cast %239 : vector<1x1x8xf32> to vector<1x8xf32>
    %241 = vector.broadcast %240 : vector<1x8xf32> to vector<8x8xf32>
    %242 = arith.addf %238, %241 : vector<8x8xf32>
    %cst_203 = arith.constant dense<0.000000e+00> : vector<10x8xf32>
    %243 = tpu.matmul %235, %242, %cst_203 {dimension_numbers = #tpu.dot_dimension_numbers<[1], [1], [0], [0], [0, 0, 1, 0], [], []>} : vector<10x8xf32>, vector<8x8xf32>, vector<10x8xf32> -> vector<10x8xf32>
    %cst_204 = arith.constant 2.500000e-01 : f32
    %244 = vector.broadcast %cst_204 : f32 to vector<10x8xf32>
    %245 = arith.mulf %243, %244 : vector<10x8xf32>
    %c3_205 = arith.constant 3 : index
    %c0_206 = arith.constant 0 : index
    %c0_207 = arith.constant 0 : index
    %246 = vector.load %arg20[%c3_205, %c0_206, %c0_207] : memref<8x10x8xf32, #tpu.memory_space<vmem>>, vector<1x10x8xf32>
    %247 = vector.shape_cast %246 : vector<1x10x8xf32> to vector<10x8xf32>
    %248 = vector.shape_cast %245 : vector<10x8xf32> to vector<1x10x8xf32>
    tpu.vector_store %arg20[%c3_205, %c0_206, %c0_207], %248 {strides = array<i32>} : memref<8x10x8xf32, #tpu.memory_space<vmem>>, vector<1x10x8xf32>,
    %cst_208 = arith.constant dense<0.000000e+00> : vector<10x8xf32>
    %249 = tpu.matmul %214, %221, %cst_208 {dimension_numbers = #tpu.dot_dimension_numbers<[1], [1], [0], [0], [0, 0, 1, 0], [], []>} : vector<10x8xf32>, vector<8x8xf32>, vector<10x8xf32> -> vector<10x8xf32>
    %cst_209 = arith.constant 2.500000e-01 : f32
    %250 = vector.broadcast %cst_209 : f32 to vector<10x8xf32>
    %251 = arith.mulf %249, %250 : vector<10x8xf32>
    %252 = arith.addf %251, %245 : vector<10x8xf32>
    %cst_210 = arith.constant -1.000000e+09 : f32
    %253 = vector.shape_cast %14 : vector<1x8xi1> to vector<1x8xi1>
    %254 = vector.broadcast %253 : vector<1x8xi1> to vector<10x8xi1>
    %255 = vector.broadcast %cst_210 : f32 to vector<10x8xf32>
    %256 = arith.select %254, %255, %252 : vector<10x8xi1>, vector<10x8xf32>
    %cst_211 = arith.constant dense<0xFF800000> : vector<10xf32>
    %257 = vector.multi_reduction <maximumf>, %256, %cst_211 [1] : vector<10x8xf32> to vector<10xf32>
    %258 = vector.shape_cast %257 : vector<10xf32> to vector<10x1xf32>
    %259 = vector.broadcast %258 : vector<10x1xf32> to vector<10x8xf32>
    %260 = arith.subf %256, %259 : vector<10x8xf32>
    %261 = math.exp %260 : vector<10x8xf32>
    %cst_212 = arith.constant dense<0.000000e+00> : vector<10xf32>
    %262 = vector.multi_reduction <add>, %261, %cst_212 [1] : vector<10x8xf32> to vector<10xf32>
    %263 = vector.shape_cast %262 : vector<10xf32> to vector<10x1xf32>
    %264 = tpu.reciprocal %263 {approx = true} : vector<10x1xf32> -> vector<10x1xf32>
    %265 = vector.broadcast %264 : vector<10x1xf32> to vector<10x8xf32>
    %266 = arith.mulf %261, %265 : vector<10x8xf32>
    %cst_213 = arith.constant dense<0.000000e+00> : vector<10x8xf32>
    %267 = tpu.matmul %266, %228, %cst_213 {dimension_numbers = #tpu.dot_dimension_numbers<[1], [0], [0], [1], [0, 0, 1, 1], [], []>} : vector<10x8xf32>, vector<8x8xf32>, vector<10x8xf32> -> vector<10x8xf32>
    %c3_214 = arith.constant 3 : index
    %c0_215 = arith.constant 0 : index
    %c0_216 = arith.constant 0 : index
    %268 = vector.load %arg15[%c3_214, %c0_215, %c0_216] : memref<4x8x32xf32, #tpu.memory_space<vmem>>, vector<1x8x32xf32>
    %269 = vector.shape_cast %268 : vector<1x8x32xf32> to vector<8x32xf32>
    %cst_217 = arith.constant dense<0.000000e+00> : vector<10x32xf32>
    %270 = tpu.matmul %267, %269, %cst_217 {dimension_numbers = #tpu.dot_dimension_numbers<[1], [0], [0], [1], [0, 0, 1, 1], [], []>} : vector<10x8xf32>, vector<8x32xf32>, vector<10x32xf32> -> vector<10x32xf32>
    %271 = arith.addf %207, %270 : vector<10x32xf32>
    %272 = arith.addf %4, %271 : vector<10x32xf32>
    %273 = vector.broadcast %0 : vector<1x32xf32> to vector<10x32xf32>
    %274 = arith.addf %272, %273 : vector<10x32xf32>
    %cst_218 = arith.constant dense<0.000000e+00> : vector<10xf32>
    %275 = vector.multi_reduction <add>, %274, %cst_218 [1] : vector<10x32xf32> to vector<10xf32>
    %276 = vector.shape_cast %275 : vector<10xf32> to vector<10x1xf32>
    %cst_219 = arith.constant 3.200000e+01 : f32
    %277 = vector.broadcast %cst_219 : f32 to vector<10x1xf32>
    %278 = arith.divf %276, %277 : vector<10x1xf32>
    %279 = vector.broadcast %278 : vector<10x1xf32> to vector<10x32xf32>
    %280 = arith.subf %274, %279 : vector<10x32xf32>
    %281 = arith.mulf %280, %280 : vector<10x32xf32>
    %cst_220 = arith.constant dense<0.000000e+00> : vector<10xf32>
    %282 = vector.multi_reduction <add>, %281, %cst_220 [1] : vector<10x32xf32> to vector<10xf32>
    %283 = vector.shape_cast %282 : vector<10xf32> to vector<10x1xf32>
    %cst_221 = arith.constant 0.0322580636 : f32
    %284 = vector.broadcast %cst_221 : f32 to vector<10x1xf32>
    %285 = arith.mulf %283, %284 : vector<10x1xf32>
    %286 = math.sqrt %285 : vector<10x1xf32>
    %cst_222 = arith.constant 9.99999997E-7 : f32
    %287 = vector.broadcast %cst_222 : f32 to vector<10x1xf32>
    %288 = arith.addf %286, %287 : vector<10x1xf32>
    %289 = tpu.reciprocal %288 {approx = true} : vector<10x1xf32> -> vector<10x1xf32>
    %290 = vector.broadcast %289 : vector<10x1xf32> to vector<10x32xf32>
    %291 = arith.mulf %280, %290 : vector<10x32xf32>
    %292 = vector.broadcast %1 : vector<1x32xf32> to vector<10x32xf32>
    %293 = arith.mulf %292, %291 : vector<10x32xf32>
    %294 = vector.broadcast %2 : vector<1x32xf32> to vector<10x32xf32>
    %295 = arith.addf %293, %294 : vector<10x32xf32>
    %c0_223 = arith.constant 0 : index
    %c0_224 = arith.constant 0 : index
    %c0_225 = arith.constant 0 : index
    %296 = vector.load %arg19[%c0_223, %c0_224, %c0_225] : memref<2x10x32xf32, #tpu.memory_space<vmem>>, vector<1x10x32xf32>
    %297 = vector.shape_cast %296 : vector<1x10x32xf32> to vector<10x32xf32>
    %298 = vector.shape_cast %295 : vector<10x32xf32> to vector<1x10x32xf32>
    tpu.vector_store %arg19[%c0_223, %c0_224, %c0_225], %298 {strides = array<i32>} : memref<2x10x32xf32, #tpu.memory_space<vmem>>, vector<1x10x32xf32>,
    %c1_226 = arith.constant 1 : index
    %c0_227 = arith.constant 0 : index
    %c0_228 = arith.constant 0 : index
    %299 = vector.load %arg0[%c1_226, %c0_227, %c0_228] : memref<2x10x32xf32, #tpu.memory_space<vmem>>, vector<1x10x32xf32>
    %300 = vector.shape_cast %299 : vector<1x10x32xf32> to vector<10x32xf32>
    %c1_229 = arith.constant 1 : index
    %c0_230 = arith.constant 0 : index
    %c0_231 = arith.constant 0 : index
    %301 = vector.load %arg1[%c1_229, %c0_230, %c0_231] : memref<2x8x32xf32, #tpu.memory_space<vmem>>, vector<1x8x32xf32>
    %302 = vector.shape_cast %301 : vector<1x8x32xf32> to vector<8x32xf32>
    %c1_232 = arith.constant 1 : index
    %c0_233 = arith.constant 0 : index
    %c0_234 = arith.constant 0 : index
    %303 = vector.load %arg2[%c1_232, %c0_233, %c0_234] : memref<2x10x32xf32, #tpu.memory_space<vmem>>, vector<1x10x32xf32>
    %304 = vector.shape_cast %303 : vector<1x10x32xf32> to vector<10x32xf32>
    %c1_235 = arith.constant 1 : index
    %c0_236 = arith.constant 0 : index
    %c0_237 = arith.constant 0 : index
    %305 = vector.load %arg3[%c1_235, %c0_236, %c0_237] : memref<2x8x32xf32, #tpu.memory_space<vmem>>, vector<1x8x32xf32>
    %306 = vector.shape_cast %305 : vector<1x8x32xf32> to vector<8x32xf32>
    %c1_238 = arith.constant 1 : index
    %c0_239 = arith.constant 0 : index
    %c0_240 = arith.constant 0 : index
    %307 = vector.load %arg4[%c1_238, %c0_239, %c0_240] : memref<2x1x8xf32, #tpu.memory_space<vmem>>, vector<1x1x8xf32>
    %308 = vector.shape_cast %307 : vector<1x1x8xf32> to vector<1x8xf32>
    %cst_241 = arith.constant 5.000000e-01 : f32
    %309 = vector.broadcast %cst_241 : f32 to vector<1x8xf32>
    %310 = arith.cmpf ogt, %308, %309 : vector<1x8xf32>
    %cst_242 = arith.constant 0.000000e+00 : f32
    %311 = vector.broadcast %cst_242 : f32 to vector<10x32xf32>
    %c0_243 = arith.constant 0 : index
    %c0_244 = arith.constant 0 : index
    %c0_245 = arith.constant 0 : index
    %312 = vector.load %arg5[%c0_243, %c0_244, %c0_245] : memref<4x32x8xf32, #tpu.memory_space<vmem>>, vector<1x32x8xf32>
    %313 = vector.shape_cast %312 : vector<1x32x8xf32> to vector<32x8xf32>
    %cst_246 = arith.constant dense<0.000000e+00> : vector<10x8xf32>
    %314 = tpu.matmul %300, %313, %cst_246 {dimension_numbers = #tpu.dot_dimension_numbers<[1], [0], [0], [1], [0, 0, 1, 1], [], []>} : vector<10x32xf32>, vector<32x8xf32>, vector<10x8xf32> -> vector<10x8xf32>
    %c0_247 = arith.constant 0 : index
    %c0_248 = arith.constant 0 : index
    %c0_249 = arith.constant 0 : index
    %315 = vector.load %arg6[%c0_247, %c0_248, %c0_249] : memref<4x1x8xf32, #tpu.memory_space<vmem>>, vector<1x1x8xf32>
    %316 = vector.shape_cast %315 : vector<1x1x8xf32> to vector<1x8xf32>
    %317 = vector.broadcast %316 : vector<1x8xf32> to vector<10x8xf32>
    %318 = arith.addf %314, %317 : vector<10x8xf32>
    %c0_250 = arith.constant 0 : index
    %c0_251 = arith.constant 0 : index
    %c0_252 = arith.constant 0 : index
    %319 = vector.load %arg7[%c0_250, %c0_251, %c0_252] : memref<4x32x8xf32, #tpu.memory_space<vmem>>, vector<1x32x8xf32>
    %320 = vector.shape_cast %319 : vector<1x32x8xf32> to vector<32x8xf32>
    %cst_253 = arith.constant dense<0.000000e+00> : vector<8x8xf32>
    %321 = tpu.matmul %302, %320, %cst_253 {dimension_numbers = #tpu.dot_dimension_numbers<[1], [0], [0], [1], [0, 0, 1, 1], [], []>} : vector<8x32xf32>, vector<32x8xf32>, vector<8x8xf32> -> vector<8x8xf32>
    %c0_254 = arith.constant 0 : index
    %c0_255 = arith.constant 0 : index
    %c0_256 = arith.constant 0 : index
    %322 = vector.load %arg8[%c0_254, %c0_255, %c0_256] : memref<4x1x8xf32, #tpu.memory_space<vmem>>, vector<1x1x8xf32>
    %323 = vector.shape_cast %322 : vector<1x1x8xf32> to vector<1x8xf32>
    %324 = vector.broadcast %323 : vector<1x8xf32> to vector<8x8xf32>
    %325 = arith.addf %321, %324 : vector<8x8xf32>
    %c0_257 = arith.constant 0 : index
    %c0_258 = arith.constant 0 : index
    %c0_259 = arith.constant 0 : index
    %326 = vector.load %arg9[%c0_257, %c0_258, %c0_259] : memref<4x32x8xf32, #tpu.memory_space<vmem>>, vector<1x32x8xf32>
    %327 = vector.shape_cast %326 : vector<1x32x8xf32> to vector<32x8xf32>
    %cst_260 = arith.constant dense<0.000000e+00> : vector<8x8xf32>
    %328 = tpu.matmul %302, %327, %cst_260 {dimension_numbers = #tpu.dot_dimension_numbers<[1], [0], [0], [1], [0, 0, 1, 1], [], []>} : vector<8x32xf32>, vector<32x8xf32>, vector<8x8xf32> -> vector<8x8xf32>
    %c0_261 = arith.constant 0 : index
    %c0_262 = arith.constant 0 : index
    %c0_263 = arith.constant 0 : index
    %329 = vector.load %arg10[%c0_261, %c0_262, %c0_263] : memref<4x1x8xf32, #tpu.memory_space<vmem>>, vector<1x1x8xf32>
    %330 = vector.shape_cast %329 : vector<1x1x8xf32> to vector<1x8xf32>
    %331 = vector.broadcast %330 : vector<1x8xf32> to vector<8x8xf32>
    %332 = arith.addf %328, %331 : vector<8x8xf32>
    %c0_264 = arith.constant 0 : index
    %c0_265 = arith.constant 0 : index
    %c0_266 = arith.constant 0 : index
    %333 = vector.load %arg11[%c0_264, %c0_265, %c0_266] : memref<4x32x8xf32, #tpu.memory_space<vmem>>, vector<1x32x8xf32>
    %334 = vector.shape_cast %333 : vector<1x32x8xf32> to vector<32x8xf32>
    %cst_267 = arith.constant dense<0.000000e+00> : vector<10x8xf32>
    %335 = tpu.matmul %304, %334, %cst_267 {dimension_numbers = #tpu.dot_dimension_numbers<[1], [0], [0], [1], [0, 0, 1, 1], [], []>} : vector<10x32xf32>, vector<32x8xf32>, vector<10x8xf32> -> vector<10x8xf32>
    %c0_268 = arith.constant 0 : index
    %c0_269 = arith.constant 0 : index
    %c0_270 = arith.constant 0 : index
    %336 = vector.load %arg12[%c0_268, %c0_269, %c0_270] : memref<4x1x8xf32, #tpu.memory_space<vmem>>, vector<1x1x8xf32>
    %337 = vector.shape_cast %336 : vector<1x1x8xf32> to vector<1x8xf32>
    %338 = vector.broadcast %337 : vector<1x8xf32> to vector<10x8xf32>
    %339 = arith.addf %335, %338 : vector<10x8xf32>
    %c0_271 = arith.constant 0 : index
    %c0_272 = arith.constant 0 : index
    %c0_273 = arith.constant 0 : index
    %340 = vector.load %arg13[%c0_271, %c0_272, %c0_273] : memref<4x32x8xf32, #tpu.memory_space<vmem>>, vector<1x32x8xf32>
    %341 = vector.shape_cast %340 : vector<1x32x8xf32> to vector<32x8xf32>
    %cst_274 = arith.constant dense<0.000000e+00> : vector<8x8xf32>
    %342 = tpu.matmul %306, %341, %cst_274 {dimension_numbers = #tpu.dot_dimension_numbers<[1], [0], [0], [1], [0, 0, 1, 1], [], []>} : vector<8x32xf32>, vector<32x8xf32>, vector<8x8xf32> -> vector<8x8xf32>
    %c0_275 = arith.constant 0 : index
    %c0_276 = arith.constant 0 : index
    %c0_277 = arith.constant 0 : index
    %343 = vector.load %arg14[%c0_275, %c0_276, %c0_277] : memref<4x1x8xf32, #tpu.memory_space<vmem>>, vector<1x1x8xf32>
    %344 = vector.shape_cast %343 : vector<1x1x8xf32> to vector<1x8xf32>
    %345 = vector.broadcast %344 : vector<1x8xf32> to vector<8x8xf32>
    %346 = arith.addf %342, %345 : vector<8x8xf32>
    %cst_278 = arith.constant dense<0.000000e+00> : vector<10x8xf32>
    %347 = tpu.matmul %339, %346, %cst_278 {dimension_numbers = #tpu.dot_dimension_numbers<[1], [1], [0], [0], [0, 0, 1, 0], [], []>} : vector<10x8xf32>, vector<8x8xf32>, vector<10x8xf32> -> vector<10x8xf32>
    %cst_279 = arith.constant 2.500000e-01 : f32
    %348 = vector.broadcast %cst_279 : f32 to vector<10x8xf32>
    %349 = arith.mulf %347, %348 : vector<10x8xf32>
    %c4 = arith.constant 4 : index
    %c0_280 = arith.constant 0 : index
    %c0_281 = arith.constant 0 : index
    %350 = vector.load %arg20[%c4, %c0_280, %c0_281] : memref<8x10x8xf32, #tpu.memory_space<vmem>>, vector<1x10x8xf32>
    %351 = vector.shape_cast %350 : vector<1x10x8xf32> to vector<10x8xf32>
    %352 = vector.shape_cast %349 : vector<10x8xf32> to vector<1x10x8xf32>
    tpu.vector_store %arg20[%c4, %c0_280, %c0_281], %352 {strides = array<i32>} : memref<8x10x8xf32, #tpu.memory_space<vmem>>, vector<1x10x8xf32>,
    %cst_282 = arith.constant dense<0.000000e+00> : vector<10x8xf32>
    %353 = tpu.matmul %318, %325, %cst_282 {dimension_numbers = #tpu.dot_dimension_numbers<[1], [1], [0], [0], [0, 0, 1, 0], [], []>} : vector<10x8xf32>, vector<8x8xf32>, vector<10x8xf32> -> vector<10x8xf32>
    %cst_283 = arith.constant 2.500000e-01 : f32
    %354 = vector.broadcast %cst_283 : f32 to vector<10x8xf32>
    %355 = arith.mulf %353, %354 : vector<10x8xf32>
    %356 = arith.addf %355, %349 : vector<10x8xf32>
    %cst_284 = arith.constant -1.000000e+09 : f32
    %357 = vector.shape_cast %310 : vector<1x8xi1> to vector<1x8xi1>
    %358 = vector.broadcast %357 : vector<1x8xi1> to vector<10x8xi1>
    %359 = vector.broadcast %cst_284 : f32 to vector<10x8xf32>
    %360 = arith.select %358, %359, %356 : vector<10x8xi1>, vector<10x8xf32>
    %cst_285 = arith.constant dense<0xFF800000> : vector<10xf32>
    %361 = vector.multi_reduction <maximumf>, %360, %cst_285 [1] : vector<10x8xf32> to vector<10xf32>
    %362 = vector.shape_cast %361 : vector<10xf32> to vector<10x1xf32>
    %363 = vector.broadcast %362 : vector<10x1xf32> to vector<10x8xf32>
    %364 = arith.subf %360, %363 : vector<10x8xf32>
    %365 = math.exp %364 : vector<10x8xf32>
    %cst_286 = arith.constant dense<0.000000e+00> : vector<10xf32>
    %366 = vector.multi_reduction <add>, %365, %cst_286 [1] : vector<10x8xf32> to vector<10xf32>
    %367 = vector.shape_cast %366 : vector<10xf32> to vector<10x1xf32>
    %368 = tpu.reciprocal %367 {approx = true} : vector<10x1xf32> -> vector<10x1xf32>
    %369 = vector.broadcast %368 : vector<10x1xf32> to vector<10x8xf32>
    %370 = arith.mulf %365, %369 : vector<10x8xf32>
    %cst_287 = arith.constant dense<0.000000e+00> : vector<10x8xf32>
    %371 = tpu.matmul %370, %332, %cst_287 {dimension_numbers = #tpu.dot_dimension_numbers<[1], [0], [0], [1], [0, 0, 1, 1], [], []>} : vector<10x8xf32>, vector<8x8xf32>, vector<10x8xf32> -> vector<10x8xf32>
    %c0_288 = arith.constant 0 : index
    %c0_289 = arith.constant 0 : index
    %c0_290 = arith.constant 0 : index
    %372 = vector.load %arg15[%c0_288, %c0_289, %c0_290] : memref<4x8x32xf32, #tpu.memory_space<vmem>>, vector<1x8x32xf32>
    %373 = vector.shape_cast %372 : vector<1x8x32xf32> to vector<8x32xf32>
    %cst_291 = arith.constant dense<0.000000e+00> : vector<10x32xf32>
    %374 = tpu.matmul %371, %373, %cst_291 {dimension_numbers = #tpu.dot_dimension_numbers<[1], [0], [0], [1], [0, 0, 1, 1], [], []>} : vector<10x8xf32>, vector<8x32xf32>, vector<10x32xf32> -> vector<10x32xf32>
    %375 = arith.addf %311, %374 : vector<10x32xf32>
    %c1_292 = arith.constant 1 : index
    %c0_293 = arith.constant 0 : index
    %c0_294 = arith.constant 0 : index
    %376 = vector.load %arg5[%c1_292, %c0_293, %c0_294] : memref<4x32x8xf32, #tpu.memory_space<vmem>>, vector<1x32x8xf32>
    %377 = vector.shape_cast %376 : vector<1x32x8xf32> to vector<32x8xf32>
    %cst_295 = arith.constant dense<0.000000e+00> : vector<10x8xf32>
    %378 = tpu.matmul %300, %377, %cst_295 {dimension_numbers = #tpu.dot_dimension_numbers<[1], [0], [0], [1], [0, 0, 1, 1], [], []>} : vector<10x32xf32>, vector<32x8xf32>, vector<10x8xf32> -> vector<10x8xf32>
    %c1_296 = arith.constant 1 : index
    %c0_297 = arith.constant 0 : index
    %c0_298 = arith.constant 0 : index
    %379 = vector.load %arg6[%c1_296, %c0_297, %c0_298] : memref<4x1x8xf32, #tpu.memory_space<vmem>>, vector<1x1x8xf32>
    %380 = vector.shape_cast %379 : vector<1x1x8xf32> to vector<1x8xf32>
    %381 = vector.broadcast %380 : vector<1x8xf32> to vector<10x8xf32>
    %382 = arith.addf %378, %381 : vector<10x8xf32>
    %c1_299 = arith.constant 1 : index
    %c0_300 = arith.constant 0 : index
    %c0_301 = arith.constant 0 : index
    %383 = vector.load %arg7[%c1_299, %c0_300, %c0_301] : memref<4x32x8xf32, #tpu.memory_space<vmem>>, vector<1x32x8xf32>
    %384 = vector.shape_cast %383 : vector<1x32x8xf32> to vector<32x8xf32>
    %cst_302 = arith.constant dense<0.000000e+00> : vector<8x8xf32>
    %385 = tpu.matmul %302, %384, %cst_302 {dimension_numbers = #tpu.dot_dimension_numbers<[1], [0], [0], [1], [0, 0, 1, 1], [], []>} : vector<8x32xf32>, vector<32x8xf32>, vector<8x8xf32> -> vector<8x8xf32>
    %c1_303 = arith.constant 1 : index
    %c0_304 = arith.constant 0 : index
    %c0_305 = arith.constant 0 : index
    %386 = vector.load %arg8[%c1_303, %c0_304, %c0_305] : memref<4x1x8xf32, #tpu.memory_space<vmem>>, vector<1x1x8xf32>
    %387 = vector.shape_cast %386 : vector<1x1x8xf32> to vector<1x8xf32>
    %388 = vector.broadcast %387 : vector<1x8xf32> to vector<8x8xf32>
    %389 = arith.addf %385, %388 : vector<8x8xf32>
    %c1_306 = arith.constant 1 : index
    %c0_307 = arith.constant 0 : index
    %c0_308 = arith.constant 0 : index
    %390 = vector.load %arg9[%c1_306, %c0_307, %c0_308] : memref<4x32x8xf32, #tpu.memory_space<vmem>>, vector<1x32x8xf32>
    %391 = vector.shape_cast %390 : vector<1x32x8xf32> to vector<32x8xf32>
    %cst_309 = arith.constant dense<0.000000e+00> : vector<8x8xf32>
    %392 = tpu.matmul %302, %391, %cst_309 {dimension_numbers = #tpu.dot_dimension_numbers<[1], [0], [0], [1], [0, 0, 1, 1], [], []>} : vector<8x32xf32>, vector<32x8xf32>, vector<8x8xf32> -> vector<8x8xf32>
    %c1_310 = arith.constant 1 : index
    %c0_311 = arith.constant 0 : index
    %c0_312 = arith.constant 0 : index
    %393 = vector.load %arg10[%c1_310, %c0_311, %c0_312] : memref<4x1x8xf32, #tpu.memory_space<vmem>>, vector<1x1x8xf32>
    %394 = vector.shape_cast %393 : vector<1x1x8xf32> to vector<1x8xf32>
    %395 = vector.broadcast %394 : vector<1x8xf32> to vector<8x8xf32>
    %396 = arith.addf %392, %395 : vector<8x8xf32>
    %c1_313 = arith.constant 1 : index
    %c0_314 = arith.constant 0 : index
    %c0_315 = arith.constant 0 : index
    %397 = vector.load %arg11[%c1_313, %c0_314, %c0_315] : memref<4x32x8xf32, #tpu.memory_space<vmem>>, vector<1x32x8xf32>
    %398 = vector.shape_cast %397 : vector<1x32x8xf32> to vector<32x8xf32>
    %cst_316 = arith.constant dense<0.000000e+00> : vector<10x8xf32>
    %399 = tpu.matmul %304, %398, %cst_316 {dimension_numbers = #tpu.dot_dimension_numbers<[1], [0], [0], [1], [0, 0, 1, 1], [], []>} : vector<10x32xf32>, vector<32x8xf32>, vector<10x8xf32> -> vector<10x8xf32>
    %c1_317 = arith.constant 1 : index
    %c0_318 = arith.constant 0 : index
    %c0_319 = arith.constant 0 : index
    %400 = vector.load %arg12[%c1_317, %c0_318, %c0_319] : memref<4x1x8xf32, #tpu.memory_space<vmem>>, vector<1x1x8xf32>
    %401 = vector.shape_cast %400 : vector<1x1x8xf32> to vector<1x8xf32>
    %402 = vector.broadcast %401 : vector<1x8xf32> to vector<10x8xf32>
    %403 = arith.addf %399, %402 : vector<10x8xf32>
    %c1_320 = arith.constant 1 : index
    %c0_321 = arith.constant 0 : index
    %c0_322 = arith.constant 0 : index
    %404 = vector.load %arg13[%c1_320, %c0_321, %c0_322] : memref<4x32x8xf32, #tpu.memory_space<vmem>>, vector<1x32x8xf32>
    %405 = vector.shape_cast %404 : vector<1x32x8xf32> to vector<32x8xf32>
    %cst_323 = arith.constant dense<0.000000e+00> : vector<8x8xf32>
    %406 = tpu.matmul %306, %405, %cst_323 {dimension_numbers = #tpu.dot_dimension_numbers<[1], [0], [0], [1], [0, 0, 1, 1], [], []>} : vector<8x32xf32>, vector<32x8xf32>, vector<8x8xf32> -> vector<8x8xf32>
    %c1_324 = arith.constant 1 : index
    %c0_325 = arith.constant 0 : index
    %c0_326 = arith.constant 0 : index
    %407 = vector.load %arg14[%c1_324, %c0_325, %c0_326] : memref<4x1x8xf32, #tpu.memory_space<vmem>>, vector<1x1x8xf32>
    %408 = vector.shape_cast %407 : vector<1x1x8xf32> to vector<1x8xf32>
    %409 = vector.broadcast %408 : vector<1x8xf32> to vector<8x8xf32>
    %410 = arith.addf %406, %409 : vector<8x8xf32>
    %cst_327 = arith.constant dense<0.000000e+00> : vector<10x8xf32>
    %411 = tpu.matmul %403, %410, %cst_327 {dimension_numbers = #tpu.dot_dimension_numbers<[1], [1], [0], [0], [0, 0, 1, 0], [], []>} : vector<10x8xf32>, vector<8x8xf32>, vector<10x8xf32> -> vector<10x8xf32>
    %cst_328 = arith.constant 2.500000e-01 : f32
    %412 = vector.broadcast %cst_328 : f32 to vector<10x8xf32>
    %413 = arith.mulf %411, %412 : vector<10x8xf32>
    %c5 = arith.constant 5 : index
    %c0_329 = arith.constant 0 : index
    %c0_330 = arith.constant 0 : index
    %414 = vector.load %arg20[%c5, %c0_329, %c0_330] : memref<8x10x8xf32, #tpu.memory_space<vmem>>, vector<1x10x8xf32>
    %415 = vector.shape_cast %414 : vector<1x10x8xf32> to vector<10x8xf32>
    %416 = vector.shape_cast %413 : vector<10x8xf32> to vector<1x10x8xf32>
    tpu.vector_store %arg20[%c5, %c0_329, %c0_330], %416 {strides = array<i32>} : memref<8x10x8xf32, #tpu.memory_space<vmem>>, vector<1x10x8xf32>,
    %cst_331 = arith.constant dense<0.000000e+00> : vector<10x8xf32>
    %417 = tpu.matmul %382, %389, %cst_331 {dimension_numbers = #tpu.dot_dimension_numbers<[1], [1], [0], [0], [0, 0, 1, 0], [], []>} : vector<10x8xf32>, vector<8x8xf32>, vector<10x8xf32> -> vector<10x8xf32>
    %cst_332 = arith.constant 2.500000e-01 : f32
    %418 = vector.broadcast %cst_332 : f32 to vector<10x8xf32>
    %419 = arith.mulf %417, %418 : vector<10x8xf32>
    %420 = arith.addf %419, %413 : vector<10x8xf32>
    %cst_333 = arith.constant -1.000000e+09 : f32
    %421 = vector.shape_cast %310 : vector<1x8xi1> to vector<1x8xi1>
    %422 = vector.broadcast %421 : vector<1x8xi1> to vector<10x8xi1>
    %423 = vector.broadcast %cst_333 : f32 to vector<10x8xf32>
    %424 = arith.select %422, %423, %420 : vector<10x8xi1>, vector<10x8xf32>
    %cst_334 = arith.constant dense<0xFF800000> : vector<10xf32>
    %425 = vector.multi_reduction <maximumf>, %424, %cst_334 [1] : vector<10x8xf32> to vector<10xf32>
    %426 = vector.shape_cast %425 : vector<10xf32> to vector<10x1xf32>
    %427 = vector.broadcast %426 : vector<10x1xf32> to vector<10x8xf32>
    %428 = arith.subf %424, %427 : vector<10x8xf32>
    %429 = math.exp %428 : vector<10x8xf32>
    %cst_335 = arith.constant dense<0.000000e+00> : vector<10xf32>
    %430 = vector.multi_reduction <add>, %429, %cst_335 [1] : vector<10x8xf32> to vector<10xf32>
    %431 = vector.shape_cast %430 : vector<10xf32> to vector<10x1xf32>
    %432 = tpu.reciprocal %431 {approx = true} : vector<10x1xf32> -> vector<10x1xf32>
    %433 = vector.broadcast %432 : vector<10x1xf32> to vector<10x8xf32>
    %434 = arith.mulf %429, %433 : vector<10x8xf32>
    %cst_336 = arith.constant dense<0.000000e+00> : vector<10x8xf32>
    %435 = tpu.matmul %434, %396, %cst_336 {dimension_numbers = #tpu.dot_dimension_numbers<[1], [0], [0], [1], [0, 0, 1, 1], [], []>} : vector<10x8xf32>, vector<8x8xf32>, vector<10x8xf32> -> vector<10x8xf32>
    %c1_337 = arith.constant 1 : index
    %c0_338 = arith.constant 0 : index
    %c0_339 = arith.constant 0 : index
    %436 = vector.load %arg15[%c1_337, %c0_338, %c0_339] : memref<4x8x32xf32, #tpu.memory_space<vmem>>, vector<1x8x32xf32>
    %437 = vector.shape_cast %436 : vector<1x8x32xf32> to vector<8x32xf32>
    %cst_340 = arith.constant dense<0.000000e+00> : vector<10x32xf32>
    %438 = tpu.matmul %435, %437, %cst_340 {dimension_numbers = #tpu.dot_dimension_numbers<[1], [0], [0], [1], [0, 0, 1, 1], [], []>} : vector<10x8xf32>, vector<8x32xf32>, vector<10x32xf32> -> vector<10x32xf32>
    %439 = arith.addf %375, %438 : vector<10x32xf32>
    %c2_341 = arith.constant 2 : index
    %c0_342 = arith.constant 0 : index
    %c0_343 = arith.constant 0 : index
    %440 = vector.load %arg5[%c2_341, %c0_342, %c0_343] : memref<4x32x8xf32, #tpu.memory_space<vmem>>, vector<1x32x8xf32>
    %441 = vector.shape_cast %440 : vector<1x32x8xf32> to vector<32x8xf32>
    %cst_344 = arith.constant dense<0.000000e+00> : vector<10x8xf32>
    %442 = tpu.matmul %300, %441, %cst_344 {dimension_numbers = #tpu.dot_dimension_numbers<[1], [0], [0], [1], [0, 0, 1, 1], [], []>} : vector<10x32xf32>, vector<32x8xf32>, vector<10x8xf32> -> vector<10x8xf32>
    %c2_345 = arith.constant 2 : index
    %c0_346 = arith.constant 0 : index
    %c0_347 = arith.constant 0 : index
    %443 = vector.load %arg6[%c2_345, %c0_346, %c0_347] : memref<4x1x8xf32, #tpu.memory_space<vmem>>, vector<1x1x8xf32>
    %444 = vector.shape_cast %443 : vector<1x1x8xf32> to vector<1x8xf32>
    %445 = vector.broadcast %444 : vector<1x8xf32> to vector<10x8xf32>
    %446 = arith.addf %442, %445 : vector<10x8xf32>
    %c2_348 = arith.constant 2 : index
    %c0_349 = arith.constant 0 : index
    %c0_350 = arith.constant 0 : index
    %447 = vector.load %arg7[%c2_348, %c0_349, %c0_350] : memref<4x32x8xf32, #tpu.memory_space<vmem>>, vector<1x32x8xf32>
    %448 = vector.shape_cast %447 : vector<1x32x8xf32> to vector<32x8xf32>
    %cst_351 = arith.constant dense<0.000000e+00> : vector<8x8xf32>
    %449 = tpu.matmul %302, %448, %cst_351 {dimension_numbers = #tpu.dot_dimension_numbers<[1], [0], [0], [1], [0, 0, 1, 1], [], []>} : vector<8x32xf32>, vector<32x8xf32>, vector<8x8xf32> -> vector<8x8xf32>
    %c2_352 = arith.constant 2 : index
    %c0_353 = arith.constant 0 : index
    %c0_354 = arith.constant 0 : index
    %450 = vector.load %arg8[%c2_352, %c0_353, %c0_354] : memref<4x1x8xf32, #tpu.memory_space<vmem>>, vector<1x1x8xf32>
    %451 = vector.shape_cast %450 : vector<1x1x8xf32> to vector<1x8xf32>
    %452 = vector.broadcast %451 : vector<1x8xf32> to vector<8x8xf32>
    %453 = arith.addf %449, %452 : vector<8x8xf32>
    %c2_355 = arith.constant 2 : index
    %c0_356 = arith.constant 0 : index
    %c0_357 = arith.constant 0 : index
    %454 = vector.load %arg9[%c2_355, %c0_356, %c0_357] : memref<4x32x8xf32, #tpu.memory_space<vmem>>, vector<1x32x8xf32>
    %455 = vector.shape_cast %454 : vector<1x32x8xf32> to vector<32x8xf32>
    %cst_358 = arith.constant dense<0.000000e+00> : vector<8x8xf32>
    %456 = tpu.matmul %302, %455, %cst_358 {dimension_numbers = #tpu.dot_dimension_numbers<[1], [0], [0], [1], [0, 0, 1, 1], [], []>} : vector<8x32xf32>, vector<32x8xf32>, vector<8x8xf32> -> vector<8x8xf32>
    %c2_359 = arith.constant 2 : index
    %c0_360 = arith.constant 0 : index
    %c0_361 = arith.constant 0 : index
    %457 = vector.load %arg10[%c2_359, %c0_360, %c0_361] : memref<4x1x8xf32, #tpu.memory_space<vmem>>, vector<1x1x8xf32>
    %458 = vector.shape_cast %457 : vector<1x1x8xf32> to vector<1x8xf32>
    %459 = vector.broadcast %458 : vector<1x8xf32> to vector<8x8xf32>
    %460 = arith.addf %456, %459 : vector<8x8xf32>
    %c2_362 = arith.constant 2 : index
    %c0_363 = arith.constant 0 : index
    %c0_364 = arith.constant 0 : index
    %461 = vector.load %arg11[%c2_362, %c0_363, %c0_364] : memref<4x32x8xf32, #tpu.memory_space<vmem>>, vector<1x32x8xf32>
    %462 = vector.shape_cast %461 : vector<1x32x8xf32> to vector<32x8xf32>
    %cst_365 = arith.constant dense<0.000000e+00> : vector<10x8xf32>
    %463 = tpu.matmul %304, %462, %cst_365 {dimension_numbers = #tpu.dot_dimension_numbers<[1], [0], [0], [1], [0, 0, 1, 1], [], []>} : vector<10x32xf32>, vector<32x8xf32>, vector<10x8xf32> -> vector<10x8xf32>
    %c2_366 = arith.constant 2 : index
    %c0_367 = arith.constant 0 : index
    %c0_368 = arith.constant 0 : index
    %464 = vector.load %arg12[%c2_366, %c0_367, %c0_368] : memref<4x1x8xf32, #tpu.memory_space<vmem>>, vector<1x1x8xf32>
    %465 = vector.shape_cast %464 : vector<1x1x8xf32> to vector<1x8xf32>
    %466 = vector.broadcast %465 : vector<1x8xf32> to vector<10x8xf32>
    %467 = arith.addf %463, %466 : vector<10x8xf32>
    %c2_369 = arith.constant 2 : index
    %c0_370 = arith.constant 0 : index
    %c0_371 = arith.constant 0 : index
    %468 = vector.load %arg13[%c2_369, %c0_370, %c0_371] : memref<4x32x8xf32, #tpu.memory_space<vmem>>, vector<1x32x8xf32>
    %469 = vector.shape_cast %468 : vector<1x32x8xf32> to vector<32x8xf32>
    %cst_372 = arith.constant dense<0.000000e+00> : vector<8x8xf32>
    %470 = tpu.matmul %306, %469, %cst_372 {dimension_numbers = #tpu.dot_dimension_numbers<[1], [0], [0], [1], [0, 0, 1, 1], [], []>} : vector<8x32xf32>, vector<32x8xf32>, vector<8x8xf32> -> vector<8x8xf32>
    %c2_373 = arith.constant 2 : index
    %c0_374 = arith.constant 0 : index
    %c0_375 = arith.constant 0 : index
    %471 = vector.load %arg14[%c2_373, %c0_374, %c0_375] : memref<4x1x8xf32, #tpu.memory_space<vmem>>, vector<1x1x8xf32>
    %472 = vector.shape_cast %471 : vector<1x1x8xf32> to vector<1x8xf32>
    %473 = vector.broadcast %472 : vector<1x8xf32> to vector<8x8xf32>
    %474 = arith.addf %470, %473 : vector<8x8xf32>
    %cst_376 = arith.constant dense<0.000000e+00> : vector<10x8xf32>
    %475 = tpu.matmul %467, %474, %cst_376 {dimension_numbers = #tpu.dot_dimension_numbers<[1], [1], [0], [0], [0, 0, 1, 0], [], []>} : vector<10x8xf32>, vector<8x8xf32>, vector<10x8xf32> -> vector<10x8xf32>
    %cst_377 = arith.constant 2.500000e-01 : f32
    %476 = vector.broadcast %cst_377 : f32 to vector<10x8xf32>
    %477 = arith.mulf %475, %476 : vector<10x8xf32>
    %c6 = arith.constant 6 : index
    %c0_378 = arith.constant 0 : index
    %c0_379 = arith.constant 0 : index
    %478 = vector.load %arg20[%c6, %c0_378, %c0_379] : memref<8x10x8xf32, #tpu.memory_space<vmem>>, vector<1x10x8xf32>
    %479 = vector.shape_cast %478 : vector<1x10x8xf32> to vector<10x8xf32>
    %480 = vector.shape_cast %477 : vector<10x8xf32> to vector<1x10x8xf32>
    tpu.vector_store %arg20[%c6, %c0_378, %c0_379], %480 {strides = array<i32>} : memref<8x10x8xf32, #tpu.memory_space<vmem>>, vector<1x10x8xf32>,
    %cst_380 = arith.constant dense<0.000000e+00> : vector<10x8xf32>
    %481 = tpu.matmul %446, %453, %cst_380 {dimension_numbers = #tpu.dot_dimension_numbers<[1], [1], [0], [0], [0, 0, 1, 0], [], []>} : vector<10x8xf32>, vector<8x8xf32>, vector<10x8xf32> -> vector<10x8xf32>
    %cst_381 = arith.constant 2.500000e-01 : f32
    %482 = vector.broadcast %cst_381 : f32 to vector<10x8xf32>
    %483 = arith.mulf %481, %482 : vector<10x8xf32>
    %484 = arith.addf %483, %477 : vector<10x8xf32>
    %cst_382 = arith.constant -1.000000e+09 : f32
    %485 = vector.shape_cast %310 : vector<1x8xi1> to vector<1x8xi1>
    %486 = vector.broadcast %485 : vector<1x8xi1> to vector<10x8xi1>
    %487 = vector.broadcast %cst_382 : f32 to vector<10x8xf32>
    %488 = arith.select %486, %487, %484 : vector<10x8xi1>, vector<10x8xf32>
    %cst_383 = arith.constant dense<0xFF800000> : vector<10xf32>
    %489 = vector.multi_reduction <maximumf>, %488, %cst_383 [1] : vector<10x8xf32> to vector<10xf32>
    %490 = vector.shape_cast %489 : vector<10xf32> to vector<10x1xf32>
    %491 = vector.broadcast %490 : vector<10x1xf32> to vector<10x8xf32>
    %492 = arith.subf %488, %491 : vector<10x8xf32>
    %493 = math.exp %492 : vector<10x8xf32>
    %cst_384 = arith.constant dense<0.000000e+00> : vector<10xf32>
    %494 = vector.multi_reduction <add>, %493, %cst_384 [1] : vector<10x8xf32> to vector<10xf32>
    %495 = vector.shape_cast %494 : vector<10xf32> to vector<10x1xf32>
    %496 = tpu.reciprocal %495 {approx = true} : vector<10x1xf32> -> vector<10x1xf32>
    %497 = vector.broadcast %496 : vector<10x1xf32> to vector<10x8xf32>
    %498 = arith.mulf %493, %497 : vector<10x8xf32>
    %cst_385 = arith.constant dense<0.000000e+00> : vector<10x8xf32>
    %499 = tpu.matmul %498, %460, %cst_385 {dimension_numbers = #tpu.dot_dimension_numbers<[1], [0], [0], [1], [0, 0, 1, 1], [], []>} : vector<10x8xf32>, vector<8x8xf32>, vector<10x8xf32> -> vector<10x8xf32>
    %c2_386 = arith.constant 2 : index
    %c0_387 = arith.constant 0 : index
    %c0_388 = arith.constant 0 : index
    %500 = vector.load %arg15[%c2_386, %c0_387, %c0_388] : memref<4x8x32xf32, #tpu.memory_space<vmem>>, vector<1x8x32xf32>
    %501 = vector.shape_cast %500 : vector<1x8x32xf32> to vector<8x32xf32>
    %cst_389 = arith.constant dense<0.000000e+00> : vector<10x32xf32>
    %502 = tpu.matmul %499, %501, %cst_389 {dimension_numbers = #tpu.dot_dimension_numbers<[1], [0], [0], [1], [0, 0, 1, 1], [], []>} : vector<10x8xf32>, vector<8x32xf32>, vector<10x32xf32> -> vector<10x32xf32>
    %503 = arith.addf %439, %502 : vector<10x32xf32>
    %c3_390 = arith.constant 3 : index
    %c0_391 = arith.constant 0 : index
    %c0_392 = arith.constant 0 : index
    %504 = vector.load %arg5[%c3_390, %c0_391, %c0_392] : memref<4x32x8xf32, #tpu.memory_space<vmem>>, vector<1x32x8xf32>
    %505 = vector.shape_cast %504 : vector<1x32x8xf32> to vector<32x8xf32>
    %cst_393 = arith.constant dense<0.000000e+00> : vector<10x8xf32>
    %506 = tpu.matmul %300, %505, %cst_393 {dimension_numbers = #tpu.dot_dimension_numbers<[1], [0], [0], [1], [0, 0, 1, 1], [], []>} : vector<10x32xf32>, vector<32x8xf32>, vector<10x8xf32> -> vector<10x8xf32>
    %c3_394 = arith.constant 3 : index
    %c0_395 = arith.constant 0 : index
    %c0_396 = arith.constant 0 : index
    %507 = vector.load %arg6[%c3_394, %c0_395, %c0_396] : memref<4x1x8xf32, #tpu.memory_space<vmem>>, vector<1x1x8xf32>
    %508 = vector.shape_cast %507 : vector<1x1x8xf32> to vector<1x8xf32>
    %509 = vector.broadcast %508 : vector<1x8xf32> to vector<10x8xf32>
    %510 = arith.addf %506, %509 : vector<10x8xf32>
    %c3_397 = arith.constant 3 : index
    %c0_398 = arith.constant 0 : index
    %c0_399 = arith.constant 0 : index
    %511 = vector.load %arg7[%c3_397, %c0_398, %c0_399] : memref<4x32x8xf32, #tpu.memory_space<vmem>>, vector<1x32x8xf32>
    %512 = vector.shape_cast %511 : vector<1x32x8xf32> to vector<32x8xf32>
    %cst_400 = arith.constant dense<0.000000e+00> : vector<8x8xf32>
    %513 = tpu.matmul %302, %512, %cst_400 {dimension_numbers = #tpu.dot_dimension_numbers<[1], [0], [0], [1], [0, 0, 1, 1], [], []>} : vector<8x32xf32>, vector<32x8xf32>, vector<8x8xf32> -> vector<8x8xf32>
    %c3_401 = arith.constant 3 : index
    %c0_402 = arith.constant 0 : index
    %c0_403 = arith.constant 0 : index
    %514 = vector.load %arg8[%c3_401, %c0_402, %c0_403] : memref<4x1x8xf32, #tpu.memory_space<vmem>>, vector<1x1x8xf32>
    %515 = vector.shape_cast %514 : vector<1x1x8xf32> to vector<1x8xf32>
    %516 = vector.broadcast %515 : vector<1x8xf32> to vector<8x8xf32>
    %517 = arith.addf %513, %516 : vector<8x8xf32>
    %c3_404 = arith.constant 3 : index
    %c0_405 = arith.constant 0 : index
    %c0_406 = arith.constant 0 : index
    %518 = vector.load %arg9[%c3_404, %c0_405, %c0_406] : memref<4x32x8xf32, #tpu.memory_space<vmem>>, vector<1x32x8xf32>
    %519 = vector.shape_cast %518 : vector<1x32x8xf32> to vector<32x8xf32>
    %cst_407 = arith.constant dense<0.000000e+00> : vector<8x8xf32>
    %520 = tpu.matmul %302, %519, %cst_407 {dimension_numbers = #tpu.dot_dimension_numbers<[1], [0], [0], [1], [0, 0, 1, 1], [], []>} : vector<8x32xf32>, vector<32x8xf32>, vector<8x8xf32> -> vector<8x8xf32>
    %c3_408 = arith.constant 3 : index
    %c0_409 = arith.constant 0 : index
    %c0_410 = arith.constant 0 : index
    %521 = vector.load %arg10[%c3_408, %c0_409, %c0_410] : memref<4x1x8xf32, #tpu.memory_space<vmem>>, vector<1x1x8xf32>
    %522 = vector.shape_cast %521 : vector<1x1x8xf32> to vector<1x8xf32>
    %523 = vector.broadcast %522 : vector<1x8xf32> to vector<8x8xf32>
    %524 = arith.addf %520, %523 : vector<8x8xf32>
    %c3_411 = arith.constant 3 : index
    %c0_412 = arith.constant 0 : index
    %c0_413 = arith.constant 0 : index
    %525 = vector.load %arg11[%c3_411, %c0_412, %c0_413] : memref<4x32x8xf32, #tpu.memory_space<vmem>>, vector<1x32x8xf32>
    %526 = vector.shape_cast %525 : vector<1x32x8xf32> to vector<32x8xf32>
    %cst_414 = arith.constant dense<0.000000e+00> : vector<10x8xf32>
    %527 = tpu.matmul %304, %526, %cst_414 {dimension_numbers = #tpu.dot_dimension_numbers<[1], [0], [0], [1], [0, 0, 1, 1], [], []>} : vector<10x32xf32>, vector<32x8xf32>, vector<10x8xf32> -> vector<10x8xf32>
    %c3_415 = arith.constant 3 : index
    %c0_416 = arith.constant 0 : index
    %c0_417 = arith.constant 0 : index
    %528 = vector.load %arg12[%c3_415, %c0_416, %c0_417] : memref<4x1x8xf32, #tpu.memory_space<vmem>>, vector<1x1x8xf32>
    %529 = vector.shape_cast %528 : vector<1x1x8xf32> to vector<1x8xf32>
    %530 = vector.broadcast %529 : vector<1x8xf32> to vector<10x8xf32>
    %531 = arith.addf %527, %530 : vector<10x8xf32>
    %c3_418 = arith.constant 3 : index
    %c0_419 = arith.constant 0 : index
    %c0_420 = arith.constant 0 : index
    %532 = vector.load %arg13[%c3_418, %c0_419, %c0_420] : memref<4x32x8xf32, #tpu.memory_space<vmem>>, vector<1x32x8xf32>
    %533 = vector.shape_cast %532 : vector<1x32x8xf32> to vector<32x8xf32>
    %cst_421 = arith.constant dense<0.000000e+00> : vector<8x8xf32>
    %534 = tpu.matmul %306, %533, %cst_421 {dimension_numbers = #tpu.dot_dimension_numbers<[1], [0], [0], [1], [0, 0, 1, 1], [], []>} : vector<8x32xf32>, vector<32x8xf32>, vector<8x8xf32> -> vector<8x8xf32>
    %c3_422 = arith.constant 3 : index
    %c0_423 = arith.constant 0 : index
    %c0_424 = arith.constant 0 : index
    %535 = vector.load %arg14[%c3_422, %c0_423, %c0_424] : memref<4x1x8xf32, #tpu.memory_space<vmem>>, vector<1x1x8xf32>
    %536 = vector.shape_cast %535 : vector<1x1x8xf32> to vector<1x8xf32>
    %537 = vector.broadcast %536 : vector<1x8xf32> to vector<8x8xf32>
    %538 = arith.addf %534, %537 : vector<8x8xf32>
    %cst_425 = arith.constant dense<0.000000e+00> : vector<10x8xf32>
    %539 = tpu.matmul %531, %538, %cst_425 {dimension_numbers = #tpu.dot_dimension_numbers<[1], [1], [0], [0], [0, 0, 1, 0], [], []>} : vector<10x8xf32>, vector<8x8xf32>, vector<10x8xf32> -> vector<10x8xf32>
    %cst_426 = arith.constant 2.500000e-01 : f32
    %540 = vector.broadcast %cst_426 : f32 to vector<10x8xf32>
    %541 = arith.mulf %539, %540 : vector<10x8xf32>
    %c7 = arith.constant 7 : index
    %c0_427 = arith.constant 0 : index
    %c0_428 = arith.constant 0 : index
    %542 = vector.load %arg20[%c7, %c0_427, %c0_428] : memref<8x10x8xf32, #tpu.memory_space<vmem>>, vector<1x10x8xf32>
    %543 = vector.shape_cast %542 : vector<1x10x8xf32> to vector<10x8xf32>
    %544 = vector.shape_cast %541 : vector<10x8xf32> to vector<1x10x8xf32>
    tpu.vector_store %arg20[%c7, %c0_427, %c0_428], %544 {strides = array<i32>} : memref<8x10x8xf32, #tpu.memory_space<vmem>>, vector<1x10x8xf32>,
    %cst_429 = arith.constant dense<0.000000e+00> : vector<10x8xf32>
    %545 = tpu.matmul %510, %517, %cst_429 {dimension_numbers = #tpu.dot_dimension_numbers<[1], [1], [0], [0], [0, 0, 1, 0], [], []>} : vector<10x8xf32>, vector<8x8xf32>, vector<10x8xf32> -> vector<10x8xf32>
    %cst_430 = arith.constant 2.500000e-01 : f32
    %546 = vector.broadcast %cst_430 : f32 to vector<10x8xf32>
    %547 = arith.mulf %545, %546 : vector<10x8xf32>
    %548 = arith.addf %547, %541 : vector<10x8xf32>
    %cst_431 = arith.constant -1.000000e+09 : f32
    %549 = vector.shape_cast %310 : vector<1x8xi1> to vector<1x8xi1>
    %550 = vector.broadcast %549 : vector<1x8xi1> to vector<10x8xi1>
    %551 = vector.broadcast %cst_431 : f32 to vector<10x8xf32>
    %552 = arith.select %550, %551, %548 : vector<10x8xi1>, vector<10x8xf32>
    %cst_432 = arith.constant dense<0xFF800000> : vector<10xf32>
    %553 = vector.multi_reduction <maximumf>, %552, %cst_432 [1] : vector<10x8xf32> to vector<10xf32>
    %554 = vector.shape_cast %553 : vector<10xf32> to vector<10x1xf32>
    %555 = vector.broadcast %554 : vector<10x1xf32> to vector<10x8xf32>
    %556 = arith.subf %552, %555 : vector<10x8xf32>
    %557 = math.exp %556 : vector<10x8xf32>
    %cst_433 = arith.constant dense<0.000000e+00> : vector<10xf32>
    %558 = vector.multi_reduction <add>, %557, %cst_433 [1] : vector<10x8xf32> to vector<10xf32>
    %559 = vector.shape_cast %558 : vector<10xf32> to vector<10x1xf32>
    %560 = tpu.reciprocal %559 {approx = true} : vector<10x1xf32> -> vector<10x1xf32>
    %561 = vector.broadcast %560 : vector<10x1xf32> to vector<10x8xf32>
    %562 = arith.mulf %557, %561 : vector<10x8xf32>
    %cst_434 = arith.constant dense<0.000000e+00> : vector<10x8xf32>
    %563 = tpu.matmul %562, %524, %cst_434 {dimension_numbers = #tpu.dot_dimension_numbers<[1], [0], [0], [1], [0, 0, 1, 1], [], []>} : vector<10x8xf32>, vector<8x8xf32>, vector<10x8xf32> -> vector<10x8xf32>
    %c3_435 = arith.constant 3 : index
    %c0_436 = arith.constant 0 : index
    %c0_437 = arith.constant 0 : index
    %564 = vector.load %arg15[%c3_435, %c0_436, %c0_437] : memref<4x8x32xf32, #tpu.memory_space<vmem>>, vector<1x8x32xf32>
    %565 = vector.shape_cast %564 : vector<1x8x32xf32> to vector<8x32xf32>
    %cst_438 = arith.constant dense<0.000000e+00> : vector<10x32xf32>
    %566 = tpu.matmul %563, %565, %cst_438 {dimension_numbers = #tpu.dot_dimension_numbers<[1], [0], [0], [1], [0, 0, 1, 1], [], []>} : vector<10x8xf32>, vector<8x32xf32>, vector<10x32xf32> -> vector<10x32xf32>
    %567 = arith.addf %503, %566 : vector<10x32xf32>
    %568 = arith.addf %300, %567 : vector<10x32xf32>
    %569 = vector.broadcast %0 : vector<1x32xf32> to vector<10x32xf32>
    %570 = arith.addf %568, %569 : vector<10x32xf32>
    %cst_439 = arith.constant dense<0.000000e+00> : vector<10xf32>
    %571 = vector.multi_reduction <add>, %570, %cst_439 [1] : vector<10x32xf32> to vector<10xf32>
    %572 = vector.shape_cast %571 : vector<10xf32> to vector<10x1xf32>
    %cst_440 = arith.constant 3.200000e+01 : f32
    %573 = vector.broadcast %cst_440 : f32 to vector<10x1xf32>
    %574 = arith.divf %572, %573 : vector<10x1xf32>
    %575 = vector.broadcast %574 : vector<10x1xf32> to vector<10x32xf32>
    %576 = arith.subf %570, %575 : vector<10x32xf32>
    %577 = arith.mulf %576, %576 : vector<10x32xf32>
    %cst_441 = arith.constant dense<0.000000e+00> : vector<10xf32>
    %578 = vector.multi_reduction <add>, %577, %cst_441 [1] : vector<10x32xf32> to vector<10xf32>
    %579 = vector.shape_cast %578 : vector<10xf32> to vector<10x1xf32>
    %cst_442 = arith.constant 0.0322580636 : f32
    %580 = vector.broadcast %cst_442 : f32 to vector<10x1xf32>
    %581 = arith.mulf %579, %580 : vector<10x1xf32>
    %582 = math.sqrt %581 : vector<10x1xf32>
    %cst_443 = arith.constant 9.99999997E-7 : f32
    %583 = vector.broadcast %cst_443 : f32 to vector<10x1xf32>
    %584 = arith.addf %582, %583 : vector<10x1xf32>
    %585 = tpu.reciprocal %584 {approx = true} : vector<10x1xf32> -> vector<10x1xf32>
    %586 = vector.broadcast %585 : vector<10x1xf32> to vector<10x32xf32>
    %587 = arith.mulf %576, %586 : vector<10x32xf32>
    %588 = vector.broadcast %1 : vector<1x32xf32> to vector<10x32xf32>
    %589 = arith.mulf %588, %587 : vector<10x32xf32>
    %590 = vector.broadcast %2 : vector<1x32xf32> to vector<10x32xf32>
    %591 = arith.addf %589, %590 : vector<10x32xf32>
    %c1_444 = arith.constant 1 : index
    %c0_445 = arith.constant 0 : index
    %c0_446 = arith.constant 0 : index
    %592 = vector.load %arg19[%c1_444, %c0_445, %c0_446] : memref<2x10x32xf32, #tpu.memory_space<vmem>>, vector<1x10x32xf32>
    %593 = vector.shape_cast %592 : vector<1x10x32xf32> to vector<10x32xf32>
    %594 = vector.shape_cast %591 : vector<10x32xf32> to vector<1x10x32xf32>
    tpu.vector_store %arg19[%c1_444, %c0_445, %c0_446], %594 {strides = array<i32>} : memref<2x10x32xf32, #tpu.memory_space<vmem>>, vector<1x10x32xf32>,
    return
  }
}

</mosaic_0001>

<bundles_post_ra>
// kernel: sga_forward.5
= control target key start
LH: loop header
LB: loop body
LE: loop exit
PB: predicated region body
PF: predicated region fallthrough
CT: control target
= control target key end

     0   :  { %v433_v0 = vmov 0.0|0.0   ;;  %vm434_vm0 = vmmov 0   ;;  %v435_v4 = vmov 0.0   ;;  %vm40_vm1 = vcmask 261120   ;;  %s560_s1 = inlined_call_operand.vmem [shape: f32[32,64], index: 1, kind: input, shape index: {}]   ;;  %s561_s3 = inlined_call_operand.vmem [shape: f32[64,32], index: 3, kind: input, shape index: {}]   ;;  %s562_s0 = inlined_call_operand.vmem [shape: f32[20,32], index: 0, kind: input, shape index: {}]   ;;  %s563_s2 = inlined_call_operand.vmem [shape: f32[1,64], index: 2, kind: input, shape index: {}]   ;;  %s564_s4 = inlined_call_operand.vmem [shape: f32[1,32], index: 4, kind: input, shape index: {}]   ;;  %s565_s5 = inlined_call_operand.vmem [shape: f32[1,32], index: 5, kind: input, shape index: {}]   ;;  %s566_s6 = inlined_call_operand.vmem [shape: f32[1,32], index: 6, kind: input, shape index: {}]   ;;  %s567_s7 = inlined_call_operand.vmem [shape: f32[20,32], index: 7, kind: output, shape index: {}]  }
   0x1   :  { %400 = vmatprep.subr.bf16.mxu0 %v433_v0  ;;  %v29_v1 = vld [vmem:[%s560_s1] sm:$0xff]  ;;  %v30_v2 = vld [vmem:[%s560_s1 + $0x8] sm:$0xff]  ;;  %v31_v3 = vld [vmem:[%s560_s1 + $0x10] sm:$0xff]  ;;  %366 = vmatprep.mubr.msk.f32.mxu0 %vm434_vm0, %v435_v4  ;;  %vm148_vm2 = vcmask 523264   ;;  %vm249_vm3 = vcmask 257024  }
   0x2   :  { %v401_v5 = vpack.c.bf16 %v30_v2, %v29_v1  ;;  %v32_v6 = vld [vmem:[%s560_s1 + $0x18] sm:$0xff]  ;;  %406 = vmatprep.subr.bf16.mxu1 %v433_v0  ;;  %391 = vmatprep.mubr.msk.f32.mxu1 %vm434_vm0, %v435_v4  ;;  %v133_v7 = vld [vmem:[%s561_s3] sm:$0xff]  ;;  %v134_v8 = vld [vmem:[%s561_s3 + $0x8] sm:$0xff] }
   0x3   :  { %v404_v9 = vpack.c.bf16 %v32_v6, %v31_v3  ;;  %v407_v10 = vpack.c.bf16 %v134_v8, %v133_v7  ;;  %v135_v11 = vld [vmem:[%s561_s3 + $0x10] sm:$0xff]  ;;  %v136_v12 = vld [vmem:[%s561_s3 + $0x18] sm:$0xff]  ;;  %v137_v14 = vld [vmem:[%s561_s3 + $0x20] sm:$0xff] }
   0x4   :  { %402 = vmatpush3.bf16.msra.mxu0 %v401_v5  ;;  %v410_v13 = vpack.c.bf16 %v136_v12, %v135_v11  ;;  %v138_v15 = vld [vmem:[%s561_s3 + $0x28] sm:$0xff]  ;;  %v26_v16 = vld [vmem:[%s562_s0] sm:$0xff]  ;;  %v28_v19 = vld [vmem:[%s562_s0 + $0x10] sm:$0xf] }
   0x5   :  { %403 = vmatprep.subr.bf16.mxu0 %v433_v0  ;;  %408 = vmatpush3.bf16.msra.mxu1 %v407_v10  ;;  %v413_v17 = vpack.c.bf16 %v138_v15, %v137_v14  ;;  %v27_v18 = vld [vmem:[%s562_s0 + $0x8] sm:$0xff]  ;;  %v139_v20 = vld [vmem:[%s561_s3 + $0x30] sm:$0xff]  ;;  %v140_v21 = vld [vmem:[%s561_s3 + $0x38] sm:$0xff] }
   0x6   :  { %409 = vmatprep.subr.bf16.mxu1 %v433_v0  ;;  %v416_v22 = vpack.c.bf16 %v140_v21, %v139_v20  ;;  %v330_v23 = vld [vmem:[%s563_s2] ss:$0 sm:$0xff] }
   0x7   :  { %v334_v36 = vld [vmem:[%s564_s4] ss:$0 sm:$0xff] }
   0x8   :  { %405 = vmatpush3.bf16.msra.mxu0 %v404_v9 }
   0x9   :  { %411 = vmatpush3.bf16.msra.mxu1 %v410_v13 }
   0xa   :  { %412 = vmatprep.subr.bf16.mxu1 %v433_v0 }
   0xb   :  { %367 = vmatmul.mubr.msk.f32.vlgmr.msra.gmra.mrb[0].mxu0 %vm40_vm1, %v26_v16 }
   0xc   :  { %369 = vmatprep.mubr.msk.f32.mxu0 %vm434_vm0, %v435_v4 }
   0xd   :  { %414 = vmatpush3.bf16.msra.mxu1 %v413_v17 }
   0xe   :  { %415 = vmatprep.subr.bf16.mxu1 %v433_v0 }
   0xf   :  { %370 = vmatmul.mubr.msk.f32.gmra.mrb[2].mxu0 %vm40_vm1, %v27_v18 }
  0x10   :  { %372 = vmatprep.mubr.msk.f32.mxu0 %vm434_vm0, %v435_v4 }
  0x11   :  { %417 = vmatpush3.bf16.msra.mxu1 %v416_v22 }
  0x13   :  { %373 = vmatmul.mubr.msk.f32.gmra.mrb[4].mxu0 %vm40_vm1, %v28_v19 }
  0xde   :  { %v116_v24 = vpop.f32.mrb[0].mxu0 }
  0xdf   :  { %v117_v25 = vadd.f32 %v330_v23, %v116_v24  ;;  %v368_v26 = vpop.f32.mrb[1].mxu0 }
  0xe1   :  { %v130_v27 = vmax.f32 %v117_v25, 0.0 }
  0xe2   :  { %v121_v28 = vpop.f32.mrb[2].mxu0 }
  0xe3   :  { %v122_v29 = vadd.f32 %v330_v23, %v121_v28  ;;  %v371_v30 = vpop.f32.mrb[3].mxu0  ;;  %392 = vmatmul.mubr.msk.f32.vlgmr.msra.gmra.mrb[0].mxu1 %vm148_vm2, %v130_v27  ;;  %v338_v28 = vld [vmem:[%s565_s5] ss:$0 sm:$0xff] }
  0xe4   :  { %394 = vmatprep.mubr.msk.f32.mxu1 %vm434_vm0, %v435_v4  ;;  %v339_v30 = vld [vmem:[%s566_s6] ss:$0 sm:$0xff] }
  0xe5   :  { %v131_v31 = vmax.f32 %v122_v29, 0.0 }
  0xe6   :  { %v126_v32 = vpop.f32.mrb[4].mxu0 }
  0xe7   :  { %v127_v33 = vadd.f32 %v330_v23, %v126_v32  ;;  %v374_v34 = vpop.f32.mrb[5].mxu0  ;;  %395 = vmatmul.mubr.msk.f32.gmra.mrb[2].mxu1 %vm148_vm2, %v131_v31 }
  0xe8   :  { %397 = vmatprep.mubr.msk.f32.mxu1 %vm434_vm0, %v435_v4 }
  0xe9   :  { %v132_v35 = vmax.f32 %v127_v33, 0.0 }
  0xeb   :  { %398 = vmatmul.mubr.msk.f32.gmra.mrb[4].mxu1 %vm148_vm2, %v132_v35 }
 0x1b6   :  { %v224_v37 = vpop.f32.mrb[0].mxu1 }
 0x1b7   :  { %v225_v38 = vadd.f32 %v334_v36, %v224_v37  ;;  %v393_v39 = vpop.f32.mrb[1].mxu1 }
 0x1b9   :  { %v238_v40 = vadd.f32 %v225_v38, %v26_v16 }
 0x1ba   :  { %v229_v41 = vpop.f32.mrb[2].mxu1 }
 0x1bb   :  { %v230_v42 = vadd.f32 %v334_v36, %v229_v41  ;;  %v396_v43 = vpop.f32.mrb[3].mxu1  ;;  %v243_v44 = vsel %vm40_vm1, %v238_v40, 0.0 }
 0x1bc   :  { %244 = vadd.xlane.f32.xlu0 %v243_v44 }
 0x1bd   :  { %v239_v45 = vadd.f32 %v230_v42, %v27_v18 }
 0x1be   :  { %v234_v46 = vpop.f32.mrb[4].mxu1 }
 0x1bf   :  { %v235_v47 = vadd.f32 %v334_v36, %v234_v46  ;;  %v399_v48 = vpop.f32.mrb[5].mxu1  ;;  %v246_v49 = vsel %vm40_vm1, %v239_v45, 0.0 }
 0x1c0   :  { %247 = vadd.xlane.f32.xlu0 %v246_v49 }
 0x1c1   :  { %v240_v50 = vadd.f32 %v235_v47, %v28_v19 }
 0x1c3   :  { %v250_v51 = vsel %vm249_vm3, %v240_v50, 0.0 }
 0x1c4   :  { %251 = vadd.xlane.f32.xlu1 %v250_v51 }
 0x249   :  { %v245_v52 = vpop.xlane.xlu0 %244 }
 0x24a   :  { %v254_v53 = vmul.f32 0.03125, %v245_v52 }
 0x24c   :  { %v257_v54 = vsub.f32 %v238_v40, %v254_v53 }
 0x24d   :  { %v248_v55 = vpop.xlane.xlu0 %247 }
 0x24e   :  { %v255_v56 = vmul.f32 0.03125, %v248_v55  ;;  %v260_v57 = vmul.f32 %v257_v54, %v257_v54 }
 0x250   :  { %v258_v58 = vsub.f32 %v239_v45, %v255_v56  ;;  %v263_v59 = vsel %vm40_vm1, %v260_v57, 0.0 }
 0x251   :  { %264 = vadd.xlane.f32.xlu1 %v263_v59  ;;  %v252_v60 = vpop.xlane.xlu1 %251 }
 0x252   :  { %v256_v61 = vmul.f32 0.03125, %v252_v60  ;;  %v261_v62 = vmul.f32 %v258_v58, %v258_v58 }
 0x254   :  { %v259_v63 = vsub.f32 %v240_v50, %v256_v61  ;;  %v266_v0 = vsel %vm40_vm1, %v261_v62, 0.0 }
 0x255   :  { %267 = vadd.xlane.f32.xlu0 %v266_v0 }
 0x256   :  { %v262_v1 = vmul.f32 %v259_v63, %v259_v63 }
 0x258   :  { %v269_v2 = vsel %vm249_vm3, %v262_v1, 0.0 }
 0x259   :  { %270 = vadd.xlane.f32.xlu1 %v269_v2 }
 0x2de   :  { %v265_v3 = vpop.xlane.xlu1 %264 }
 0x2df   :  { %v272_v4 = vmul.f32 0.032258064, %v265_v3 }
 0x2e1   :  { %421 = vrsqrt.f32 %v272_v4  ;;  %vm277_vm4 = vcmp.eq.f32.partialorder %v272_v4, inf  ;;  %v280_v11 = vand.u32 2147483648, %v272_v4  ;;  %vm279_vm5 = vcmp.eq.f32.partialorder %v272_v4, 0.0 }
 0x2e2   :  { %v268_v5 = vpop.xlane.xlu0 %267 }
 0x2e3   :  { %v273_v6 = vmul.f32 0.032258064, %v268_v5 }
 0x2e5   :  { %423 = vrsqrt.f32 %v273_v6  ;;  %vm284_vm6 = vcmp.eq.f32.partialorder %v273_v6, inf  ;;  %v287_v17 = vand.u32 2147483648, %v273_v6  ;;  %vm286_vm7 = vcmp.eq.f32.partialorder %v273_v6, 0.0 }
 0x2e6   :  { %v271_v7 = vpop.xlane.xlu1 %270 }
 0x2e7   :  { %v274_v8 = vmul.f32 0.032258064, %v271_v7 }
 0x2e9   :  { %425 = vrsqrt.f32 %v274_v8  ;;  %vm291_vm8 = vcmp.eq.f32.partialorder %v274_v8, inf  ;;  %v294_v23 = vand.u32 2147483648, %v274_v8  ;;  %vm293_vm9 = vcmp.eq.f32.partialorder %v274_v8, 0.0 }
 0x2eb   :  { %v422_v9 = vpop.eup %421 }
 0x2ec   :  { %v276_v10 = vmul.f32 %v422_v9, %v272_v4 }
 0x2ee   :  { %v278_v12 = vsel %vm277_vm4, %v272_v4, %v276_v10 }
 0x2ef   :  { %v424_v13 = vpop.eup %423  ;;  %v281_v14 = vsel %vm279_vm5, %v280_v11, %v278_v12 }
 0x2f0   :  { %v296_v15 = vadd.f32 1e-06, %v281_v14  ;;  %v283_v16 = vmul.f32 %v424_v13, %v273_v6 }
 0x2f2   :  { %427 = vrcp.f32 %v296_v15  ;;  %v285_v18 = vsel %vm284_vm6, %v273_v6, %v283_v16 }
 0x2f3   :  { %v426_v19 = vpop.eup %425  ;;  %v288_v20 = vsel %vm286_vm7, %v287_v17, %v285_v18 }
 0x2f4   :  { %v297_v21 = vadd.f32 1e-06, %v288_v20  ;;  %v290_v22 = vmul.f32 %v426_v19, %v274_v8 }
 0x2f6   :  { %429 = vrcp.f32 %v297_v21  ;;  %v292_v24 = vsel %vm291_vm8, %v274_v8, %v290_v22 }
 0x2f7   :  { %v295_v25 = vsel %vm293_vm9, %v294_v23, %v292_v24 }
 0x2f8   :  { %v298_v26 = vadd.f32 1e-06, %v295_v25 }
 0x2fa   :  { %431 = vrcp.f32 %v298_v26 }
 0x2fc   :  { %v428_v27 = vpop.eup %427 }
 0x2fd   :  { %v302_v29 = vmul.f32 %v428_v27, %v257_v54 }
 0x2ff   :  { %v311_v31 = vmul.f32 %v338_v28, %v302_v29 }
 0x300   :  { %v430_v32 = vpop.eup %429 }
 0x301   :  { %v320_v33 = vadd.f32 %v339_v30, %v311_v31  ;;  %v303_v34 = vmul.f32 %v430_v32, %v258_v58 }
 0x303   :  { %323 = vst.msk [vmem:[%s567_s7] sm:$0xff] %vm40_vm1, %v320_v33  ;;  %v312_v35 = vmul.f32 %v338_v28, %v303_v34 }
 0x304   :  { %v432_v36 = vpop.eup %431 }
 0x305   :  { %v321_v37 = vadd.f32 %v339_v30, %v312_v35  ;;  %v304_v38 = vmul.f32 %v432_v36, %v259_v63 }
 0x307   :  { %324 = vst.msk [vmem:[%s567_s7 + $0x8] sm:$0xff] %vm40_vm1, %v321_v37  ;;  %v313_v39 = vmul.f32 %v338_v28, %v304_v38 }
 0x309   :  { %v322_v40 = vadd.f32 %v339_v30, %v313_v39 }
 0x30b   :  { %325 = vst.msk [vmem:[%s567_s7 + $0x10] sm:$0xf] %vm249_vm3, %v322_v40 }

// kernel: sga_forward.3
= control target key start
LH: loop header
LB: loop body
LE: loop exit
PB: predicated region body
PF: predicated region fallthrough
CT: control target
= control target key end

     0   :  { %vm366_vm0 = vcmask 261120   ;;  %vm107_vm1 = vcmask 64512   ;;  %vm111_vm2 = vcmask 58368   ;;  %v238_v62 = vlaneseq  ;;  %s7690_s5 = inlined_call_operand.vmem [shape: f32[4,32,8], index: 5, kind: input, shape index: {}]   ;;  %s7691_s0 = inlined_call_operand.vmem [shape: f32[2,10,32], index: 0, kind: input, shape index: {}]   ;;  %s7692_s3 = inlined_call_operand.vmem [shape: f32[4,32,8], index: 3, kind: input, shape index: {}]   ;;  %s7693_s1 = inlined_call_operand.vmem [shape: f32[2,10,10,8], index: 1, kind: input, shape index: {}]   ;;  %s7694_s11 = inlined_call_operand.vmem [shape: f32[1,8], index: 11, kind: input, shape index: {}]   ;;  %s7695_s2 = inlined_call_operand.vmem [shape: f32[2,1,10], index: 2, kind: input, shape index: {}]   ;;  %s7696_s12 = inlined_call_operand.<no memory space> [shape: f32[1,1], index: 12, kind: input, shape index: {}]   ;;  %s7697_s6 = inlined_call_operand.vmem [shape: f32[4,1,8], index: 6, kind: input, shape index: {}]   ;;  %s7698_s4 = inlined_call_operand.vmem [shape: f32[4,1,8], index: 4, kind: input, shape index: {}]   ;;  %s7699_s16 = inlined_call_operand.vmem [shape: f32[2,10,10], index: 16, kind: output, shape index: {1}]   ;;  %s7700_s7 = inlined_call_operand.vmem [shape: f32[4,32,8], index: 7, kind: input, shape index: {}]   ;;  %s7701_s8 = inlined_call_operand.vmem [shape: f32[4,1,8], index: 8, kind: input, shape index: {}]   ;;  %s7702_s9 = inlined_call_operand.vmem [shape: f32[4,8,32], index: 9, kind: input, shape index: {}]   ;;  %s7703_s10 = inlined_call_operand.vmem [shape: f32[1,32], index: 10, kind: input, shape index: {}]   ;;  %s7704_s13 = inlined_call_operand.vmem [shape: f32[1,32], index: 13, kind: input, shape index: {}]   ;;  %s7705_s14 = inlined_call_operand.vmem [shape: f32[1,32], index: 14, kind: input, shape index: {}]   ;;  %s7706_s15 = inlined_call_operand.vmem [shape: f32[2,10,32], index: 15, kind: output, shape index: {0}]  }
   0x1   :  { %7710 = sst [smem:[#allocation3_spill]] %s7690_s5  ;;  %v6532_v5 = vld [vmem:[%s7691_s0] sm:$0xff]  ;;  %v356_v8 = vld [vmem:[%s7692_s3 + $0x8] sm:$0xff]  ;;  %v357_v9 = vld [vmem:[%s7692_s3 + $0x10] sm:$0xff]  ;;  %v22_v55 = vstv %s7696_s12  ;;  %vm249_vm6 = vcmask 130112   ;;  %vm332_vm7 = vcmask 1041409  }
   0x2   :  { %s7711_s23 = sld [smem:[#allocation3_spill]]  ;;  %v355_v6 = vld [vmem:[%s7692_s3] sm:$0xff]  ;;  %5644 = vmatprep.mubr.msk.f32.mxu1 %vm366_vm0, %v6532_v5  ;;  %5633 = vmatprep.mubr.msk.f32.mxu0 %vm366_vm0, %v6532_v5  ;;  %v358_v11 = vld [vmem:[%s7692_s3 + $0x18] sm:$0xff]  ;;  %v62_v16 = vld [vmem:[%s7693_s1 + $0x8] sm:$0x3]  ;;  %vm334_vm8 = vcmask 1042434  }
   0x3   :  { %v6041_v10 = vpack.c.bf16 %v356_v8, %v355_v6  ;;  %v6553_v12 = vld [vmem:[%s7694_s11] ss:$0 sm:$0xff]  ;;  %v6045_v14 = vpack.c.bf16 %v358_v11, %v357_v9  ;;  %v6570_v20 = vld [vmem:[%s7691_s0 + $0x8] sm:$0x3]  ;;  %v67_v23 = vld [vmem:[%s7693_s1 + $0x30] sm:$0xff]  ;;  %vm336_vm9 = vcmask 1043459  }
   0x4   :  { %v61_v13 = vld [vmem:[%s7693_s1] sm:$0xff]  ;;  %v88_v17 = vmul.f32 %v6553_v12, %v62_v16  ;;  %v93_v25 = vmul.f32 %v6553_v12, %v67_v23  ;;  %v71_v30 = vld [vmem:[%s7693_s1 + $0x50] sm:$0xff]  ;;  %v64_v38 = vld [vmem:[%s7693_s1 + $0x18] sm:$0x3]  ;;  %23 = vst [vmem:[#allocation2] sm:$0x1] %v22_v55 }
   0x5   :  { %v87_v15 = vmul.f32 %v6553_v12, %v61_v13  ;;  %6042 = vmatprep.subr.bf16.mxu0 %v6041_v10  ;;  %v65_v18 = vld [vmem:[%s7693_s1 + $0x20] sm:$0xff]  ;;  %v97_v31 = vmul.f32 %v6553_v12, %v71_v30  ;;  %v63_v32 = vld [vmem:[%s7693_s1 + $0x10] sm:$0xff]  ;;  %v90_v41 = vmul.f32 %v6553_v12, %v64_v38  ;;  %v66_v45 = vld [vmem:[%s7693_s1 + $0x28] sm:$0x3]  ;;  %vm338_vm10 = vcmask 1044484  }
   0x6   :  { %6044 = vmatpush3.bf16.msra.mxu0 %v6041_v10  ;;  %v112_v21 = vsel %vm111_vm2, %v88_v17, 0.0  ;;  %v91_v22 = vmul.f32 %v6553_v12, %v65_v18  ;;  %v127_v26 = vsel %vm107_vm1, %v93_v25, 0.0  ;;  %v69_v27 = vld [vmem:[%s7693_s1 + $0x40] sm:$0xff]  ;;  %v89_v34 = vmul.f32 %v6553_v12, %v63_v32  ;;  %v75_v39 = vld [vmem:[%s7693_s1 + $0x70] sm:$0xff]  ;;  %v68_v50 = vld [vmem:[%s7693_s1 + $0x38] sm:$0x3] }
   0x7   :  { %v108_v19 = vsel %vm107_vm1, %v87_v15, 0.0  ;;  %6046 = vmatprep.subr.bf16.mxu0 %v6045_v14  ;;  %v95_v28 = vmul.f32 %v6553_v12, %v69_v27  ;;  %v139_v33 = vsel %vm107_vm1, %v97_v31, 0.0  ;;  %v73_v35 = vld [vmem:[%s7693_s1 + $0x60] sm:$0xff]  ;;  %v101_v42 = vmul.f32 %v6553_v12, %v75_v39  ;;  %v79_v51 = vld [vmem:[%s7693_s1 + $0x90] sm:$0xff]  ;;  %v70_v52 = vld [vmem:[%s7693_s1 + $0x48] sm:$0x3] }
   0x8   :  { %v448_v0 = vld [vmem:[%s7711_s23] sm:$0xff]  ;;  %v449_v1 = vld [vmem:[%s7711_s23 + $0x8] sm:$0xff]  ;;  %v450_v2 = vld [vmem:[%s7711_s23 + $0x10] sm:$0xff]  ;;  %109 = vadd.xlane.f32.xlu0 %v108_v19  ;;  %v121_v24 = vsel %vm107_vm1, %v91_v22, 0.0  ;;  %v115_v36 = vsel %vm107_vm1, %v89_v34, 0.0  ;;  %v99_v37 = vmul.f32 %v6553_v12, %v73_v35  ;;  %v118_v43 = vsel %vm111_vm2, %v90_v41, 0.0 }
   0x9   :  { %v6049_v3 = vpack.c.bf16 %v449_v1, %v448_v0  ;;  %v451_v4 = vld [vmem:[%s7711_s23 + $0x18] sm:$0xff]  ;;  %v133_v29 = vsel %vm107_vm1, %v95_v28, 0.0  ;;  %116 = vadd.xlane.f32.xlu1 %v115_v36  ;;  %v151_v44 = vsel %vm107_vm1, %v101_v42, 0.0  ;;  %v92_v46 = vmul.f32 %v6553_v12, %v66_v45  ;;  %v77_v47 = vld [vmem:[%s7693_s1 + $0x80] sm:$0xff]  ;;  %v78_v17 = vld [vmem:[%s7693_s1 + $0x88] sm:$0x3] }
   0xa   :  { %v6053_v7 = vpack.c.bf16 %v451_v4, %v450_v2  ;;  %6048 = vmatpush3.bf16.msra.mxu0 %v6045_v14  ;;  %v145_v40 = vsel %vm107_vm1, %v99_v37, 0.0  ;;  %v103_v49 = vmul.f32 %v6553_v12, %v77_v47  ;;  %v94_v53 = vmul.f32 %v6553_v12, %v68_v50  ;;  %v353_v58 = vld [vmem:[%s7695_s2] sm:$0x1]  ;;  %v5270_v59 = vld [vmem:[%s7695_s2 + $0x1] sm:$0x1]  ;;  %vm6691_vm5 = vmpackc.low %vm107_vm1, %vm107_vm1 }
   0xb   :  { %6050 = vmatprep.subr.bf16.mxu1 %v6049_v3  ;;  %v124_v48 = vsel %vm111_vm2, %v92_v46, 0.0  ;;  %v105_v54 = vmul.f32 %v6553_v12, %v79_v51  ;;  %v96_v57 = vmul.f32 %v6553_v12, %v70_v52  ;;  %v72_v61 = vld [vmem:[%s7693_s1 + $0x58] sm:$0x3]  ;;  %v6430_v0 = vmov 0   ;;  %v5126_v28 = vld [vmem:[%s7697_s6] ss:$0 sm:$0xff] }
   0xc   :  { %6052 = vmatpush3.bf16.msra.mxu1 %v6049_v3  ;;  %113 = vadd.xlane.f32.xlu0 %v112_v21  ;;  %v157_v56 = vsel %vm107_vm1, %v103_v49, 0.0  ;;  %v130_v60 = vsel %vm111_vm2, %v94_v53, 0.0  ;;  %v6653_v1 = vshrl.u32 %v238_v62, 7  ;;  %vm354_vm3 = vcmp.gt.f32.partialorder %v353_v58, 0.5  ;;  %v76_v14 = vld [vmem:[%s7693_s1 + $0x78] sm:$0x3] }
   0xd   :  { %6054 = vmatprep.subr.bf16.mxu1 %v6053_v7  ;;  %5634 = vmatmul.mubr.msk.f32.vlgmr.msra.gmra.mrb[0].mxu0 %vm366_vm0, %v6570_v20  ;;  %v163_v63 = vsel %vm107_vm1, %v105_v54, 0.0  ;;  %vm2889_vm4 = vcmp.gt.f32.partialorder %v5270_v59, 0.5  ;;  %v136_v2 = vsel %vm111_vm2, %v96_v57, 0.0  ;;  %v98_v3 = vmul.f32 %v6553_v12, %v72_v61  ;;  %v80_v21 = vld [vmem:[%s7693_s1 + $0x98] sm:$0x3] }
   0xe   :  { %5655 = vmatprep.mubr.msk.f32.mxu0 %vm366_vm0, %v6532_v5  ;;  %119 = vadd.xlane.f32.xlu1 %v118_v43  ;;  %v711_v4 = vsel %vm354_vm3, 1, %v6430_v0  ;;  %v3245_v6 = vsel %vm2889_vm4, 1, %v6430_v0  ;;  %v714_v8 = vsub.s32 0, %v6653_v1  ;;  %v102_v16 = vmul.f32 %v6553_v12, %v76_v14  ;;  %v5123_v32 = vld [vmem:[%s7698_s4] ss:$0 sm:$0xff] }
   0xf   :  { %6343 = vset.pattern.permute.xlu0 %v6430_v0  ;;  %v142_v11 = vsel %vm111_vm2, %v98_v3, 0.0  ;;  %v104_v19 = vmul.f32 %v6553_v12, %v78_v17  ;;  %v106_v23 = vmul.f32 %v6553_v12, %v80_v21  ;;  %v239_v51 = vand.u32 127, %v238_v62 }
  0x10   :  { %6056 = vmatpush3.bf16.msra.mxu1 %v6053_v7  ;;  %122 = vadd.xlane.f32.xlu0 %v121_v24  ;;  %v74_v7 = vld [vmem:[%s7693_s1 + $0x68] sm:$0x3]  ;;  %v6661_v9 = vrot.slane %v711_v4, %v714_v8  ;;  %v6663_v10 = vrot.slane %v3245_v6, %v714_v8  ;;  %v154_v18 = vsel %vm111_vm2, %v102_v16, 0.0  ;;  %v5122_v24 = vld [vmem:[#allocation2] ss:$0 sm:$0xff]  ;;  %vm340_vm11 = vcmask 1045509  }
  0x11   :  { %v100_v13 = vmul.f32 %v6553_v12, %v74_v7  ;;  %v160_v22 = vsel %vm111_vm2, %v104_v19, 0.0  ;;  %v166_v25 = vsel %vm111_vm2, %v106_v23, 0.0  ;;  %v244_v54 = vadd.s32 4294967288, %v239_v51 }
  0x12   :  { %125 = vadd.xlane.f32.xlu1 %v124_v48  ;;  %vm7709_vm12 = vcmask 1046534   ;;  %vm7708_vm13 = vcmask 1047559   ;;  %vm349_vm14 = vcmask 80896   ;;  %vm351_vm15 = vcmask 74752  }
  0x13   :  { %5645 = vmatmul.mubr.msk.f32.vlgmr.msra.gmra.mrb[0].mxu1 %vm366_vm0, %v6570_v20  ;;  %v148_v15 = vsel %vm111_vm2, %v100_v13, 0.0  ;;  %v6712_v57 = vsub.s32 %v244_v54, %v6653_v1  ;;  %vm716_vm3 = vcmp.eq.s32.totalorder %v6661_v9, 1  ;;  %vm747_vm4 = vcmask 1041408  }
  0x14   :  { %128 = vadd.xlane.f32.xlu0 %v127_v26 }
  0x16   :  { %131 = vadd.xlane.f32.xlu1 %v130_v60 }
  0x18   :  { %134 = vadd.xlane.f32.xlu0 %v133_v29 }
  0x1a   :  { %137 = vadd.xlane.f32.xlu1 %v136_v2 }
  0x1c   :  { %140 = vadd.xlane.f32.xlu0 %v139_v33 }
  0x1e   :  { %143 = vadd.xlane.f32.xlu1 %v142_v11 }
  0x20   :  { %146 = vadd.xlane.f32.xlu0 %v145_v40 }
  0x22   :  { %149 = vadd.xlane.f32.xlu1 %v148_v15 }
  0x24   :  { %152 = vadd.xlane.f32.xlu0 %v151_v44 }
  0x26   :  { %155 = vadd.xlane.f32.xlu1 %v154_v18 }
  0x28   :  { %158 = vadd.xlane.f32.xlu0 %v157_v56  ;;  %v6709_v56 = vsub.s32 %v239_v51, %v6653_v1 }
  0x2a   :  { %161 = vadd.xlane.f32.xlu1 %v160_v22 }
  0x2c   :  { %164 = vadd.xlane.f32.xlu0 %v163_v63 }
  0x2e   :  { %167 = vadd.xlane.f32.xlu1 %v166_v25 }
  0x42   :  { %175 = vperm.xlu0 %6343, %v5122_v24  }
  0x95   :  { %v110_v26 = vpop.xlane.xlu0 %109 }
  0x96   :  { %v117_v44 = vpop.xlane.xlu1 %116 }
  0x99   :  { %v114_v27 = vpop.xlane.xlu0 %113 }
  0x9b   :  { %v120_v46 = vpop.xlane.xlu1 %119 }
  0x9d   :  { %v123_v35 = vpop.xlane.xlu0 %122 }
  0x9f   :  { %v126_v48 = vpop.xlane.xlu1 %125 }
  0xa1   :  { %v129_v40 = vpop.xlane.xlu0 %128 }
  0xa3   :  { %v132_v50 = vpop.xlane.xlu1 %131 }
  0xa5   :  { %v135_v42 = vpop.xlane.xlu0 %134 }
  0xa7   :  { %v138_v52 = vpop.xlane.xlu1 %137 }
  0xa9   :  { %v141_v43 = vpop.xlane.xlu0 %140 }
  0xab   :  { %v144_v55 = vpop.xlane.xlu1 %143 }
  0xad   :  { %v147_v45 = vpop.xlane.xlu0 %146 }
  0xaf   :  { %v150_v63 = vpop.xlane.xlu1 %149 }
  0xb1   :  { %v6701_v47 = vpop.xlane.xlu0 %152 }
  0xb3   :  { %v156_v25 = vpop.xlane.xlu1 %155 }
  0xb5   :  { %v6703_v49 = vpop.xlane.xlu0 %158 }
  0xb9   :  { %v6706_v53 = vpop.xlane.xlu0 %164 }
  0xc1   :  { %v6714_v58 = vpop.permute.xlu0 %175 }
  0xc2   :  { %v178_v59 = vadd.f32 %v6714_v58, %v110_v26  ;;  %v179_v60 = vadd.f32 %v6714_v58, %v114_v27  ;;  %v180_v61 = vadd.f32 %v6714_v58, %v117_v44  ;;  %v181_v62 = vadd.f32 %v6714_v58, %v120_v46 }
  0xc3   :  { %v182_v0 = vadd.f32 %v6714_v58, %v123_v35  ;;  %v183_v2 = vadd.f32 %v6714_v58, %v126_v48  ;;  %v184_v1 = vadd.f32 %v6714_v58, %v129_v40  ;;  %v185_v3 = vadd.f32 %v6714_v58, %v132_v50 }
  0xc4   :  { %v186_v4 = vadd.f32 %v6714_v58, %v135_v42  ;;  %v187_v6 = vadd.f32 %v6714_v58, %v138_v52  ;;  %v188_v7 = vadd.f32 %v6714_v58, %v141_v43  ;;  %v189_v8 = vadd.f32 %v6714_v58, %v144_v55  ;;  %v162_v43 = vpop.xlane.xlu1 %161 }
  0xc5   :  { %v190_v11 = vadd.f32 %v6714_v58, %v147_v45  ;;  %v191_v13 = vadd.f32 %v6714_v58, %v150_v63  ;;  %v198_v14 = vmax.f32 %v178_v59, 0.0  ;;  %v199_v15 = vmax.f32 %v179_v60, 0.0 }
  0xc6   :  { %v200_v16 = vmax.f32 %v180_v61, 0.0  ;;  %v201_v17 = vmax.f32 %v181_v62, 0.0  ;;  %v202_v18 = vmax.f32 %v182_v0, 0.0  ;;  %v203_v19 = vmax.f32 %v183_v2, 0.0 }
  0xc7   :  { %v204_v21 = vmax.f32 %v184_v1, 0.0  ;;  %v205_v22 = vmax.f32 %v185_v3, 0.0  ;;  %v206_v23 = vmax.f32 %v186_v4, 0.0  ;;  %v207_v24 = vmax.f32 %v187_v6, 0.0 }
  0xc8   :  { %v208_v26 = vmax.f32 %v188_v7, 0.0  ;;  %v209_v27 = vmax.f32 %v189_v8, 0.0  ;;  %v267_v35 = vrot.slane %v203_v19, %v6712_v57  ;;  %v192_v60 = vadd.f32 %v6714_v58, %v6701_v47  ;;  %v168_v1 = vpop.xlane.xlu1 %167 }
  0xc9   :  { %v285_v42 = vrot.slane %v207_v24, %v6712_v57  ;;  %v193_v61 = vadd.f32 %v6714_v58, %v156_v25  ;;  %v194_v0 = vadd.f32 %v6714_v58, %v6703_v49  ;;  %v195_v2 = vadd.f32 %v6714_v58, %v162_v43 }
  0xca   :  { %v290_v46 = vrot.slane %v208_v26, %v6709_v56  ;;  %v294_v48 = vrot.slane %v209_v27, %v6712_v57  ;;  %v212_v4 = vmax.f32 %v192_v60, 0.0  ;;  %v196_v7 = vadd.f32 %v6714_v58, %v6706_v53  ;;  %v534_v27 = vld [vmem:[%s7700_s7] sm:$0xff] }
  0xcb   :  { %v213_v6 = vmax.f32 %v193_v61, 0.0  ;;  %v214_v8 = vmax.f32 %v194_v0, 0.0  ;;  %v5147_v60 = vld [vmem:[%s7711_s23 + $0x20] sm:$0xff]  ;;  %v5148_v61 = vld [vmem:[%s7711_s23 + $0x28] sm:$0xff] }
  0xcc   :  { %v295_v55 = vsel %vm249_vm6, %v294_v48, %v290_v46  ;;  %v308_v49 = vrot.slane %v212_v4, %v6709_v56  ;;  %v5129_v0 = vld [vmem:[%s7701_s8] ss:$0 sm:$0xff]  ;;  %v5149_v4 = vld [vmem:[%s7711_s23 + $0x30] sm:$0xff] }
  0xe0   :  { %v5635_v34 = vpop.f32.mrb[0].mxu0 }
  0xe1   :  { %v439_v37 = vpop.f32.mrb[1].mxu0  ;;  %v445_v41 = vadd.f32 %v5635_v34, %v5123_v32  ;;  %v263_v34 = vrot.slane %v202_v18, %v6709_v56 }
  0xe2   :  { %v440_v39 = vadd.f32 %v5123_v32, %v439_v37  ;;  %v254_v32 = vrot.slane %v200_v16, %v6709_v56  ;;  %v272_v37 = vrot.slane %v204_v21, %v6709_v56  ;;  %v216_v16 = vmax.f32 %v196_v7, 0.0 }
  0xe3   :  { %v268_v44 = vsel %vm249_vm6, %v267_v35, %v263_v34 }
  0xe4   :  { %5662 = vmatprep.mubr.msk.f32.mxu1 %vm107_vm1, %v440_v39  ;;  %v326_v21 = vrot.slane %v216_v16, %v6709_v56 }
  0xe6   :  { %v5646_v29 = vpop.f32.mrb[0].mxu1 }
  0xe7   :  { %v531_v30 = vadd.f32 %v5646_v29, %v5126_v28  ;;  %v525_v31 = vpop.f32.mrb[1].mxu1  ;;  %v211_v29 = vmax.f32 %v191_v13, 0.0  ;;  %v197_v13 = vadd.f32 %v6714_v58, %v168_v1 }
  0xe8   :  { %v526_v33 = vadd.f32 %v5126_v28, %v525_v31  ;;  %v210_v28 = vmax.f32 %v190_v11, 0.0  ;;  %v248_v31 = vrot.slane %v199_v15, %v6712_v57  ;;  %v215_v11 = vmax.f32 %v195_v2, 0.0 }
  0xe9   :  { %v303_v52 = vrot.slane %v211_v29, %v6712_v57  ;;  %v312_v15 = vrot.slane %v213_v6, %v6712_v57  ;;  %v217_v19 = vmax.f32 %v197_v13, 0.0  ;;  %v536_v29 = vld [vmem:[%s7700_s7 + $0x10] sm:$0xff]  ;;  %v5150_v6 = vld [vmem:[%s7711_s23 + $0x38] sm:$0xff]  ;;  %v5140_v13 = vld [vmem:[%s7692_s3 + $0x28] sm:$0xff] }
  0xea   :  { %v6065_v38 = vpack.c.bf16 %v531_v30, %v526_v33  ;;  %v243_v30 = vrot.slane %v198_v14, %v6709_v56  ;;  %v258_v33 = vrot.slane %v201_v17, %v6712_v57  ;;  %v299_v51 = vrot.slane %v210_v28, %v6709_v56  ;;  %v535_v28 = vld [vmem:[%s7700_s7 + $0x8] sm:$0xff] }
  0xeb   :  { %v317_v17 = vrot.slane %v214_v8, %v6709_v56  ;;  %v321_v18 = vrot.slane %v215_v11, %v6712_v57  ;;  %v313_v53 = vsel %vm249_vm6, %v312_v15, %v308_v49  ;;  %v6089_v7 = vpack.c.bf16 %v5150_v6, %v5149_v4  ;;  %v5139_v11 = vld [vmem:[%s7692_s3 + $0x20] sm:$0xff] }
  0xec   :  { %6067 = vmatprep.subr.msk.bf16.mxu1 %vm6691_vm5, %v6065_v38  ;;  %v250_v39 = vsel %vm249_vm6, %v248_v31, %v243_v30  ;;  %v259_v40 = vsel %vm249_vm6, %v258_v33, %v254_v32  ;;  %v304_v62 = vsel %vm249_vm6, %v303_v52, %v299_v51  ;;  %v6057_v30 = vpack.c.bf16 %v535_v28, %v534_v27  ;;  %v537_v31 = vld [vmem:[%s7700_s7 + $0x18] sm:$0xff] }
  0xed   :  { %6070 = vmatpush3.bf16.xpose.msk.msra.mxu1 %vm6691_vm5, %v6065_v38  ;;  %v276_v38 = vrot.slane %v205_v22, %v6712_v57  ;;  %v333_v54 = vsel %vm332_vm7, %v259_v40, %v250_v39  ;;  %v322_v22 = vsel %vm249_vm6, %v321_v18, %v317_v17  ;;  %v6061_v32 = vpack.c.bf16 %v537_v31, %v536_v29  ;;  %v5141_v18 = vld [vmem:[%s7692_s3 + $0x30] sm:$0xff] }
  0xee   :  { %v335_v59 = vsel %vm334_vm8, %v268_v44, %v333_v54  ;;  %6058 = vmatprep.subr.bf16.mxu0 %v6057_v30 }
  0xef   :  { %v277_v45 = vsel %vm249_vm6, %v276_v38, %v272_v37  ;;  %6060 = vmatpush3.bf16.msra.mxu0 %v6057_v30 }
  0xf0   :  { %v337_v63 = vsel %vm336_vm9, %v277_v45, %v335_v59  ;;  %6062 = vmatprep.subr.bf16.mxu0 %v6061_v32 }
  0xf3   :  { %6064 = vmatpush3.bf16.msra.mxu0 %v6061_v32 }
  0xf4   :  { %5663 = vmatmul.mubr.msk.f32.vlgmr.msra.gmra.mrb[2].mxu1 %vm107_vm1, %v445_v41  ;;  %v281_v41 = vrot.slane %v206_v23, %v6709_v56  ;;  %v330_v23 = vrot.slane %v217_v19, %v6712_v57  ;;  %v5142_v19 = vld [vmem:[%s7692_s3 + $0x38] sm:$0xff] }
  0xf6   :  { %v286_v50 = vsel %vm249_vm6, %v285_v42, %v281_v41  ;;  %v331_v25 = vsel %vm249_vm6, %v330_v23, %v326_v21  ;;  %5656 = vmatmul.mubr.msk.f32.vlgmr.msra.gmra.mrb[2].mxu0 %vm366_vm0, %v6570_v20  ;;  %v5152_v23 = vld [vmem:[%s7697_s6 + $0x1] ss:$0 sm:$0xff] }
  0xf7   :  { %v339_v3 = vsel %vm338_vm10, %v286_v50, %v337_v63  ;;  %v6784_v26 = vsel %vm332_vm7, %v331_v25, %v322_v22  ;;  %5691 = vmatprep.mubr.msk.f32.mxu0 %vm366_vm0, %v6532_v5  ;;  %v6081_v22 = vpack.c.bf16 %v5142_v19, %v5141_v18 }
  0xf8   :  { %v341_v47 = vsel %vm340_vm11, %v295_v55, %v339_v3  ;;  %352 = vst.msk [vmem:[%s7699_s16 + $0x8] sm:$0x3] %vm351_vm15, %v6784_v26 }
  0xf9   :  { %v343_v14 = vsel %vm7709_vm12, %v304_v62, %v341_v47  ;;  %v6085_v62 = vpack.c.bf16 %v5148_v61, %v5147_v60 }
  0xfa   :  { %v6775_v24 = vsel %vm7708_vm13, %v313_v53, %v343_v14  ;;  %vm6431_vm13 = vmmov 1   ;;  %v6077_v14 = vpack.c.bf16 %v5140_v13, %v5139_v11  ;;  %v5160_v11 = vld [vmem:[%s7701_s8 + $0x1] ss:$0 sm:$0xff] }
  0xfb   :  { %350 = vst.msk [vmem:[%s7699_s16] sm:$0xff] %vm349_vm14, %v6775_v24  ;;  %6086 = vmatprep.subr.bf16.mxu0 %v6085_v62  ;;  %vm6833_vm12 = vmpackc.low %vm747_vm4, %vm6431_vm13 }
  0xfc   :  { %6088 = vmatpush3.bf16.msra.mxu0 %v6085_v62 }
  0xfd   :  { %6090 = vmatprep.subr.bf16.mxu0 %v6089_v7 }
 0x100   :  { %6092 = vmatpush3.bf16.msra.mxu0 %v6089_v7 }
 0x103   :  { %5692 = vmatmul.mubr.msk.f32.vlgmr.msra.gmra.mrb[4].mxu0 %vm366_vm0, %v6570_v20 }
 0x1c7   :  { %v5664_v33 = vpop.f32.mrb[2].mxu1 }
 0x1c8   :  { %v708_v34 = vmul.f32 0.35355338, %v5664_v33  ;;  %v698_v35 = vpop.f32.mrb[3].mxu1  ;;  %v5144_v33 = vld [vmem:[%s7698_s4 + $0x1] ss:$0 sm:$0xff] }
 0x1c9   :  { %v707_v37 = vmul.f32 0.35355338, %v698_v35  ;;  %v5657_v63 = vpop.f32.mrb[2].mxu0 }
 0x1ca   :  { %v710_v38 = vadd.f32 %v708_v34, %v6784_v26  ;;  %v611_v2 = vpop.f32.mrb[3].mxu0  ;;  %v617_v1 = vadd.f32 %v5657_v63, %v5129_v0 }
 0x1cb   :  { %v709_v39 = vadd.f32 %v707_v37, %v6775_v24  ;;  %v612_v3 = vadd.f32 %v5129_v0, %v611_v2 }
 0x1cc   :  { %v718_v42 = vsel %vm716_vm3, -1e+09, %v710_v38 }
 0x1cd   :  { %v717_v40 = vsel %vm716_vm3, -1e+09, %v709_v39  ;;  %v722_v43 = vsel %vm351_vm15, %v718_v42, -inf  ;;  %v6071_v47 = vpack.c.bf16 %v617_v1, %v612_v3  ;;  %v5155_v39 = vld [vmem:[%s7700_s7 + $0x20] sm:$0xff] }
 0x1ce   :  { %v719_v41 = vsel %vm349_vm14, %v717_v40, -inf }
 0x1cf   :  { %720 = vmax.xlane.f32.xlu1 %v719_v41  ;;  %6073 = vmatprep.subr.msk.bf16.mxu1 %vm6833_vm12, %v6071_v47  ;;  %v5157_v41 = vld [vmem:[%s7700_s7 + $0x30] sm:$0xff] }
 0x1d0   :  { %6076 = vmatpush3.bf16.msk.msra.mxu1 %vm6833_vm12, %v6071_v47 }
 0x1d1   :  { %6078 = vmatprep.subr.bf16.mxu1 %v6077_v14 }
 0x1d3   :  { %723 = vmax.xlane.f32.xlu1 %v722_v43  ;;  %v5158_v43 = vld [vmem:[%s7700_s7 + $0x38] sm:$0xff] }
 0x1d6   :  { %v5693_v25 = vpop.f32.mrb[4].mxu0 }
 0x1d7   :  { %v1000_v27 = vadd.f32 %v5693_v25, %v5152_v23  ;;  %v994_v28 = vpop.f32.mrb[5].mxu0  ;;  %v5175_v25 = vld [vmem:[%s7692_s3 + $0x40] sm:$0xff] }
 0x1d8   :  { %v995_v29 = vadd.f32 %v5152_v23, %v994_v28  ;;  %v826_v23 = vld [vmem:[%s7702_s9] sm:$0xff] }
 0x1da   :  { %v6101_v30 = vpack.c.bf16 %v1000_v27, %v995_v29  ;;  %v5176_v27 = vld [vmem:[%s7692_s3 + $0x48] sm:$0xff]  ;;  %v5177_v29 = vld [vmem:[%s7692_s3 + $0x50] sm:$0xff] }
 0x1db   :  { %v6113_v28 = vpack.c.bf16 %v5176_v27, %v5175_v25 }
 0x1dc   :  { %6103 = vmatprep.subr.msk.bf16.mxu0 %vm6691_vm5, %v6101_v30 }
 0x1dd   :  { %6106 = vmatpush3.bf16.xpose.msk.msra.mxu0 %vm6691_vm5, %v6101_v30  ;;  %v5178_v30 = vld [vmem:[%s7692_s3 + $0x58] sm:$0xff] }
 0x25c   :  { %v721_v44 = vpop.xlane.xlu1 %720 }
 0x25d   :  { %v725_v45 = vsub.f32 %v717_v40, %v721_v44  ;;  %v5156_v40 = vld [vmem:[%s7700_s7 + $0x28] sm:$0xff]  ;;  %v6097_v44 = vpack.c.bf16 %v5158_v43, %v5157_v41  ;;  %v5186_v41 = vld [vmem:[%s7711_s23 + $0x58] sm:$0xff] }
 0x25f   :  { %v727_v46 = vmul.f32 1.442695, %v725_v45 }
 0x260   :  { %v724_v48 = vpop.xlane.xlu1 %723 }
 0x261   :  { %6344 = vpow2.f32 %v727_v46  ;;  %v726_v50 = vsub.f32 %v718_v42, %v724_v48  ;;  %v6093_v42 = vpack.c.bf16 %v5156_v40, %v5155_v39  ;;  %v5185_v40 = vld [vmem:[%s7711_s23 + $0x50] sm:$0xff] }
 0x263   :  { %v729_v51 = vmul.f32 1.442695, %v726_v50 }
 0x265   :  { %6346 = vpow2.f32 %v729_v51 }
 0x26b   :  { %v6345_v52 = vpop.eup %6344 }
 0x26c   :  { %v731_v54 = vsel %vm349_vm14, %v6345_v52, 0.0 }
 0x26d   :  { %732 = vadd.xlane.f32.xlu1 %v731_v54 }
 0x26f   :  { %v6347_v55 = vpop.eup %6346 }
 0x270   :  { %v734_v59 = vsel %vm351_vm15, %v6347_v55, 0.0 }
 0x271   :  { %735 = vadd.xlane.f32.xlu1 %v734_v59 }
 0x2fa   :  { %v733_v49 = vpop.xlane.xlu1 %732 }
 0x2fb   :  { %6348 = vrcp.f32 %v733_v49 }
 0x2fe   :  { %v736_v15 = vpop.xlane.xlu1 %735 }
 0x2ff   :  { %6350 = vrcp.f32 %v736_v15 }
 0x305   :  { %v6349_v16 = vpop.eup %6348 }
 0x306   :  { %v739_v17 = vmul.f32 %v6349_v16, %v6345_v52  ;;  %v5170_v16 = vld [vmem:[%s7702_s9 + $0x8] sm:$0xff] }
 0x307   :  { %5719 = vmatprep.subr.mxu0 %v5170_v16 }
 0x308   :  { %5669 = vmatprep.mubr.msk.f32.mxu1 %vm349_vm14, %v739_v17 }
 0x309   :  { %v6351_v53 = vpop.eup %6350 }
 0x30a   :  { %v740_v21 = vmul.f32 %v6351_v53, %v6347_v55 }
 0x30c   :  { %5670 = vmatmul.mubr.msk.f32.vlgmr.msra.gmra.mrb[4].mxu1 %vm349_vm14, %v740_v21 }
 0x30d   :  { %6080 = vmatpush3.bf16.msra.mxu1 %v6077_v14  ;;  %5680 = vmatprep.mubr.msk.f32.mxu1 %vm366_vm0, %v6532_v5 }
 0x30e   :  { %6082 = vmatprep.subr.bf16.mxu1 %v6081_v22 }
 0x311   :  { %6084 = vmatpush3.bf16.msra.mxu1 %v6081_v22 }
 0x312   :  { %6094 = vmatprep.subr.bf16.mxu1 %v6093_v42 }
 0x314   :  { %5681 = vmatmul.mubr.msk.f32.vlgmr.msra.gmra.mrb[6].mxu1 %vm366_vm0, %v6570_v20 }
 0x315   :  { %5702 = vmatprep.mubr.msk.f32.mxu1 %vm366_vm0, %v6532_v5  ;;  %6096 = vmatpush3.bf16.msra.mxu1 %v6093_v42  ;;  %v6125_v42 = vpack.c.bf16 %v5186_v41, %v5185_v40  ;;  %v5262_v41 = vld [vmem:[%s7693_s1 + $0x110] sm:$0xff] }
 0x316   :  { %6098 = vmatprep.subr.bf16.mxu1 %v6097_v44 }
 0x319   :  { %6100 = vmatpush3.bf16.msra.mxu1 %v6097_v44 }
 0x31c   :  { %5703 = vmatmul.mubr.msk.f32.vlgmr.msra.gmra.mrb[8].mxu1 %vm366_vm0, %v6570_v20 }
 0x3df   :  { %v6870_v31 = vpop.f32.mrb[4].mxu1 }
 0x3e0   :  { %v6872_v32 = vpop.f32.mrb[5].mxu1 }
 0x3e7   :  { %v5682_v34 = vpop.f32.mrb[6].mxu1 }
 0x3e8   :  { %v906_v35 = vpop.f32.mrb[7].mxu1  ;;  %v912_v38 = vadd.f32 %v5682_v34, %v5144_v33  ;;  %v5183_v34 = vld [vmem:[%s7711_s23 + $0x40] sm:$0xff] }
 0x3e9   :  { %v907_v37 = vadd.f32 %v5144_v33, %v906_v35  ;;  %v6117_v33 = vpack.c.bf16 %v5178_v30, %v5177_v29  ;;  %v5184_v35 = vld [vmem:[%s7711_s23 + $0x48] sm:$0xff] }
 0x3ea   :  { %v6121_v39 = vpack.c.bf16 %v5184_v35, %v5183_v34 }
 0x3eb   :  { %5709 = vmatprep.mubr.msk.f32.mxu0 %vm107_vm1, %v907_v37 }
 0x3ec   :  { %5710 = vmatmul.mubr.msk.f32.vlgmr.msra.gmra.mrb[6].mxu0 %vm107_vm1, %v912_v38 }
 0x3ed   :  { %5720 = vmatpush3.msra.mxu0 %v5170_v16 }
 0x3ee   :  { %5724 = vmatprep.subr.mxu0 %v826_v23 }
 0x3ef   :  { %v5704_v47 = vpop.f32.mrb[8].mxu1 }
 0x3f0   :  { %v1082_v13 = vpop.f32.mrb[9].mxu1  ;;  %v1088_v14 = vadd.f32 %v5704_v47, %v5160_v11 }
 0x3f1   :  { %v1083_v49 = vadd.f32 %v5160_v11, %v1082_v13 }
 0x3f3   :  { %v6107_v15 = vpack.c.bf16 %v1088_v14, %v1083_v49 }
 0x3f5   :  { %6109 = vmatprep.subr.msk.bf16.mxu1 %vm6833_vm12, %v6107_v15 }
 0x3f6   :  { %6112 = vmatpush3.bf16.msk.msra.mxu1 %vm6833_vm12, %v6107_v15 }
 0x3f7   :  { %6114 = vmatprep.subr.bf16.mxu1 %v6113_v28 }
 0x4bf   :  { %v5711_v45 = vpop.f32.mrb[6].mxu0 }
 0x4c0   :  { %v1179_v46 = vmul.f32 0.35355338, %v5711_v45  ;;  %v1169_v48 = vpop.f32.mrb[7].mxu0 }
 0x4c1   :  { %v1178_v50 = vmul.f32 0.35355338, %v1169_v48 }
 0x4c2   :  { %v1181_v51 = vadd.f32 %v1179_v46, %v6784_v26 }
 0x4c3   :  { %v1180_v52 = vadd.f32 %v1178_v50, %v6775_v24 }
 0x4c4   :  { %v1183_v59 = vsel %vm716_vm3, -1e+09, %v1181_v51 }
 0x4c5   :  { %v1182_v54 = vsel %vm716_vm3, -1e+09, %v1180_v52  ;;  %v1187_v60 = vsel %vm351_vm15, %v1183_v59, -inf }
 0x4c6   :  { %v1184_v55 = vsel %vm349_vm14, %v1182_v54, -inf }
 0x4c7   :  { %1185 = vmax.xlane.f32.xlu1 %v1184_v55  ;;  %v5192_v55 = vld [vmem:[%s7700_s7 + $0x48] sm:$0xff] }
 0x4cb   :  { %1188 = vmax.xlane.f32.xlu1 %v1187_v60 }
 0x554   :  { %v1186_v61 = vpop.xlane.xlu1 %1185 }
 0x555   :  { %v1190_v62 = vsub.f32 %v1182_v54, %v1186_v61  ;;  %v5191_v54 = vld [vmem:[%s7700_s7 + $0x40] sm:$0xff]  ;;  %v5194_v61 = vld [vmem:[%s7700_s7 + $0x58] sm:$0xff] }
 0x556   :  { %v6129_v60 = vpack.c.bf16 %v5192_v55, %v5191_v54 }
 0x557   :  { %v1192_v63 = vmul.f32 1.442695, %v1190_v62 }
 0x558   :  { %v1189_v0 = vpop.xlane.xlu1 %1188 }
 0x559   :  { %6352 = vpow2.f32 %v1192_v63  ;;  %v1191_v2 = vsub.f32 %v1183_v59, %v1189_v0  ;;  %v5193_v59 = vld [vmem:[%s7700_s7 + $0x50] sm:$0xff] }
 0x55a   :  { %v6133_v62 = vpack.c.bf16 %v5194_v61, %v5193_v59  ;;  %v5206_v59 = vld [vmem:[%s7702_s9 + $0x10] sm:$0xff] }
 0x55b   :  { %v1194_v1 = vmul.f32 1.442695, %v1191_v2 }
 0x55d   :  { %6354 = vpow2.f32 %v1194_v1 }
 0x563   :  { %v6353_v3 = vpop.eup %6352 }
 0x564   :  { %v1196_v4 = vsel %vm349_vm14, %v6353_v3, 0.0 }
 0x565   :  { %1197 = vadd.xlane.f32.xlu1 %v1196_v4 }
 0x567   :  { %v6355_v6 = vpop.eup %6354 }
 0x568   :  { %v1199_v7 = vsel %vm351_vm15, %v6355_v6, 0.0 }
 0x569   :  { %1200 = vadd.xlane.f32.xlu1 %v1199_v7 }
 0x5f2   :  { %v1198_v17 = vpop.xlane.xlu1 %1197 }
 0x5f3   :  { %6356 = vrcp.f32 %v1198_v17 }
 0x5f6   :  { %v1201_v18 = vpop.xlane.xlu1 %1200 }
 0x5f7   :  { %6358 = vrcp.f32 %v1201_v18  ;;  %v5252_v18 = vld [vmem:[%s7693_s1 + $0xc0] sm:$0xff] }
 0x5fd   :  { %v6357_v19 = vpop.eup %6356 }
 0x5fe   :  { %v1204_v53 = vmul.f32 %v6357_v19, %v6353_v3 }
 0x600   :  { %5716 = vmatprep.mubr.msk.f32.mxu1 %vm349_vm14, %v1204_v53  ;;  %v2648_v53 = vmul.f32 %v5252_v18, %v6553_v12 }
 0x601   :  { %v6359_v21 = vpop.eup %6358 }
 0x602   :  { %v1205_v22 = vmul.f32 %v6359_v21, %v6355_v6  ;;  %v2676_v25 = vsel %vm107_vm1, %v2648_v53, 0.0  ;;  %v5214_v53 = vld [vmem:[%s7698_s4 + $0x3] ss:$0 sm:$0xff] }
 0x604   :  { %5717 = vmatmul.mubr.msk.f32.vlgmr.msra.gmra.mrb[10].mxu1 %vm349_vm14, %v1205_v22  ;;  %v5254_v22 = vld [vmem:[%s7693_s1 + $0xd0] sm:$0xff] }
 0x605   :  { %5737 = vmatprep.mubr.msk.f32.mxu1 %vm366_vm0, %v6532_v5  ;;  %6116 = vmatpush3.bf16.msra.mxu1 %v6113_v28  ;;  %v2650_v27 = vmul.f32 %v5254_v22, %v6553_v12  ;;  %v5256_v28 = vld [vmem:[%s7693_s1 + $0xe0] sm:$0xff] }
 0x606   :  { %6118 = vmatprep.subr.bf16.mxu1 %v6117_v33  ;;  %v2652_v30 = vmul.f32 %v5256_v28, %v6553_v12 }
 0x607   :  { %v2682_v29 = vsel %vm107_vm1, %v2650_v27, 0.0  ;;  %v5222_v27 = vld [vmem:[%s7697_s6 + $0x3] ss:$0 sm:$0xff] }
 0x608   :  { %v2688_v34 = vsel %vm107_vm1, %v2652_v30, 0.0 }
 0x609   :  { %6120 = vmatpush3.bf16.msra.mxu1 %v6117_v33  ;;  %v5258_v33 = vld [vmem:[%s7693_s1 + $0xf0] sm:$0xff] }
 0x60a   :  { %6130 = vmatprep.subr.bf16.mxu1 %v6129_v60  ;;  %v2654_v35 = vmul.f32 %v5258_v33, %v6553_v12  ;;  %v5196_v12 = vld [vmem:[%s7701_s8 + $0x2] ss:$0 sm:$0xff] }
 0x60c   :  { %5738 = vmatmul.mubr.msk.f32.vlgmr.msra.gmra.mrb[12].mxu1 %vm366_vm0, %v6570_v20 }
 0x60d   :  { %5759 = vmatprep.mubr.msk.f32.mxu1 %vm366_vm0, %v6532_v5  ;;  %6132 = vmatpush3.bf16.msra.mxu1 %v6129_v60 }
 0x60e   :  { %6134 = vmatprep.subr.bf16.mxu1 %v6133_v62 }
 0x611   :  { %6136 = vmatpush3.bf16.msra.mxu1 %v6133_v62 }
 0x614   :  { %5760 = vmatmul.mubr.msk.f32.vlgmr.msra.gmra.mrb[14].mxu1 %vm366_vm0, %v6570_v20 }
 0x6d7   :  { %v5718_v37 = vpop.f32.mrb[10].mxu1 }
 0x6d8   :  { %v1281_v38 = vpop.f32.mrb[11].mxu1 }
 0x6d9   :  { %5721 = vmatprep.mubr.msk.f32.mxu0 %vm107_vm1, %v1281_v38  ;;  %v2694_v38 = vsel %vm107_vm1, %v2654_v35, 0.0  ;;  %v5225_v35 = vld [vmem:[%s7700_s7 + $0x60] sm:$0xff] }
 0x6da   :  { %5722 = vmatmul.mubr.msk.f32.vlgmr.msra.gmra.mrb[8].mxu0 %vm107_vm1, %v5718_v37  ;;  %v5260_v37 = vld [vmem:[%s7693_s1 + $0x100] sm:$0xff] }
 0x6db   :  { %5725 = vmatpush3.msra.mxu0 %v826_v23  ;;  %5726 = vmatprep.mubr.msk.f32.mxu0 %vm107_vm1, %v6872_v32  ;;  %v5180_v32 = vld [vmem:[%s7698_s4 + $0x2] ss:$0 sm:$0xff] }
 0x6dc   :  { %6122 = vmatprep.subr.bf16.mxu0 %v6121_v39 }
 0x6df   :  { %v5739_v43 = vpop.f32.mrb[12].mxu1 }
 0x6e0   :  { %v1539_v44 = vadd.f32 %v5739_v43, %v5180_v32  ;;  %v1533_v45 = vpop.f32.mrb[13].mxu1 }
 0x6e1   :  { %v1534_v46 = vadd.f32 %v5180_v32, %v1533_v45 }
 0x6e2   :  { %5727 = vmatmul.mubr.msk.f32.vlgmr.msra.gmra.mrb[8].mxu0 %vm107_vm1, %v6870_v31  ;;  %v5188_v31 = vld [vmem:[%s7697_s6 + $0x2] ss:$0 sm:$0xff] }
 0x6e3   :  { %6124 = vmatpush3.bf16.msra.mxu0 %v6121_v39  ;;  %5748 = vmatprep.mubr.msk.f32.mxu0 %vm366_vm0, %v6532_v5  ;;  %v7020_v39 = vld [vmem:[%s7694_s11] ss:$0 sm:$0xff] }
 0x6e4   :  { %6126 = vmatprep.subr.bf16.mxu0 %v6125_v42  ;;  %v2656_v40 = vmul.f32 %v7020_v39, %v5260_v37  ;;  %v5226_v37 = vld [vmem:[%s7700_s7 + $0x68] sm:$0xff] }
 0x6e6   :  { %v2700_v43 = vsel %vm107_vm1, %v2656_v40, 0.0  ;;  %v6165_v40 = vpack.c.bf16 %v5226_v37, %v5225_v35  ;;  %v5263_v37 = vld [vmem:[%s7693_s1 + $0x118] sm:$0x3] }
 0x6e7   :  { %6128 = vmatpush3.bf16.msra.mxu0 %v6125_v42  ;;  %v5761_v42 = vpop.f32.mrb[14].mxu1 }
 0x6e8   :  { %v1709_v32 = vpop.f32.mrb[15].mxu1  ;;  %v1715_v45 = vadd.f32 %v5761_v42, %v5196_v12 }
 0x6ea   :  { %5749 = vmatmul.mubr.msk.f32.vlgmr.msra.gmra.mrb[10].mxu0 %vm366_vm0, %v6570_v20 }
 0x6eb   :  { %5766 = vmatprep.mubr.msk.f32.mxu0 %vm107_vm1, %v1534_v46  ;;  %v1710_v46 = vadd.f32 %v5196_v12, %v1709_v32 }
 0x7bd   :  { %v5750_v5 = vpop.f32.mrb[10].mxu0 }
 0x7be   :  { %v1627_v48 = vadd.f32 %v5750_v5, %v5188_v31  ;;  %v1621_v50 = vpop.f32.mrb[11].mxu0  ;;  %v6143_v5 = vpack.c.bf16 %v1715_v45, %v1710_v46 }
 0x7bf   :  { %v1622_v51 = vadd.f32 %v5188_v31, %v1621_v50  ;;  %v5264_v31 = vld [vmem:[%s7693_s1 + $0x120] sm:$0xff] }
 0x7c0   :  { %v2660_v50 = vmul.f32 %v7020_v39, %v5264_v31  ;;  %6145 = vmatprep.subr.msk.bf16.mxu1 %vm6833_vm12, %v6143_v5 }
 0x7c1   :  { %v6137_v52 = vpack.c.bf16 %v1627_v48, %v1622_v51  ;;  %v5266_v51 = vld [vmem:[%s7693_s1 + $0x130] sm:$0xff]  ;;  %6148 = vmatpush3.bf16.msk.msra.mxu1 %vm6833_vm12, %v6143_v5 }
 0x7c2   :  { %v2662_v54 = vmul.f32 %v7020_v39, %v5266_v51 }
 0x7c3   :  { %6139 = vmatprep.subr.msk.bf16.mxu0 %vm6691_vm5, %v6137_v52 }
 0x7c4   :  { %6142 = vmatpush3.bf16.xpose.msk.msra.mxu0 %vm6691_vm5, %v6137_v52  ;;  %v2712_v52 = vsel %vm107_vm1, %v2660_v50, 0.0  ;;  %v2718_v55 = vsel %vm107_vm1, %v2662_v54, 0.0 }
 0x7c5   :  { %5776 = vmatprep.subr.mxu0 %v5206_v59 }
 0x7cb   :  { %5767 = vmatmul.mubr.msk.f32.vlgmr.msra.gmra.mrb[12].mxu0 %vm107_vm1, %v1539_v44  ;;  %v2658_v44 = vmul.f32 %v7020_v39, %v5262_v41  ;;  %v5228_v41 = vld [vmem:[%s7700_s7 + $0x78] sm:$0xff] }
 0x7cc   :  { %5777 = vmatpush3.msra.mxu0 %v5206_v59 }
 0x7cd   :  { %v2706_v48 = vsel %vm107_vm1, %v2658_v44, 0.0 }
 0x89e   :  { %v5768_v63 = vpop.f32.mrb[12].mxu0 }
 0x89f   :  { %v1806_v0 = vmul.f32 0.35355338, %v5768_v63  ;;  %v1796_v2 = vpop.f32.mrb[13].mxu0 }
 0x8a0   :  { %v1805_v1 = vmul.f32 0.35355338, %v1796_v2 }
 0x8a1   :  { %v1808_v3 = vadd.f32 %v1806_v0, %v6784_v26 }
 0x8a2   :  { %v1807_v4 = vadd.f32 %v1805_v1, %v6775_v24  ;;  %v6425_v1 = vld [vmem:[%s7691_s0] sm:$0xff] }
 0x8a3   :  { %v1810_v47 = vsel %vm716_vm3, -1e+09, %v1808_v3  ;;  %v5217_v3 = vld [vmem:[%s7711_s23 + $0x60] sm:$0xff] }
 0x8a4   :  { %v1809_v6 = vsel %vm716_vm3, -1e+09, %v1807_v4  ;;  %v1814_v11 = vsel %vm351_vm15, %v1810_v47, -inf  ;;  %v5218_v4 = vld [vmem:[%s7711_s23 + $0x68] sm:$0xff] }
 0x8a5   :  { %v1811_v7 = vsel %vm349_vm14, %v1809_v6, -inf }
 0x8a6   :  { %1812 = vmax.xlane.f32.xlu1 %v1811_v7  ;;  %v5209_v7 = vld [vmem:[%s7692_s3 + $0x60] sm:$0xff] }
 0x8aa   :  { %1815 = vmax.xlane.f32.xlu1 %v1814_v11 }
 0x933   :  { %v1813_v20 = vpop.xlane.xlu1 %1812 }
 0x934   :  { %v1817_v13 = vsub.f32 %v1809_v6, %v1813_v20  ;;  %v6157_v6 = vpack.c.bf16 %v5218_v4, %v5217_v3  ;;  %v5211_v20 = vld [vmem:[%s7692_s3 + $0x70] sm:$0xff] }
 0x935   :  { %v5250_v3 = vld [vmem:[%s7693_s1 + $0xb0] sm:$0xff] }
 0x936   :  { %v1819_v14 = vmul.f32 1.442695, %v1817_v13  ;;  %6158 = vmatprep.subr.bf16.mxu0 %v6157_v6  ;;  %v5212_v13 = vld [vmem:[%s7692_s3 + $0x78] sm:$0xff] }
 0x937   :  { %v1816_v49 = vpop.xlane.xlu1 %1815 }
 0x938   :  { %6360 = vpow2.f32 %v1819_v14  ;;  %v1818_v15 = vsub.f32 %v1810_v47, %v1816_v49  ;;  %v5210_v47 = vld [vmem:[%s7692_s3 + $0x68] sm:$0xff]  ;;  %v6153_v14 = vpack.c.bf16 %v5212_v13, %v5211_v20 }
 0x939   :  { %v6149_v11 = vpack.c.bf16 %v5210_v47, %v5209_v7  ;;  %v6426_v49 = vld [vmem:[%s7691_s0 + $0x8] sm:$0x3]  ;;  %v5251_v7 = vld [vmem:[%s7693_s1 + $0xb8] sm:$0x3] }
 0x93a   :  { %v1821_v16 = vmul.f32 1.442695, %v1818_v15  ;;  %v5219_v15 = vld [vmem:[%s7711_s23 + $0x70] sm:$0xff]  ;;  %v5253_v20 = vld [vmem:[%s7693_s1 + $0xc8] sm:$0x3] }
 0x93b   :  { %6150 = vmatprep.subr.bf16.mxu1 %v6149_v11 }
 0x93c   :  { %6362 = vpow2.f32 %v1821_v16  ;;  %v5220_v16 = vld [vmem:[%s7711_s23 + $0x78] sm:$0xff] }
 0x942   :  { %v6361_v17 = vpop.eup %6360 }
 0x943   :  { %v1823_v19 = vsel %vm349_vm14, %v6361_v17, 0.0 }
 0x944   :  { %1824 = vadd.xlane.f32.xlu1 %v1823_v19  ;;  %v6161_v19 = vpack.c.bf16 %v5220_v16, %v5219_v15  ;;  %v5230_v16 = vld [vmem:[%s7701_s8 + $0x3] ss:$0 sm:$0xff] }
 0x946   :  { %v6363_v21 = vpop.eup %6362 }
 0x947   :  { %v1826_v23 = vsel %vm351_vm15, %v6363_v21, 0.0 }
 0x948   :  { %1827 = vadd.xlane.f32.xlu0 %v1826_v23 }
 0x94c   :  { %2677 = vadd.xlane.f32.xlu0 %v2676_v25 }
 0x950   :  { %2683 = vadd.xlane.f32.xlu0 %v2682_v29 }
 0x954   :  { %2689 = vadd.xlane.f32.xlu0 %v2688_v34 }
 0x958   :  { %2695 = vadd.xlane.f32.xlu0 %v2694_v38  ;;  %v5227_v38 = vld [vmem:[%s7700_s7 + $0x70] sm:$0xff] }
 0x959   :  { %v6169_v42 = vpack.c.bf16 %v5228_v41, %v5227_v38  ;;  %v5265_v41 = vld [vmem:[%s7693_s1 + $0x128] sm:$0x3] }
 0x95c   :  { %2701 = vadd.xlane.f32.xlu0 %v2700_v43 }
 0x960   :  { %2707 = vadd.xlane.f32.xlu0 %v2706_v48 }
 0x964   :  { %2713 = vadd.xlane.f32.xlu0 %v2712_v52 }
 0x968   :  { %2719 = vadd.xlane.f32.xlu0 %v2718_v55 }
 0x9d1   :  { %v1825_v60 = vpop.xlane.xlu1 %1824 }
 0x9d2   :  { %6364 = vrcp.f32 %v1825_v60  ;;  %v5248_v60 = vld [vmem:[%s7693_s1 + $0xa0] sm:$0xff] }
 0x9d5   :  { %v1828_v61 = vpop.xlane.xlu0 %1827 }
 0x9d6   :  { %6366 = vrcp.f32 %v1828_v61  ;;  %v2644_v61 = vmul.f32 %v7020_v39, %v5248_v60 }
 0x9dc   :  { %v6365_v62 = vpop.eup %6364 }
 0x9dd   :  { %v1831_v63 = vmul.f32 %v6365_v62, %v6361_v17 }
 0x9df   :  { %5773 = vmatprep.mubr.msk.f32.mxu1 %vm349_vm14, %v1831_v63  ;;  %v5249_v63 = vld [vmem:[%s7693_s1 + $0xa8] sm:$0x3] }
 0x9e0   :  { %v6367_v0 = vpop.eup %6366 }
 0x9e1   :  { %v1832_v2 = vmul.f32 %v6367_v0, %v6363_v21 }
 0x9e3   :  { %5774 = vmatmul.mubr.msk.f32.vlgmr.msra.gmra.mrb[16].mxu1 %vm349_vm14, %v1832_v2  ;;  %v2664_v2 = vsel %vm107_vm1, %v2644_v61, 0.0 }
 0x9e4   :  { %5789 = vmatprep.mubr.msk.f32.mxu1 %vm366_vm0, %v6425_v1  ;;  %6152 = vmatpush3.bf16.msra.mxu1 %v6149_v11  ;;  %v2647_v11 = vmul.f32 %v7020_v39, %v5251_v7 }
 0x9e5   :  { %6154 = vmatprep.subr.bf16.mxu1 %v6153_v14 }
 0x9e6   :  { %v2673_v13 = vsel %vm111_vm2, %v2647_v11, 0.0 }
 0x9e8   :  { %6156 = vmatpush3.bf16.msra.mxu1 %v6153_v14  ;;  %v2649_v14 = vmul.f32 %v7020_v39, %v5253_v20 }
 0x9e9   :  { %6166 = vmatprep.subr.bf16.mxu1 %v6165_v40 }
 0x9eb   :  { %5790 = vmatmul.mubr.msk.f32.vlgmr.msra.gmra.mrb[18].mxu1 %vm366_vm0, %v6426_v49 }
 0x9ec   :  { %5811 = vmatprep.mubr.msk.f32.mxu1 %vm366_vm0, %v6425_v1  ;;  %6168 = vmatpush3.bf16.msra.mxu1 %v6165_v40  ;;  %v2659_v40 = vmul.f32 %v7020_v39, %v5263_v37 }
 0x9ed   :  { %6170 = vmatprep.subr.bf16.mxu1 %v6169_v42 }
 0x9f0   :  { %6172 = vmatpush3.bf16.msra.mxu1 %v6169_v42  ;;  %v2709_v42 = vsel %vm111_vm2, %v2659_v40, 0.0 }
 0x9f3   :  { %5812 = vmatmul.mubr.msk.f32.vlgmr.msra.gmra.mrb[20].mxu1 %vm366_vm0, %v6426_v49 }
 0xab6   :  { %v5775_v17 = vpop.f32.mrb[16].mxu1 }
 0xab7   :  { %v1908_v18 = vpop.f32.mrb[17].mxu1 }
 0xab8   :  { %5778 = vmatprep.mubr.msk.f32.mxu0 %vm107_vm1, %v1908_v18  ;;  %v2679_v18 = vsel %vm111_vm2, %v2649_v14, 0.0 }
 0xab9   :  { %5779 = vmatmul.mubr.msk.f32.vlgmr.msra.gmra.mrb[8].mxu0 %vm107_vm1, %v5775_v17 }
 0xaba   :  { %6160 = vmatpush3.bf16.msra.mxu0 %v6157_v6  ;;  %5800 = vmatprep.mubr.msk.f32.mxu0 %vm366_vm0, %v6425_v1  ;;  %v2645_v1 = vmul.f32 %v7020_v39, %v5249_v63  ;;  %v2646_v6 = vmul.f32 %v7020_v39, %v5250_v3 }
 0xabb   :  { %6162 = vmatprep.subr.bf16.mxu0 %v6161_v19 }
 0xabc   :  { %v2667_v4 = vsel %vm111_vm2, %v2645_v1, 0.0  ;;  %v2670_v47 = vsel %vm107_vm1, %v2646_v6, 0.0 }
 0xabe   :  { %6164 = vmatpush3.bf16.msra.mxu0 %v6161_v19  ;;  %v5791_v21 = vpop.f32.mrb[18].mxu1 }
 0xabf   :  { %v2087_v22 = vadd.f32 %v5791_v21, %v5214_v53  ;;  %v2081_v23 = vpop.f32.mrb[19].mxu1 }
 0xac0   :  { %v2082_v25 = vadd.f32 %v5214_v53, %v2081_v23 }
 0xac1   :  { %5801 = vmatmul.mubr.msk.f32.vlgmr.msra.gmra.mrb[14].mxu0 %vm366_vm0, %v6426_v49  ;;  %v5255_v49 = vld [vmem:[%s7693_s1 + $0xd8] sm:$0x3] }
 0xac2   :  { %5818 = vmatprep.mubr.msk.f32.mxu0 %vm107_vm1, %v2082_v25  ;;  %v2651_v19 = vmul.f32 %v7020_v39, %v5255_v49 }
 0xac4   :  { %v2685_v25 = vsel %vm111_vm2, %v2651_v19, 0.0 }
 0xac6   :  { %v5813_v15 = vpop.f32.mrb[20].mxu1 }
 0xac7   :  { %v2257_v17 = vpop.f32.mrb[21].mxu1  ;;  %v2263_v53 = vadd.f32 %v5813_v15, %v5230_v16 }
 0xac8   :  { %v2258_v21 = vadd.f32 %v5230_v16, %v2257_v17 }
 0xaca   :  { %v6179_v23 = vpack.c.bf16 %v2263_v53, %v2258_v21 }
 0xacc   :  { %6181 = vmatprep.subr.msk.bf16.mxu1 %vm6833_vm12, %v6179_v23 }
 0xacd   :  { %6184 = vmatpush3.bf16.msk.msra.mxu1 %vm6833_vm12, %v6179_v23 }
 0xb94   :  { %v5802_v28 = vpop.f32.mrb[14].mxu0 }
 0xb95   :  { %v2175_v29 = vadd.f32 %v5802_v28, %v5222_v27  ;;  %v2169_v30 = vpop.f32.mrb[15].mxu0  ;;  %v5259_v28 = vld [vmem:[%s7693_s1 + $0xf8] sm:$0x3] }
 0xb96   :  { %v2170_v33 = vadd.f32 %v5222_v27, %v2169_v30  ;;  %v2655_v30 = vmul.f32 %v7020_v39, %v5259_v28 }
 0xb98   :  { %v6173_v34 = vpack.c.bf16 %v2175_v29, %v2170_v33  ;;  %v5261_v33 = vld [vmem:[%s7693_s1 + $0x108] sm:$0x3] }
 0xb99   :  { %v2657_v35 = vmul.f32 %v7020_v39, %v5261_v33 }
 0xb9a   :  { %6175 = vmatprep.subr.msk.bf16.mxu0 %vm6691_vm5, %v6173_v34 }
 0xb9b   :  { %6178 = vmatpush3.bf16.xpose.msk.msra.mxu0 %vm6691_vm5, %v6173_v34  ;;  %v2697_v34 = vsel %vm111_vm2, %v2655_v30, 0.0  ;;  %v2703_v38 = vsel %vm111_vm2, %v2657_v35, 0.0 }
 0xba2   :  { %5819 = vmatmul.mubr.msk.f32.vlgmr.msra.gmra.mrb[16].mxu0 %vm107_vm1, %v2087_v22  ;;  %v5257_v22 = vld [vmem:[%s7693_s1 + $0xe8] sm:$0x3] }
 0xba3   :  { %v2653_v27 = vmul.f32 %v7020_v39, %v5257_v22 }
 0xba5   :  { %v2691_v29 = vsel %vm111_vm2, %v2653_v27, 0.0 }
 0xc75   :  { %v5820_v12 = vpop.f32.mrb[16].mxu0 }
 0xc76   :  { %v2354_v32 = vmul.f32 0.35355338, %v5820_v12  ;;  %v2344_v43 = vpop.f32.mrb[17].mxu0  ;;  %v2661_v12 = vmul.f32 %v7020_v39, %v5265_v41 }
 0xc77   :  { %v2353_v44 = vmul.f32 0.35355338, %v2344_v43 }
 0xc78   :  { %v2356_v45 = vadd.f32 %v2354_v32, %v6784_v26  ;;  %v5267_v32 = vld [vmem:[%s7693_s1 + $0x138] sm:$0x3]  ;;  %v2715_v43 = vsel %vm111_vm2, %v2661_v12, 0.0 }
 0xc79   :  { %v2355_v46 = vadd.f32 %v2353_v44, %v6775_v24  ;;  %v2663_v44 = vmul.f32 %v7020_v39, %v5267_v32 }
 0xc7a   :  { %v2358_v48 = vsel %vm716_vm3, -1e+09, %v2356_v45 }
 0xc7b   :  { %v2357_v31 = vsel %vm716_vm3, -1e+09, %v2355_v46  ;;  %v2362_v50 = vsel %vm351_vm15, %v2358_v48, -inf  ;;  %v2721_v45 = vsel %vm111_vm2, %v2663_v44, 0.0  ;;  %v7199_v46 = vld [vmem:[%s7702_s9 + $0x18] sm:$0xff]  ;;  %vm7716_vm2 = vcmask 1046534  }
 0xc7c   :  { %v2359_v5 = vsel %vm349_vm14, %v2357_v31, -inf  ;;  %5828 = vmatprep.subr.mxu0 %v7199_v46 }
 0xc7d   :  { %2360 = vmax.xlane.f32.xlu1 %v2359_v5  ;;  %5829 = vmatpush3.msra.mxu0 %v7199_v46  ;;  %v2678_v5 = vpop.xlane.xlu0 %2677 }
 0xc81   :  { %2363 = vmax.xlane.f32.xlu1 %v2362_v50  ;;  %v2684_v39 = vpop.xlane.xlu0 %2683 }
 0xd0a   :  { %v2361_v51 = vpop.xlane.xlu1 %2360 }
 0xd0b   :  { %v2365_v52 = vsub.f32 %v2357_v31, %v2361_v51 }
 0xd0d   :  { %v2367_v54 = vmul.f32 1.442695, %v2365_v52 }
 0xd0e   :  { %v2364_v55 = vpop.xlane.xlu1 %2363 }
 0xd0f   :  { %6368 = vpow2.f32 %v2367_v54  ;;  %v2366_v26 = vsub.f32 %v2358_v48, %v2364_v55 }
 0xd11   :  { %v2369_v59 = vmul.f32 1.442695, %v2366_v26  ;;  %v2690_v26 = vpop.xlane.xlu0 %2689 }
 0xd12   :  { %v2732_v49 = vadd.f32 %v2690_v26, %v6714_v58 }
 0xd13   :  { %6370 = vpow2.f32 %v2369_v59 }
 0xd14   :  { %v2752_v33 = vmax.f32 %v2732_v49, 0.0 }
 0xd15   :  { %v2696_v61 = vpop.xlane.xlu0 %2695 }
 0xd16   :  { %v2734_v15 = vadd.f32 %v2696_v61, %v6714_v58 }
 0xd19   :  { %v7121_v24 = vpop.eup %6368 }
 0xd1a   :  { %v2371_v9 = vsel %vm349_vm14, %v7121_v24, 0.0 }
 0xd1b   :  { %2372 = vadd.xlane.f32.xlu1 %v2371_v9 }
 0xd1d   :  { %v7129_v62 = vpop.eup %6370 }
 0xd1e   :  { %v2374_v0 = vsel %vm351_vm15, %v7129_v62, 0.0 }
 0xd1f   :  { %2375 = vadd.xlane.f32.xlu1 %v2374_v0  ;;  %v2702_v0 = vpop.xlane.xlu0 %2701 }
 0xd23   :  { %2665 = vadd.xlane.f32.xlu1 %v2664_v2  ;;  %v2708_v11 = vpop.xlane.xlu0 %2707 }
 0xd24   :  { %v2738_v35 = vadd.f32 %v2708_v11, %v6714_v58 }
 0xd27   :  { %2668 = vadd.xlane.f32.xlu1 %v2667_v4  ;;  %v2714_v37 = vpop.xlane.xlu0 %2713 }
 0xd2b   :  { %2671 = vadd.xlane.f32.xlu1 %v2670_v47  ;;  %v2730_v47 = vadd.f32 %v2684_v39, %v6714_v58 }
 0xd2d   :  { %v2750_v23 = vmax.f32 %v2730_v47, 0.0 }
 0xd2f   :  { %2674 = vadd.xlane.f32.xlu1 %v2673_v13  ;;  %v2814_v44 = vrot.slane %v2750_v23, %v6709_v56 }
 0xd33   :  { %2680 = vadd.xlane.f32.xlu1 %v2679_v18 }
 0xd37   :  { %2686 = vadd.xlane.f32.xlu1 %v2685_v25  ;;  %v2736_v25 = vadd.f32 %v2702_v0, %v6714_v58  ;;  %v2720_v0 = vpop.xlane.xlu0 %2719 }
 0xd3b   :  { %2692 = vadd.xlane.f32.xlu1 %v2691_v29 }
 0xd3f   :  { %2698 = vadd.xlane.f32.xlu1 %v2697_v34  ;;  %v2754_v34 = vmax.f32 %v2734_v15, 0.0 }
 0xd43   :  { %2704 = vadd.xlane.f32.xlu1 %v2703_v38 }
 0xd47   :  { %2710 = vadd.xlane.f32.xlu1 %v2709_v42 }
 0xd4b   :  { %2716 = vadd.xlane.f32.xlu1 %v2715_v43 }
 0xd4f   :  { %2722 = vadd.xlane.f32.xlu1 %v2721_v45  ;;  %v2756_v45 = vmax.f32 %v2736_v25, 0.0 }
 0xda8   :  { %v2373_v31 = vpop.xlane.xlu1 %2372 }
 0xda9   :  { %6372 = vrcp.f32 %v2373_v31 }
 0xdac   :  { %v2376_v48 = vpop.xlane.xlu1 %2375 }
 0xdad   :  { %6374 = vrcp.f32 %v2376_v48 }
 0xdb0   :  { %v2666_v50 = vpop.xlane.xlu1 %2665 }
 0xdb1   :  { %v2724_v13 = vadd.f32 %v2666_v50, %v6714_v58 }
 0xdb3   :  { %v6373_v51 = vpop.eup %6372  ;;  %v2744_v28 = vmax.f32 %v2724_v13, 0.0 }
 0xdb4   :  { %v2669_v52 = vpop.xlane.xlu1 %2668  ;;  %v2379_v54 = vmul.f32 %v6373_v51, %v7121_v24  ;;  %v2823_v51 = vrot.slane %v2752_v33, %v6709_v56 }
 0xdb5   :  { %v2725_v24 = vadd.f32 %v2669_v52, %v6714_v58  ;;  %v2832_v52 = vrot.slane %v2754_v34, %v6709_v56 }
 0xdb6   :  { %5825 = vmatprep.mubr.msk.f32.mxu1 %vm349_vm14, %v2379_v54  ;;  %v2758_v54 = vmax.f32 %v2738_v35, 0.0  ;;  %v2982_v35 = vld [vmem:[%s7711_s23] sm:$0xff] }
 0xdb7   :  { %v6375_v55 = vpop.eup %6374  ;;  %v2745_v18 = vmax.f32 %v2725_v24, 0.0 }
 0xdb8   :  { %v2380_v59 = vmul.f32 %v6375_v55, %v7129_v62  ;;  %v2672_v60 = vpop.xlane.xlu1 %2671  ;;  %v2728_v62 = vadd.f32 %v2678_v5, %v6714_v58  ;;  %v2787_v5 = vrot.slane %v2744_v28, %v6709_v56 }
 0xdb9   :  { %v2726_v6 = vadd.f32 %v2672_v60, %v6714_v58  ;;  %v2791_v41 = vrot.slane %v2745_v18, %v6712_v57 }
 0xdba   :  { %5826 = vmatmul.mubr.msk.f32.vlgmr.msra.gmra.mrb[22].mxu1 %vm349_vm14, %v2380_v59  ;;  %v2748_v22 = vmax.f32 %v2728_v62, 0.0 }
 0xdbb   :  { %v2746_v19 = vmax.f32 %v2726_v6, 0.0  ;;  %v2792_v59 = vsel %vm249_vm6, %v2791_v41, %v2787_v5  ;;  %v2850_v6 = vrot.slane %v2758_v54, %v6709_v56 }
 0xdbc   :  { %v2675_v9 = vpop.xlane.xlu1 %2674  ;;  %v2805_v43 = vrot.slane %v2748_v22, %v6709_v56 }
 0xdbd   :  { %v2727_v1 = vadd.f32 %v2675_v9, %v6714_v58  ;;  %v2796_v42 = vrot.slane %v2746_v19, %v6709_v56 }
 0xdbf   :  { %v2747_v14 = vmax.f32 %v2727_v1, 0.0 }
 0xdc0   :  { %v2681_v63 = vpop.xlane.xlu1 %2680 }
 0xdc1   :  { %v2729_v3 = vadd.f32 %v2681_v63, %v6714_v58  ;;  %v2800_v29 = vrot.slane %v2747_v14, %v6712_v57  ;;  %v2841_v63 = vrot.slane %v2756_v45, %v6709_v56  ;;  %v2985_v45 = vld [vmem:[%s7711_s23 + $0x18] sm:$0xff] }
 0xdc3   :  { %v2749_v16 = vmax.f32 %v2729_v3, 0.0  ;;  %v2801_v48 = vsel %vm249_vm6, %v2800_v29, %v2796_v42  ;;  %v2892_v42 = vld [vmem:[%s7692_s3 + $0x10] sm:$0xff] }
 0xdc4   :  { %v2687_v2 = vpop.xlane.xlu1 %2686 }
 0xdc5   :  { %v2731_v7 = vadd.f32 %v2687_v2, %v6714_v58  ;;  %v2809_v38 = vrot.slane %v2749_v16, %v6712_v57  ;;  %v2874_v2 = vsel %vm332_vm7, %v2801_v48, %v2792_v59  ;;  %v5274_v59 = vld [vmem:[%s7697_s6] ss:$0 sm:$0xff] }
 0xdc7   :  { %v2751_v53 = vmax.f32 %v2731_v7, 0.0  ;;  %v2810_v55 = vsel %vm249_vm6, %v2809_v38, %v2805_v43  ;;  %v2740_v7 = vadd.f32 %v2714_v37, %v6714_v58  ;;  %v7288_v37 = vld [vmem:[%s7691_s0 + $0x10] sm:$0xff]  ;;  %v2890_v38 = vld [vmem:[%s7692_s3] sm:$0xff]  ;;  %v7307_v43 = vld [vmem:[%s7691_s0 + $0x18] sm:$0x3] }
 0xdc8   :  { %v2693_v4 = vpop.xlane.xlu1 %2692  ;;  %v2875_v3 = vsel %vm334_vm8, %v2810_v55, %v2874_v2  ;;  %vm7717_vm8 = vcmask 1047559   ;;  %5841 = vmatprep.mubr.msk.f32.mxu1 %vm366_vm0, %v7288_v37  ;;  %v3068_v2 = vld [vmem:[%s7700_s7] sm:$0xff] }
 0xdc9   :  { %v2733_v20 = vadd.f32 %v2693_v4, %v6714_v58  ;;  %v2818_v12 = vrot.slane %v2751_v53, %v6712_v57 }
 0xdcb   :  { %v2753_v27 = vmax.f32 %v2733_v20, 0.0  ;;  %v2819_v60 = vsel %vm249_vm6, %v2818_v12, %v2814_v44  ;;  %v2742_v20 = vadd.f32 %v2720_v0, %v6714_v58  ;;  %v2893_v12 = vld [vmem:[%s7692_s3 + $0x18] sm:$0xff]  ;;  %v2984_v44 = vld [vmem:[%s7711_s23 + $0x10] sm:$0xff] }
 0xdcc   :  { %v2699_v17 = vpop.xlane.xlu1 %2698  ;;  %v2876_v62 = vsel %vm336_vm9, %v2819_v60, %v2875_v3  ;;  %v6197_v48 = vpack.c.bf16 %v2985_v45, %v2984_v44  ;;  %v3070_v3 = vld [vmem:[%s7700_s7 + $0x10] sm:$0xff]  ;;  %v5287_v44 = vld [vmem:[%s7692_s3 + $0x20] sm:$0xff]  ;;  %v5288_v45 = vld [vmem:[%s7692_s3 + $0x28] sm:$0xff] }
 0xdcd   :  { %v2735_v21 = vadd.f32 %v2699_v17, %v6714_v58  ;;  %v2827_v31 = vrot.slane %v2753_v27, %v6712_v57  ;;  %v2762_v22 = vmax.f32 %v2742_v20, 0.0 }
 0xdcf   :  { %v2755_v30 = vmax.f32 %v2735_v21, 0.0  ;;  %v2828_v1 = vsel %vm249_vm6, %v2827_v31, %v2823_v51  ;;  %v2760_v21 = vmax.f32 %v2740_v7, 0.0  ;;  %v2868_v29 = vrot.slane %v2762_v22, %v6709_v56 }
 0xdd0   :  { %v2705_v40 = vpop.xlane.xlu1 %2704  ;;  %v2877_v13 = vsel %vm338_vm10, %v2828_v1, %v2876_v62  ;;  %v3069_v1 = vld [vmem:[%s7700_s7 + $0x8] sm:$0xff] }
 0xdd1   :  { %v2737_v32 = vadd.f32 %v2705_v40, %v6714_v58  ;;  %v2836_v50 = vrot.slane %v2755_v30, %v6712_v57  ;;  %v2859_v28 = vrot.slane %v2760_v21, %v6709_v56  ;;  %v2983_v56 = vld [vmem:[%s7711_s23 + $0x8] sm:$0xff] }
 0xdd2   :  { %v2891_v40 = vld [vmem:[%s7692_s3 + $0x8] sm:$0xff] }
 0xdd3   :  { %v2757_v39 = vmax.f32 %v2737_v32, 0.0  ;;  %v2837_v4 = vsel %vm249_vm6, %v2836_v50, %v2832_v52  ;;  %v6185_v41 = vpack.c.bf16 %v2891_v40, %v2890_v38  ;;  %v6189_v32 = vpack.c.bf16 %v2893_v12, %v2892_v42  ;;  %v5271_v50 = vld [vmem:[%s7698_s4] ss:$0 sm:$0xff]  ;;  %v5298_v42 = vld [vmem:[%s7711_s23 + $0x38] sm:$0xff] }
 0xdd4   :  { %v2711_v26 = vpop.xlane.xlu1 %2710  ;;  %v2878_v15 = vsel %vm340_vm11, %v2837_v4, %v2877_v13  ;;  %v6201_v4 = vpack.c.bf16 %v3069_v1, %v3068_v2 }
 0xdd5   :  { %v2845_v9 = vrot.slane %v2757_v39, %v6712_v57  ;;  %v2739_v61 = vadd.f32 %v2711_v26, %v6714_v58  ;;  %6186 = vmatprep.subr.bf16.mxu1 %v6185_v41 }
 0xdd6   :  { %6188 = vmatpush3.bf16.msra.mxu1 %v6185_v41  ;;  %v5297_v41 = vld [vmem:[%s7711_s23 + $0x30] sm:$0xff] }
 0xdd7   :  { %v2759_v24 = vmax.f32 %v2739_v61, 0.0  ;;  %v2846_v47 = vsel %vm249_vm6, %v2845_v9, %v2841_v63  ;;  %6190 = vmatprep.subr.bf16.mxu1 %v6189_v32  ;;  %v6233_v12 = vpack.c.bf16 %v5298_v42, %v5297_v41 }
 0xdd8   :  { %v2717_v11 = vpop.xlane.xlu1 %2716  ;;  %v2879_v16 = vsel %vm7716_vm2, %v2846_v47, %v2878_v15 }
 0xdd9   :  { %v2854_v14 = vrot.slane %v2759_v24, %v6712_v57  ;;  %v2741_v49 = vadd.f32 %v2717_v11, %v6714_v58  ;;  %v3071_v24 = vld [vmem:[%s7700_s7 + $0x18] sm:$0xff] }
 0xdda   :  { %6192 = vmatpush3.bf16.msra.mxu1 %v6189_v32 }
 0xddb   :  { %v2855_v17 = vsel %vm249_vm6, %v2854_v14, %v2850_v6  ;;  %v2761_v18 = vmax.f32 %v2741_v49, 0.0  ;;  %v6205_v6 = vpack.c.bf16 %v3071_v24, %v3070_v3  ;;  %6202 = vmatprep.subr.bf16.mxu1 %v6201_v4  ;;  %v5292_v24 = vld [vmem:[%s7698_s4 + $0x1] ss:$0 sm:$0xff] }
 0xddc   :  { %v2723_v19 = vpop.xlane.xlu1 %2722  ;;  %v7257_v53 = vsel %vm7717_vm8, %v2855_v17, %v2879_v16 }
 0xddd   :  { %v2743_v23 = vadd.f32 %v2723_v19, %v6714_v58  ;;  %5268 = vst.msk [vmem:[%s7699_s16 + $0x10] sm:$0xff] %vm349_vm14, %v7257_v53  ;;  %v2863_v25 = vrot.slane %v2761_v18, %v6712_v57  ;;  %5842 = vmatmul.mubr.msk.f32.vlgmr.msra.gmra.mrb[24].mxu1 %vm366_vm0, %v7307_v43 }
 0xdde   :  { %5863 = vmatprep.mubr.msk.f32.mxu1 %vm366_vm0, %v7288_v37  ;;  %6204 = vmatpush3.bf16.msra.mxu1 %v6201_v4 }
 0xddf   :  { %v2763_v27 = vmax.f32 %v2743_v23, 0.0  ;;  %v2864_v33 = vsel %vm249_vm6, %v2863_v25, %v2859_v28  ;;  %6206 = vmatprep.subr.bf16.mxu1 %v6205_v6 }
 0xde1   :  { %v2872_v30 = vrot.slane %v2763_v27, %v6712_v57  ;;  %v6193_v57 = vpack.c.bf16 %v2983_v56, %v2982_v35  ;;  %v5277_v56 = vld [vmem:[%s7701_s8] ss:$0 sm:$0xff] }
 0xde2   :  { %6208 = vmatpush3.bf16.msra.mxu1 %v6205_v6 }
 0xde3   :  { %v2873_v34 = vsel %vm249_vm6, %v2872_v30, %v2868_v29  ;;  %6194 = vmatprep.subr.bf16.mxu0 %v6193_v57  ;;  %vm3250_vm6 = vcmp.eq.s32.totalorder %v6663_v10, 1  ;;  %v5295_v30 = vld [vmem:[%s7711_s23 + $0x20] sm:$0xff] }
 0xde4   :  { %v7272_v58 = vsel %vm332_vm7, %v2873_v34, %v2864_v33  ;;  %v5296_v33 = vld [vmem:[%s7711_s23 + $0x28] sm:$0xff]  ;;  %v6428_v10 = vld [vmem:[%s7691_s0] sm:$0xff] }
 0xde5   :  { %5269 = vst.msk [vmem:[%s7699_s16 + $0x18] sm:$0x3] %vm351_vm15, %v7272_v58  ;;  %5864 = vmatmul.mubr.msk.f32.vlgmr.msra.gmra.mrb[26].mxu1 %vm366_vm0, %v7307_v43  ;;  %v6229_v34 = vpack.c.bf16 %v5296_v33, %v5295_v30 }
 0xe8d   :  { %v5827_v31 = vpop.f32.mrb[22].mxu1 }
 0xe8e   :  { %v2456_v5 = vpop.f32.mrb[23].mxu1 }
 0xe8f   :  { %5830 = vmatprep.mubr.msk.f32.mxu0 %vm107_vm1, %v2456_v5 }
 0xe90   :  { %5831 = vmatmul.mubr.msk.f32.vlgmr.msra.gmra.mrb[8].mxu0 %vm107_vm1, %v5827_v31  ;;  %v6221_v31 = vpack.c.bf16 %v5288_v45, %v5287_v44 }
 0xe91   :  { %6196 = vmatpush3.bf16.msra.mxu0 %v6193_v57  ;;  %5852 = vmatprep.mubr.msk.f32.mxu0 %vm366_vm0, %v7288_v37 }
 0xe92   :  { %6198 = vmatprep.subr.bf16.mxu0 %v6197_v48 }
 0xe95   :  { %6200 = vmatpush3.bf16.msra.mxu0 %v6197_v48 }
 0xe98   :  { %5853 = vmatmul.mubr.msk.f32.vlgmr.msra.gmra.mrb[18].mxu0 %vm366_vm0, %v7307_v43 }
 0xeb0   :  { %v5843_v39 = vpop.f32.mrb[24].mxu1 }
 0xeb1   :  { %v2979_v51 = vadd.f32 %v5843_v39, %v5271_v50  ;;  %v2973_v52 = vpop.f32.mrb[25].mxu1  ;;  %v5289_v39 = vld [vmem:[%s7692_s3 + $0x30] sm:$0xff] }
 0xeb2   :  { %v2974_v54 = vadd.f32 %v5271_v50, %v2973_v52 }
 0xeb4   :  { %5870 = vmatprep.mubr.msk.f32.mxu0 %vm107_vm1, %v2974_v54 }
 0xeb8   :  { %v5865_v35 = vpop.f32.mrb[26].mxu1 }
 0xeb9   :  { %v3145_v57 = vpop.f32.mrb[27].mxu1  ;;  %v3151_v38 = vadd.f32 %v5865_v35, %v5277_v56 }
 0xeba   :  { %v3146_v40 = vadd.f32 %v5277_v56, %v3145_v57 }
 0xebc   :  { %v6215_v32 = vpack.c.bf16 %v3151_v38, %v3146_v40 }
 0xebe   :  { %6217 = vmatprep.subr.msk.bf16.mxu1 %vm6833_vm12, %v6215_v32 }
 0xebf   :  { %6220 = vmatpush3.bf16.msk.msra.mxu1 %vm6833_vm12, %v6215_v32 }
 0xec0   :  { %6222 = vmatprep.subr.bf16.mxu1 %v6221_v31 }
 0xf63   :  { %v7329_v55 = vpop.f32.mrb[8].mxu0 }
 0xf64   :  { %v7331_v26 = vpop.f32.mrb[9].mxu0 }
 0xf6b   :  { %v5854_v60 = vpop.f32.mrb[18].mxu0 }
 0xf6c   :  { %v3065_v9 = vadd.f32 %v5854_v60, %v5274_v59  ;;  %v3059_v61 = vpop.f32.mrb[19].mxu0 }
 0xf6d   :  { %v3060_v63 = vadd.f32 %v5274_v59, %v3059_v61 }
 0xf6f   :  { %v6209_v0 = vpack.c.bf16 %v3065_v9, %v3060_v63  ;;  %v5300_v9 = vld [vmem:[%s7697_s6 + $0x1] ss:$0 sm:$0xff] }
 0xf71   :  { %6211 = vmatprep.subr.msk.bf16.mxu0 %vm6691_vm5, %v6209_v0 }
 0xf72   :  { %6214 = vmatpush3.bf16.xpose.msk.msra.mxu0 %vm6691_vm5, %v6209_v0 }
 0xf73   :  { %6230 = vmatprep.subr.bf16.mxu0 %v6229_v34 }
 0xf79   :  { %5871 = vmatmul.mubr.msk.f32.vlgmr.msra.gmra.mrb[20].mxu0 %vm107_vm1, %v2979_v51  ;;  %v5290_v51 = vld [vmem:[%s7692_s3 + $0x38] sm:$0xff] }
 0xf7a   :  { %5899 = vmatprep.mubr.msk.f32.mxu0 %vm366_vm0, %v7288_v37  ;;  %6232 = vmatpush3.bf16.msra.mxu0 %v6229_v34  ;;  %v6225_v60 = vpack.c.bf16 %v5290_v51, %v5289_v39 }
 0xf7b   :  { %6234 = vmatprep.subr.bf16.mxu0 %v6233_v12 }
 0xf7e   :  { %6236 = vmatpush3.bf16.msra.mxu0 %v6233_v12  ;;  %v5308_v12 = vld [vmem:[%s7701_s8 + $0x1] ss:$0 sm:$0xff] }
 0xf81   :  { %5900 = vmatmul.mubr.msk.f32.vlgmr.msra.gmra.mrb[22].mxu0 %vm366_vm0, %v7307_v43 }
0x104c   :  { %v5872_v7 = vpop.f32.mrb[20].mxu0 }
0x104d   :  { %v3242_v62 = vmul.f32 0.35355338, %v5872_v7  ;;  %v3232_v47 = vpop.f32.mrb[21].mxu0 }
0x104e   :  { %v3241_v11 = vmul.f32 0.35355338, %v3232_v47 }
0x104f   :  { %v3244_v20 = vadd.f32 %v3242_v62, %v7272_v58 }
0x1050   :  { %v3243_v13 = vadd.f32 %v3241_v11, %v7257_v53  ;;  %v5303_v11 = vld [vmem:[%s7700_s7 + $0x20] sm:$0xff] }
0x1051   :  { %v3252_v14 = vsel %vm3250_vm6, -1e+09, %v3244_v20  ;;  %v5304_v20 = vld [vmem:[%s7700_s7 + $0x28] sm:$0xff] }
0x1052   :  { %v3256_v49 = vsel %vm351_vm15, %v3252_v14, -inf  ;;  %v3251_v15 = vsel %vm3250_vm6, -1e+09, %v3243_v13  ;;  %v5305_v13 = vld [vmem:[%s7700_s7 + $0x30] sm:$0xff] }
0x1053   :  { %3257 = vmax.xlane.f32.xlu1 %v3256_v49  ;;  %v3253_v16 = vsel %vm349_vm14, %v3251_v15, -inf  ;;  %v5306_v49 = vld [vmem:[%s7700_s7 + $0x38] sm:$0xff] }
0x1054   :  { %3254 = vmax.xlane.f32.xlu0 %v3253_v16  ;;  %v5901_v61 = vpop.f32.mrb[22].mxu0 }
0x1055   :  { %v3529_v63 = vadd.f32 %v5901_v61, %v5300_v9  ;;  %v3523_v0 = vpop.f32.mrb[23].mxu0 }
0x1056   :  { %v3524_v2 = vadd.f32 %v5300_v9, %v3523_v0  ;;  %v5324_v9 = vld [vmem:[%s7692_s3 + $0x48] sm:$0xff]  ;;  %v5326_v0 = vld [vmem:[%s7692_s3 + $0x58] sm:$0xff] }
0x1058   :  { %v6245_v1 = vpack.c.bf16 %v3529_v63, %v3524_v2  ;;  %v5325_v63 = vld [vmem:[%s7692_s3 + $0x50] sm:$0xff] }
0x1059   :  { %v6261_v2 = vpack.c.bf16 %v5326_v0, %v5325_v63  ;;  %v5354_v63 = vld [vmem:[%s7702_s9 + $0x10] sm:$0xff] }
0x105a   :  { %6247 = vmatprep.subr.msk.bf16.mxu0 %vm6691_vm5, %v6245_v1 }
0x105b   :  { %6250 = vmatpush3.bf16.xpose.msk.msra.mxu0 %vm6691_vm5, %v6245_v1  ;;  %v5331_v1 = vld [vmem:[%s7711_s23 + $0x40] sm:$0xff] }
0x10e0   :  { %v3258_v17 = vpop.xlane.xlu1 %3257 }
0x10e1   :  { %v3260_v18 = vsub.f32 %v3252_v14, %v3258_v17  ;;  %v3255_v19 = vpop.xlane.xlu0 %3254  ;;  %v6237_v14 = vpack.c.bf16 %v5304_v20, %v5303_v11  ;;  %v5334_v11 = vld [vmem:[%s7711_s23 + $0x58] sm:$0xff] }
0x10e2   :  { %v3259_v21 = vsub.f32 %v3251_v15, %v3255_v19  ;;  %v6241_v15 = vpack.c.bf16 %v5306_v49, %v5305_v13 }
0x10e3   :  { %v3263_v22 = vmul.f32 1.442695, %v3260_v18 }
0x10e4   :  { %v3261_v23 = vmul.f32 1.442695, %v3259_v21 }
0x10e5   :  { %6376 = vpow2.f32 %v3263_v22 }
0x10e6   :  { %6378 = vpow2.f32 %v3261_v23 }
0x10ef   :  { %v6377_v25 = vpop.eup %6376 }
0x10f0   :  { %v6379_v27 = vpop.eup %6378  ;;  %v3268_v28 = vsel %vm351_vm15, %v6377_v25, 0.0 }
0x10f1   :  { %3269 = vadd.xlane.f32.xlu1 %v3268_v28  ;;  %v3265_v29 = vsel %vm349_vm14, %v6379_v27, 0.0 }
0x10f2   :  { %3266 = vadd.xlane.f32.xlu0 %v3265_v29 }
0x117e   :  { %v3270_v5 = vpop.xlane.xlu1 %3269 }
0x117f   :  { %6380 = vrcp.f32 %v3270_v5  ;;  %v3267_v48 = vpop.xlane.xlu0 %3266  ;;  %v5318_v5 = vld [vmem:[%s7702_s9 + $0x8] sm:$0xff] }
0x1180   :  { %6382 = vrcp.f32 %v3267_v48  ;;  %5927 = vmatprep.subr.mxu0 %v5318_v5 }
0x1189   :  { %v6381_v50 = vpop.eup %6380 }
0x118a   :  { %v6383_v52 = vpop.eup %6382  ;;  %v3274_v59 = vmul.f32 %v6381_v50, %v6377_v25 }
0x118b   :  { %v3273_v54 = vmul.f32 %v6383_v52, %v6379_v27 }
0x118d   :  { %5877 = vmatprep.mubr.msk.f32.mxu1 %vm349_vm14, %v3273_v54 }
0x118e   :  { %5878 = vmatmul.mubr.msk.f32.vlgmr.msra.gmra.mrb[28].mxu1 %vm349_vm14, %v3274_v59  ;;  %v3359_v59 = vld [vmem:[%s7702_s9] sm:$0xff] }
0x118f   :  { %6224 = vmatpush3.bf16.msra.mxu1 %v6221_v31  ;;  %5888 = vmatprep.mubr.msk.f32.mxu1 %vm366_vm0, %v7288_v37 }
0x1190   :  { %6226 = vmatprep.subr.bf16.mxu1 %v6225_v60 }
0x1193   :  { %6228 = vmatpush3.bf16.msra.mxu1 %v6225_v60  ;;  %v5323_v60 = vld [vmem:[%s7692_s3 + $0x40] sm:$0xff] }
0x1194   :  { %6238 = vmatprep.subr.bf16.mxu1 %v6237_v14  ;;  %v6257_v61 = vpack.c.bf16 %v5324_v9, %v5323_v60 }
0x1196   :  { %5889 = vmatmul.mubr.msk.f32.vlgmr.msra.gmra.mrb[30].mxu1 %vm366_vm0, %v7307_v43 }
0x1197   :  { %5910 = vmatprep.mubr.msk.f32.mxu1 %vm366_vm0, %v7288_v37  ;;  %6240 = vmatpush3.bf16.msra.mxu1 %v6237_v14 }
0x1198   :  { %6242 = vmatprep.subr.bf16.mxu1 %v6241_v15 }
0x119b   :  { %6244 = vmatpush3.bf16.msra.mxu1 %v6241_v15 }
0x119e   :  { %5911 = vmatmul.mubr.msk.f32.vlgmr.msra.gmra.mrb[32].mxu1 %vm366_vm0, %v7307_v43 }
0x1261   :  { %v7416_v3 = vpop.f32.mrb[28].mxu1 }
0x1262   :  { %v7418_v4 = vpop.f32.mrb[29].mxu1 }
0x1269   :  { %v5890_v6 = vpop.f32.mrb[30].mxu1 }
0x126a   :  { %v3437_v7 = vpop.f32.mrb[31].mxu1  ;;  %v3443_v47 = vadd.f32 %v5890_v6, %v5292_v24 }
0x126b   :  { %v3438_v62 = vadd.f32 %v5292_v24, %v3437_v7  ;;  %v5332_v24 = vld [vmem:[%s7711_s23 + $0x48] sm:$0xff] }
0x126d   :  { %5917 = vmatprep.mubr.msk.f32.mxu0 %vm107_vm1, %v3438_v62  ;;  %v6265_v62 = vpack.c.bf16 %v5332_v24, %v5331_v1 }
0x126e   :  { %5918 = vmatmul.mubr.msk.f32.vlgmr.msra.gmra.mrb[24].mxu0 %vm107_vm1, %v3443_v47  ;;  %v5333_v47 = vld [vmem:[%s7711_s23 + $0x50] sm:$0xff] }
0x126f   :  { %5928 = vmatpush3.msra.mxu0 %v5318_v5  ;;  %v6269_v20 = vpack.c.bf16 %v5334_v11, %v5333_v47  ;;  %v5366_v47 = vld [vmem:[%s7711_s23 + $0x68] sm:$0xff] }
0x1270   :  { %5932 = vmatprep.subr.mxu0 %v3359_v59 }
0x1271   :  { %v5912_v42 = vpop.f32.mrb[32].mxu1 }
0x1272   :  { %v3609_v32 = vpop.f32.mrb[33].mxu1  ;;  %v3615_v44 = vadd.f32 %v5912_v42, %v5308_v12 }
0x1273   :  { %v3610_v45 = vadd.f32 %v5308_v12, %v3609_v32 }
0x1275   :  { %v6251_v31 = vpack.c.bf16 %v3615_v44, %v3610_v45 }
0x1277   :  { %6253 = vmatprep.subr.msk.bf16.mxu1 %vm6833_vm12, %v6251_v31 }
0x1278   :  { %6256 = vmatpush3.bf16.msk.msra.mxu1 %vm6833_vm12, %v6251_v31 }
0x1279   :  { %6258 = vmatprep.subr.bf16.mxu1 %v6257_v61 }
0x1341   :  { %v5919_v16 = vpop.f32.mrb[24].mxu0 }
0x1342   :  { %v3706_v17 = vmul.f32 0.35355338, %v5919_v16  ;;  %v3696_v18 = vpop.f32.mrb[25].mxu0 }
0x1343   :  { %v3705_v19 = vmul.f32 0.35355338, %v3696_v18 }
0x1344   :  { %v3708_v21 = vadd.f32 %v3706_v17, %v7272_v58 }
0x1345   :  { %v3707_v22 = vadd.f32 %v3705_v19, %v7257_v53 }
0x1346   :  { %v3710_v23 = vsel %vm3250_vm6, -1e+09, %v3708_v21 }
0x1347   :  { %v3714_v25 = vsel %vm351_vm15, %v3710_v23, -inf  ;;  %v3709_v27 = vsel %vm3250_vm6, -1e+09, %v3707_v22  ;;  %v5339_v22 = vld [vmem:[%s7700_s7 + $0x40] sm:$0xff] }
0x1348   :  { %3715 = vmax.xlane.f32.xlu1 %v3714_v25  ;;  %v3711_v28 = vsel %vm349_vm14, %v3709_v27, -inf  ;;  %v5341_v25 = vld [vmem:[%s7700_s7 + $0x50] sm:$0xff] }
0x1349   :  { %3712 = vmax.xlane.f32.xlu0 %v3711_v28  ;;  %v5342_v28 = vld [vmem:[%s7700_s7 + $0x58] sm:$0xff] }
0x13d5   :  { %v3716_v29 = vpop.xlane.xlu1 %3715 }
0x13d6   :  { %v3718_v30 = vsub.f32 %v3710_v23, %v3716_v29  ;;  %v3713_v33 = vpop.xlane.xlu0 %3712  ;;  %v5340_v23 = vld [vmem:[%s7700_s7 + $0x48] sm:$0xff]  ;;  %v6277_v29 = vpack.c.bf16 %v5342_v28, %v5341_v25  ;;  %v5370_v28 = vld [vmem:[%s7697_s6 + $0x3] ss:$0 sm:$0xff] }
0x13d7   :  { %v3717_v34 = vsub.f32 %v3709_v27, %v3713_v33  ;;  %v6273_v27 = vpack.c.bf16 %v5340_v23, %v5339_v22 }
0x13d8   :  { %v3721_v35 = vmul.f32 1.442695, %v3718_v30 }
0x13d9   :  { %v3719_v56 = vmul.f32 1.442695, %v3717_v34 }
0x13da   :  { %6384 = vpow2.f32 %v3721_v35 }
0x13db   :  { %6386 = vpow2.f32 %v3719_v56 }
0x13e4   :  { %v6385_v57 = vpop.eup %6384 }
0x13e5   :  { %v6387_v38 = vpop.eup %6386  ;;  %v3726_v40 = vsel %vm351_vm15, %v6385_v57, 0.0 }
0x13e6   :  { %3727 = vadd.xlane.f32.xlu1 %v3726_v40  ;;  %v3723_v41 = vsel %vm349_vm14, %v6387_v38, 0.0 }
0x13e7   :  { %3724 = vadd.xlane.f32.xlu0 %v3723_v41 }
0x1473   :  { %v3728_v48 = vpop.xlane.xlu1 %3727 }
0x1474   :  { %6388 = vrcp.f32 %v3728_v48  ;;  %v3725_v50 = vpop.xlane.xlu0 %3724 }
0x1475   :  { %6390 = vrcp.f32 %v3725_v50 }
0x147e   :  { %v6389_v39 = vpop.eup %6388 }
0x147f   :  { %v6391_v51 = vpop.eup %6390  ;;  %v3732_v54 = vmul.f32 %v6389_v39, %v6385_v57 }
0x1480   :  { %v3731_v52 = vmul.f32 %v6391_v51, %v6387_v38 }
0x1482   :  { %5924 = vmatprep.mubr.msk.f32.mxu1 %vm349_vm14, %v3731_v52 }
0x1483   :  { %5925 = vmatmul.mubr.msk.f32.vlgmr.msra.gmra.mrb[34].mxu1 %vm349_vm14, %v3732_v54  ;;  %v5344_v54 = vld [vmem:[%s7701_s8 + $0x2] ss:$0 sm:$0xff] }
0x1484   :  { %5945 = vmatprep.mubr.msk.f32.mxu1 %vm366_vm0, %v7288_v37  ;;  %6260 = vmatpush3.bf16.msra.mxu1 %v6257_v61 }
0x1485   :  { %6262 = vmatprep.subr.bf16.mxu1 %v6261_v2 }
0x1488   :  { %6264 = vmatpush3.bf16.msra.mxu1 %v6261_v2 }
0x1489   :  { %6274 = vmatprep.subr.bf16.mxu1 %v6273_v27 }
0x148b   :  { %5946 = vmatmul.mubr.msk.f32.vlgmr.msra.gmra.mrb[36].mxu1 %vm366_vm0, %v7307_v43 }
0x148c   :  { %5967 = vmatprep.mubr.msk.f32.mxu1 %vm366_vm0, %v7288_v37  ;;  %6276 = vmatpush3.bf16.msra.mxu1 %v6273_v27 }
0x148d   :  { %6278 = vmatprep.subr.bf16.mxu1 %v6277_v29 }
0x1490   :  { %6280 = vmatpush3.bf16.msra.mxu1 %v6277_v29 }
0x1493   :  { %5968 = vmatmul.mubr.msk.f32.vlgmr.msra.gmra.mrb[38].mxu1 %vm366_vm0, %v7307_v43 }
0x1556   :  { %v5926_v6 = vpop.f32.mrb[34].mxu1 }
0x1557   :  { %v3808_v7 = vpop.f32.mrb[35].mxu1 }
0x1558   :  { %5929 = vmatprep.mubr.msk.f32.mxu0 %vm107_vm1, %v3808_v7 }
0x1559   :  { %5930 = vmatmul.mubr.msk.f32.vlgmr.msra.gmra.mrb[26].mxu0 %vm107_vm1, %v5926_v6 }
0x155a   :  { %5933 = vmatpush3.msra.mxu0 %v3359_v59  ;;  %5934 = vmatprep.mubr.msk.f32.mxu0 %vm107_vm1, %v7418_v4  ;;  %v5328_v4 = vld [vmem:[%s7698_s4 + $0x2] ss:$0 sm:$0xff] }
0x155b   :  { %6266 = vmatprep.subr.bf16.mxu0 %v6265_v62 }
0x155e   :  { %v5947_v13 = vpop.f32.mrb[36].mxu1 }
0x155f   :  { %v4063_v14 = vadd.f32 %v5947_v13, %v5328_v4  ;;  %v4057_v49 = vpop.f32.mrb[37].mxu1 }
0x1560   :  { %v4058_v15 = vadd.f32 %v5328_v4, %v4057_v49  ;;  %v5358_v4 = vld [vmem:[%s7692_s3 + $0x68] sm:$0xff]  ;;  %v5360_v49 = vld [vmem:[%s7692_s3 + $0x78] sm:$0xff] }
0x1561   :  { %5935 = vmatmul.mubr.msk.f32.vlgmr.msra.gmra.mrb[26].mxu0 %vm107_vm1, %v7416_v3  ;;  %v5336_v3 = vld [vmem:[%s7697_s6 + $0x2] ss:$0 sm:$0xff] }
0x1562   :  { %6268 = vmatpush3.bf16.msra.mxu0 %v6265_v62  ;;  %5956 = vmatprep.mubr.msk.f32.mxu0 %vm366_vm0, %v7288_v37  ;;  %v5365_v62 = vld [vmem:[%s7711_s23 + $0x60] sm:$0xff] }
0x1563   :  { %6270 = vmatprep.subr.bf16.mxu0 %v6269_v20  ;;  %v6301_v11 = vpack.c.bf16 %v5366_v47, %v5365_v62  ;;  %v6429_v47 = vld [vmem:[%s7701_s8 + $0x3] ss:$0 sm:$0xff] }
0x1566   :  { %6272 = vmatpush3.bf16.msra.mxu0 %v6269_v20  ;;  %v5969_v52 = vpop.f32.mrb[38].mxu1  ;;  %v5357_v20 = vld [vmem:[%s7692_s3 + $0x60] sm:$0xff] }
0x1567   :  { %v4229_v59 = vpop.f32.mrb[39].mxu1  ;;  %v4235_v60 = vadd.f32 %v5969_v52, %v5344_v54  ;;  %v6293_v13 = vpack.c.bf16 %v5358_v4, %v5357_v20 }
0x1568   :  { %v4230_v9 = vadd.f32 %v5344_v54, %v4229_v59 }
0x1569   :  { %5957 = vmatmul.mubr.msk.f32.vlgmr.msra.gmra.mrb[28].mxu0 %vm366_vm0, %v7307_v43 }
0x156a   :  { %5974 = vmatprep.mubr.msk.f32.mxu0 %vm107_vm1, %v4058_v15  ;;  %v6287_v61 = vpack.c.bf16 %v4235_v60, %v4230_v9  ;;  %v2550_v9 = vadd.f32 %v6428_v10, %v7331_v26 }
0x156c   :  { %6289 = vmatprep.subr.msk.bf16.mxu1 %vm6833_vm12, %v6287_v61 }
0x156d   :  { %6292 = vmatpush3.bf16.msk.msra.mxu1 %vm6833_vm12, %v6287_v61  ;;  %v5243_v61 = vld [vmem:[%s7703_s10] ss:$0 sm:$0xff] }
0x156e   :  { %6294 = vmatprep.subr.bf16.mxu1 %v6293_v13 }
0x163c   :  { %v5958_v16 = vpop.f32.mrb[28].mxu0 }
0x163d   :  { %v4149_v17 = vadd.f32 %v5958_v16, %v5336_v3  ;;  %v4143_v18 = vpop.f32.mrb[29].mxu0  ;;  %v5368_v16 = vld [vmem:[%s7711_s23 + $0x78] sm:$0xff] }
0x163e   :  { %v4144_v19 = vadd.f32 %v5336_v3, %v4143_v18  ;;  %v5367_v3 = vld [vmem:[%s7711_s23 + $0x70] sm:$0xff] }
0x1640   :  { %v6281_v21 = vpack.c.bf16 %v4149_v17, %v4144_v19  ;;  %v6305_v19 = vpack.c.bf16 %v5368_v16, %v5367_v3 }
0x1642   :  { %6283 = vmatprep.subr.msk.bf16.mxu0 %vm6691_vm5, %v6281_v21 }
0x1643   :  { %6286 = vmatpush3.bf16.xpose.msk.msra.mxu0 %vm6691_vm5, %v6281_v21  ;;  %v5362_v21 = vld [vmem:[%s7698_s4 + $0x3] ss:$0 sm:$0xff] }
0x1644   :  { %5984 = vmatprep.subr.mxu0 %v5354_v63 }
0x164a   :  { %5975 = vmatmul.mubr.msk.f32.vlgmr.msra.gmra.mrb[30].mxu0 %vm107_vm1, %v4063_v14  ;;  %v5359_v14 = vld [vmem:[%s7692_s3 + $0x70] sm:$0xff] }
0x164b   :  { %5985 = vmatpush3.msra.mxu0 %v5354_v63  ;;  %v6297_v15 = vpack.c.bf16 %v5360_v49, %v5359_v14 }
0x164c   :  { %6302 = vmatprep.subr.bf16.mxu0 %v6301_v11 }
0x171d   :  { %v5976_v30 = vpop.f32.mrb[30].mxu0 }
0x171e   :  { %v4326_v33 = vmul.f32 0.35355338, %v5976_v30  ;;  %v4316_v34 = vpop.f32.mrb[31].mxu0 }
0x171f   :  { %v4325_v35 = vmul.f32 0.35355338, %v4316_v34 }
0x1720   :  { %v4328_v56 = vadd.f32 %v4326_v33, %v7272_v58 }
0x1721   :  { %v4327_v57 = vadd.f32 %v4325_v35, %v7257_v53 }
0x1722   :  { %v4330_v38 = vsel %vm3250_vm6, -1e+09, %v4328_v56  ;;  %v5373_v56 = vld [vmem:[%s7700_s7 + $0x60] sm:$0xff] }
0x1723   :  { %v4334_v40 = vsel %vm351_vm15, %v4330_v38, -inf  ;;  %v4329_v41 = vsel %vm3250_vm6, -1e+09, %v4327_v57  ;;  %v5374_v57 = vld [vmem:[%s7700_s7 + $0x68] sm:$0xff] }
0x1724   :  { %4335 = vmax.xlane.f32.xlu1 %v4334_v40  ;;  %v4331_v42 = vsel %vm349_vm14, %v4329_v41, -inf  ;;  %v6309_v36 = vpack.c.bf16 %v5374_v57, %v5373_v56  ;;  %v5376_v40 = vld [vmem:[%s7700_s7 + $0x78] sm:$0xff] }
0x1725   :  { %4332 = vmax.xlane.f32.xlu0 %v4331_v42 }
0x17b1   :  { %v4336_v12 = vpop.xlane.xlu1 %4335 }
0x17b2   :  { %v4338_v32 = vsub.f32 %v4330_v38, %v4336_v12  ;;  %v4333_v44 = vpop.xlane.xlu0 %4332  ;;  %v5375_v38 = vld [vmem:[%s7700_s7 + $0x70] sm:$0xff] }
0x17b3   :  { %v4337_v45 = vsub.f32 %v4329_v41, %v4333_v44  ;;  %v6313_v41 = vpack.c.bf16 %v5376_v40, %v5375_v38 }
0x17b4   :  { %v4341_v31 = vmul.f32 1.442695, %v4338_v32 }
0x17b5   :  { %v4339_v5 = vmul.f32 1.442695, %v4337_v45 }
0x17b6   :  { %6392 = vpow2.f32 %v4341_v31 }
0x17b7   :  { %6394 = vpow2.f32 %v4339_v5 }
0x17c0   :  { %v6393_v48 = vpop.eup %6392 }
0x17c1   :  { %v6395_v50 = vpop.eup %6394  ;;  %v4346_v39 = vsel %vm351_vm15, %v6393_v48, 0.0 }
0x17c2   :  { %4347 = vadd.xlane.f32.xlu1 %v4346_v39  ;;  %v4343_v51 = vsel %vm349_vm14, %v6395_v50, 0.0 }
0x17c3   :  { %4344 = vadd.xlane.f32.xlu0 %v4343_v51 }
0x184f   :  { %v4348_v0 = vpop.xlane.xlu1 %4347 }
0x1850   :  { %6396 = vrcp.f32 %v4348_v0  ;;  %v4345_v2 = vpop.xlane.xlu0 %4344 }
0x1851   :  { %6398 = vrcp.f32 %v4345_v2 }
0x185a   :  { %v6397_v1 = vpop.eup %6396 }
0x185b   :  { %v6399_v24 = vpop.eup %6398  ;;  %v4352_v7 = vmul.f32 %v6397_v1, %v6393_v48 }
0x185c   :  { %v4351_v6 = vmul.f32 %v6399_v24, %v6395_v50 }
0x185e   :  { %5981 = vmatprep.mubr.msk.f32.mxu1 %vm349_vm14, %v4351_v6 }
0x185f   :  { %5982 = vmatmul.mubr.msk.f32.vlgmr.msra.gmra.mrb[40].mxu1 %vm349_vm14, %v4352_v7 }
0x1860   :  { %5997 = vmatprep.mubr.msk.f32.mxu1 %vm366_vm0, %v7288_v37  ;;  %6296 = vmatpush3.bf16.msra.mxu1 %v6293_v13 }
0x1861   :  { %6298 = vmatprep.subr.bf16.mxu1 %v6297_v15 }
0x1864   :  { %6300 = vmatpush3.bf16.msra.mxu1 %v6297_v15 }
0x1865   :  { %6310 = vmatprep.subr.bf16.mxu1 %v6309_v36 }
0x1867   :  { %5998 = vmatmul.mubr.msk.f32.vlgmr.msra.gmra.mrb[42].mxu1 %vm366_vm0, %v7307_v43 }
0x1868   :  { %6019 = vmatprep.mubr.msk.f32.mxu1 %vm366_vm0, %v7288_v37  ;;  %6312 = vmatpush3.bf16.msra.mxu1 %v6309_v36 }
0x1869   :  { %6314 = vmatprep.subr.bf16.mxu1 %v6313_v41 }
0x186c   :  { %6316 = vmatpush3.bf16.msra.mxu1 %v6313_v41 }
0x186f   :  { %6020 = vmatmul.mubr.msk.f32.vlgmr.msra.gmra.mrb[44].mxu1 %vm366_vm0, %v7307_v43 }
0x1932   :  { %v5983_v17 = vpop.f32.mrb[40].mxu1 }
0x1933   :  { %v4428_v18 = vpop.f32.mrb[41].mxu1 }
0x1934   :  { %5986 = vmatprep.mubr.msk.f32.mxu0 %vm107_vm1, %v4428_v18 }
0x1935   :  { %5987 = vmatmul.mubr.msk.f32.vlgmr.msra.gmra.mrb[26].mxu0 %vm107_vm1, %v5983_v17 }
0x1936   :  { %6304 = vmatpush3.bf16.msra.mxu0 %v6301_v11  ;;  %6008 = vmatprep.mubr.msk.f32.mxu0 %vm366_vm0, %v7288_v37 }
0x1937   :  { %6306 = vmatprep.subr.bf16.mxu0 %v6305_v19 }
0x193a   :  { %6308 = vmatpush3.bf16.msra.mxu0 %v6305_v19  ;;  %v5999_v22 = vpop.f32.mrb[42].mxu1 }
0x193b   :  { %v4604_v23 = vadd.f32 %v5999_v22, %v5362_v21  ;;  %v4598_v25 = vpop.f32.mrb[43].mxu1 }
0x193c   :  { %v4599_v27 = vadd.f32 %v5362_v21, %v4598_v25 }
0x193d   :  { %6009 = vmatmul.mubr.msk.f32.vlgmr.msra.gmra.mrb[32].mxu0 %vm366_vm0, %v7307_v43 }
0x193e   :  { %6026 = vmatprep.mubr.msk.f32.mxu0 %vm107_vm1, %v4599_v27 }
0x1942   :  { %v6021_v7 = vpop.f32.mrb[44].mxu1 }
0x1943   :  { %v4770_v62 = vpop.f32.mrb[45].mxu1  ;;  %v4776_v11 = vadd.f32 %v6429_v47, %v6021_v7 }
0x1944   :  { %v4771_v20 = vadd.f32 %v6429_v47, %v4770_v62 }
0x1946   :  { %v6323_v4 = vpack.c.bf16 %v4776_v11, %v4771_v20 }
0x1948   :  { %6325 = vmatprep.subr.msk.bf16.mxu1 %vm6833_vm12, %v6323_v4 }
0x1949   :  { %6328 = vmatpush3.bf16.msk.msra.mxu1 %vm6833_vm12, %v6323_v4 }
0x1a10   :  { %v6010_v29 = vpop.f32.mrb[32].mxu0 }
0x1a11   :  { %v4690_v30 = vadd.f32 %v6010_v29, %v5370_v28  ;;  %v4684_v33 = vpop.f32.mrb[33].mxu0 }
0x1a12   :  { %v4685_v34 = vadd.f32 %v5370_v28, %v4684_v33 }
0x1a14   :  { %v6317_v35 = vpack.c.bf16 %v4690_v30, %v4685_v34 }
0x1a16   :  { %6319 = vmatprep.subr.msk.bf16.mxu0 %vm6691_vm5, %v6317_v35 }
0x1a17   :  { %6322 = vmatpush3.bf16.xpose.msk.msra.mxu0 %vm6691_vm5, %v6317_v35  ;;  %vm2563_vm5 = vcmask 254976  }
0x1a18   :  { %6036 = vmatprep.subr.mxu0 %v7199_v46 }
0x1a1e   :  { %6027 = vmatmul.mubr.msk.f32.vlgmr.msra.gmra.mrb[34].mxu0 %vm107_vm1, %v4604_v23 }
0x1a1f   :  { %6037 = vmatpush3.msra.mxu0 %v7199_v46 }
0x1af1   :  { %v6028_v46 = vpop.f32.mrb[34].mxu0 }
0x1af2   :  { %v4867_v42 = vmul.f32 0.35355338, %v6028_v46  ;;  %v4857_v12 = vpop.f32.mrb[35].mxu0 }
0x1af3   :  { %v4866_v32 = vmul.f32 0.35355338, %v4857_v12 }
0x1af4   :  { %v4869_v44 = vadd.f32 %v4867_v42, %v7272_v58 }
0x1af5   :  { %v4868_v45 = vadd.f32 %v4866_v32, %v7257_v53  ;;  %v6427_v53 = vld [vmem:[%s7691_s0 + $0x8] sm:$0x3] }
0x1af6   :  { %v4871_v31 = vsel %vm3250_vm6, -1e+09, %v4869_v44  ;;  %v2551_v60 = vadd.f32 %v6427_v53, %v7329_v55  ;;  %v2558_v55 = vadd.f32 %v5243_v61, %v2550_v9 }
0x1af7   :  { %v4875_v5 = vsel %vm351_vm15, %v4871_v31, -inf  ;;  %v4870_v48 = vsel %vm3250_vm6, -1e+09, %v4868_v45 }
0x1af8   :  { %4876 = vmax.xlane.f32.xlu1 %v4875_v5  ;;  %v4872_v50 = vsel %vm349_vm14, %v4870_v48, -inf  ;;  %v2559_v1 = vadd.f32 %v5243_v61, %v2551_v60  ;;  %v2560_v26 = vsel %vm366_vm0, %v2558_v55, 0.0 }
0x1af9   :  { %4873 = vmax.xlane.f32.xlu0 %v4872_v50 }
0x1afa   :  { %v2564_v6 = vsel %vm2563_vm5, %v2559_v1, 0.0 }
0x1b85   :  { %v4877_v39 = vpop.xlane.xlu1 %4876 }
0x1b86   :  { %v4879_v51 = vsub.f32 %v4871_v31, %v4877_v39  ;;  %v4874_v52 = vpop.xlane.xlu0 %4873 }
0x1b87   :  { %v4878_v54 = vsub.f32 %v4870_v48, %v4874_v52 }
0x1b88   :  { %v4882_v59 = vmul.f32 1.442695, %v4879_v51 }
0x1b89   :  { %v4880_v58 = vmul.f32 1.442695, %v4878_v54 }
0x1b8a   :  { %6400 = vpow2.f32 %v4882_v59 }
0x1b8b   :  { %6402 = vpow2.f32 %v4880_v58 }
0x1b94   :  { %v6401_v63 = vpop.eup %6400 }
0x1b95   :  { %v6403_v0 = vpop.eup %6402  ;;  %v4887_v2 = vsel %vm351_vm15, %v6401_v63, 0.0 }
0x1b96   :  { %4888 = vadd.xlane.f32.xlu1 %v4887_v2  ;;  %v4884_v24 = vsel %vm349_vm14, %v6403_v0, 0.0 }
0x1b97   :  { %4885 = vadd.xlane.f32.xlu0 %v4884_v24 }
0x1b9a   :  { %2565 = vadd.xlane.f32.xlu1 %v2564_v6  ;;  %v5245_v6 = vld [vmem:[%s7705_s14] ss:$0 sm:$0xff] }
0x1b9b   :  { %2561 = vadd.xlane.f32.xlu0 %v2560_v26 }
0x1c23   :  { %v4889_v13 = vpop.xlane.xlu1 %4888 }
0x1c24   :  { %6404 = vrcp.f32 %v4889_v13  ;;  %v4886_v14 = vpop.xlane.xlu0 %4885 }
0x1c25   :  { %6406 = vrcp.f32 %v4886_v14 }
0x1c27   :  { %v2566_v8 = vpop.xlane.xlu1 %2565 }
0x1c28   :  { %v2562_v19 = vpop.xlane.xlu0 %2561  ;;  %v2569_v21 = vmul.f32 0.03125, %v2566_v8 }
0x1c29   :  { %v2568_v22 = vmul.f32 0.03125, %v2562_v19 }
0x1c2a   :  { %v2571_v25 = vsub.f32 %v2559_v1, %v2569_v21  ;;  %v5244_v1 = vld [vmem:[%s7704_s13] ss:$0 sm:$0xff] }
0x1c2b   :  { %v2570_v29 = vsub.f32 %v2558_v55, %v2568_v22 }
0x1c2c   :  { %v2573_v56 = vmul.f32 %v2571_v25, %v2571_v25 }
0x1c2d   :  { %v2572_v38 = vmul.f32 %v2570_v29, %v2570_v29 }
0x1c2e   :  { %v6405_v49 = vpop.eup %6404  ;;  %v2577_v36 = vsel %vm2563_vm5, %v2573_v56, 0.0 }
0x1c2f   :  { %v6407_v15 = vpop.eup %6406  ;;  %v4893_v16 = vmul.f32 %v6405_v49, %v6401_v63  ;;  %v2574_v40 = vsel %vm366_vm0, %v2572_v38, 0.0 }
0x1c30   :  { %v4892_v3 = vmul.f32 %v6407_v15, %v6403_v0 }
0x1c32   :  { %6033 = vmatprep.mubr.msk.f32.mxu1 %vm349_vm14, %v4892_v3 }
0x1c33   :  { %6034 = vmatmul.mubr.msk.f32.vlgmr.msra.gmra.mrb[46].mxu1 %vm349_vm14, %v4893_v16 }
0x1d06   :  { %v6035_v17 = vpop.f32.mrb[46].mxu1 }
0x1d07   :  { %v4969_v18 = vpop.f32.mrb[47].mxu1 }
0x1d08   :  { %6038 = vmatprep.mubr.msk.f32.mxu0 %vm107_vm1, %v4969_v18 }
0x1d09   :  { %6039 = vmatmul.mubr.msk.f32.vlgmr.msra.gmra.mrb[26].mxu0 %vm107_vm1, %v6035_v17 }
0x1ddc   :  { %v6040_v23 = vpop.f32.mrb[26].mxu0 }
0x1ddd   :  { %v5063_v27 = vadd.f32 %v6040_v23, %v7307_v43  ;;  %v5051_v28 = vpop.f32.mrb[27].mxu0 }
0x1dde   :  { %v5062_v30 = vadd.f32 %v7288_v37, %v5051_v28 }
0x1ddf   :  { %v5065_v33 = vadd.f32 %v5243_v61, %v5063_v27 }
0x1de0   :  { %v5064_v34 = vadd.f32 %v5243_v61, %v5062_v30 }
0x1de1   :  { %v5069_v35 = vsel %vm2563_vm5, %v5065_v33, 0.0 }
0x1de2   :  { %5070 = vadd.xlane.f32.xlu1 %v5069_v35  ;;  %v5066_v57 = vsel %vm366_vm0, %v5064_v34, 0.0 }
0x1de3   :  { %5067 = vadd.xlane.f32.xlu0 %v5066_v57 }
0x1de6   :  { %2578 = vadd.xlane.f32.xlu1 %v2577_v36 }
0x1de7   :  { %2575 = vadd.xlane.f32.xlu0 %v2574_v40 }
0x1e6f   :  { %v5071_v43 = vpop.xlane.xlu1 %5070 }
0x1e70   :  { %v5073_v41 = vmul.f32 0.03125, %v5071_v43  ;;  %v5068_v46 = vpop.xlane.xlu0 %5067 }
0x1e71   :  { %v5072_v37 = vmul.f32 0.03125, %v5068_v46 }
0x1e72   :  { %v7656_v42 = vsub.f32 %v5065_v33, %v5073_v41 }
0x1e73   :  { %v7658_v12 = vsub.f32 %v5064_v34, %v5072_v37  ;;  %v2579_v32 = vpop.xlane.xlu1 %2578 }
0x1e74   :  { %v2581_v44 = vmul.f32 0.032258064, %v2579_v32  ;;  %v2576_v45 = vpop.xlane.xlu0 %2575  ;;  %v5077_v31 = vmul.f32 %v7656_v42, %v7656_v42 }
0x1e75   :  { %v2580_v5 = vmul.f32 0.032258064, %v2576_v45  ;;  %v5076_v48 = vmul.f32 %v7658_v12, %v7658_v12 }
0x1e76   :  { %6408 = vrsqrt.f32 %v2581_v44  ;;  %v5081_v50 = vsel %vm2563_vm5, %v5077_v31, 0.0  ;;  %vm2591_vm1 = vcmp.eq.f32.partialorder %v2581_v44, inf  ;;  %v2594_v59 = vand.u32 2147483648, %v2581_v44 }
0x1e77   :  { %6410 = vrsqrt.f32 %v2580_v5  ;;  %v5078_v39 = vsel %vm366_vm0, %v5076_v48, 0.0  ;;  %5082 = vadd.xlane.f32.xlu1 %v5081_v50  ;;  %vm2593_vm7 = vcmp.eq.f32.partialorder %v2581_v44, 0.0  ;;  %vm2584_vm9 = vcmp.eq.f32.partialorder %v2580_v5, inf }
0x1e78   :  { %5079 = vadd.xlane.f32.xlu0 %v5078_v39  ;;  %v2587_v60 = vand.u32 2147483648, %v2580_v5  ;;  %vm2586_vm10 = vcmp.eq.f32.partialorder %v2580_v5, 0.0 }
0x1e80   :  { %v6409_v51 = vpop.eup %6408 }
0x1e81   :  { %v6411_v52 = vpop.eup %6410  ;;  %v2590_v54 = vmul.f32 %v6409_v51, %v2581_v44 }
0x1e82   :  { %v2583_v58 = vmul.f32 %v6411_v52, %v2580_v5 }
0x1e83   :  { %v2592_v53 = vsel %vm2591_vm1, %v2581_v44, %v2590_v54 }
0x1e84   :  { %v2595_v10 = vsel %vm2593_vm7, %v2594_v59, %v2592_v53  ;;  %v2585_v9 = vsel %vm2584_vm9, %v2580_v5, %v2583_v58 }
0x1e85   :  { %v2597_v61 = vadd.f32 1e-06, %v2595_v10  ;;  %v2588_v63 = vsel %vm2586_vm10, %v2587_v60, %v2585_v9 }
0x1e86   :  { %v2596_v0 = vadd.f32 1e-06, %v2588_v63 }
0x1e87   :  { %6412 = vrcp.f32 %v2597_v61 }
0x1e88   :  { %6414 = vrcp.f32 %v2596_v0 }
0x1e91   :  { %v6413_v2 = vpop.eup %6412 }
0x1e92   :  { %v6415_v24 = vpop.eup %6414  ;;  %v2601_v55 = vmul.f32 %v6413_v2, %v2571_v25 }
0x1e93   :  { %v2600_v26 = vmul.f32 %v6415_v24, %v2570_v29 }
0x1e94   :  { %v2609_v7 = vmul.f32 %v5244_v1, %v2601_v55 }
0x1e95   :  { %v2608_v62 = vmul.f32 %v5244_v1, %v2600_v26 }
0x1e96   :  { %v2617_v47 = vadd.f32 %v5245_v6, %v2609_v7 }
0x1e97   :  { %v2616_v11 = vadd.f32 %v5245_v6, %v2608_v62 }
0x1e98   :  { %2619 = vst.msk [vmem:[%s7706_s15 + $0x8] sm:$0x3] %vm2563_vm5, %v2617_v47 }
0x1e99   :  { %2618 = vst.msk [vmem:[%s7706_s15] sm:$0xff] %vm366_vm0, %v2616_v11 }
0x1f04   :  { %v5083_v20 = vpop.xlane.xlu1 %5082 }
0x1f05   :  { %v5080_v4 = vpop.xlane.xlu0 %5079  ;;  %v5085_v13 = vmul.f32 0.032258064, %v5083_v20 }
0x1f06   :  { %v5084_v14 = vmul.f32 0.032258064, %v5080_v4 }
0x1f07   :  { %6416 = vrsqrt.f32 %v5085_v13  ;;  %vm5095_vm11 = vcmp.eq.f32.partialorder %v5085_v13, inf  ;;  %v5098_v16 = vand.u32 2147483648, %v5085_v13  ;;  %vm5097_vm12 = vcmp.eq.f32.partialorder %v5085_v13, 0.0 }
0x1f08   :  { %6418 = vrsqrt.f32 %v5084_v14  ;;  %vm5088_vm13 = vcmp.eq.f32.partialorder %v5084_v14, inf  ;;  %v5091_v8 = vand.u32 2147483648, %v5084_v14  ;;  %vm5090_vm14 = vcmp.eq.f32.partialorder %v5084_v14, 0.0 }
0x1f11   :  { %v6417_v49 = vpop.eup %6416 }
0x1f12   :  { %v6419_v15 = vpop.eup %6418  ;;  %v5094_v3 = vmul.f32 %v6417_v49, %v5085_v13 }
0x1f13   :  { %v5087_v17 = vmul.f32 %v6419_v15, %v5084_v14 }
0x1f14   :  { %v5096_v18 = vsel %vm5095_vm11, %v5085_v13, %v5094_v3 }
0x1f15   :  { %v5099_v19 = vsel %vm5097_vm12, %v5098_v16, %v5096_v18  ;;  %v5089_v21 = vsel %vm5088_vm13, %v5084_v14, %v5087_v17 }
0x1f16   :  { %v5101_v22 = vadd.f32 1e-06, %v5099_v19  ;;  %v5092_v23 = vsel %vm5090_vm14, %v5091_v8, %v5089_v21 }
0x1f17   :  { %v5100_v25 = vadd.f32 1e-06, %v5092_v23 }
0x1f18   :  { %6420 = vrcp.f32 %v5101_v22 }
0x1f19   :  { %6422 = vrcp.f32 %v5100_v25 }
0x1f22   :  { %v6421_v27 = vpop.eup %6420 }
0x1f23   :  { %v6423_v28 = vpop.eup %6422  ;;  %v5105_v29 = vmul.f32 %v6421_v27, %v7656_v42 }
0x1f24   :  { %v5104_v30 = vmul.f32 %v6423_v28, %v7658_v12 }
0x1f25   :  { %v5107_v33 = vmul.f32 %v5244_v1, %v5105_v29 }
0x1f26   :  { %v5106_v34 = vmul.f32 %v5244_v1, %v5104_v30 }
0x1f27   :  { %v5109_v35 = vadd.f32 %v5245_v6, %v5107_v33 }
0x1f28   :  { %v5108_v56 = vadd.f32 %v5245_v6, %v5106_v34 }
0x1f29   :  { %5392 = vst.msk [vmem:[%s7706_s15 + $0x18] sm:$0x3] %vm2563_vm5, %v5109_v35 }
0x1f2a   :  { %5391 = vst.msk [vmem:[%s7706_s15 + $0x10] sm:$0xff] %vm366_vm0, %v5108_v56 }

// kernel: sga_forward.4
= control target key start
LH: loop header
LB: loop body
LE: loop exit
PB: predicated region body
PF: predicated region fallthrough
CT: control target
= control target key end

     0   :  { %vm86_vm0 = vcmask 261120   ;;  %v8182_v3 = vmov 0.0|0.0   ;;  %vm8183_vm1 = vmmov 0   ;;  %v8184_v4 = vmov 0.0   ;;  %s9501_s5 = inlined_call_operand.vmem [shape: f32[4,32,8], index: 5, kind: input, shape index: {}]   ;;  %s9502_s0 = inlined_call_operand.vmem [shape: f32[2,10,32], index: 0, kind: input, shape index: {}]   ;;  %s9503_s7 = inlined_call_operand.vmem [shape: f32[4,32,8], index: 7, kind: input, shape index: {}]   ;;  %s9504_s9 = inlined_call_operand.vmem [shape: f32[4,32,8], index: 9, kind: input, shape index: {}]   ;;  %s9505_s11 = inlined_call_operand.vmem [shape: f32[4,32,8], index: 11, kind: input, shape index: {}]   ;;  %s9506_s2 = inlined_call_operand.vmem [shape: f32[2,10,32], index: 2, kind: input, shape index: {}]   ;;  %s9507_s1 = inlined_call_operand.vmem [shape: f32[2,8,32], index: 1, kind: input, shape index: {}]   ;;  %s9508_s13 = inlined_call_operand.vmem [shape: f32[4,32,8], index: 13, kind: input, shape index: {}]   ;;  %s9509_s3 = inlined_call_operand.vmem [shape: f32[2,8,32], index: 3, kind: input, shape index: {}]   ;;  %s9510_s12 = inlined_call_operand.vmem [shape: f32[4,1,8], index: 12, kind: input, shape index: {}]   ;;  %s9511_s14 = inlined_call_operand.vmem [shape: f32[4,1,8], index: 14, kind: input, shape index: {}]   ;;  %s9512_s8 = inlined_call_operand.vmem [shape: f32[4,1,8], index: 8, kind: input, shape index: {}]   ;;  %s9513_s6 = inlined_call_operand.vmem [shape: f32[4,1,8], index: 6, kind: input, shape index: {}]   ;;  %s9514_s10 = inlined_call_operand.vmem [shape: f32[4,1,8], index: 10, kind: input, shape index: {}]   ;;  %s9515_s4 = inlined_call_operand.vmem [shape: f32[2,1,8], index: 4, kind: input, shape index: {}]   ;;  %s9516_s20 = inlined_call_operand.vmem [shape: f32[8,10,8], index: 20, kind: output, shape index: {1}]   ;;  %s9517_s15 = inlined_call_operand.vmem [shape: f32[4,8,32], index: 15, kind: input, shape index: {}]   ;;  %s9518_s16 = inlined_call_operand.vmem [shape: f32[1,32], index: 16, kind: input, shape index: {}]   ;;  %s9519_s17 = inlined_call_operand.vmem [shape: f32[1,32], index: 17, kind: input, shape index: {}]   ;;  %s9520_s18 = inlined_call_operand.vmem [shape: f32[1,32], index: 18, kind: input, shape index: {}]   ;;  %s9521_s19 = inlined_call_operand.vmem [shape: f32[2,10,32], index: 19, kind: output, shape index: {0}]  }
   0x1   :  { %9527 = sst [smem:[#allocation2_spill]] %s9501_s5  ;;  %7818 = vmatprep.subr.bf16.mxu1 %v8182_v3  ;;  %7229 = vmatprep.mubr.msk.f32.mxu1 %vm8183_vm1, %v8184_v4  ;;  %v8361_v27 = vld [vmem:[%s9506_s2] sm:$0xff]  ;;  %v426_v31 = vld [vmem:[%s9508_s13 + $0x8] sm:$0xff]  ;;  %v427_v33 = vld [vmem:[%s9508_s13 + $0x10] sm:$0xff]  ;;  %vm509_vm2 = vcmask 64512   ;;  %v688_v60 = vlaneseq  ;;  %vm597_vm4 = vcmask 58368  }
   0x2   :  { %9528 = sst [smem:[#allocation3_spill]] %s9502_s0  ;;  %s9532_s23 = sld [smem:[#allocation2_spill]]  ;;  %v8368_v29 = vld [vmem:[%s9507_s1] sm:$0xff]  ;;  %v428_v34 = vld [vmem:[%s9508_s13 + $0x18] sm:$0xff]  ;;  %v8391_v35 = vld [vmem:[%s9506_s2 + $0x8] sm:$0x3] }
   0x3   :  { %9529 = sst [smem:[#allocation4_spill]] %s9503_s7  ;;  %s9533_s29 = sld [smem:[#allocation3_spill]]  ;;  %v425_v30 = vld [vmem:[%s9508_s13] sm:$0xff]  ;;  %v7842_v36 = vpack.c.bf16 %v428_v34, %v427_v33  ;;  %v8436_v62 = vshrl.u32 %v688_v60, 7  ;;  %vm3267_vm8 = vcmask 254976  }
   0x4   :  { %9530 = sst [smem:[#allocation5_spill]] %s9504_s9  ;;  %s9534_s21 = sld [smem:[#allocation4_spill]]  ;;  %v7839_v32 = vpack.c.bf16 %v426_v31, %v425_v30  ;;  %v8403_v37 = vld [vmem:[%s9509_s3] sm:$0xff] }
   0x5   :  { %9531 = sst [smem:[#allocation6_spill]] %s9505_s11  ;;  %s9535_s25 = sld [smem:[#allocation5_spill]]  ;;  %v6547_v44 = vld [vmem:[%s9510_s12] ss:$0 sm:$0xff]  ;;  %v690_v63 = vsub.s32 0, %v8436_v62 }
   0x6   :  { %s9536_s22 = sld [smem:[#allocation6_spill]]  ;;  %v6550_v48 = vld [vmem:[%s9511_s14] ss:$0 sm:$0xff] }
   0x7   :  { %v6543_v49 = vld [vmem:[%s9512_s8] ss:$0 sm:$0xff] }
   0x8   :  { %v75_v0 = vld [vmem:[%s9532_s23] sm:$0xff]  ;;  %v76_v1 = vld [vmem:[%s9532_s23 + $0x8] sm:$0xff]  ;;  %v77_v2 = vld [vmem:[%s9532_s23 + $0x10] sm:$0xff] }
   0x9   :  { %v7810_v5 = vpack.c.bf16 %v76_v1, %v75_v0  ;;  %v78_v6 = vld [vmem:[%s9532_s23 + $0x18] sm:$0xff]  ;;  %v8309_v7 = vld [vmem:[%s9533_s29] sm:$0xff]  ;;  %v8341_v20 = vld [vmem:[%s9533_s29 + $0x8] sm:$0x3]  ;;  %v8185_v1 = vmov 0  }
   0xa   :  { %v7814_v8 = vpack.c.bf16 %v78_v6, %v77_v2  ;;  %7218 = vmatprep.mubr.msk.f32.mxu0 %vm86_vm0, %v8309_v7  ;;  %v168_v9 = vld [vmem:[%s9534_s21] sm:$0xff]  ;;  %v169_v10 = vld [vmem:[%s9534_s21 + $0x8] sm:$0xff]  ;;  %v170_v13 = vld [vmem:[%s9534_s21 + $0x10] sm:$0xff] }
   0xb   :  { %7811 = vmatprep.subr.bf16.mxu0 %v7810_v5  ;;  %v252_v11 = vld [vmem:[%s9535_s25] sm:$0xff]  ;;  %v7819_v12 = vpack.c.bf16 %v169_v10, %v168_v9  ;;  %v171_v14 = vld [vmem:[%s9534_s21 + $0x18] sm:$0xff]  ;;  %v253_v15 = vld [vmem:[%s9535_s25 + $0x8] sm:$0xff] }
   0xc   :  { %7813 = vmatpush3.bf16.msra.mxu0 %v7810_v5  ;;  %v333_v16 = vld [vmem:[%s9536_s22] sm:$0xff]  ;;  %v334_v17 = vld [vmem:[%s9536_s22 + $0x8] sm:$0xff]  ;;  %v7822_v18 = vpack.c.bf16 %v171_v14, %v170_v13  ;;  %v7825_v21 = vpack.c.bf16 %v253_v15, %v252_v11  ;;  %v335_v22 = vld [vmem:[%s9536_s22 + $0x10] sm:$0xff] }
   0xd   :  { %7815 = vmatprep.subr.bf16.mxu0 %v7814_v8  ;;  %7820 = vmatpush3.bf16.msra.mxu1 %v7819_v12  ;;  %v7830_v19 = vpack.c.bf16 %v334_v17, %v333_v16  ;;  %v336_v23 = vld [vmem:[%s9536_s22 + $0x18] sm:$0xff]  ;;  %v254_v24 = vld [vmem:[%s9535_s25 + $0x10] sm:$0xff]  ;;  %v6540_v53 = vld [vmem:[%s9513_s6] ss:$0 sm:$0xff] }
   0xe   :  { %7821 = vmatprep.subr.bf16.mxu1 %v8182_v3  ;;  %v255_v25 = vld [vmem:[%s9535_s25 + $0x18] sm:$0xff]  ;;  %v7834_v26 = vpack.c.bf16 %v336_v23, %v335_v22  ;;  %v6545_v55 = vld [vmem:[%s9514_s10] ss:$0 sm:$0xff]  ;;  %v6561_v34 = vld [vmem:[%s9532_s23 + $0x28] sm:$0xff] }
   0xf   :  { %v7828_v28 = vpack.c.bf16 %v255_v25, %v254_v24  ;;  %v73_v61 = vld [vmem:[%s9515_s4] sm:$0x1]  ;;  %v6576_v60 = vld [vmem:[%s9535_s25 + $0x28] sm:$0xff] }
  0x10   :  { %7817 = vmatpush3.bf16.msra.mxu0 %v7814_v8  ;;  %vm74_vm3 = vcmp.gt.f32.partialorder %v73_v61, 0.5  ;;  %v6560_v33 = vld [vmem:[%s9532_s23 + $0x20] sm:$0xff] }
  0x11   :  { %7824 = vmatprep.subr.bf16.mxu0 %v8182_v3  ;;  %7823 = vmatpush3.bf16.msra.mxu1 %v7822_v18  ;;  %v687_v2 = vsel %vm74_vm3, 1, %v8185_v1 }
  0x12   :  { %7831 = vmatprep.subr.bf16.mxu1 %v7830_v19  ;;  %v8446_v9 = vrot.slane %v687_v2, %v690_v63  ;;  %v6578_v2 = vld [vmem:[%s9535_s25 + $0x38] sm:$0xff] }
  0x13   :  { %7219 = vmatmul.mubr.msk.f32.vlgmr.msra.gmra.mrb[0].mxu0 %vm86_vm0, %v8341_v20 }
  0x14   :  { %7826 = vmatpush3.bf16.msra.mxu0 %v7825_v21  ;;  %7240 = vmatprep.mubr.msk.f32.mxu0 %vm8183_vm1, %v8184_v4  ;;  %vm692_vm5 = vcmp.eq.s32.totalorder %v8446_v9, 1 }
  0x15   :  { %7827 = vmatprep.subr.bf16.mxu0 %v8182_v3  ;;  %7230 = vmatmul.mubr.msk.f32.vlgmr.msra.gmra.mrb[0].mxu1 %vm86_vm0, %v8368_v29 }
  0x16   :  { %7833 = vmatpush3.bf16.msra.mxu1 %v7830_v19  ;;  %7251 = vmatprep.mubr.msk.f32.mxu1 %vm86_vm0, %v8361_v27 }
  0x17   :  { %7835 = vmatprep.subr.bf16.mxu1 %v7834_v26 }
  0x18   :  { %7829 = vmatpush3.bf16.msra.mxu0 %v7828_v28 }
  0x19   :  { %7838 = vmatprep.subr.bf16.mxu0 %v8182_v3 }
  0x1a   :  { %7837 = vmatpush3.bf16.msra.mxu1 %v7834_v26 }
  0x1b   :  { %7241 = vmatmul.mubr.msk.f32.vlgmr.msra.gmra.mrb[2].mxu0 %vm86_vm0, %v8368_v29 }
  0x1c   :  { %7840 = vmatpush3.bf16.msra.mxu0 %v7839_v32  ;;  %7262 = vmatprep.mubr.msk.f32.mxu0 %vm8183_vm1, %v8184_v4 }
  0x1d   :  { %7841 = vmatprep.subr.bf16.mxu0 %v8182_v3  ;;  %7252 = vmatmul.mubr.msk.f32.vlgmr.msra.gmra.mrb[2].mxu1 %vm86_vm0, %v8391_v35 }
  0x20   :  { %7843 = vmatpush3.bf16.msra.mxu0 %v7842_v36  ;;  %v7844_v36 = vpack.c.bf16 %v6561_v34, %v6560_v33  ;;  %v6573_v33 = vld [vmem:[%s9512_s8 + $0x1] ss:$0 sm:$0xff] }
  0x21   :  { %7852 = vmatprep.subr.bf16.mxu0 %v8182_v3 }
  0x23   :  { %7263 = vmatmul.mubr.msk.f32.vlgmr.msra.gmra.mrb[4].mxu0 %vm86_vm0, %v8403_v37 }
  0x24   :  { %7299 = vmatprep.mubr.msk.f32.mxu0 %vm8183_vm1, %v8184_v4 }
  0xe6   :  { %v7220_v38 = vpop.f32.mrb[0].mxu0 }
  0xe7   :  { %v159_v39 = vpop.f32.mrb[1].mxu0  ;;  %v165_v59 = vadd.f32 %v7220_v38, %v6540_v53  ;;  %v6568_v38 = vld [vmem:[%s9534_s21 + $0x20] sm:$0xff] }
  0xe8   :  { %v248_v40 = vpop.f32.mrb[0].mxu1  ;;  %v160_v57 = vadd.f32 %v6540_v53, %v159_v39  ;;  %v6569_v39 = vld [vmem:[%s9534_s21 + $0x28] sm:$0xff] }
  0xe9   :  { %v7231_v41 = vpop.f32.mrb[1].mxu1  ;;  %v249_v54 = vadd.f32 %v6543_v49, %v248_v40  ;;  %v7853_v40 = vpack.c.bf16 %v6569_v39, %v6568_v38  ;;  %v6565_v39 = vld [vmem:[%s9513_s6 + $0x1] ss:$0 sm:$0xff] }
  0xea   :  { %v6570_v41 = vld [vmem:[%s9534_s21 + $0x30] sm:$0xff] }
  0xeb   :  { %7854 = vmatpush3.bf16.msra.mxu0 %v7853_v40 }
  0xec   :  { %7855 = vmatprep.subr.bf16.mxu0 %v8182_v3 }
  0xee   :  { %v329_v42 = vpop.f32.mrb[2].mxu0 }
  0xef   :  { %v7242_v43 = vpop.f32.mrb[3].mxu0  ;;  %v330_v58 = vadd.f32 %v6545_v55, %v329_v42  ;;  %v6571_v42 = vld [vmem:[%s9534_s21 + $0x38] sm:$0xff] }
  0xf0   :  { %v7253_v45 = vpop.f32.mrb[2].mxu1  ;;  %v7856_v43 = vpack.c.bf16 %v6571_v42, %v6570_v41  ;;  %v6563_v55 = vld [vmem:[%s9532_s23 + $0x38] sm:$0xff] }
  0xf1   :  { %v416_v46 = vpop.f32.mrb[3].mxu1  ;;  %v422_v56 = vadd.f32 %v7253_v45, %v6547_v44  ;;  %v6583_v45 = vld [vmem:[%s9536_s22 + $0x28] sm:$0xff] }
  0xf2   :  { %v417_v47 = vadd.f32 %v6547_v44, %v416_v46  ;;  %7857 = vmatpush3.bf16.msra.mxu0 %v7856_v43  ;;  %v6582_v44 = vld [vmem:[%s9536_s22 + $0x20] sm:$0xff] }
  0xf3   :  { %v7864_v46 = vpack.c.bf16 %v6583_v45, %v6582_v44 }
  0xf4   :  { %7267 = vmatprep.mubr.msk.f32.mxu1 %vm509_vm2, %v417_v47  ;;  %v6584_v47 = vld [vmem:[%s9536_s22 + $0x30] sm:$0xff] }
  0xf5   :  { %7300 = vmatmul.mubr.msk.f32.vlgmr.msra.gmra.mrb[6].mxu0 %vm86_vm0, %v8368_v29  ;;  %7865 = vmatprep.subr.bf16.mxu0 %v7864_v46 }
  0xf6   :  { %v505_v50 = vpop.f32.mrb[4].mxu0  ;;  %7321 = vmatprep.mubr.msk.f32.mxu0 %vm86_vm0, %v8361_v27  ;;  %7867 = vmatpush3.bf16.msra.mxu0 %v7864_v46 }
  0xf7   :  { %v506_v51 = vadd.f32 %v6550_v48, %v505_v50  ;;  %v7264_v52 = vpop.f32.mrb[5].mxu0  ;;  %v6585_v48 = vld [vmem:[%s9536_s22 + $0x38] sm:$0xff] }
  0xf8   :  { %v7868_v49 = vpack.c.bf16 %v6585_v48, %v6584_v47 }
  0xf9   :  { %7265 = vmatprep.subr.msk.mxu1 %vm509_vm2, %v506_v51 }
  0xfa   :  { %7266 = vmatpush3.xpose.msk.msra.mxu1 %vm509_vm2, %v506_v51  ;;  %7869 = vmatprep.subr.bf16.mxu0 %v7868_v49 }
  0xfb   :  { %7270 = vmatprep.subr.msk.mxu1 %vm509_vm2, %v249_v54  ;;  %7871 = vmatpush3.bf16.msra.mxu0 %v7868_v49 }
  0xfd   :  { %7268 = vmatmul.mubr.msk.f32.vlgmr.msra.gmra.mrb[4].mxu1 %vm509_vm2, %v422_v56 }
  0xfe   :  { %7271 = vmatpush3.xpose.msk.msra.mxu1 %vm509_vm2, %v249_v54  ;;  %7272 = vmatprep.mubr.msk.f32.mxu1 %vm509_vm2, %v160_v57  ;;  %v6562_v54 = vld [vmem:[%s9532_s23 + $0x30] sm:$0xff] }
  0xff   :  { %7275 = vmatprep.subr.mxu1 %v330_v58  ;;  %7322 = vmatmul.mubr.msk.f32.vlgmr.msra.gmra.mrb[8].mxu0 %vm86_vm0, %v8391_v35 }
 0x101   :  { %7273 = vmatmul.mubr.msk.f32.vlgmr.msra.gmra.mrb[6].mxu1 %vm509_vm2, %v165_v59  ;;  %v6575_v59 = vld [vmem:[%s9535_s25 + $0x20] sm:$0xff] }
 0x102   :  { %7276 = vmatpush3.msra.mxu1 %v330_v58  ;;  %v7848_v58 = vpack.c.bf16 %v6563_v55, %v6562_v54  ;;  %v7859_v61 = vpack.c.bf16 %v6576_v60, %v6575_v59 }
 0x103   :  { %7845 = vmatprep.subr.bf16.mxu1 %v7844_v36 }
 0x1d0   :  { %v7269_v0 = vpop.f32.mrb[4].mxu1 }
 0x1d1   :  { %v595_v5 = vmul.f32 0.25, %v7269_v0  ;;  %v585_v6 = vpop.f32.mrb[5].mxu1  ;;  %v6577_v0 = vld [vmem:[%s9535_s25 + $0x30] sm:$0xff] }
 0x1d2   :  { %v594_v8 = vmul.f32 0.25, %v585_v6  ;;  %v6590_v6 = vld [vmem:[%s9508_s13 + $0x20] sm:$0xff] }
 0x1d3   :  { %598 = vst.msk [vmem:[%s9516_s20 + $0x8] sm:$0x3] %vm597_vm4, %v595_v5 }
 0x1d4   :  { %596 = vst.msk [vmem:[%s9516_s20] sm:$0xff] %vm509_vm2, %v594_v8  ;;  %v7274_v10 = vpop.f32.mrb[6].mxu1 }
 0x1d5   :  { %v684_v11 = vmul.f32 0.25, %v7274_v10  ;;  %v674_v12 = vpop.f32.mrb[7].mxu1 }
 0x1d6   :  { %v683_v13 = vmul.f32 0.25, %v674_v12  ;;  %v6593_v12 = vld [vmem:[%s9508_s13 + $0x38] sm:$0xff] }
 0x1d7   :  { %v686_v14 = vadd.f32 %v684_v11, %v595_v5  ;;  %v7862_v5 = vpack.c.bf16 %v6578_v2, %v6577_v0  ;;  %v6592_v11 = vld [vmem:[%s9508_s13 + $0x30] sm:$0xff] }
 0x1d8   :  { %v685_v15 = vadd.f32 %v683_v13, %v594_v8  ;;  %v6591_v8 = vld [vmem:[%s9508_s13 + $0x28] sm:$0xff]  ;;  %v7876_v13 = vpack.c.bf16 %v6593_v12, %v6592_v11 }
 0x1d9   :  { %v694_v18 = vsel %vm692_vm5, -1e+09, %v686_v14  ;;  %v7873_v10 = vpack.c.bf16 %v6591_v8, %v6590_v6  ;;  %v966_v14 = vpop.f32.mrb[6].mxu0  ;;  %v6613_v11 = vld [vmem:[%s9532_s23 + $0x48] sm:$0xff] }
 0x1da   :  { %v693_v16 = vsel %vm692_vm5, -1e+09, %v685_v15  ;;  %v698_v19 = vsel %vm597_vm4, %v694_v18, -inf  ;;  %v7301_v15 = vpop.f32.mrb[7].mxu0  ;;  %v967_v40 = vadd.f32 %v6573_v33, %v966_v14 }
 0x1db   :  { %v695_v17 = vsel %vm509_vm2, %v693_v16, -inf }
 0x1dc   :  { %696 = vmax.xlane.f32.xlu0 %v695_v17  ;;  %v7323_v17 = vpop.f32.mrb[8].mxu0 }
 0x1e0   :  { %699 = vmax.xlane.f32.xlu0 %v698_v19  ;;  %v1132_v19 = vpop.f32.mrb[9].mxu0 }
 0x269   :  { %v697_v21 = vpop.xlane.xlu0 %696 }
 0x26a   :  { %v701_v22 = vsub.f32 %v693_v16, %v697_v21  ;;  %v6587_v16 = vld [vmem:[%s9510_s12 + $0x1] ss:$0 sm:$0xff] }
 0x26b   :  { %v1133_v21 = vadd.f32 %v6587_v16, %v1132_v19 }
 0x26c   :  { %v703_v23 = vmul.f32 1.442695, %v701_v22 }
 0x26d   :  { %v700_v24 = vpop.xlane.xlu0 %699  ;;  %7337 = vmatprep.mubr.msk.f32.mxu0 %vm509_vm2, %v1133_v21 }
 0x26e   :  { %8098 = vpow2.f32 %v703_v23  ;;  %v702_v25 = vsub.f32 %v694_v18, %v700_v24  ;;  %v1138_v18 = vadd.f32 %v7323_v17, %v6587_v16  ;;  %v6614_v17 = vld [vmem:[%s9532_s23 + $0x50] sm:$0xff] }
 0x270   :  { %v705_v26 = vmul.f32 1.442695, %v702_v25 }
 0x272   :  { %8100 = vpow2.f32 %v705_v26  ;;  %v6580_v26 = vld [vmem:[%s9514_s10 + $0x1] ss:$0 sm:$0xff] }
 0x278   :  { %v8099_v28 = vpop.eup %8098 }
 0x279   :  { %v707_v30 = vsel %vm509_vm2, %v8099_v28, 0.0 }
 0x27a   :  { %708 = vadd.xlane.f32.xlu1 %v707_v30 }
 0x27c   :  { %v8101_v31 = vpop.eup %8100 }
 0x27d   :  { %v710_v32 = vsel %vm597_vm4, %v8101_v31, 0.0 }
 0x27e   :  { %711 = vadd.xlane.f32.xlu1 %v710_v32  ;;  %v6595_v32 = vld [vmem:[%s9511_s14 + $0x1] ss:$0 sm:$0xff] }
 0x307   :  { %v709_v50 = vpop.xlane.xlu1 %708 }
 0x308   :  { %8102 = vrcp.f32 %v709_v50 }
 0x30b   :  { %v712_v51 = vpop.xlane.xlu1 %711 }
 0x30c   :  { %8104 = vrcp.f32 %v712_v51 }
 0x312   :  { %v8103_v52 = vpop.eup %8102 }
 0x313   :  { %v715_v53 = vmul.f32 %v8103_v52, %v8099_v28 }
 0x315   :  { %7277 = vmatprep.mubr.msk.f32.mxu1 %vm509_vm2, %v715_v53 }
 0x316   :  { %v8105_v56 = vpop.eup %8104 }
 0x317   :  { %v716_v57 = vmul.f32 %v8105_v56, %v8101_v31 }
 0x319   :  { %7278 = vmatmul.mubr.msk.f32.vlgmr.msra.gmra.mrb[8].mxu1 %vm509_vm2, %v716_v57 }
 0x31a   :  { %7847 = vmatpush3.bf16.msra.mxu1 %v7844_v36  ;;  %7288 = vmatprep.mubr.msk.f32.mxu1 %vm86_vm0, %v8309_v7 }
 0x31b   :  { %7849 = vmatprep.subr.bf16.mxu1 %v7848_v58 }
 0x31e   :  { %7851 = vmatpush3.bf16.msra.mxu1 %v7848_v58 }
 0x31f   :  { %7858 = vmatprep.subr.bf16.mxu1 %v8182_v3 }
 0x321   :  { %7289 = vmatmul.mubr.msk.f32.vlgmr.msra.gmra.mrb[10].mxu1 %vm86_vm0, %v8341_v20 }
 0x322   :  { %7860 = vmatpush3.bf16.msra.mxu1 %v7859_v61  ;;  %7310 = vmatprep.mubr.msk.f32.mxu1 %vm8183_vm1, %v8184_v4 }
 0x323   :  { %7861 = vmatprep.subr.bf16.mxu1 %v8182_v3 }
 0x326   :  { %7863 = vmatpush3.bf16.msra.mxu1 %v7862_v5 }
 0x327   :  { %7872 = vmatprep.subr.bf16.mxu1 %v8182_v3 }
 0x329   :  { %7311 = vmatmul.mubr.msk.f32.vlgmr.msra.gmra.mrb[12].mxu1 %vm86_vm0, %v8368_v29 }
 0x32a   :  { %7874 = vmatpush3.bf16.msra.mxu1 %v7873_v10  ;;  %7332 = vmatprep.mubr.msk.f32.mxu1 %vm8183_vm1, %v8184_v4  ;;  %v6612_v10 = vld [vmem:[%s9532_s23 + $0x40] sm:$0xff] }
 0x32b   :  { %7875 = vmatprep.subr.bf16.mxu1 %v8182_v3  ;;  %v7878_v12 = vpack.c.bf16 %v6613_v11, %v6612_v10  ;;  %v6625_v11 = vld [vmem:[%s9512_s8 + $0x2] ss:$0 sm:$0xff] }
 0x32e   :  { %7877 = vmatpush3.bf16.msra.mxu1 %v7876_v13  ;;  %v6607_v13 = vld [vmem:[%s9517_s15 + $0x8] sm:$0xff] }
 0x331   :  { %7333 = vmatmul.mubr.msk.f32.vlgmr.msra.gmra.mrb[14].mxu1 %vm86_vm0, %v8403_v37 }
 0x3ec   :  { %v8550_v22 = vpop.f32.mrb[8].mxu1 }
 0x3ed   :  { %v8552_v23 = vpop.f32.mrb[9].mxu1 }
 0x3f4   :  { %v7290_v24 = vpop.f32.mrb[10].mxu1 }
 0x3f5   :  { %v878_v25 = vpop.f32.mrb[11].mxu1  ;;  %v884_v42 = vadd.f32 %v7290_v24, %v6565_v39 }
 0x3f6   :  { %v879_v41 = vadd.f32 %v6565_v39, %v878_v25 }
 0x3fc   :  { %v1049_v28 = vpop.f32.mrb[12].mxu1 }
 0x3fd   :  { %v1050_v30 = vadd.f32 %v6580_v26, %v1049_v28  ;;  %v7312_v31 = vpop.f32.mrb[13].mxu1  ;;  %v6627_v26 = vld [vmem:[%s9535_s25 + $0x40] sm:$0xff]  ;;  %v6628_v28 = vld [vmem:[%s9535_s25 + $0x48] sm:$0xff] }
 0x3fe   :  { %v6629_v31 = vld [vmem:[%s9535_s25 + $0x50] sm:$0xff] }
 0x3ff   :  { %7345 = vmatprep.subr.mxu1 %v1050_v30 }
 0x400   :  { %7346 = vmatpush3.msra.mxu1 %v1050_v30  ;;  %v7893_v30 = vpack.c.bf16 %v6628_v28, %v6627_v26 }
 0x401   :  { %7879 = vmatprep.subr.bf16.mxu1 %v7878_v12 }
 0x404   :  { %v1220_v34 = vpop.f32.mrb[14].mxu1 }
 0x405   :  { %v1221_v36 = vadd.f32 %v6595_v32, %v1220_v34  ;;  %v7334_v38 = vpop.f32.mrb[15].mxu1  ;;  %v6630_v32 = vld [vmem:[%s9535_s25 + $0x58] sm:$0xff]  ;;  %v798_v34 = vld [vmem:[%s9517_s15] sm:$0xff] }
 0x406   :  { %v7896_v33 = vpack.c.bf16 %v6630_v32, %v6629_v31  ;;  %v6643_v38 = vld [vmem:[%s9508_s13 + $0x48] sm:$0xff] }
 0x407   :  { %7335 = vmatprep.subr.msk.mxu0 %vm509_vm2, %v1221_v36 }
 0x408   :  { %7336 = vmatpush3.xpose.msk.msra.mxu0 %vm509_vm2, %v1221_v36  ;;  %v6642_v36 = vld [vmem:[%s9508_s13 + $0x40] sm:$0xff] }
 0x409   :  { %7340 = vmatprep.subr.msk.mxu0 %vm509_vm2, %v967_v40  ;;  %v7907_v39 = vpack.c.bf16 %v6643_v38, %v6642_v36 }
 0x40b   :  { %7338 = vmatmul.mubr.msk.f32.vlgmr.msra.gmra.mrb[10].mxu0 %vm509_vm2, %v1138_v18  ;;  %v6615_v18 = vld [vmem:[%s9532_s23 + $0x58] sm:$0xff] }
 0x40c   :  { %7341 = vmatpush3.xpose.msk.msra.mxu0 %vm509_vm2, %v967_v40  ;;  %7342 = vmatprep.mubr.msk.f32.mxu0 %vm509_vm2, %v879_v41  ;;  %v7882_v25 = vpack.c.bf16 %v6615_v18, %v6614_v17  ;;  %v6644_v40 = vld [vmem:[%s9508_s13 + $0x50] sm:$0xff]  ;;  %v6645_v41 = vld [vmem:[%s9508_s13 + $0x58] sm:$0xff] }
 0x40d   :  { %7350 = vmatprep.subr.mxu0 %v6607_v13 }
 0x40f   :  { %7343 = vmatmul.mubr.msk.f32.vlgmr.msra.gmra.mrb[12].mxu0 %vm509_vm2, %v884_v42  ;;  %v7910_v42 = vpack.c.bf16 %v6645_v41, %v6644_v40 }
 0x410   :  { %7351 = vmatpush3.msra.mxu0 %v6607_v13 }
 0x411   :  { %7355 = vmatprep.subr.mxu0 %v798_v34 }
 0x4de   :  { %v7339_v43 = vpop.f32.mrb[10].mxu0 }
 0x4df   :  { %v1309_v44 = vmul.f32 0.25, %v7339_v43  ;;  %v1299_v45 = vpop.f32.mrb[11].mxu0 }
 0x4e0   :  { %v1308_v46 = vmul.f32 0.25, %v1299_v45  ;;  %v6620_v45 = vld [vmem:[%s9534_s21 + $0x40] sm:$0xff] }
 0x4e1   :  { %6601 = vst.msk [vmem:[%s9516_s20 + $0x18] sm:$0x3] %vm597_vm4, %v1309_v44 }
 0x4e2   :  { %6600 = vst.msk [vmem:[%s9516_s20 + $0x10] sm:$0xff] %vm509_vm2, %v1308_v46  ;;  %v7344_v47 = vpop.f32.mrb[12].mxu0 }
 0x4e3   :  { %v1398_v48 = vmul.f32 0.25, %v7344_v47  ;;  %v1388_v49 = vpop.f32.mrb[13].mxu0  ;;  %v6617_v47 = vld [vmem:[%s9513_s6 + $0x2] ss:$0 sm:$0xff] }
 0x4e4   :  { %v1397_v50 = vmul.f32 0.25, %v1388_v49 }
 0x4e5   :  { %v1400_v51 = vadd.f32 %v1398_v48, %v1309_v44 }
 0x4e6   :  { %v1399_v52 = vadd.f32 %v1397_v50, %v1308_v46  ;;  %v6621_v46 = vld [vmem:[%s9534_s21 + $0x48] sm:$0xff]  ;;  %v6623_v50 = vld [vmem:[%s9534_s21 + $0x58] sm:$0xff] }
 0x4e7   :  { %v1402_v53 = vsel %vm692_vm5, -1e+09, %v1400_v51  ;;  %v7887_v48 = vpack.c.bf16 %v6621_v46, %v6620_v45 }
 0x4e8   :  { %v1406_v54 = vsel %vm597_vm4, %v1402_v53, -inf  ;;  %v1401_v55 = vsel %vm692_vm5, -1e+09, %v1399_v52 }
 0x4e9   :  { %1407 = vmax.xlane.f32.xlu1 %v1406_v54  ;;  %v1403_v56 = vsel %vm509_vm2, %v1401_v55, -inf  ;;  %v6635_v54 = vld [vmem:[%s9536_s22 + $0x48] sm:$0xff] }
 0x4ea   :  { %1404 = vmax.xlane.f32.xlu0 %v1403_v56 }
 0x576   :  { %v1408_v57 = vpop.xlane.xlu1 %1407 }
 0x577   :  { %v1410_v58 = vsub.f32 %v1402_v53, %v1408_v57  ;;  %v1405_v59 = vpop.xlane.xlu0 %1404  ;;  %v6634_v53 = vld [vmem:[%s9536_s22 + $0x40] sm:$0xff] }
 0x578   :  { %v1409_v60 = vsub.f32 %v1401_v55, %v1405_v59  ;;  %v7898_v57 = vpack.c.bf16 %v6635_v54, %v6634_v53  ;;  %v6637_v59 = vld [vmem:[%s9536_s22 + $0x58] sm:$0xff] }
 0x579   :  { %v1413_v61 = vmul.f32 1.442695, %v1410_v58  ;;  %v6636_v58 = vld [vmem:[%s9536_s22 + $0x50] sm:$0xff]  ;;  %v6665_v53 = vld [vmem:[%s9532_s23 + $0x78] sm:$0xff] }
 0x57a   :  { %v1411_v0 = vmul.f32 1.442695, %v1409_v60 }
 0x57b   :  { %8106 = vpow2.f32 %v1413_v61 }
 0x57c   :  { %8108 = vpow2.f32 %v1411_v0  ;;  %v6632_v0 = vld [vmem:[%s9514_s10 + $0x2] ss:$0 sm:$0xff] }
 0x585   :  { %v8107_v2 = vpop.eup %8106 }
 0x586   :  { %v8109_v5 = vpop.eup %8108  ;;  %v1418_v6 = vsel %vm597_vm4, %v8107_v2, 0.0 }
 0x587   :  { %1419 = vadd.xlane.f32.xlu1 %v1418_v6  ;;  %v1415_v8 = vsel %vm509_vm2, %v8109_v5, 0.0 }
 0x588   :  { %1416 = vadd.xlane.f32.xlu0 %v1415_v8 }
 0x614   :  { %v1420_v14 = vpop.xlane.xlu1 %1419 }
 0x615   :  { %8110 = vrcp.f32 %v1420_v14  ;;  %v1417_v15 = vpop.xlane.xlu0 %1416 }
 0x616   :  { %8112 = vrcp.f32 %v1417_v15  ;;  %v6639_v15 = vld [vmem:[%s9510_s12 + $0x2] ss:$0 sm:$0xff] }
 0x61f   :  { %v8111_v16 = vpop.eup %8110 }
 0x620   :  { %v8113_v19 = vpop.eup %8112  ;;  %v1424_v24 = vmul.f32 %v8111_v16, %v8107_v2  ;;  %v6647_v2 = vld [vmem:[%s9511_s14 + $0x2] ss:$0 sm:$0xff] }
 0x621   :  { %v1423_v21 = vmul.f32 %v8113_v19, %v8109_v5 }
 0x623   :  { %7347 = vmatprep.mubr.msk.f32.mxu1 %vm509_vm2, %v1423_v21 }
 0x624   :  { %7348 = vmatmul.mubr.msk.f32.vlgmr.msra.gmra.mrb[16].mxu1 %vm509_vm2, %v1424_v24 }
 0x625   :  { %7881 = vmatpush3.bf16.msra.mxu1 %v7878_v12  ;;  %7368 = vmatprep.mubr.msk.f32.mxu1 %vm86_vm0, %v8309_v7 }
 0x626   :  { %7883 = vmatprep.subr.bf16.mxu1 %v7882_v25 }
 0x629   :  { %7885 = vmatpush3.bf16.msra.mxu1 %v7882_v25 }
 0x62a   :  { %7892 = vmatprep.subr.bf16.mxu1 %v8182_v3 }
 0x62c   :  { %7369 = vmatmul.mubr.msk.f32.vlgmr.msra.gmra.mrb[18].mxu1 %vm86_vm0, %v8341_v20 }
 0x62d   :  { %7390 = vmatprep.mubr.msk.f32.mxu1 %vm8183_vm1, %v8184_v4  ;;  %7894 = vmatpush3.bf16.msra.mxu1 %v7893_v30 }
 0x62e   :  { %7895 = vmatprep.subr.bf16.mxu1 %v8182_v3 }
 0x631   :  { %7897 = vmatpush3.bf16.msra.mxu1 %v7896_v33 }
 0x632   :  { %7906 = vmatprep.subr.bf16.mxu1 %v8182_v3 }
 0x634   :  { %7391 = vmatmul.mubr.msk.f32.vlgmr.msra.gmra.mrb[20].mxu1 %vm86_vm0, %v8368_v29 }
 0x635   :  { %7908 = vmatpush3.bf16.msra.mxu1 %v7907_v39  ;;  %7412 = vmatprep.mubr.msk.f32.mxu1 %vm8183_vm1, %v8184_v4 }
 0x636   :  { %7909 = vmatprep.subr.bf16.mxu1 %v8182_v3 }
 0x639   :  { %7911 = vmatpush3.bf16.msra.mxu1 %v7910_v42 }
 0x63c   :  { %7413 = vmatmul.mubr.msk.f32.vlgmr.msra.gmra.mrb[22].mxu1 %vm86_vm0, %v8403_v37 }
 0x6f7   :  { %v7349_v43 = vpop.f32.mrb[16].mxu1 }
 0x6f8   :  { %v1497_v44 = vpop.f32.mrb[17].mxu1 }
 0x6f9   :  { %7352 = vmatprep.mubr.msk.f32.mxu0 %vm509_vm2, %v1497_v44 }
 0x6fa   :  { %7353 = vmatmul.mubr.msk.f32.vlgmr.msra.gmra.mrb[14].mxu0 %vm509_vm2, %v7349_v43 }
 0x6fb   :  { %7356 = vmatpush3.msra.mxu0 %v798_v34  ;;  %7357 = vmatprep.mubr.msk.f32.mxu0 %vm509_vm2, %v8552_v23  ;;  %v6622_v23 = vld [vmem:[%s9534_s21 + $0x50] sm:$0xff] }
 0x6fc   :  { %7886 = vmatprep.subr.bf16.mxu0 %v8182_v3  ;;  %v7890_v56 = vpack.c.bf16 %v6623_v50, %v6622_v23  ;;  %v6662_v23 = vld [vmem:[%s9532_s23 + $0x60] sm:$0xff]  ;;  %v6663_v50 = vld [vmem:[%s9532_s23 + $0x68] sm:$0xff] }
 0x6ff   :  { %v7370_v49 = vpop.f32.mrb[18].mxu1 }
 0x700   :  { %v1755_v51 = vadd.f32 %v7370_v49, %v6617_v47  ;;  %v1749_v52 = vpop.f32.mrb[19].mxu1 }
 0x701   :  { %v1750_v55 = vadd.f32 %v6617_v47, %v1749_v52  ;;  %v7912_v52 = vpack.c.bf16 %v6663_v50, %v6662_v23 }
 0x702   :  { %7358 = vmatmul.mubr.msk.f32.vlgmr.msra.gmra.mrb[14].mxu0 %vm509_vm2, %v8550_v22  ;;  %v7902_v22 = vpack.c.bf16 %v6637_v59, %v6636_v58  ;;  %v6679_v59 = vld [vmem:[%s9535_s25 + $0x70] sm:$0xff] }
 0x703   :  { %7888 = vmatpush3.bf16.msra.mxu0 %v7887_v48  ;;  %7379 = vmatprep.mubr.msk.f32.mxu0 %vm8183_vm1, %v8184_v4 }
 0x704   :  { %7889 = vmatprep.subr.bf16.mxu0 %v8182_v3  ;;  %7422 = vmatprep.mubr.msk.f32.mxu1 %vm509_vm2, %v1750_v55  ;;  %v6659_v55 = vld [vmem:[%s9517_s15 + $0x10] sm:$0xff] }
 0x707   :  { %7891 = vmatpush3.bf16.msra.mxu0 %v7890_v56  ;;  %v1920_v60 = vpop.f32.mrb[20].mxu1  ;;  %v6677_v56 = vld [vmem:[%s9535_s25 + $0x60] sm:$0xff] }
 0x708   :  { %7899 = vmatprep.subr.bf16.mxu0 %v7898_v57  ;;  %v7392_v61 = vpop.f32.mrb[21].mxu1  ;;  %v1921_v6 = vadd.f32 %v6632_v0, %v1920_v60 }
 0x70a   :  { %7380 = vmatmul.mubr.msk.f32.vlgmr.msra.gmra.mrb[16].mxu0 %vm86_vm0, %v8368_v29 }
 0x70b   :  { %7901 = vmatpush3.bf16.msra.mxu0 %v7898_v57  ;;  %7401 = vmatprep.mubr.msk.f32.mxu0 %vm86_vm0, %v8361_v27  ;;  %v6678_v57 = vld [vmem:[%s9535_s25 + $0x68] sm:$0xff] }
 0x70c   :  { %7903 = vmatprep.subr.bf16.mxu0 %v7902_v22  ;;  %v7927_v58 = vpack.c.bf16 %v6678_v57, %v6677_v56 }
 0x70f   :  { %7905 = vmatpush3.bf16.msra.mxu0 %v7902_v22  ;;  %v2091_v5 = vpop.f32.mrb[22].mxu1  ;;  %v6680_v22 = vld [vmem:[%s9535_s25 + $0x78] sm:$0xff] }
 0x710   :  { %v2092_v8 = vadd.f32 %v6647_v2, %v2091_v5  ;;  %v7414_v10 = vpop.f32.mrb[23].mxu1  ;;  %v7930_v60 = vpack.c.bf16 %v6680_v22, %v6679_v59 }
 0x711   :  { %v6693_v10 = vld [vmem:[%s9508_s13 + $0x68] sm:$0xff] }
 0x712   :  { %7402 = vmatmul.mubr.msk.f32.vlgmr.msra.gmra.mrb[18].mxu0 %vm86_vm0, %v8391_v35  ;;  %7415 = vmatprep.subr.msk.mxu0 %vm509_vm2, %v2092_v8 }
 0x718   :  { %7416 = vmatpush3.xpose.msk.msra.mxu0 %vm509_vm2, %v2092_v8  ;;  %v6692_v8 = vld [vmem:[%s9508_s13 + $0x60] sm:$0xff] }
 0x719   :  { %7425 = vmatprep.subr.mxu0 %v1921_v6 }
 0x7dd   :  { %v1837_v12 = vpop.f32.mrb[16].mxu0 }
 0x7de   :  { %v1838_v13 = vadd.f32 %v6625_v11, %v1837_v12  ;;  %v7381_v14 = vpop.f32.mrb[17].mxu0  ;;  %v7941_v11 = vpack.c.bf16 %v6693_v10, %v6692_v8  ;;  %v6694_v12 = vld [vmem:[%s9508_s13 + $0x70] sm:$0xff] }
 0x7e0   :  { %7420 = vmatprep.subr.msk.mxu1 %vm509_vm2, %v1838_v13 }
 0x7e1   :  { %7421 = vmatpush3.xpose.msk.msra.mxu1 %vm509_vm2, %v1838_v13  ;;  %v6695_v13 = vld [vmem:[%s9508_s13 + $0x78] sm:$0xff] }
 0x7e2   :  { %7913 = vmatprep.subr.bf16.mxu1 %v7912_v52  ;;  %v7944_v14 = vpack.c.bf16 %v6695_v13, %v6694_v12 }
 0x7e4   :  { %7423 = vmatmul.mubr.msk.f32.vlgmr.msra.gmra.mrb[24].mxu1 %vm509_vm2, %v1755_v51  ;;  %v6664_v51 = vld [vmem:[%s9532_s23 + $0x70] sm:$0xff] }
 0x7e5   :  { %v7403_v16 = vpop.f32.mrb[18].mxu0  ;;  %7443 = vmatprep.mubr.msk.f32.mxu1 %vm86_vm0, %v8309_v7  ;;  %v7916_v54 = vpack.c.bf16 %v6665_v53, %v6664_v51  ;;  %7915 = vmatpush3.bf16.msra.mxu1 %v7912_v52 }
 0x7e6   :  { %v2003_v17 = vpop.f32.mrb[19].mxu0  ;;  %v2009_v19 = vadd.f32 %v7403_v16, %v6639_v15  ;;  %v6667_v16 = vld [vmem:[%s9513_s6 + $0x3] ss:$0 sm:$0xff] }
 0x7e7   :  { %v2004_v18 = vadd.f32 %v6639_v15, %v2003_v17  ;;  %7917 = vmatprep.subr.bf16.mxu1 %v7916_v54 }
 0x7e9   :  { %7417 = vmatprep.mubr.msk.f32.mxu0 %vm509_vm2, %v2004_v18  ;;  %7919 = vmatpush3.bf16.msra.mxu1 %v7916_v54 }
 0x7ea   :  { %7418 = vmatmul.mubr.msk.f32.vlgmr.msra.gmra.mrb[20].mxu0 %vm509_vm2, %v2009_v19  ;;  %7926 = vmatprep.subr.bf16.mxu1 %v8182_v3 }
 0x7eb   :  { %7426 = vmatpush3.msra.mxu0 %v1921_v6 }
 0x7ec   :  { %7430 = vmatprep.subr.mxu0 %v6659_v55  ;;  %7444 = vmatmul.mubr.msk.f32.vlgmr.msra.gmra.mrb[26].mxu1 %vm86_vm0, %v8341_v20 }
 0x7ed   :  { %7928 = vmatpush3.bf16.msra.mxu1 %v7927_v58  ;;  %7465 = vmatprep.mubr.msk.f32.mxu1 %vm8183_vm1, %v8184_v4 }
 0x7ee   :  { %7929 = vmatprep.subr.bf16.mxu1 %v8182_v3 }
 0x7f1   :  { %7931 = vmatpush3.bf16.msra.mxu1 %v7930_v60 }
 0x7f2   :  { %7940 = vmatprep.subr.bf16.mxu1 %v8182_v3 }
 0x7f4   :  { %7466 = vmatmul.mubr.msk.f32.vlgmr.msra.gmra.mrb[28].mxu1 %vm86_vm0, %v8368_v29 }
 0x7f5   :  { %7487 = vmatprep.mubr.msk.f32.mxu1 %vm8183_vm1, %v8184_v4  ;;  %7942 = vmatpush3.bf16.msra.mxu1 %v7941_v11 }
 0x7f6   :  { %7943 = vmatprep.subr.bf16.mxu1 %v8182_v3 }
 0x7f9   :  { %7945 = vmatpush3.bf16.msra.mxu1 %v7944_v14 }
 0x7fc   :  { %7488 = vmatmul.mubr.msk.f32.vlgmr.msra.gmra.mrb[30].mxu1 %vm86_vm0, %v8403_v37  ;;  %v6671_v37 = vld [vmem:[%s9534_s21 + $0x68] sm:$0xff] }
 0x8b7   :  { %v7424_v21 = vpop.f32.mrb[24].mxu1 }
 0x8b8   :  { %v2259_v24 = vpop.f32.mrb[25].mxu1  ;;  %v2269_v26 = vmul.f32 0.25, %v7424_v21 }
 0x8b9   :  { %v2268_v31 = vmul.f32 0.25, %v2259_v24 }
 0x8bd   :  { %v7419_v25 = vpop.f32.mrb[20].mxu0 }
 0x8be   :  { %v2180_v28 = vmul.f32 0.25, %v7419_v25  ;;  %v2170_v30 = vpop.f32.mrb[21].mxu0  ;;  %v6670_v25 = vld [vmem:[%s9534_s21 + $0x60] sm:$0xff] }
 0x8bf   :  { %v2179_v32 = vmul.f32 0.25, %v2170_v30  ;;  %v7445_v15 = vpop.f32.mrb[26].mxu1 }
 0x8c0   :  { %6653 = vst.msk [vmem:[%s9516_s20 + $0x28] sm:$0x3] %vm597_vm4, %v2180_v28  ;;  %v2271_v7 = vadd.f32 %v2269_v26, %v2180_v28  ;;  %v2547_v17 = vadd.f32 %v7445_v15, %v6667_v16  ;;  %v2541_v18 = vpop.f32.mrb[27].mxu1  ;;  %v7921_v28 = vpack.c.bf16 %v6671_v37, %v6670_v25  ;;  %v6709_v37 = vld [vmem:[%s9517_s15 + $0x18] sm:$0xff] }
 0x8c1   :  { %6652 = vst.msk [vmem:[%s9516_s20 + $0x20] sm:$0xff] %vm509_vm2, %v2179_v32  ;;  %v2270_v33 = vadd.f32 %v2268_v31, %v2179_v32  ;;  %v2542_v19 = vadd.f32 %v6667_v16, %v2541_v18  ;;  %v6672_v31 = vld [vmem:[%s9534_s21 + $0x70] sm:$0xff]  ;;  %v6673_v32 = vld [vmem:[%s9534_s21 + $0x78] sm:$0xff]  ;;  %v3337_v16 = vld [vmem:[%s9532_s23] sm:$0xff] }
 0x8c2   :  { %v2273_v34 = vsel %vm692_vm5, -1e+09, %v2271_v7  ;;  %v6684_v7 = vld [vmem:[%s9536_s22 + $0x60] sm:$0xff]  ;;  %v3339_v18 = vld [vmem:[%s9532_s23 + $0x10] sm:$0xff] }
 0x8c3   :  { %v2277_v36 = vsel %vm597_vm4, %v2273_v34, -inf  ;;  %v2272_v38 = vsel %vm692_vm5, -1e+09, %v2270_v33  ;;  %7497 = vmatprep.mubr.msk.f32.mxu1 %vm509_vm2, %v2542_v19  ;;  %v6685_v33 = vld [vmem:[%s9536_s22 + $0x68] sm:$0xff] }
 0x8c4   :  { %2278 = vmax.xlane.f32.xlu1 %v2277_v36  ;;  %v2274_v39 = vsel %vm509_vm2, %v2272_v38, -inf  ;;  %v7932_v36 = vpack.c.bf16 %v6685_v33, %v6684_v7  ;;  %v3516_v7 = vld [vmem:[%s9535_s25 + $0x18] sm:$0xff] }
 0x8c5   :  { %2275 = vmax.xlane.f32.xlu0 %v2274_v39  ;;  %v6687_v39 = vld [vmem:[%s9536_s22 + $0x78] sm:$0xff] }
 0x8c7   :  { %v2712_v21 = vpop.f32.mrb[28].mxu1 }
 0x8c8   :  { %v7467_v24 = vpop.f32.mrb[29].mxu1 }
 0x8c9   :  { %v8875_v24 = vld [vmem:[%s9533_s29 + $0x10] sm:$0xff] }
 0x951   :  { %v2279_v40 = vpop.xlane.xlu1 %2278 }
 0x952   :  { %v2281_v41 = vsub.f32 %v2273_v34, %v2279_v40  ;;  %v2276_v42 = vpop.xlane.xlu0 %2275  ;;  %v7924_v34 = vpack.c.bf16 %v6673_v32, %v6672_v31  ;;  %v3515_v32 = vld [vmem:[%s9535_s25 + $0x10] sm:$0xff] }
 0x953   :  { %v2280_v43 = vsub.f32 %v2272_v38, %v2276_v42  ;;  %v6686_v38 = vld [vmem:[%s9536_s22 + $0x70] sm:$0xff]  ;;  %v6697_v42 = vld [vmem:[%s9511_s14 + $0x3] ss:$0 sm:$0xff]  ;;  %v7964_v33 = vpack.c.bf16 %v3516_v7, %v3515_v32  ;;  %v6721_v32 = vld [vmem:[%s9515_s4 + $0x1] sm:$0x1] }
 0x954   :  { %v2284_v44 = vmul.f32 1.442695, %v2281_v41  ;;  %v7936_v40 = vpack.c.bf16 %v6687_v39, %v6686_v38  ;;  %v6682_v41 = vld [vmem:[%s9514_s10 + $0x3] ss:$0 sm:$0xff]  ;;  %vm3336_vm6 = vcmp.gt.f32.partialorder %v6721_v32, 0.5  ;;  %v6754_v32 = vld [vmem:[%s9534_s21 + $0x30] sm:$0xff] }
 0x955   :  { %v2282_v45 = vmul.f32 1.442695, %v2280_v43  ;;  %v2883_v43 = vpop.f32.mrb[30].mxu1 }
 0x956   :  { %8114 = vpow2.f32 %v2284_v44  ;;  %v2713_v44 = vadd.f32 %v6682_v41, %v2712_v21  ;;  %v3340_v21 = vld [vmem:[%s9532_s23 + $0x18] sm:$0xff] }
 0x957   :  { %8116 = vpow2.f32 %v2282_v45  ;;  %v7489_v45 = vpop.f32.mrb[31].mxu1  ;;  %v7950_v25 = vpack.c.bf16 %v3340_v21, %v3339_v18 }
 0x958   :  { %v3688_v45 = vld [vmem:[%s9508_s13 + $0x10] sm:$0xff] }
 0x960   :  { %v8115_v46 = vpop.eup %8114 }
 0x961   :  { %v8117_v47 = vpop.eup %8116  ;;  %v2289_v48 = vsel %vm597_vm4, %v8115_v46, 0.0 }
 0x962   :  { %2290 = vadd.xlane.f32.xlu1 %v2289_v48  ;;  %v2286_v49 = vsel %vm509_vm2, %v8117_v47, 0.0  ;;  %v6689_v48 = vld [vmem:[%s9510_s12 + $0x3] ss:$0 sm:$0xff] }
 0x963   :  { %2287 = vadd.xlane.f32.xlu0 %v2286_v49 }
 0x9ef   :  { %v2291_v61 = vpop.xlane.xlu1 %2290 }
 0x9f0   :  { %8118 = vrcp.f32 %v2291_v61  ;;  %v2288_v0 = vpop.xlane.xlu0 %2287 }
 0x9f1   :  { %8120 = vrcp.f32 %v2288_v0 }
 0x9fa   :  { %v8119_v20 = vpop.eup %8118 }
 0x9fb   :  { %v8121_v2 = vpop.eup %8120  ;;  %v2295_v6 = vmul.f32 %v8119_v20, %v8115_v46 }
 0x9fc   :  { %v2294_v5 = vmul.f32 %v8121_v2, %v8117_v47 }
 0x9fe   :  { %7427 = vmatprep.mubr.msk.f32.mxu0 %vm509_vm2, %v2294_v5 }
 0x9ff   :  { %7428 = vmatmul.mubr.msk.f32.vlgmr.msra.gmra.mrb[22].mxu0 %vm509_vm2, %v2295_v6 }
 0xa00   :  { %7431 = vmatpush3.msra.mxu0 %v6659_v55 }
 0xa01   :  { %7920 = vmatprep.subr.bf16.mxu0 %v8182_v3 }
 0xad2   :  { %v7429_v26 = vpop.f32.mrb[22].mxu0 }
 0xad3   :  { %v2368_v30 = vpop.f32.mrb[23].mxu0 }
 0xad4   :  { %7432 = vmatprep.mubr.msk.f32.mxu0 %vm509_vm2, %v2368_v30  ;;  %v8891_v30 = vld [vmem:[%s9533_s29 + $0x18] sm:$0x3] }
 0xad5   :  { %7433 = vmatmul.mubr.msk.f32.vlgmr.msra.gmra.mrb[14].mxu0 %vm509_vm2, %v7429_v26  ;;  %v3513_v26 = vld [vmem:[%s9535_s25] sm:$0xff] }
 0xad6   :  { %7922 = vmatpush3.bf16.msra.mxu0 %v7921_v28  ;;  %7454 = vmatprep.mubr.msk.f32.mxu0 %vm8183_vm1, %v8184_v4  ;;  %v3514_v28 = vld [vmem:[%s9535_s25 + $0x8] sm:$0xff] }
 0xad7   :  { %7923 = vmatprep.subr.bf16.mxu0 %v8182_v3  ;;  %v7961_v31 = vpack.c.bf16 %v3514_v28, %v3513_v26 }
 0xada   :  { %7925 = vmatpush3.bf16.msra.mxu0 %v7924_v34 }
 0xadb   :  { %7933 = vmatprep.subr.bf16.mxu0 %v7932_v36 }
 0xadd   :  { %7455 = vmatmul.mubr.msk.f32.vlgmr.msra.gmra.mrb[24].mxu0 %vm86_vm0, %v8368_v29  ;;  %v2884_v29 = vadd.f32 %v6697_v42, %v2883_v43  ;;  %v3686_v42 = vld [vmem:[%s9508_s13] sm:$0xff]  ;;  %v3687_v43 = vld [vmem:[%s9508_s13 + $0x8] sm:$0xff] }
 0xade   :  { %7935 = vmatpush3.bf16.msra.mxu0 %v7932_v36  ;;  %7476 = vmatprep.mubr.msk.f32.mxu0 %vm86_vm0, %v8361_v27  ;;  %v6675_v27 = vld [vmem:[%s9512_s8 + $0x3] ss:$0 sm:$0xff] }
 0xadf   :  { %7937 = vmatprep.subr.bf16.mxu0 %v7936_v40 }
 0xae2   :  { %7939 = vmatpush3.bf16.msra.mxu0 %v7936_v40 }
 0xae3   :  { %7490 = vmatprep.subr.msk.mxu0 %vm509_vm2, %v2884_v29 }
 0xae5   :  { %7477 = vmatmul.mubr.msk.f32.vlgmr.msra.gmra.mrb[26].mxu0 %vm86_vm0, %v8391_v35 }
 0xaeb   :  { %7491 = vmatpush3.xpose.msk.msra.mxu0 %vm509_vm2, %v2884_v29  ;;  %v8918_v29 = vld [vmem:[%s9507_s1 + $0x8] sm:$0xff] }
 0xaec   :  { %7500 = vmatprep.subr.mxu0 %v2713_v44 }
 0xbb0   :  { %v2629_v35 = vpop.f32.mrb[24].mxu0 }
 0xbb1   :  { %v2630_v46 = vadd.f32 %v6675_v27, %v2629_v35  ;;  %v7456_v47 = vpop.f32.mrb[25].mxu0  ;;  %v3689_v27 = vld [vmem:[%s9508_s13 + $0x18] sm:$0xff] }
 0xbb2   :  { %v7978_v35 = vpack.c.bf16 %v3689_v27, %v3688_v45 }
 0xbb3   :  { %7495 = vmatprep.subr.msk.mxu1 %vm509_vm2, %v2630_v46 }
 0xbb4   :  { %7496 = vmatpush3.xpose.msk.msra.mxu1 %vm509_vm2, %v2630_v46  ;;  %v8934_v46 = vld [vmem:[%s9509_s3 + $0x8] sm:$0xff] }
 0xbb7   :  { %7498 = vmatmul.mubr.msk.f32.vlgmr.msra.gmra.mrb[32].mxu1 %vm509_vm2, %v2547_v17  ;;  %v3338_v17 = vld [vmem:[%s9532_s23 + $0x8] sm:$0xff] }
 0xbb8   :  { %v7478_v49 = vpop.f32.mrb[26].mxu0  ;;  %v7946_v19 = vpack.c.bf16 %v3338_v17, %v3337_v16  ;;  %7518 = vmatprep.mubr.msk.f32.mxu1 %vm86_vm0, %v8875_v24  ;;  %v6725_v17 = vld [vmem:[%s9512_s8] ss:$0 sm:$0xff] }
 0xbb9   :  { %v2795_v23 = vpop.f32.mrb[27].mxu0  ;;  %v2801_v51 = vadd.f32 %v7478_v49, %v6689_v48 }
 0xbba   :  { %v2796_v50 = vadd.f32 %v6689_v48, %v2795_v23  ;;  %7947 = vmatprep.subr.bf16.mxu1 %v7946_v19  ;;  %v6722_v48 = vld [vmem:[%s9513_s6] ss:$0 sm:$0xff] }
 0xbbb   :  { %7949 = vmatpush3.bf16.msra.mxu1 %v7946_v19 }
 0xbbc   :  { %7492 = vmatprep.mubr.msk.f32.mxu0 %vm509_vm2, %v2796_v50  ;;  %7951 = vmatprep.subr.bf16.mxu1 %v7950_v25 }
 0xbbd   :  { %7493 = vmatmul.mubr.msk.f32.vlgmr.msra.gmra.mrb[28].mxu0 %vm509_vm2, %v2801_v51  ;;  %v3429_v51 = vld [vmem:[%s9534_s21] sm:$0xff] }
 0xbbe   :  { %7501 = vmatpush3.msra.mxu0 %v2713_v44  ;;  %v7975_v44 = vpack.c.bf16 %v3687_v43, %v3686_v42 }
 0xbbf   :  { %7505 = vmatprep.subr.mxu0 %v6709_v37  ;;  %7953 = vmatpush3.bf16.msra.mxu1 %v7950_v25  ;;  %v6729_v25 = vld [vmem:[%s9510_s12] ss:$0 sm:$0xff] }
 0xbc0   :  { %7960 = vmatprep.subr.bf16.mxu1 %v8182_v3 }
 0xbc2   :  { %7519 = vmatmul.mubr.msk.f32.vlgmr.msra.gmra.mrb[34].mxu1 %vm86_vm0, %v8891_v30 }
 0xbc3   :  { %7962 = vmatpush3.bf16.msra.mxu1 %v7961_v31  ;;  %7540 = vmatprep.mubr.msk.f32.mxu1 %vm8183_vm1, %v8184_v4 }
 0xbc4   :  { %7963 = vmatprep.subr.bf16.mxu1 %v8182_v3 }
 0xbc7   :  { %7965 = vmatpush3.bf16.msra.mxu1 %v7964_v33 }
 0xbc8   :  { %7974 = vmatprep.subr.bf16.mxu1 %v8182_v3 }
 0xbca   :  { %7541 = vmatmul.mubr.msk.f32.vlgmr.msra.gmra.mrb[36].mxu1 %vm86_vm0, %v8918_v29 }
 0xbcb   :  { %7976 = vmatpush3.bf16.msra.mxu1 %v7975_v44  ;;  %7562 = vmatprep.mubr.msk.f32.mxu1 %vm8183_vm1, %v8184_v4 }
 0xbcc   :  { %7977 = vmatprep.subr.bf16.mxu1 %v8182_v3 }
 0xbcf   :  { %7979 = vmatpush3.bf16.msra.mxu1 %v7978_v35  ;;  %v6744_v35 = vld [vmem:[%s9532_s23 + $0x20] sm:$0xff] }
 0xbd2   :  { %7563 = vmatmul.mubr.msk.f32.vlgmr.msra.gmra.mrb[38].mxu1 %vm86_vm0, %v8934_v46 }
 0xc8a   :  { %v7499_v52 = vpop.f32.mrb[32].mxu1 }
 0xc8b   :  { %v3051_v53 = vpop.f32.mrb[33].mxu1  ;;  %v3061_v55 = vmul.f32 0.25, %v7499_v52  ;;  %v3430_v52 = vld [vmem:[%s9534_s21 + $0x8] sm:$0xff] }
 0xc8c   :  { %v3060_v58 = vmul.f32 0.25, %v3051_v53 }
 0xc90   :  { %v7494_v54 = vpop.f32.mrb[28].mxu0 }
 0xc91   :  { %v2972_v56 = vmul.f32 0.25, %v7494_v54  ;;  %v2962_v57 = vpop.f32.mrb[29].mxu0  ;;  %v7955_v54 = vpack.c.bf16 %v3430_v52, %v3429_v51 }
 0xc92   :  { %v2971_v59 = vmul.f32 0.25, %v2962_v57  ;;  %v3432_v57 = vld [vmem:[%s9534_s21 + $0x18] sm:$0xff] }
 0xc93   :  { %6703 = vst.msk [vmem:[%s9516_s20 + $0x38] sm:$0x3] %vm597_vm4, %v2972_v56  ;;  %v3063_v22 = vadd.f32 %v3061_v55, %v2972_v56  ;;  %v3431_v56 = vld [vmem:[%s9534_s21 + $0x10] sm:$0xff] }
 0xc94   :  { %6702 = vst.msk [vmem:[%s9516_s20 + $0x30] sm:$0xff] %vm509_vm2, %v2971_v59  ;;  %v3062_v60 = vadd.f32 %v3060_v58, %v2971_v59  ;;  %v3594_v58 = vld [vmem:[%s9536_s22] sm:$0xff]  ;;  %v3595_v59 = vld [vmem:[%s9536_s22 + $0x8] sm:$0xff] }
 0xc95   :  { %v3065_v61 = vsel %vm692_vm5, -1e+09, %v3063_v22  ;;  %v7520_v47 = vpop.f32.mrb[34].mxu1  ;;  %v7958_v22 = vpack.c.bf16 %v3432_v57, %v3431_v56 }
 0xc96   :  { %v3069_v0 = vsel %vm597_vm4, %v3065_v61, -inf  ;;  %v3064_v20 = vsel %vm692_vm5, -1e+09, %v3062_v60  ;;  %v3426_v49 = vadd.f32 %v7520_v47, %v6722_v48  ;;  %v3420_v23 = vpop.f32.mrb[35].mxu1  ;;  %v7966_v60 = vpack.c.bf16 %v3595_v59, %v3594_v58  ;;  %v6745_v47 = vld [vmem:[%s9532_s23 + $0x28] sm:$0xff]  ;;  %v6746_v58 = vld [vmem:[%s9532_s23 + $0x30] sm:$0xff] }
 0xc97   :  { %3070 = vmax.xlane.f32.xlu1 %v3069_v0  ;;  %v3066_v2 = vsel %vm509_vm2, %v3064_v20, -inf  ;;  %v3421_v50 = vadd.f32 %v6722_v48, %v3420_v23  ;;  %v3597_v0 = vld [vmem:[%s9536_s22 + $0x18] sm:$0xff]  ;;  %v7980_v48 = vpack.c.bf16 %v6745_v47, %v6744_v35 }
 0xc98   :  { %3067 = vmax.xlane.f32.xlu0 %v3066_v2  ;;  %v8974_v2 = vld [vmem:[%s9506_s2 + $0x10] sm:$0xff]  ;;  %v6747_v59 = vld [vmem:[%s9532_s23 + $0x38] sm:$0xff] }
 0xc99   :  { %7572 = vmatprep.mubr.msk.f32.mxu1 %vm509_vm2, %v3421_v50 }
 0xd24   :  { %v3071_v5 = vpop.xlane.xlu1 %3070 }
 0xd25   :  { %v3073_v6 = vsub.f32 %v3065_v61, %v3071_v5  ;;  %v3068_v8 = vpop.xlane.xlu0 %3067  ;;  %v3596_v61 = vld [vmem:[%s9536_s22 + $0x10] sm:$0xff]  ;;  %v8983_v5 = vld [vmem:[%s9506_s2 + $0x18] sm:$0x3] }
 0xd26   :  { %v3072_v10 = vsub.f32 %v3064_v20, %v3068_v8  ;;  %v7970_v20 = vpack.c.bf16 %v3597_v0, %v3596_v61  ;;  %v6760_v61 = vld [vmem:[%s9535_s25 + $0x28] sm:$0xff] }
 0xd27   :  { %v3076_v11 = vmul.f32 1.442695, %v3073_v6  ;;  %v3590_v6 = vpop.f32.mrb[36].mxu1 }
 0xd28   :  { %v3074_v12 = vmul.f32 1.442695, %v3072_v10  ;;  %v7542_v8 = vpop.f32.mrb[37].mxu1  ;;  %v6727_v10 = vld [vmem:[%s9514_s10] ss:$0 sm:$0xff] }
 0xd29   :  { %8122 = vpow2.f32 %v3076_v11  ;;  %v6732_v11 = vld [vmem:[%s9511_s14] ss:$0 sm:$0xff] }
 0xd2a   :  { %8124 = vpow2.f32 %v3074_v12  ;;  %v3766_v12 = vpop.f32.mrb[38].mxu1 }
 0xd33   :  { %v8123_v13 = vpop.eup %8122 }
 0xd34   :  { %v8125_v14 = vpop.eup %8124  ;;  %v3081_v15 = vsel %vm597_vm4, %v8123_v13, 0.0 }
 0xd35   :  { %3082 = vadd.xlane.f32.xlu1 %v3081_v15  ;;  %v3078_v9 = vsel %vm509_vm2, %v8125_v14, 0.0  ;;  %v7564_v15 = vpop.f32.mrb[39].mxu1 }
 0xd36   :  { %3079 = vadd.xlane.f32.xlu0 %v3078_v9 }
 0xdc2   :  { %v3083_v34 = vpop.xlane.xlu1 %3082 }
 0xdc3   :  { %8126 = vrcp.f32 %v3083_v34  ;;  %v3080_v36 = vpop.xlane.xlu0 %3079  ;;  %v3947_v34 = vsel %vm3336_vm6, 1, %v8185_v1 }
 0xdc4   :  { %8128 = vrcp.f32 %v3080_v36  ;;  %v9019_v36 = vrot.slane %v3947_v34, %v690_v63  ;;  %v6767_v34 = vld [vmem:[%s9536_s22 + $0x28] sm:$0xff] }
 0xdc6   :  { %vm3952_vm7 = vcmp.eq.s32.totalorder %v9019_v36, 1  ;;  %v8179_v36 = vld [vmem:[%s9533_s29] sm:$0xff] }
 0xdcd   :  { %v8127_v38 = vpop.eup %8126 }
 0xdce   :  { %v8129_v39 = vpop.eup %8128  ;;  %v3087_v41 = vmul.f32 %v8127_v38, %v8123_v13  ;;  %v3591_v13 = vadd.f32 %v6727_v10, %v3590_v6  ;;  %v6762_v6 = vld [vmem:[%s9535_s25 + $0x38] sm:$0xff]  ;;  %v6774_v10 = vld [vmem:[%s9508_s13 + $0x20] sm:$0xff] }
 0xdcf   :  { %v3086_v40 = vmul.f32 %v8129_v39, %v8125_v14  ;;  %v3767_v14 = vadd.f32 %v6732_v11, %v3766_v12  ;;  %v6775_v11 = vld [vmem:[%s9508_s13 + $0x28] sm:$0xff] }
 0xdd0   :  { %v8009_v12 = vpack.c.bf16 %v6775_v11, %v6774_v10 }
 0xdd1   :  { %7502 = vmatprep.mubr.msk.f32.mxu0 %vm509_vm2, %v3086_v40 }
 0xdd2   :  { %7503 = vmatmul.mubr.msk.f32.vlgmr.msra.gmra.mrb[30].mxu0 %vm509_vm2, %v3087_v41 }
 0xdd3   :  { %7506 = vmatpush3.msra.mxu0 %v6709_v37 }
 0xdd4   :  { %7954 = vmatprep.subr.bf16.mxu0 %v8182_v3 }
 0xea5   :  { %v7504_v53 = vpop.f32.mrb[30].mxu0 }
 0xea6   :  { %v3160_v55 = vpop.f32.mrb[31].mxu0 }
 0xea7   :  { %7507 = vmatprep.mubr.msk.f32.mxu0 %vm509_vm2, %v3160_v55 }
 0xea8   :  { %7508 = vmatmul.mubr.msk.f32.vlgmr.msra.gmra.mrb[14].mxu0 %vm509_vm2, %v7504_v53 }
 0xea9   :  { %7956 = vmatpush3.bf16.msra.mxu0 %v7955_v54  ;;  %7529 = vmatprep.mubr.msk.f32.mxu0 %vm8183_vm1, %v8184_v4 }
 0xeaa   :  { %7957 = vmatprep.subr.bf16.mxu0 %v8182_v3 }
 0xead   :  { %7959 = vmatpush3.bf16.msra.mxu0 %v7958_v22  ;;  %v7984_v22 = vpack.c.bf16 %v6747_v59, %v6746_v58 }
 0xeae   :  { %7967 = vmatprep.subr.bf16.mxu0 %v7966_v60 }
 0xeb0   :  { %7530 = vmatmul.mubr.msk.f32.vlgmr.msra.gmra.mrb[32].mxu0 %vm86_vm0, %v8918_v29 }
 0xeb1   :  { %7969 = vmatpush3.bf16.msra.mxu0 %v7966_v60  ;;  %7551 = vmatprep.mubr.msk.f32.mxu0 %vm86_vm0, %v8974_v2  ;;  %v6759_v60 = vld [vmem:[%s9535_s25 + $0x20] sm:$0xff] }
 0xeb2   :  { %7971 = vmatprep.subr.bf16.mxu0 %v7970_v20  ;;  %v7995_v0 = vpack.c.bf16 %v6760_v61, %v6759_v60 }
 0xeb5   :  { %7973 = vmatpush3.bf16.msra.mxu0 %v7970_v20  ;;  %v6761_v20 = vld [vmem:[%s9535_s25 + $0x30] sm:$0xff] }
 0xeb6   :  { %7565 = vmatprep.subr.msk.mxu0 %vm509_vm2, %v3767_v14  ;;  %v7998_v8 = vpack.c.bf16 %v6762_v6, %v6761_v20 }
 0xeb8   :  { %7552 = vmatmul.mubr.msk.f32.vlgmr.msra.gmra.mrb[34].mxu0 %vm86_vm0, %v8983_v5 }
 0xebe   :  { %7566 = vmatpush3.xpose.msk.msra.mxu0 %vm509_vm2, %v3767_v14  ;;  %v6777_v14 = vld [vmem:[%s9508_s13 + $0x38] sm:$0xff] }
 0xebf   :  { %7575 = vmatprep.subr.mxu0 %v3591_v13 }
 0xf7b   :  { %v8995_v9 = vpop.f32.mrb[14].mxu0 }
 0xf7c   :  { %v8997_v16 = vpop.f32.mrb[15].mxu0 }
 0xf83   :  { %v3509_v18 = vpop.f32.mrb[32].mxu0 }
 0xf84   :  { %v3510_v19 = vadd.f32 %v6725_v17, %v3509_v18  ;;  %v7531_v21 = vpop.f32.mrb[33].mxu0 }
 0xf85   :  { %v6753_v21 = vld [vmem:[%s9534_s21 + $0x28] sm:$0xff] }
 0xf86   :  { %7570 = vmatprep.subr.msk.mxu1 %vm509_vm2, %v3510_v19 }
 0xf87   :  { %7571 = vmatpush3.xpose.msk.msra.mxu1 %vm509_vm2, %v3510_v19  ;;  %v6752_v19 = vld [vmem:[%s9534_s21 + $0x20] sm:$0xff] }
 0xf88   :  { %7981 = vmatprep.subr.bf16.mxu1 %v7980_v48 }
 0xf8a   :  { %7573 = vmatmul.mubr.msk.f32.vlgmr.msra.gmra.mrb[40].mxu1 %vm509_vm2, %v3426_v49 }
 0xf8b   :  { %v7553_v37 = vpop.f32.mrb[34].mxu0  ;;  %7588 = vmatprep.mubr.msk.f32.mxu1 %vm86_vm0, %v8875_v24  ;;  %7983 = vmatpush3.bf16.msra.mxu1 %v7980_v48 }
 0xf8c   :  { %v3677_v26 = vpop.f32.mrb[35].mxu0  ;;  %v3683_v31 = vadd.f32 %v7553_v37, %v6729_v25  ;;  %7985 = vmatprep.subr.bf16.mxu1 %v7984_v22 }
 0xf8d   :  { %v3678_v28 = vadd.f32 %v6729_v25, %v3677_v26 }
 0xf8f   :  { %7567 = vmatprep.mubr.msk.f32.mxu0 %vm509_vm2, %v3678_v28  ;;  %7987 = vmatpush3.bf16.msra.mxu1 %v7984_v22  ;;  %v7989_v28 = vpack.c.bf16 %v6753_v21, %v6752_v19 }
 0xf90   :  { %7568 = vmatmul.mubr.msk.f32.vlgmr.msra.gmra.mrb[36].mxu0 %vm509_vm2, %v3683_v31  ;;  %7994 = vmatprep.subr.bf16.mxu1 %v8182_v3 }
 0xf91   :  { %7576 = vmatpush3.msra.mxu0 %v3591_v13  ;;  %v6776_v13 = vld [vmem:[%s9508_s13 + $0x30] sm:$0xff] }
 0xf92   :  { %7988 = vmatprep.subr.bf16.mxu0 %v8182_v3  ;;  %7589 = vmatmul.mubr.msk.f32.vlgmr.msra.gmra.mrb[42].mxu1 %vm86_vm0, %v8891_v30  ;;  %v8012_v15 = vpack.c.bf16 %v6777_v14, %v6776_v13 }
 0xf93   :  { %7996 = vmatpush3.bf16.msra.mxu1 %v7995_v0  ;;  %7610 = vmatprep.mubr.msk.f32.mxu1 %vm8183_vm1, %v8184_v4 }
 0xf94   :  { %7997 = vmatprep.subr.bf16.mxu1 %v8182_v3 }
 0xf97   :  { %7999 = vmatpush3.bf16.msra.mxu1 %v7998_v8 }
 0xf98   :  { %8008 = vmatprep.subr.bf16.mxu1 %v8182_v3 }
 0xf9a   :  { %7611 = vmatmul.mubr.msk.f32.vlgmr.msra.gmra.mrb[44].mxu1 %vm86_vm0, %v8918_v29 }
 0xf9b   :  { %8010 = vmatpush3.bf16.msra.mxu1 %v8009_v12  ;;  %7632 = vmatprep.mubr.msk.f32.mxu1 %vm8183_vm1, %v8184_v4 }
 0xf9c   :  { %8011 = vmatprep.subr.bf16.mxu1 %v8182_v3 }
 0xf9f   :  { %8013 = vmatpush3.bf16.msra.mxu1 %v8012_v15 }
 0xfa2   :  { %7633 = vmatmul.mubr.msk.f32.vlgmr.msra.gmra.mrb[46].mxu1 %vm86_vm0, %v8934_v46 }
0x105d   :  { %v7574_v7 = vpop.f32.mrb[40].mxu1 }
0x105e   :  { %v3934_v33 = vpop.f32.mrb[41].mxu1  ;;  %v3944_v39 = vmul.f32 0.25, %v7574_v7  ;;  %v6755_v7 = vld [vmem:[%s9534_s21 + $0x38] sm:$0xff] }
0x105f   :  { %v3943_v42 = vmul.f32 0.25, %v3934_v33  ;;  %v6766_v33 = vld [vmem:[%s9536_s22 + $0x20] sm:$0xff] }
0x1063   :  { %v7569_v38 = vpop.f32.mrb[36].mxu0 }
0x1064   :  { %v3855_v40 = vmul.f32 0.25, %v7569_v38  ;;  %v3845_v41 = vpop.f32.mrb[37].mxu0  ;;  %v7992_v38 = vpack.c.bf16 %v6755_v7, %v6754_v32 }
0x1065   :  { %v3854_v43 = vmul.f32 0.25, %v3845_v41  ;;  %v6769_v41 = vld [vmem:[%s9536_s22 + $0x38] sm:$0xff] }
0x1066   :  { %6738 = vst.msk [vmem:[%s9516_s20 + $0x48] sm:$0x3] %vm597_vm4, %v3855_v40  ;;  %v3946_v44 = vadd.f32 %v3944_v39, %v3855_v40  ;;  %v8000_v39 = vpack.c.bf16 %v6767_v34, %v6766_v33  ;;  %v6768_v40 = vld [vmem:[%s9536_s22 + $0x30] sm:$0xff] }
0x1067   :  { %6737 = vst.msk [vmem:[%s9516_s20 + $0x40] sm:$0xff] %vm509_vm2, %v3854_v43  ;;  %v3945_v62 = vadd.f32 %v3943_v42, %v3854_v43  ;;  %v8004_v42 = vpack.c.bf16 %v6769_v41, %v6768_v40  ;;  %v7590_v43 = vpop.f32.mrb[42].mxu1  ;;  %v6791_v41 = vld [vmem:[%s9517_s15 + $0x8] sm:$0xff] }
0x1068   :  { %v3954_v63 = vsel %vm3952_vm7, -1e+09, %v3946_v44  ;;  %v4136_v44 = vpop.f32.mrb[43].mxu1 }
0x1069   :  { %v3958_v1 = vsel %vm597_vm4, %v3954_v63, -inf  ;;  %v3953_v45 = vsel %vm3952_vm7, -1e+09, %v3945_v62  ;;  %v6764_v62 = vld [vmem:[%s9514_s10 + $0x1] ss:$0 sm:$0xff] }
0x106a   :  { %3959 = vmax.xlane.f32.xlu1 %v3958_v1  ;;  %v3955_v27 = vsel %vm509_vm2, %v3953_v45, -inf }
0x106b   :  { %3956 = vmax.xlane.f32.xlu0 %v3955_v27  ;;  %v6779_v27 = vld [vmem:[%s9511_s14 + $0x1] ss:$0 sm:$0xff] }
0x10f7   :  { %v3960_v49 = vpop.xlane.xlu1 %3959 }
0x10f8   :  { %v3962_v23 = vsub.f32 %v3954_v63, %v3960_v49  ;;  %v3957_v50 = vpop.xlane.xlu0 %3956  ;;  %v4303_v63 = vpop.f32.mrb[44].mxu1 }
0x10f9   :  { %v3961_v51 = vsub.f32 %v3953_v45, %v3957_v50  ;;  %v4304_v1 = vadd.f32 %v6764_v62, %v4303_v63  ;;  %v7612_v45 = vpop.f32.mrb[45].mxu1  ;;  %v6757_v50 = vld [vmem:[%s9512_s8 + $0x1] ss:$0 sm:$0xff]  ;;  %v6798_v62 = vld [vmem:[%s9532_s23 + $0x50] sm:$0xff]  ;;  %v6799_v63 = vld [vmem:[%s9532_s23 + $0x58] sm:$0xff] }
0x10fa   :  { %v3965_v52 = vmul.f32 1.442695, %v3962_v23  ;;  %v4470_v35 = vpop.f32.mrb[46].mxu1 }
0x10fb   :  { %v3963_v53 = vmul.f32 1.442695, %v3961_v51  ;;  %7645 = vmatprep.subr.mxu1 %v4304_v1  ;;  %v4471_v47 = vadd.f32 %v6779_v27, %v4470_v35  ;;  %v7634_v48 = vpop.f32.mrb[47].mxu1  ;;  %v8018_v35 = vpack.c.bf16 %v6799_v63, %v6798_v62 }
0x10fc   :  { %8130 = vpow2.f32 %v3965_v52  ;;  %7646 = vmatpush3.msra.mxu1 %v4304_v1  ;;  %v6812_v48 = vld [vmem:[%s9535_s25 + $0x48] sm:$0xff] }
0x10fd   :  { %8132 = vpow2.f32 %v3963_v53 }
0x1106   :  { %v8131_v54 = vpop.eup %8130 }
0x1107   :  { %v8133_v55 = vpop.eup %8132  ;;  %v3970_v56 = vsel %vm597_vm4, %v8131_v54, 0.0 }
0x1108   :  { %3971 = vadd.xlane.f32.xlu1 %v3970_v56  ;;  %v3967_v57 = vsel %vm509_vm2, %v8133_v55, 0.0  ;;  %v6749_v56 = vld [vmem:[%s9513_s6 + $0x1] ss:$0 sm:$0xff] }
0x1109   :  { %3968 = vadd.xlane.f32.xlu0 %v3967_v57  ;;  %v4137_v22 = vadd.f32 %v6749_v56, %v4136_v44  ;;  %v4142_v60 = vadd.f32 %v7590_v43, %v6749_v56  ;;  %v6827_v56 = vld [vmem:[%s9508_s13 + $0x48] sm:$0xff] }
0x1195   :  { %v3972_v17 = vpop.xlane.xlu1 %3971 }
0x1196   :  { %8134 = vrcp.f32 %v3972_v17  ;;  %v3969_v18 = vpop.xlane.xlu0 %3968 }
0x1197   :  { %8136 = vrcp.f32 %v3969_v18 }
0x11a0   :  { %v8135_v25 = vpop.eup %8134 }
0x11a1   :  { %v8137_v37 = vpop.eup %8136  ;;  %v3976_v31 = vmul.f32 %v8135_v25, %v8131_v54  ;;  %v6771_v54 = vld [vmem:[%s9510_s12 + $0x1] ss:$0 sm:$0xff] }
0x11a2   :  { %v3975_v26 = vmul.f32 %v8137_v37, %v8133_v55 }
0x11a4   :  { %7577 = vmatprep.mubr.msk.f32.mxu0 %vm509_vm2, %v3975_v26 }
0x11a5   :  { %7578 = vmatmul.mubr.msk.f32.vlgmr.msra.gmra.mrb[38].mxu0 %vm509_vm2, %v3976_v31 }
0x11a6   :  { %7990 = vmatpush3.bf16.msra.mxu0 %v7989_v28  ;;  %7599 = vmatprep.mubr.msk.f32.mxu0 %vm8183_vm1, %v8184_v4 }
0x11a7   :  { %7991 = vmatprep.subr.bf16.mxu0 %v8182_v3 }
0x11aa   :  { %7993 = vmatpush3.bf16.msra.mxu0 %v7992_v38  ;;  %v6796_v38 = vld [vmem:[%s9532_s23 + $0x40] sm:$0xff] }
0x11ab   :  { %8001 = vmatprep.subr.bf16.mxu0 %v8000_v39 }
0x11ad   :  { %7600 = vmatmul.mubr.msk.f32.vlgmr.msra.gmra.mrb[40].mxu0 %vm86_vm0, %v8918_v29 }
0x11ae   :  { %8003 = vmatpush3.bf16.msra.mxu0 %v8000_v39  ;;  %7621 = vmatprep.mubr.msk.f32.mxu0 %vm86_vm0, %v8974_v2  ;;  %v6797_v39 = vld [vmem:[%s9532_s23 + $0x48] sm:$0xff] }
0x11af   :  { %8005 = vmatprep.subr.bf16.mxu0 %v8004_v42  ;;  %v8014_v40 = vpack.c.bf16 %v6797_v39, %v6796_v38  ;;  %v6809_v38 = vld [vmem:[%s9512_s8 + $0x2] ss:$0 sm:$0xff] }
0x11b1   :  { %8015 = vmatprep.subr.bf16.mxu1 %v8014_v40 }
0x11b2   :  { %8007 = vmatpush3.bf16.msra.mxu0 %v8004_v42 }
0x11b3   :  { %7635 = vmatprep.subr.msk.mxu0 %vm509_vm2, %v4471_v47 }
0x11b5   :  { %7622 = vmatmul.mubr.msk.f32.vlgmr.msra.gmra.mrb[42].mxu0 %vm86_vm0, %v8983_v5 }
0x11bb   :  { %7636 = vmatpush3.xpose.msk.msra.mxu0 %vm509_vm2, %v4471_v47  ;;  %v6811_v47 = vld [vmem:[%s9535_s25 + $0x40] sm:$0xff] }
0x1278   :  { %v9131_v49 = vpop.f32.mrb[38].mxu0 }
0x1279   :  { %v9133_v23 = vpop.f32.mrb[39].mxu0 }
0x1280   :  { %v4222_v51 = vpop.f32.mrb[40].mxu0 }
0x1281   :  { %v4223_v52 = vadd.f32 %v6757_v50, %v4222_v51  ;;  %v7601_v53 = vpop.f32.mrb[41].mxu0  ;;  %v8029_v50 = vpack.c.bf16 %v6812_v48, %v6811_v47  ;;  %v6813_v51 = vld [vmem:[%s9535_s25 + $0x50] sm:$0xff] }
0x1282   :  { %v4058_v53 = vld [vmem:[%s9517_s15] sm:$0xff] }
0x1283   :  { %7640 = vmatprep.subr.msk.mxu0 %vm509_vm2, %v4223_v52 }
0x1288   :  { %v7623_v55 = vpop.f32.mrb[42].mxu0 }
0x1289   :  { %v4384_v57 = vpop.f32.mrb[43].mxu0  ;;  %v4390_v59 = vadd.f32 %v7623_v55, %v6771_v54  ;;  %v6826_v55 = vld [vmem:[%s9508_s13 + $0x40] sm:$0xff] }
0x128a   :  { %v4385_v58 = vadd.f32 %v6771_v54, %v4384_v57  ;;  %v8043_v57 = vpack.c.bf16 %v6827_v56, %v6826_v55 }
0x128c   :  { %7637 = vmatprep.mubr.msk.f32.mxu0 %vm509_vm2, %v4385_v58  ;;  %v6828_v58 = vld [vmem:[%s9508_s13 + $0x50] sm:$0xff] }
0x128d   :  { %7638 = vmatmul.mubr.msk.f32.vlgmr.msra.gmra.mrb[44].mxu0 %vm509_vm2, %v4390_v59  ;;  %v6829_v59 = vld [vmem:[%s9508_s13 + $0x58] sm:$0xff] }
0x128e   :  { %7641 = vmatpush3.xpose.msk.msra.mxu0 %vm509_vm2, %v4223_v52  ;;  %7642 = vmatprep.mubr.msk.f32.mxu0 %vm509_vm2, %v4137_v22  ;;  %v6814_v52 = vld [vmem:[%s9535_s25 + $0x58] sm:$0xff]  ;;  %v8046_v22 = vpack.c.bf16 %v6829_v59, %v6828_v58 }
0x128f   :  { %7650 = vmatprep.subr.mxu0 %v6791_v41  ;;  %v8032_v54 = vpack.c.bf16 %v6814_v52, %v6813_v51 }
0x1291   :  { %7643 = vmatmul.mubr.msk.f32.vlgmr.msra.gmra.mrb[46].mxu0 %vm509_vm2, %v4142_v60 }
0x1292   :  { %7651 = vmatpush3.msra.mxu0 %v6791_v41 }
0x1293   :  { %7655 = vmatprep.subr.mxu0 %v4058_v53 }
0x1360   :  { %v7639_v61 = vpop.f32.mrb[44].mxu0 }
0x1361   :  { %v4559_v0 = vmul.f32 0.25, %v7639_v61  ;;  %v4549_v20 = vpop.f32.mrb[45].mxu0 }
0x1362   :  { %v4558_v6 = vmul.f32 0.25, %v4549_v20  ;;  %v6805_v20 = vld [vmem:[%s9534_s21 + $0x48] sm:$0xff] }
0x1363   :  { %6785 = vst.msk [vmem:[%s9516_s20 + $0x58] sm:$0x3] %vm597_vm4, %v4559_v0 }
0x1364   :  { %6784 = vst.msk [vmem:[%s9516_s20 + $0x50] sm:$0xff] %vm509_vm2, %v4558_v6  ;;  %v7644_v8 = vpop.f32.mrb[46].mxu0 }
0x1365   :  { %v4648_v10 = vmul.f32 0.25, %v7644_v8  ;;  %v4638_v11 = vpop.f32.mrb[47].mxu0 }
0x1366   :  { %v4647_v12 = vmul.f32 0.25, %v4638_v11  ;;  %v6807_v11 = vld [vmem:[%s9534_s21 + $0x58] sm:$0xff] }
0x1367   :  { %v4650_v13 = vadd.f32 %v4648_v10, %v4559_v0  ;;  %v6804_v0 = vld [vmem:[%s9534_s21 + $0x40] sm:$0xff] }
0x1368   :  { %v4649_v14 = vadd.f32 %v4647_v12, %v4558_v6  ;;  %v6801_v6 = vld [vmem:[%s9513_s6 + $0x2] ss:$0 sm:$0xff]  ;;  %v8023_v8 = vpack.c.bf16 %v6805_v20, %v6804_v0 }
0x1369   :  { %v4652_v15 = vsel %vm3952_vm7, -1e+09, %v4650_v13 }
0x136a   :  { %v4656_v17 = vsel %vm597_vm4, %v4652_v15, -inf  ;;  %v4651_v18 = vsel %vm3952_vm7, -1e+09, %v4649_v14  ;;  %v6818_v14 = vld [vmem:[%s9536_s22 + $0x40] sm:$0xff] }
0x136b   :  { %4657 = vmax.xlane.f32.xlu1 %v4656_v17  ;;  %v4653_v19 = vsel %vm509_vm2, %v4651_v18, -inf }
0x136c   :  { %4654 = vmax.xlane.f32.xlu0 %v4653_v19 }
0x13f8   :  { %v4658_v21 = vpop.xlane.xlu1 %4657 }
0x13f9   :  { %v4660_v25 = vsub.f32 %v4652_v15, %v4658_v21  ;;  %v4655_v37 = vpop.xlane.xlu0 %4654  ;;  %v6819_v15 = vld [vmem:[%s9536_s22 + $0x48] sm:$0xff]  ;;  %v6820_v21 = vld [vmem:[%s9536_s22 + $0x50] sm:$0xff] }
0x13fa   :  { %v4659_v26 = vsub.f32 %v4651_v18, %v4655_v37  ;;  %v8034_v19 = vpack.c.bf16 %v6819_v15, %v6818_v14  ;;  %v6843_v15 = vld [vmem:[%s9517_s15 + $0x10] sm:$0xff] }
0x13fb   :  { %v4663_v28 = vmul.f32 1.442695, %v4660_v25  ;;  %v6821_v25 = vld [vmem:[%s9536_s22 + $0x58] sm:$0xff] }
0x13fc   :  { %v4661_v31 = vmul.f32 1.442695, %v4659_v26 }
0x13fd   :  { %8138 = vpow2.f32 %v4663_v28  ;;  %v6816_v28 = vld [vmem:[%s9514_s10 + $0x2] ss:$0 sm:$0xff] }
0x13fe   :  { %8140 = vpow2.f32 %v4661_v31  ;;  %v6831_v31 = vld [vmem:[%s9511_s14 + $0x2] ss:$0 sm:$0xff] }
0x1407   :  { %v8139_v32 = vpop.eup %8138 }
0x1408   :  { %v8141_v7 = vpop.eup %8140  ;;  %v4668_v33 = vsel %vm597_vm4, %v8139_v32, 0.0 }
0x1409   :  { %4669 = vadd.xlane.f32.xlu1 %v4668_v33  ;;  %v4665_v34 = vsel %vm509_vm2, %v8141_v7, 0.0 }
0x140a   :  { %4666 = vadd.xlane.f32.xlu0 %v4665_v34 }
0x1496   :  { %v4670_v42 = vpop.xlane.xlu1 %4669 }
0x1497   :  { %8142 = vrcp.f32 %v4670_v42  ;;  %v4667_v43 = vpop.xlane.xlu0 %4666  ;;  %v6823_v42 = vld [vmem:[%s9510_s12 + $0x2] ss:$0 sm:$0xff] }
0x1498   :  { %8144 = vrcp.f32 %v4667_v43 }
0x14a1   :  { %v8143_v44 = vpop.eup %8142 }
0x14a2   :  { %v8145_v1 = vpop.eup %8144  ;;  %v4674_v27 = vmul.f32 %v8143_v44, %v8139_v32 }
0x14a3   :  { %v4673_v45 = vmul.f32 %v8145_v1, %v8141_v7 }
0x14a5   :  { %7647 = vmatprep.mubr.msk.f32.mxu1 %vm509_vm2, %v4673_v45 }
0x14a6   :  { %7648 = vmatmul.mubr.msk.f32.vlgmr.msra.gmra.mrb[48].mxu1 %vm509_vm2, %v4674_v27 }
0x14a7   :  { %8017 = vmatpush3.bf16.msra.mxu1 %v8014_v40  ;;  %7668 = vmatprep.mubr.msk.f32.mxu1 %vm86_vm0, %v8875_v24 }
0x14a8   :  { %8019 = vmatprep.subr.bf16.mxu1 %v8018_v35 }
0x14ab   :  { %8021 = vmatpush3.bf16.msra.mxu1 %v8018_v35 }
0x14ac   :  { %8028 = vmatprep.subr.bf16.mxu1 %v8182_v3 }
0x14ae   :  { %7669 = vmatmul.mubr.msk.f32.vlgmr.msra.gmra.mrb[50].mxu1 %vm86_vm0, %v8891_v30 }
0x14af   :  { %7690 = vmatprep.mubr.msk.f32.mxu1 %vm8183_vm1, %v8184_v4  ;;  %8030 = vmatpush3.bf16.msra.mxu1 %v8029_v50 }
0x14b0   :  { %8031 = vmatprep.subr.bf16.mxu1 %v8182_v3 }
0x14b3   :  { %8033 = vmatpush3.bf16.msra.mxu1 %v8032_v54 }
0x14b4   :  { %8042 = vmatprep.subr.bf16.mxu1 %v8182_v3 }
0x14b6   :  { %7691 = vmatmul.mubr.msk.f32.vlgmr.msra.gmra.mrb[52].mxu1 %vm86_vm0, %v8918_v29 }
0x14b7   :  { %8044 = vmatpush3.bf16.msra.mxu1 %v8043_v57  ;;  %7712 = vmatprep.mubr.msk.f32.mxu1 %vm8183_vm1, %v8184_v4 }
0x14b8   :  { %8045 = vmatprep.subr.bf16.mxu1 %v8182_v3 }
0x14bb   :  { %8047 = vmatpush3.bf16.msra.mxu1 %v8046_v22 }
0x14be   :  { %7713 = vmatmul.mubr.msk.f32.vlgmr.msra.gmra.mrb[54].mxu1 %vm86_vm0, %v8934_v46 }
0x1579   :  { %v7649_v60 = vpop.f32.mrb[48].mxu1 }
0x157a   :  { %v4747_v61 = vpop.f32.mrb[49].mxu1 }
0x157b   :  { %7652 = vmatprep.mubr.msk.f32.mxu0 %vm509_vm2, %v4747_v61 }
0x157c   :  { %7653 = vmatmul.mubr.msk.f32.vlgmr.msra.gmra.mrb[48].mxu0 %vm509_vm2, %v7649_v60 }
0x157d   :  { %7656 = vmatpush3.msra.mxu0 %v4058_v53  ;;  %7657 = vmatprep.mubr.msk.f32.mxu0 %vm509_vm2, %v9133_v23  ;;  %v6806_v23 = vld [vmem:[%s9534_s21 + $0x50] sm:$0xff] }
0x157e   :  { %8022 = vmatprep.subr.bf16.mxu0 %v8182_v3  ;;  %v8026_v18 = vpack.c.bf16 %v6807_v11, %v6806_v23  ;;  %v6847_v23 = vld [vmem:[%s9532_s23 + $0x68] sm:$0xff]  ;;  %v6848_v11 = vld [vmem:[%s9532_s23 + $0x70] sm:$0xff] }
0x1581   :  { %v7670_v10 = vpop.f32.mrb[50].mxu1 }
0x1582   :  { %v5002_v12 = vadd.f32 %v7670_v10, %v6801_v6  ;;  %v4996_v13 = vpop.f32.mrb[51].mxu1  ;;  %v6846_v10 = vld [vmem:[%s9532_s23 + $0x60] sm:$0xff] }
0x1583   :  { %v4997_v17 = vadd.f32 %v6801_v6, %v4996_v13  ;;  %v6849_v13 = vld [vmem:[%s9532_s23 + $0x78] sm:$0xff] }
0x1584   :  { %7658 = vmatmul.mubr.msk.f32.vlgmr.msra.gmra.mrb[48].mxu0 %vm509_vm2, %v9131_v49  ;;  %v8038_v49 = vpack.c.bf16 %v6821_v25, %v6820_v21  ;;  %v8052_v14 = vpack.c.bf16 %v6849_v13, %v6848_v11  ;;  %v6863_v21 = vld [vmem:[%s9535_s25 + $0x70] sm:$0xff]  ;;  %v6864_v25 = vld [vmem:[%s9535_s25 + $0x78] sm:$0xff] }
0x1585   :  { %8024 = vmatpush3.bf16.msra.mxu0 %v8023_v8  ;;  %7679 = vmatprep.mubr.msk.f32.mxu0 %vm8183_vm1, %v8184_v4 }
0x1586   :  { %8025 = vmatprep.subr.bf16.mxu0 %v8182_v3  ;;  %7722 = vmatprep.mubr.msk.f32.mxu1 %vm509_vm2, %v4997_v17  ;;  %v6861_v17 = vld [vmem:[%s9535_s25 + $0x60] sm:$0xff] }
0x1589   :  { %8027 = vmatpush3.bf16.msra.mxu0 %v8026_v18  ;;  %v5163_v37 = vpop.f32.mrb[52].mxu1  ;;  %v6862_v18 = vld [vmem:[%s9535_s25 + $0x68] sm:$0xff] }
0x158a   :  { %8035 = vmatprep.subr.bf16.mxu0 %v8034_v19  ;;  %v7692_v26 = vpop.f32.mrb[53].mxu1  ;;  %v5164_v7 = vadd.f32 %v6816_v28, %v5163_v37 }
0x158c   :  { %7680 = vmatmul.mubr.msk.f32.vlgmr.msra.gmra.mrb[50].mxu0 %vm86_vm0, %v8918_v29 }
0x158d   :  { %8037 = vmatpush3.bf16.msra.mxu0 %v8034_v19  ;;  %7701 = vmatprep.mubr.msk.f32.mxu0 %vm86_vm0, %v8974_v2  ;;  %v8063_v19 = vpack.c.bf16 %v6862_v18, %v6861_v17 }
0x158e   :  { %8039 = vmatprep.subr.bf16.mxu0 %v8038_v49 }
0x1591   :  { %8041 = vmatpush3.bf16.msra.mxu0 %v8038_v49  ;;  %v5330_v32 = vpop.f32.mrb[54].mxu1  ;;  %v8066_v49 = vpack.c.bf16 %v6864_v25, %v6863_v21 }
0x1592   :  { %v5331_v33 = vadd.f32 %v6831_v31, %v5330_v32  ;;  %v7714_v34 = vpop.f32.mrb[55].mxu1 }
0x1594   :  { %7702 = vmatmul.mubr.msk.f32.vlgmr.msra.gmra.mrb[52].mxu0 %vm86_vm0, %v8983_v5  ;;  %7715 = vmatprep.subr.msk.mxu0 %vm509_vm2, %v5331_v33 }
0x159a   :  { %7716 = vmatpush3.xpose.msk.msra.mxu0 %vm509_vm2, %v5331_v33  ;;  %v6877_v33 = vld [vmem:[%s9508_s13 + $0x68] sm:$0xff] }
0x159b   :  { %7725 = vmatprep.subr.mxu0 %v5164_v7 }
0x165f   :  { %v5082_v39 = vpop.f32.mrb[50].mxu0 }
0x1660   :  { %v5083_v40 = vadd.f32 %v6809_v38, %v5082_v39  ;;  %v7681_v41 = vpop.f32.mrb[51].mxu0  ;;  %v6878_v38 = vld [vmem:[%s9508_s13 + $0x70] sm:$0xff]  ;;  %v6879_v39 = vld [vmem:[%s9508_s13 + $0x78] sm:$0xff] }
0x1662   :  { %7720 = vmatprep.subr.msk.mxu1 %vm509_vm2, %v5083_v40 }
0x1663   :  { %7721 = vmatpush3.xpose.msk.msra.mxu1 %vm509_vm2, %v5083_v40  ;;  %v8080_v40 = vpack.c.bf16 %v6879_v39, %v6878_v38  ;;  %v3254_v38 = vadd.f32 %v8179_v36, %v8997_v16  ;;  %v6712_v39 = vld [vmem:[%s9518_s16] ss:$0 sm:$0xff] }
0x1666   :  { %7723 = vmatmul.mubr.msk.f32.vlgmr.msra.gmra.mrb[56].mxu1 %vm509_vm2, %v5002_v12  ;;  %v8048_v12 = vpack.c.bf16 %v6847_v23, %v6846_v10 }
0x1667   :  { %v7703_v43 = vpop.f32.mrb[52].mxu0  ;;  %7743 = vmatprep.mubr.msk.f32.mxu1 %vm86_vm0, %v8875_v24 }
0x1668   :  { %v5244_v44 = vpop.f32.mrb[53].mxu0  ;;  %v5250_v63 = vadd.f32 %v7703_v43, %v6823_v42  ;;  %8049 = vmatprep.subr.bf16.mxu1 %v8048_v12 }
0x1669   :  { %v5245_v62 = vadd.f32 %v6823_v42, %v5244_v44  ;;  %8051 = vmatpush3.bf16.msra.mxu1 %v8048_v12  ;;  %v6851_v42 = vld [vmem:[%s9513_s6 + $0x3] ss:$0 sm:$0xff] }
0x166a   :  { %8053 = vmatprep.subr.bf16.mxu1 %v8052_v14 }
0x166b   :  { %7717 = vmatprep.mubr.msk.f32.mxu0 %vm509_vm2, %v5245_v62 }
0x166c   :  { %7718 = vmatmul.mubr.msk.f32.vlgmr.msra.gmra.mrb[54].mxu0 %vm509_vm2, %v5250_v63 }
0x166d   :  { %7726 = vmatpush3.msra.mxu0 %v5164_v7  ;;  %8055 = vmatpush3.bf16.msra.mxu1 %v8052_v14  ;;  %v6876_v7 = vld [vmem:[%s9508_s13 + $0x60] sm:$0xff] }
0x166e   :  { %7730 = vmatprep.subr.mxu0 %v6843_v15  ;;  %8062 = vmatprep.subr.bf16.mxu1 %v8182_v3  ;;  %v8077_v34 = vpack.c.bf16 %v6877_v33, %v6876_v7  ;;  %v8178_v33 = vld [vmem:[%s9533_s29 + $0x8] sm:$0x3] }
0x1670   :  { %7744 = vmatmul.mubr.msk.f32.vlgmr.msra.gmra.mrb[58].mxu1 %vm86_vm0, %v8891_v30 }
0x1671   :  { %8064 = vmatpush3.bf16.msra.mxu1 %v8063_v19  ;;  %7765 = vmatprep.mubr.msk.f32.mxu1 %vm8183_vm1, %v8184_v4 }
0x1672   :  { %8065 = vmatprep.subr.bf16.mxu1 %v8182_v3 }
0x1675   :  { %8067 = vmatpush3.bf16.msra.mxu1 %v8066_v49 }
0x1676   :  { %8076 = vmatprep.subr.bf16.mxu1 %v8182_v3 }
0x1678   :  { %7766 = vmatmul.mubr.msk.f32.vlgmr.msra.gmra.mrb[60].mxu1 %vm86_vm0, %v8918_v29 }
0x1679   :  { %7787 = vmatprep.mubr.msk.f32.mxu1 %vm8183_vm1, %v8184_v4  ;;  %8078 = vmatpush3.bf16.msra.mxu1 %v8077_v34  ;;  %v3255_v34 = vadd.f32 %v8178_v33, %v8995_v9  ;;  %v3262_v9 = vadd.f32 %v6712_v39, %v3254_v38 }
0x167a   :  { %8079 = vmatprep.subr.bf16.mxu1 %v8182_v3 }
0x167b   :  { %v3264_v16 = vsel %vm86_vm0, %v3262_v9, 0.0 }
0x167d   :  { %8081 = vmatpush3.bf16.msra.mxu1 %v8080_v40 }
0x1680   :  { %7788 = vmatmul.mubr.msk.f32.vlgmr.msra.gmra.mrb[62].mxu1 %vm86_vm0, %v8934_v46  ;;  %v6855_v46 = vld [vmem:[%s9534_s21 + $0x68] sm:$0xff] }
0x1739   :  { %v7724_v1 = vpop.f32.mrb[56].mxu1 }
0x173a   :  { %v5498_v45 = vpop.f32.mrb[57].mxu1  ;;  %v5508_v35 = vmul.f32 0.25, %v7724_v1 }
0x173b   :  { %v5507_v50 = vmul.f32 0.25, %v5498_v45  ;;  %v6854_v45 = vld [vmem:[%s9534_s21 + $0x60] sm:$0xff] }
0x173f   :  { %v7719_v27 = vpop.f32.mrb[54].mxu0 }
0x1740   :  { %v5419_v47 = vmul.f32 0.25, %v7719_v27  ;;  %v5409_v48 = vpop.f32.mrb[55].mxu0 }
0x1741   :  { %v5418_v51 = vmul.f32 0.25, %v5409_v48  ;;  %v6856_v48 = vld [vmem:[%s9534_s21 + $0x70] sm:$0xff] }
0x1742   :  { %6837 = vst.msk [vmem:[%s9516_s20 + $0x68] sm:$0x3] %vm597_vm4, %v5419_v47  ;;  %v5510_v24 = vadd.f32 %v5508_v35, %v5419_v47  ;;  %v8057_v35 = vpack.c.bf16 %v6855_v46, %v6854_v45 }
0x1743   :  { %6836 = vst.msk [vmem:[%s9516_s20 + $0x60] sm:$0xff] %vm509_vm2, %v5418_v51  ;;  %v5509_v52 = vadd.f32 %v5507_v50, %v5418_v51  ;;  %v7745_v41 = vpop.f32.mrb[58].mxu1  ;;  %v6857_v50 = vld [vmem:[%s9534_s21 + $0x78] sm:$0xff]  ;;  %v6868_v51 = vld [vmem:[%s9536_s22 + $0x60] sm:$0xff] }
0x1744   :  { %v5512_v53 = vsel %vm3952_vm7, -1e+09, %v5510_v24  ;;  %v5783_v43 = vadd.f32 %v7745_v41, %v6851_v42  ;;  %v5777_v44 = vpop.f32.mrb[59].mxu1  ;;  %v6869_v24 = vld [vmem:[%s9536_s22 + $0x68] sm:$0xff] }
0x1745   :  { %v5516_v54 = vsel %vm597_vm4, %v5512_v53, -inf  ;;  %v5511_v55 = vsel %vm3952_vm7, -1e+09, %v5509_v52  ;;  %v5778_v62 = vadd.f32 %v6851_v42, %v5777_v44  ;;  %v8060_v52 = vpack.c.bf16 %v6857_v50, %v6856_v48 }
0x1746   :  { %5517 = vmax.xlane.f32.xlu1 %v5516_v54  ;;  %v5513_v56 = vsel %vm509_vm2, %v5511_v55, -inf  ;;  %v6870_v54 = vld [vmem:[%s9536_s22 + $0x70] sm:$0xff] }
0x1747   :  { %5514 = vmax.xlane.f32.xlu0 %v5513_v56  ;;  %7797 = vmatprep.mubr.msk.f32.mxu1 %vm509_vm2, %v5778_v62 }
0x174b   :  { %v5944_v63 = vpop.f32.mrb[60].mxu1 }
0x174c   :  { %v7767_v1 = vpop.f32.mrb[61].mxu1 }
0x17d3   :  { %v5518_v57 = vpop.xlane.xlu1 %5517 }
0x17d4   :  { %v5520_v58 = vsub.f32 %v5512_v53, %v5518_v57  ;;  %v5515_v59 = vpop.xlane.xlu0 %5514  ;;  %v8068_v53 = vpack.c.bf16 %v6869_v24, %v6868_v51  ;;  %v6111_v57 = vpop.f32.mrb[62].mxu1 }
0x17d5   :  { %v5519_v22 = vsub.f32 %v5511_v55, %v5515_v59  ;;  %v6871_v55 = vld [vmem:[%s9536_s22 + $0x78] sm:$0xff]  ;;  %v7789_v59 = vpop.f32.mrb[63].mxu1 }
0x17d6   :  { %v5523_v60 = vmul.f32 1.442695, %v5520_v58  ;;  %v8072_v56 = vpack.c.bf16 %v6871_v55, %v6870_v54 }
0x17d7   :  { %v5521_v61 = vmul.f32 1.442695, %v5519_v22 }
0x17d8   :  { %8146 = vpow2.f32 %v5523_v60 }
0x17d9   :  { %8148 = vpow2.f32 %v5521_v61  ;;  %v6873_v61 = vld [vmem:[%s9510_s12 + $0x3] ss:$0 sm:$0xff] }
0x17e2   :  { %v8147_v0 = vpop.eup %8146 }
0x17e3   :  { %v8149_v20 = vpop.eup %8148  ;;  %v5528_v6 = vsel %vm597_vm4, %v8147_v0, 0.0 }
0x17e4   :  { %5529 = vadd.xlane.f32.xlu1 %v5528_v6  ;;  %v5525_v8 = vsel %vm509_vm2, %v8149_v20, 0.0 }
0x17e5   :  { %5526 = vadd.xlane.f32.xlu0 %v5525_v8 }
0x1871   :  { %v5530_v37 = vpop.xlane.xlu1 %5529 }
0x1872   :  { %8150 = vrcp.f32 %v5530_v37  ;;  %v5527_v26 = vpop.xlane.xlu0 %5526 }
0x1873   :  { %8152 = vrcp.f32 %v5527_v26 }
0x187c   :  { %v8151_v30 = vpop.eup %8150 }
0x187d   :  { %v8153_v28 = vpop.eup %8152  ;;  %v5534_v32 = vmul.f32 %v8151_v30, %v8147_v0 }
0x187e   :  { %v5533_v31 = vmul.f32 %v8153_v28, %v8149_v20 }
0x1880   :  { %7727 = vmatprep.mubr.msk.f32.mxu0 %vm509_vm2, %v5533_v31 }
0x1881   :  { %7728 = vmatmul.mubr.msk.f32.vlgmr.msra.gmra.mrb[56].mxu0 %vm509_vm2, %v5534_v32 }
0x1882   :  { %7731 = vmatpush3.msra.mxu0 %v6843_v15 }
0x1883   :  { %8056 = vmatprep.subr.bf16.mxu0 %v8182_v3 }
0x1954   :  { %v7729_v27 = vpop.f32.mrb[56].mxu0 }
0x1955   :  { %v5607_v47 = vpop.f32.mrb[57].mxu0 }
0x1956   :  { %7732 = vmatprep.mubr.msk.f32.mxu0 %vm509_vm2, %v5607_v47 }
0x1957   :  { %7733 = vmatmul.mubr.msk.f32.vlgmr.msra.gmra.mrb[48].mxu0 %vm509_vm2, %v7729_v27 }
0x1958   :  { %8058 = vmatpush3.bf16.msra.mxu0 %v8057_v35  ;;  %7754 = vmatprep.mubr.msk.f32.mxu0 %vm8183_vm1, %v8184_v4  ;;  %v6881_v4 = vld [vmem:[%s9511_s14 + $0x3] ss:$0 sm:$0xff] }
0x1959   :  { %8059 = vmatprep.subr.bf16.mxu0 %v8182_v3  ;;  %v6866_v3 = vld [vmem:[%s9514_s10 + $0x3] ss:$0 sm:$0xff] }
0x195a   :  { %v5945_v58 = vadd.f32 %v6866_v3, %v5944_v63  ;;  %v6893_v63 = vld [vmem:[%s9517_s15 + $0x18] sm:$0xff] }
0x195c   :  { %8061 = vmatpush3.bf16.msra.mxu0 %v8060_v52 }
0x195d   :  { %8069 = vmatprep.subr.bf16.mxu0 %v8068_v53 }
0x195f   :  { %7755 = vmatmul.mubr.msk.f32.vlgmr.msra.gmra.mrb[58].mxu0 %vm86_vm0, %v8918_v29  ;;  %v6112_v29 = vadd.f32 %v6881_v4, %v6111_v57 }
0x1960   :  { %8071 = vmatpush3.bf16.msra.mxu0 %v8068_v53  ;;  %7776 = vmatprep.mubr.msk.f32.mxu0 %vm86_vm0, %v8974_v2  ;;  %v6859_v2 = vld [vmem:[%s9512_s8 + $0x3] ss:$0 sm:$0xff] }
0x1961   :  { %8073 = vmatprep.subr.bf16.mxu0 %v8072_v56 }
0x1964   :  { %8075 = vmatpush3.bf16.msra.mxu0 %v8072_v56  ;;  %v8180_v56 = vld [vmem:[%s9533_s29 + $0x18] sm:$0x3] }
0x1965   :  { %7790 = vmatprep.subr.msk.mxu0 %vm509_vm2, %v6112_v29 }
0x1967   :  { %7777 = vmatmul.mubr.msk.f32.vlgmr.msra.gmra.mrb[60].mxu0 %vm86_vm0, %v8983_v5 }
0x196d   :  { %7791 = vmatpush3.xpose.msk.msra.mxu0 %vm509_vm2, %v6112_v29 }
0x196e   :  { %7800 = vmatprep.subr.mxu0 %v5945_v58 }
0x1a32   :  { %v5863_v5 = vpop.f32.mrb[58].mxu0 }
0x1a33   :  { %v5864_v22 = vadd.f32 %v6859_v2, %v5863_v5  ;;  %v7756_v60 = vpop.f32.mrb[59].mxu0 }
0x1a35   :  { %7795 = vmatprep.subr.msk.mxu1 %vm509_vm2, %v5864_v22 }
0x1a36   :  { %7796 = vmatpush3.xpose.msk.msra.mxu1 %vm509_vm2, %v5864_v22 }
0x1a39   :  { %7798 = vmatmul.mubr.msk.f32.vlgmr.msra.gmra.mrb[64].mxu1 %vm509_vm2, %v5783_v43  ;;  %v3263_v43 = vadd.f32 %v6712_v39, %v3255_v34 }
0x1a3a   :  { %v7778_v0 = vpop.f32.mrb[60].mxu0 }
0x1a3b   :  { %v6025_v20 = vpop.f32.mrb[61].mxu0  ;;  %v6031_v8 = vadd.f32 %v7778_v0, %v6873_v61  ;;  %v3268_v62 = vsel %vm3267_vm8, %v3263_v43, 0.0 }
0x1a3c   :  { %v6026_v6 = vadd.f32 %v6873_v61, %v6025_v20 }
0x1a3e   :  { %7792 = vmatprep.mubr.msk.f32.mxu0 %vm509_vm2, %v6026_v6 }
0x1a3f   :  { %7793 = vmatmul.mubr.msk.f32.vlgmr.msra.gmra.mrb[62].mxu0 %vm509_vm2, %v6031_v8 }
0x1a40   :  { %7801 = vmatpush3.msra.mxu0 %v5945_v58  ;;  %v8181_v58 = vld [vmem:[%s9533_s29 + $0x10] sm:$0xff] }
0x1a41   :  { %7805 = vmatprep.subr.mxu0 %v6893_v63 }
0x1b0c   :  { %v7799_v10 = vpop.f32.mrb[64].mxu1 }
0x1b0d   :  { %v6279_v23 = vpop.f32.mrb[65].mxu1  ;;  %v6289_v12 = vmul.f32 0.25, %v7799_v10 }
0x1b0e   :  { %v6288_v15 = vmul.f32 0.25, %v6279_v23 }
0x1b12   :  { %v7794_v11 = vpop.f32.mrb[62].mxu0 }
0x1b13   :  { %v6200_v13 = vmul.f32 0.25, %v7794_v11  ;;  %v6190_v14 = vpop.f32.mrb[63].mxu0 }
0x1b14   :  { %v6199_v17 = vmul.f32 0.25, %v6190_v14 }
0x1b15   :  { %6887 = vst.msk [vmem:[%s9516_s20 + $0x78] sm:$0x3] %vm597_vm4, %v6200_v13  ;;  %v6291_v18 = vadd.f32 %v6289_v12, %v6200_v13 }
0x1b16   :  { %6886 = vst.msk [vmem:[%s9516_s20 + $0x70] sm:$0xff] %vm509_vm2, %v6199_v17  ;;  %v6290_v19 = vadd.f32 %v6288_v15, %v6199_v17 }
0x1b17   :  { %v6293_v21 = vsel %vm3952_vm7, -1e+09, %v6291_v18 }
0x1b18   :  { %v6297_v25 = vsel %vm597_vm4, %v6293_v21, -inf  ;;  %v6292_v49 = vsel %vm3952_vm7, -1e+09, %v6290_v19 }
0x1b19   :  { %6298 = vmax.xlane.f32.xlu1 %v6297_v25  ;;  %v6294_v37 = vsel %vm509_vm2, %v6292_v49, -inf }
0x1b1a   :  { %6295 = vmax.xlane.f32.xlu0 %v6294_v37 }
0x1ba6   :  { %v6299_v26 = vpop.xlane.xlu1 %6298 }
0x1ba7   :  { %v6301_v30 = vsub.f32 %v6293_v21, %v6299_v26  ;;  %v6296_v28 = vpop.xlane.xlu0 %6295 }
0x1ba8   :  { %v6300_v31 = vsub.f32 %v6292_v49, %v6296_v28 }
0x1ba9   :  { %v6304_v32 = vmul.f32 1.442695, %v6301_v30 }
0x1baa   :  { %v6302_v7 = vmul.f32 1.442695, %v6300_v31 }
0x1bab   :  { %8154 = vpow2.f32 %v6304_v32 }
0x1bac   :  { %8156 = vpow2.f32 %v6302_v7 }
0x1bb5   :  { %v8155_v40 = vpop.eup %8154 }
0x1bb6   :  { %v8157_v41 = vpop.eup %8156  ;;  %v6309_v42 = vsel %vm597_vm4, %v8155_v40, 0.0 }
0x1bb7   :  { %6310 = vadd.xlane.f32.xlu1 %v6309_v42  ;;  %v6306_v44 = vsel %vm509_vm2, %v8157_v41, 0.0 }
0x1bb8   :  { %6307 = vadd.xlane.f32.xlu0 %v6306_v44 }
0x1bbb   :  { %3269 = vadd.xlane.f32.xlu1 %v3268_v62 }
0x1bbc   :  { %3265 = vadd.xlane.f32.xlu0 %v3264_v16 }
0x1c44   :  { %v6311_v1 = vpop.xlane.xlu1 %6310 }
0x1c45   :  { %8158 = vrcp.f32 %v6311_v1  ;;  %v6308_v45 = vpop.xlane.xlu0 %6307 }
0x1c46   :  { %8160 = vrcp.f32 %v6308_v45 }
0x1c48   :  { %v3270_v51 = vpop.xlane.xlu1 %3269 }
0x1c49   :  { %v3266_v24 = vpop.xlane.xlu0 %3265  ;;  %v3273_v52 = vmul.f32 0.03125, %v3270_v51 }
0x1c4a   :  { %v3272_v53 = vmul.f32 0.03125, %v3266_v24 }
0x1c4b   :  { %v3275_v55 = vsub.f32 %v3263_v43, %v3273_v52  ;;  %v6714_v43 = vld [vmem:[%s9520_s18] ss:$0 sm:$0xff] }
0x1c4c   :  { %v3274_v57 = vsub.f32 %v3262_v9, %v3272_v53 }
0x1c4d   :  { %v3277_v22 = vmul.f32 %v3275_v55, %v3275_v55 }
0x1c4e   :  { %v3276_v61 = vmul.f32 %v3274_v57, %v3274_v57 }
0x1c4f   :  { %v8159_v46 = vpop.eup %8158  ;;  %v3281_v0 = vsel %vm3267_vm8, %v3277_v22, 0.0 }
0x1c50   :  { %v8161_v27 = vpop.eup %8160  ;;  %v6315_v47 = vmul.f32 %v8159_v46, %v8155_v40  ;;  %v3278_v20 = vsel %vm86_vm0, %v3276_v61, 0.0  ;;  %v6713_v40 = vld [vmem:[%s9519_s17] ss:$0 sm:$0xff] }
0x1c51   :  { %v6314_v35 = vmul.f32 %v8161_v27, %v8157_v41 }
0x1c53   :  { %7802 = vmatprep.mubr.msk.f32.mxu0 %vm509_vm2, %v6314_v35 }
0x1c54   :  { %7803 = vmatmul.mubr.msk.f32.vlgmr.msra.gmra.mrb[64].mxu0 %vm509_vm2, %v6315_v47 }
0x1c55   :  { %7806 = vmatpush3.msra.mxu0 %v6893_v63 }
0x1d27   :  { %v7804_v48 = vpop.f32.mrb[64].mxu0 }
0x1d28   :  { %v6388_v50 = vpop.f32.mrb[65].mxu0 }
0x1d29   :  { %7807 = vmatprep.mubr.msk.f32.mxu0 %vm509_vm2, %v6388_v50 }
0x1d2a   :  { %7808 = vmatmul.mubr.msk.f32.vlgmr.msra.gmra.mrb[48].mxu0 %vm509_vm2, %v7804_v48 }
0x1dfd   :  { %v7809_v54 = vpop.f32.mrb[48].mxu0 }
0x1dfe   :  { %v6482_v3 = vadd.f32 %v8180_v56, %v7809_v54  ;;  %v6470_v4 = vpop.f32.mrb[49].mxu0 }
0x1dff   :  { %v6481_v29 = vadd.f32 %v8181_v58, %v6470_v4 }
0x1e00   :  { %v6484_v59 = vadd.f32 %v6712_v39, %v6482_v3 }
0x1e01   :  { %v6483_v2 = vadd.f32 %v6712_v39, %v6481_v29 }
0x1e02   :  { %v6488_v5 = vsel %vm3267_vm8, %v6484_v59, 0.0 }
0x1e03   :  { %6489 = vadd.xlane.f32.xlu1 %v6488_v5  ;;  %v6485_v60 = vsel %vm86_vm0, %v6483_v2, 0.0 }
0x1e04   :  { %6486 = vadd.xlane.f32.xlu0 %v6485_v60 }
0x1e07   :  { %3282 = vadd.xlane.f32.xlu1 %v3281_v0 }
0x1e08   :  { %3279 = vadd.xlane.f32.xlu0 %v3278_v20 }
0x1e90   :  { %v6490_v6 = vpop.xlane.xlu1 %6489 }
0x1e91   :  { %v6492_v8 = vmul.f32 0.03125, %v6490_v6  ;;  %v6487_v10 = vpop.xlane.xlu0 %6486 }
0x1e92   :  { %v6491_v23 = vmul.f32 0.03125, %v6487_v10 }
0x1e93   :  { %v9467_v11 = vsub.f32 %v6484_v59, %v6492_v8 }
0x1e94   :  { %v9469_v12 = vsub.f32 %v6483_v2, %v6491_v23  ;;  %v3283_v13 = vpop.xlane.xlu1 %3282 }
0x1e95   :  { %v3285_v14 = vmul.f32 0.032258064, %v3283_v13  ;;  %v3280_v15 = vpop.xlane.xlu0 %3279  ;;  %v6496_v17 = vmul.f32 %v9467_v11, %v9467_v11 }
0x1e96   :  { %v3284_v18 = vmul.f32 0.032258064, %v3280_v15  ;;  %v6495_v19 = vmul.f32 %v9469_v12, %v9469_v12 }
0x1e97   :  { %8162 = vrsqrt.f32 %v3285_v14  ;;  %v6500_v21 = vsel %vm3267_vm8, %v6496_v17, 0.0  ;;  %vm3295_vm9 = vcmp.eq.f32.partialorder %v3285_v14, inf  ;;  %v3298_v30 = vand.u32 2147483648, %v3285_v14 }
0x1e98   :  { %8164 = vrsqrt.f32 %v3284_v18  ;;  %v6497_v25 = vsel %vm86_vm0, %v6495_v19, 0.0  ;;  %6501 = vadd.xlane.f32.xlu1 %v6500_v21  ;;  %vm3297_vm10 = vcmp.eq.f32.partialorder %v3285_v14, 0.0  ;;  %vm3288_vm11 = vcmp.eq.f32.partialorder %v3284_v18, inf }
0x1e99   :  { %6498 = vadd.xlane.f32.xlu0 %v6497_v25  ;;  %v3291_v32 = vand.u32 2147483648, %v3284_v18  ;;  %vm3290_vm12 = vcmp.eq.f32.partialorder %v3284_v18, 0.0 }
0x1ea1   :  { %v8163_v49 = vpop.eup %8162 }
0x1ea2   :  { %v8165_v37 = vpop.eup %8164  ;;  %v3294_v26 = vmul.f32 %v8163_v49, %v3285_v14 }
0x1ea3   :  { %v3287_v28 = vmul.f32 %v8165_v37, %v3284_v18 }
0x1ea4   :  { %v3296_v31 = vsel %vm3295_vm9, %v3285_v14, %v3294_v26 }
0x1ea5   :  { %v3299_v7 = vsel %vm3297_vm10, %v3298_v30, %v3296_v31  ;;  %v3289_v33 = vsel %vm3288_vm11, %v3284_v18, %v3287_v28 }
0x1ea6   :  { %v3301_v34 = vadd.f32 1e-06, %v3299_v7  ;;  %v3292_v36 = vsel %vm3290_vm12, %v3291_v32, %v3289_v33 }
0x1ea7   :  { %v3300_v38 = vadd.f32 1e-06, %v3292_v36 }
0x1ea8   :  { %8166 = vrcp.f32 %v3301_v34 }
0x1ea9   :  { %8168 = vrcp.f32 %v3300_v38 }
0x1eb2   :  { %v8167_v39 = vpop.eup %8166 }
0x1eb3   :  { %v8169_v41 = vpop.eup %8168  ;;  %v3305_v42 = vmul.f32 %v8167_v39, %v3275_v55 }
0x1eb4   :  { %v3304_v44 = vmul.f32 %v8169_v41, %v3274_v57 }
0x1eb5   :  { %v3313_v9 = vmul.f32 %v6713_v40, %v3305_v42 }
0x1eb6   :  { %v3312_v62 = vmul.f32 %v6713_v40, %v3304_v44 }
0x1eb7   :  { %v3321_v16 = vadd.f32 %v6714_v43, %v3313_v9 }
0x1eb8   :  { %v3320_v63 = vadd.f32 %v6714_v43, %v3312_v62 }
0x1eb9   :  { %3323 = vst.msk [vmem:[%s9521_s19 + $0x8] sm:$0x3] %vm3267_vm8, %v3321_v16 }
0x1eba   :  { %3322 = vst.msk [vmem:[%s9521_s19] sm:$0xff] %vm86_vm0, %v3320_v63 }
0x1f25   :  { %v6502_v1 = vpop.xlane.xlu1 %6501 }
0x1f26   :  { %v6499_v45 = vpop.xlane.xlu0 %6498  ;;  %v6504_v46 = vmul.f32 0.032258064, %v6502_v1 }
0x1f27   :  { %v6503_v27 = vmul.f32 0.032258064, %v6499_v45 }
0x1f28   :  { %8170 = vrsqrt.f32 %v6504_v46  ;;  %vm6514_vm13 = vcmp.eq.f32.partialorder %v6504_v46, inf  ;;  %v6517_v50 = vand.u32 2147483648, %v6504_v46  ;;  %vm6516_vm14 = vcmp.eq.f32.partialorder %v6504_v46, 0.0 }
0x1f29   :  { %8172 = vrsqrt.f32 %v6503_v27  ;;  %vm6507_vm15 = vcmp.eq.f32.partialorder %v6503_v27, inf  ;;  %v6510_v52 = vand.u32 2147483648, %v6503_v27  ;;  %vm6509_vm1 = vcmp.eq.f32.partialorder %v6503_v27, 0.0 }
0x1f32   :  { %v8171_v35 = vpop.eup %8170 }
0x1f33   :  { %v8173_v47 = vpop.eup %8172  ;;  %v6513_v48 = vmul.f32 %v8171_v35, %v6504_v46 }
0x1f34   :  { %v6506_v51 = vmul.f32 %v8173_v47, %v6503_v27 }
0x1f35   :  { %v6515_v24 = vsel %vm6514_vm13, %v6504_v46, %v6513_v48 }
0x1f36   :  { %v6518_v53 = vsel %vm6516_vm14, %v6517_v50, %v6515_v24  ;;  %v6508_v54 = vsel %vm6507_vm15, %v6503_v27, %v6506_v51 }
0x1f37   :  { %v6520_v55 = vadd.f32 1e-06, %v6518_v53  ;;  %v6511_v56 = vsel %vm6509_vm1, %v6510_v52, %v6508_v54 }
0x1f38   :  { %v6519_v3 = vadd.f32 1e-06, %v6511_v56 }
0x1f39   :  { %8174 = vrcp.f32 %v6520_v55 }
0x1f3a   :  { %8176 = vrcp.f32 %v6519_v3 }
0x1f43   :  { %v8175_v4 = vpop.eup %8174 }
0x1f44   :  { %v8177_v57 = vpop.eup %8176  ;;  %v6524_v58 = vmul.f32 %v8175_v4, %v9467_v11 }
0x1f45   :  { %v6523_v29 = vmul.f32 %v8177_v57, %v9469_v12 }
0x1f46   :  { %v6526_v59 = vmul.f32 %v6713_v40, %v6524_v58 }
0x1f47   :  { %v6525_v2 = vmul.f32 %v6713_v40, %v6523_v29 }
0x1f48   :  { %v6528_v5 = vadd.f32 %v6714_v43, %v6526_v59 }
0x1f49   :  { %v6527_v22 = vadd.f32 %v6714_v43, %v6525_v2 }
0x1f4a   :  { %6897 = vst.msk [vmem:[%s9521_s19 + $0x18] sm:$0x3] %vm3267_vm8, %v6528_v5 }
0x1f4b   :  { %6896 = vst.msk [vmem:[%s9521_s19 + $0x10] sm:$0xff] %vm86_vm0, %v6527_v22 }

</bundles_post_ra>
